<compile_context>
chip_gen: v6e
topology: v6e:2x2x1
jax: 0.10.0
libtpu: 0.0.40
codegen_flags: <defaults>
</compile_context>

<pallas_src>
import numpy as np
import jax
import jax.numpy as jnp
from jax.experimental import pallas as pl
from jax.experimental.pallas import tpu as pltpu

_BN_EPS = 1e-5
_INV_SQRT2 = 0.7071067811865476


# ----------------------------- in-kernel helpers -----------------------------

def _erf(x):
    # Abramowitz & Stegun 7.1.26 (exp + elementwise only; divide goes to the EUP).
    p = 0.3275911
    a1, a2, a3, a4, a5 = (0.254829592, -0.284496736, 1.421413741,
                          -1.453152027, 1.061405429)
    sgn = jnp.where(x >= 0.0, 1.0, -1.0)
    ax = jnp.abs(x)
    t = pl.reciprocal(1.0 + p * ax, approx=True)
    poly = ((((a5 * t + a4) * t + a3) * t + a2) * t + a1) * t
    return sgn * (1.0 - poly * jnp.exp(-ax * ax))


def _gelu(x):
    # exact (erf-based) GELU, matching nn.GELU() default
    return 0.5 * x * (1.0 + _erf(x * _INV_SQRT2))


def _batchnorm_rows(y, g, b):
    # y: (R, C). Training-mode nn.BatchNorm2d over the R = N*H*W rows (biased variance).
    mean = jnp.mean(y, axis=0, keepdims=True)
    var = jnp.mean(jnp.square(y - mean), axis=0, keepdims=True)
    return (y - mean) * jax.lax.rsqrt(var + _BN_EPS) * g + b


def _conv3x3_im2col(h, w_bf16, pad_ref):
    """3x3 'same' conv of h (N,H,W,Cin) as ONE MXU matmul.

    The halo is built in a zero-initialised VMEM scratch (no HBM-side jnp.pad);
    the 9 shifted taps are concatenated on the lane axis -> (N*H*W, 9*Cin) and
    contracted against the (9*Cin, Cout) bf16 weight with an f32 accumulator.
    """
    N, H, W, Cin = h.shape
    pad_ref[...] = jnp.zeros_like(pad_ref)
    pad_ref[:, 1:H + 1, 1:W + 1, :] = h
    cols = []
    for dy in range(3):
        for dx in range(3):
            cols.append(pad_ref[:, dy:dy + H, dx:dx + W, :].reshape(N * H * W, Cin))
    patches = jnp.concatenate(cols, axis=-1).astype(jnp.bfloat16)   # (N*H*W, 9*Cin)
    return jnp.dot(patches, w_bf16, preferred_element_type=jnp.float32)  # (N*H*W, Cout) f32


# --------------------------------- kernels -----------------------------------

def _pool_conv_bn_gelu_kernel(xw_ref, w_ref, g_ref, b_ref, h0_ref, t_ref, pad_ref):
    # xw_ref: (2, 2, N, H/2, W/2, Cin) -- leading dims are the 2x2 pool-window offsets
    h0 = jnp.maximum(jnp.maximum(xw_ref[0, 0], xw_ref[0, 1]),
                     jnp.maximum(xw_ref[1, 0], xw_ref[1, 1]))
    h0_ref[...] = h0
    N, Hh, Wh, _ = h0.shape
    acc = _conv3x3_im2col(h0, w_ref[...], pad_ref)
    y = _gelu(_batchnorm_rows(acc, g_ref[...], b_ref[...]))
    t_ref[...] = y.reshape(N, Hh, Wh, -1)


def _conv_bn_addres_gelu_kernel(x_ref, res_ref, w_ref, g_ref, b_ref, o_ref, pad_ref):
    # residual tail of ConvBlock(residual=True): gelu(res + BN(conv(x)))
    N, H, W, _ = x_ref.shape
    acc = _conv3x3_im2col(x_ref[...], w_ref[...], pad_ref)
    y = _batchnorm_rows(acc, g_ref[...], b_ref[...])
    y = _gelu(res_ref[...].reshape(N * H * W, -1) + y)
    o_ref[...] = y.reshape(N, H, W, -1)


def _conv_bn_gelu_kernel(x_ref, w_ref, g_ref, b_ref, o_ref, pad_ref):
    N, H, W, _ = x_ref.shape
    acc = _conv3x3_im2col(x_ref[...], w_ref[...], pad_ref)
    y = _gelu(_batchnorm_rows(acc, g_ref[...], b_ref[...]))
    o_ref[...] = y.reshape(N, H, W, -1)


def _conv_bn_bn_kernel(x_ref, w_ref, g1_ref, b1_ref, g2_ref, b2_ref, o_ref, pad_ref):
    # conv2b + BN2b, then the module's final BatchNorm2d fused into the same epilogue
    N, H, W, _ = x_ref.shape
    acc = _conv3x3_im2col(x_ref[...], w_ref[...], pad_ref)
    y = _batchnorm_rows(acc, g1_ref[...], b1_ref[...])
    y = _batchnorm_rows(y, g2_ref[...], b2_ref[...])
    o_ref[...] = y.reshape(N, H, W, -1)


# ------------------------------ pallas wrappers -------------------------------

def _vmem():
    return pl.BlockSpec(memory_space=pltpu.MemorySpace.VMEM)


def pool_conv_bn_gelu(xw, w, g, b):
    _, _, N, Hh, Wh, Cin = xw.shape
    Cout = w.shape[-1]
    return pl.pallas_call(
        _pool_conv_bn_gelu_kernel,
        out_shape=(jax.ShapeDtypeStruct((N, Hh, Wh, Cin), jnp.float32),
                   jax.ShapeDtypeStruct((N, Hh, Wh, Cout), jnp.float32)),
        in_specs=[_vmem()] * 4,
        out_specs=(_vmem(), _vmem()),
        scratch_shapes=[pltpu.VMEM((N, Hh + 2, Wh + 2, Cin), jnp.float32)],
    )(xw, w, g, b)


def conv_bn_addres_gelu(x, res, w, g, b):
    N, H, W, Cin = x.shape
    Cout = w.shape[-1]
    return pl.pallas_call(
        _conv_bn_addres_gelu_kernel,
        out_shape=jax.ShapeDtypeStruct((N, H, W, Cout), jnp.float32),
        in_specs=[_vmem()] * 5,
        out_specs=_vmem(),
        scratch_shapes=[pltpu.VMEM((N, H + 2, W + 2, Cin), jnp.float32)],
    )(x, res, w, g, b)


def conv_bn_gelu(x, w, g, b):
    N, H, W, Cin = x.shape
    Cout = w.shape[-1]
    return pl.pallas_call(
        _conv_bn_gelu_kernel,
        out_shape=jax.ShapeDtypeStruct((N, H, W, Cout), jnp.float32),
        in_specs=[_vmem()] * 4,
        out_specs=_vmem(),
        scratch_shapes=[pltpu.VMEM((N, H + 2, W + 2, Cin), jnp.float32)],
    )(x, w, g, b)


def conv_bn_bn(x, w, g1, b1, g2, b2):
    N, H, W, Cin = x.shape
    Cout = w.shape[-1]
    return pl.pallas_call(
        _conv_bn_bn_kernel,
        out_shape=jax.ShapeDtypeStruct((N, H, W, Cout), jnp.float32),
        in_specs=[_vmem()] * 6,
        out_specs=_vmem(),
        scratch_shapes=[pltpu.VMEM((N, H + 2, W + 2, Cin), jnp.float32)],
    )(x, w, g1, b1, g2, b2)


# ------------------------------ DownSample model ------------------------------

def init_downsample_params(key, in_channels, out_channels):
    def conv_w(k, cin, cout):
        # torch layout (Cout, Cin, 3, 3) -> im2col layout (9*Cin, Cout); bf16 for the MXU.
        w = jax.random.normal(k, (cout, cin, 3, 3), jnp.float32) / np.sqrt(9.0 * cin)
        return jnp.transpose(w, (2, 3, 1, 0)).reshape(9 * cin, cout).astype(jnp.bfloat16)

    def bn_p(k, c):
        kg, kb = jax.random.split(k)
        gamma = 1.0 + 0.1 * jax.random.normal(kg, (1, c), jnp.float32)
        beta = 0.1 * jax.random.normal(kb, (1, c), jnp.float32)
        return gamma, beta

    ks = jax.random.split(key, 9)
    return {
        # ConvBlock(in, in, residual=True): mid = in
        "w1a": conv_w(ks[0], in_channels, in_channels),  "bn1a": bn_p(ks[1], in_channels),
        "w1b": conv_w(ks[2], in_channels, in_channels),  "bn1b": bn_p(ks[3], in_channels),
        # ConvBlock(in, out): mid = out
        "w2a": conv_w(ks[4], in_channels, out_channels), "bn2a": bn_p(ks[5], out_channels),
        "w2b": conv_w(ks[6], out_channels, out_channels),"bn2b": bn_p(ks[7], out_channels),
        # final BatchNorm2d(out)
        "bn3": bn_p(ks[8], out_channels),
    }


@jax.jit
def downsample_forward(x_nchw, params):
    # x_nchw: (N, Cin, H, W) like torch. One layout op exposes the 2x2 pool window AND
    # puts channels on lanes: (N,C,H,W) -> (2, 2, N, H/2, W/2, C).
    x = x_nchw.astype(jnp.float32)
    N, C, H, W = x.shape
    xw = x.reshape(N, C, H // 2, 2, W // 2, 2).transpose(3, 5, 0, 2, 4, 1)

    # Kernel A: maxpool + conv1a + BN1a + GELU
    h0, t = pool_conv_bn_gelu(xw, params["w1a"], *params["bn1a"])
    # Kernel B: conv1b + BN1b + residual add + GELU  (ConvBlock(in,in,residual=True) tail)
    h1 = conv_bn_addres_gelu(t, h0, params["w1b"], *params["bn1b"])
    # Kernel C: conv2a + BN2a + GELU
    t2 = conv_bn_gelu(h1, params["w2a"], *params["bn2a"])
    # Kernel D: conv2b + BN2b + final BatchNorm2d
    out = conv_bn_bn(t2, params["w2b"], *params["bn2b"], *params["bn3"])

    # back to NCHW to match the torch output convention
    return jnp.transpose(out, (0, 3, 1, 2))


if __name__ == "__main__":
    key = jax.random.PRNGKey(0)
    kx, kp = jax.random.split(key)

    N, Cin, H, W = 2, 4, 16, 16
    Cout = 8

    x = jax.random.normal(kx, (N, Cin, H, W), jnp.float32)
    params = init_downsample_params(kp, Cin, Cout)

    out = downsample_forward(x, params)
    out = jax.block_until_ready(out)

    assert out.shape == (N, Cout, H // 2, W // 2), out.shape
    assert bool(jnp.all(jnp.isfinite(out)))
    print("KERNEL_OK")
</pallas_src>

<mosaic_0001>
module attributes {stable_mosaic.version = 11 : i64} {
  func.func @_pool_conv_bn_gelu_kernel(%arg0: memref<2x2x2x8x8x4xf32, #tpu.memory_space<vmem>>, %arg1: memref<36x4xbf16, #tpu.memory_space<vmem>>, %arg2: memref<1x4xf32, #tpu.memory_space<vmem>>, %arg3: memref<1x4xf32, #tpu.memory_space<vmem>>, %arg4: memref<2x8x8x4xf32, #tpu.memory_space<vmem>>, %arg5: memref<2x8x8x4xf32, #tpu.memory_space<vmem>>, %arg6: memref<2x10x10x4xf32, #tpu.memory_space<vmem>>) attributes {dimension_semantics = [], scalar_prefetch = 0 : i64, scratch_operands = 1 : i64, tpu.core_type = #tpu.core_type<tc>} {
    %c0 = arith.constant 0 : index
    %c0_0 = arith.constant 0 : index
    %c0_1 = arith.constant 0 : index
    %c0_2 = arith.constant 0 : index
    %c0_3 = arith.constant 0 : index
    %c0_4 = arith.constant 0 : index
    %0 = vector.load %arg0[%c0, %c0_0, %c0_1, %c0_2, %c0_3, %c0_4] : memref<2x2x2x8x8x4xf32, #tpu.memory_space<vmem>>, vector<1x1x2x8x8x4xf32>
    %1 = vector.shape_cast %0 : vector<1x1x2x8x8x4xf32> to vector<2x8x8x4xf32>
    %c0_5 = arith.constant 0 : index
    %c1 = arith.constant 1 : index
    %c0_6 = arith.constant 0 : index
    %c0_7 = arith.constant 0 : index
    %c0_8 = arith.constant 0 : index
    %c0_9 = arith.constant 0 : index
    %2 = vector.load %arg0[%c0_5, %c1, %c0_6, %c0_7, %c0_8, %c0_9] : memref<2x2x2x8x8x4xf32, #tpu.memory_space<vmem>>, vector<1x1x2x8x8x4xf32>
    %3 = vector.shape_cast %2 : vector<1x1x2x8x8x4xf32> to vector<2x8x8x4xf32>
    %4 = arith.maximumf %1, %3 : vector<2x8x8x4xf32>
    %c1_10 = arith.constant 1 : index
    %c0_11 = arith.constant 0 : index
    %c0_12 = arith.constant 0 : index
    %c0_13 = arith.constant 0 : index
    %c0_14 = arith.constant 0 : index
    %c0_15 = arith.constant 0 : index
    %5 = vector.load %arg0[%c1_10, %c0_11, %c0_12, %c0_13, %c0_14, %c0_15] : memref<2x2x2x8x8x4xf32, #tpu.memory_space<vmem>>, vector<1x1x2x8x8x4xf32>
    %6 = vector.shape_cast %5 : vector<1x1x2x8x8x4xf32> to vector<2x8x8x4xf32>
    %c1_16 = arith.constant 1 : index
    %c1_17 = arith.constant 1 : index
    %c0_18 = arith.constant 0 : index
    %c0_19 = arith.constant 0 : index
    %c0_20 = arith.constant 0 : index
    %c0_21 = arith.constant 0 : index
    %7 = vector.load %arg0[%c1_16, %c1_17, %c0_18, %c0_19, %c0_20, %c0_21] : memref<2x2x2x8x8x4xf32, #tpu.memory_space<vmem>>, vector<1x1x2x8x8x4xf32>
    %8 = vector.shape_cast %7 : vector<1x1x2x8x8x4xf32> to vector<2x8x8x4xf32>
    %9 = arith.maximumf %6, %8 : vector<2x8x8x4xf32>
    %10 = arith.maximumf %4, %9 : vector<2x8x8x4xf32>
    %c0_22 = arith.constant 0 : index
    %c0_23 = arith.constant 0 : index
    %c0_24 = arith.constant 0 : index
    %c0_25 = arith.constant 0 : index
    %11 = vector.load %arg4[%c0_22, %c0_23, %c0_24, %c0_25] : memref<2x8x8x4xf32, #tpu.memory_space<vmem>>, vector<2x8x8x4xf32>
    tpu.vector_store %arg4[%c0_22, %c0_23, %c0_24, %c0_25], %10 {strides = array<i32>} : memref<2x8x8x4xf32, #tpu.memory_space<vmem>>, vector<2x8x8x4xf32>,
    %c0_26 = arith.constant 0 : index
    %c0_27 = arith.constant 0 : index
    %12 = vector.load %arg1[%c0_26, %c0_27] : memref<36x4xbf16, #tpu.memory_space<vmem>>, vector<36x4xbf16>
    %cst = arith.constant 0.000000e+00 : f32
    %13 = vector.broadcast %cst : f32 to vector<2x10x10x4xf32>
    %c0_28 = arith.constant 0 : index
    %c0_29 = arith.constant 0 : index
    %c0_30 = arith.constant 0 : index
    %c0_31 = arith.constant 0 : index
    %14 = vector.load %arg6[%c0_28, %c0_29, %c0_30, %c0_31] : memref<2x10x10x4xf32, #tpu.memory_space<vmem>>, vector<2x10x10x4xf32>
    tpu.vector_store %arg6[%c0_28, %c0_29, %c0_30, %c0_31], %13 {strides = array<i32>} : memref<2x10x10x4xf32, #tpu.memory_space<vmem>>, vector<2x10x10x4xf32>,
    %c0_32 = arith.constant 0 : index
    %c1_33 = arith.constant 1 : index
    %c1_34 = arith.constant 1 : index
    %c0_35 = arith.constant 0 : index
    %15 = vector.load %arg6[%c0_32, %c1_33, %c1_34, %c0_35] : memref<2x10x10x4xf32, #tpu.memory_space<vmem>>, vector<2x8x8x4xf32>
    tpu.vector_store %arg6[%c0_32, %c1_33, %c1_34, %c0_35], %10 {strides = array<i32>} : memref<2x10x10x4xf32, #tpu.memory_space<vmem>>, vector<2x8x8x4xf32>,
    %c0_36 = arith.constant 0 : index
    %c0_37 = arith.constant 0 : index
    %c0_38 = arith.constant 0 : index
    %c0_39 = arith.constant 0 : index
    %16 = vector.load %arg6[%c0_36, %c0_37, %c0_38, %c0_39] : memref<2x10x10x4xf32, #tpu.memory_space<vmem>>, vector<2x8x8x4xf32>
    %17 = vector.shape_cast %16 : vector<2x8x8x4xf32> to vector<128x4xf32>
    %c0_40 = arith.constant 0 : index
    %c0_41 = arith.constant 0 : index
    %c1_42 = arith.constant 1 : index
    %c0_43 = arith.constant 0 : index
    %18 = vector.load %arg6[%c0_40, %c0_41, %c1_42, %c0_43] : memref<2x10x10x4xf32, #tpu.memory_space<vmem>>, vector<2x8x8x4xf32>
    %19 = vector.shape_cast %18 : vector<2x8x8x4xf32> to vector<128x4xf32>
    %c0_44 = arith.constant 0 : index
    %c0_45 = arith.constant 0 : index
    %c2 = arith.constant 2 : index
    %c0_46 = arith.constant 0 : index
    %20 = vector.load %arg6[%c0_44, %c0_45, %c2, %c0_46] : memref<2x10x10x4xf32, #tpu.memory_space<vmem>>, vector<2x8x8x4xf32>
    %21 = vector.shape_cast %20 : vector<2x8x8x4xf32> to vector<128x4xf32>
    %c0_47 = arith.constant 0 : index
    %c1_48 = arith.constant 1 : index
    %c0_49 = arith.constant 0 : index
    %c0_50 = arith.constant 0 : index
    %22 = vector.load %arg6[%c0_47, %c1_48, %c0_49, %c0_50] : memref<2x10x10x4xf32, #tpu.memory_space<vmem>>, vector<2x8x8x4xf32>
    %23 = vector.shape_cast %22 : vector<2x8x8x4xf32> to vector<128x4xf32>
    %c0_51 = arith.constant 0 : index
    %c1_52 = arith.constant 1 : index
    %c1_53 = arith.constant 1 : index
    %c0_54 = arith.constant 0 : index
    %24 = vector.load %arg6[%c0_51, %c1_52, %c1_53, %c0_54] : memref<2x10x10x4xf32, #tpu.memory_space<vmem>>, vector<2x8x8x4xf32>
    %25 = vector.shape_cast %24 : vector<2x8x8x4xf32> to vector<128x4xf32>
    %c0_55 = arith.constant 0 : index
    %c1_56 = arith.constant 1 : index
    %c2_57 = arith.constant 2 : index
    %c0_58 = arith.constant 0 : index
    %26 = vector.load %arg6[%c0_55, %c1_56, %c2_57, %c0_58] : memref<2x10x10x4xf32, #tpu.memory_space<vmem>>, vector<2x8x8x4xf32>
    %27 = vector.shape_cast %26 : vector<2x8x8x4xf32> to vector<128x4xf32>
    %c0_59 = arith.constant 0 : index
    %c2_60 = arith.constant 2 : index
    %c0_61 = arith.constant 0 : index
    %c0_62 = arith.constant 0 : index
    %28 = vector.load %arg6[%c0_59, %c2_60, %c0_61, %c0_62] : memref<2x10x10x4xf32, #tpu.memory_space<vmem>>, vector<2x8x8x4xf32>
    %29 = vector.shape_cast %28 : vector<2x8x8x4xf32> to vector<128x4xf32>
    %c0_63 = arith.constant 0 : index
    %c2_64 = arith.constant 2 : index
    %c1_65 = arith.constant 1 : index
    %c0_66 = arith.constant 0 : index
    %30 = vector.load %arg6[%c0_63, %c2_64, %c1_65, %c0_66] : memref<2x10x10x4xf32, #tpu.memory_space<vmem>>, vector<2x8x8x4xf32>
    %31 = vector.shape_cast %30 : vector<2x8x8x4xf32> to vector<128x4xf32>
    %c0_67 = arith.constant 0 : index
    %c2_68 = arith.constant 2 : index
    %c2_69 = arith.constant 2 : index
    %c0_70 = arith.constant 0 : index
    %32 = vector.load %arg6[%c0_67, %c2_68, %c2_69, %c0_70] : memref<2x10x10x4xf32, #tpu.memory_space<vmem>>, vector<2x8x8x4xf32>
    %33 = vector.shape_cast %32 : vector<2x8x8x4xf32> to vector<128x4xf32>
    %34 = tpu.concatenate %17, %19, %21, %23, %25, %27, %29, %31, %33 in 1 : vector<128x4xf32>, vector<128x4xf32>, vector<128x4xf32>, vector<128x4xf32>, vector<128x4xf32>, vector<128x4xf32>, vector<128x4xf32>, vector<128x4xf32>, vector<128x4xf32> -> vector<128x36xf32>
    %35 = arith.truncf %34 : vector<128x36xf32> to vector<128x36xbf16>
    %cst_71 = arith.constant dense<0.000000e+00> : vector<128x4xf32>
    %36 = tpu.matmul %35, %12, %cst_71 {dimension_numbers = #tpu.dot_dimension_numbers<[1], [0], [0], [1], [0, 0, 1, 1], [], []>} : vector<128x36xbf16>, vector<36x4xbf16>, vector<128x4xf32> -> vector<128x4xf32>
    %c0_72 = arith.constant 0 : index
    %c0_73 = arith.constant 0 : index
    %37 = vector.load %arg2[%c0_72, %c0_73] : memref<1x4xf32, #tpu.memory_space<vmem>>, vector<1x4xf32>
    %c0_74 = arith.constant 0 : index
    %c0_75 = arith.constant 0 : index
    %38 = vector.load %arg3[%c0_74, %c0_75] : memref<1x4xf32, #tpu.memory_space<vmem>>, vector<1x4xf32>
    %cst_76 = arith.constant dense<0.000000e+00> : vector<4xf32>
    %39 = vector.multi_reduction <add>, %36, %cst_76 [0] : vector<128x4xf32> to vector<4xf32>
    %40 = vector.shape_cast %39 : vector<4xf32> to vector<1x4xf32>
    %cst_77 = arith.constant 1.280000e+02 : f32
    %41 = vector.broadcast %cst_77 : f32 to vector<1x4xf32>
    %42 = arith.divf %40, %41 : vector<1x4xf32>
    %43 = vector.broadcast %42 : vector<1x4xf32> to vector<128x4xf32>
    %44 = arith.subf %36, %43 : vector<128x4xf32>
    %45 = arith.mulf %44, %44 : vector<128x4xf32>
    %cst_78 = arith.constant dense<0.000000e+00> : vector<4xf32>
    %46 = vector.multi_reduction <add>, %45, %cst_78 [0] : vector<128x4xf32> to vector<4xf32>
    %47 = vector.shape_cast %46 : vector<4xf32> to vector<1x4xf32>
    %cst_79 = arith.constant 1.280000e+02 : f32
    %48 = vector.broadcast %cst_79 : f32 to vector<1x4xf32>
    %49 = arith.divf %47, %48 : vector<1x4xf32>
    %50 = vector.broadcast %42 : vector<1x4xf32> to vector<128x4xf32>
    %51 = arith.subf %36, %50 : vector<128x4xf32>
    %cst_80 = arith.constant 9.99999974E-6 : f32
    %52 = vector.broadcast %cst_80 : f32 to vector<1x4xf32>
    %53 = arith.addf %49, %52 : vector<1x4xf32>
    %54 = math.rsqrt %53 : vector<1x4xf32>
    %55 = vector.broadcast %54 : vector<1x4xf32> to vector<128x4xf32>
    %56 = arith.mulf %51, %55 : vector<128x4xf32>
    %57 = vector.broadcast %37 : vector<1x4xf32> to vector<128x4xf32>
    %58 = arith.mulf %56, %57 : vector<128x4xf32>
    %59 = vector.broadcast %38 : vector<1x4xf32> to vector<128x4xf32>
    %60 = arith.addf %58, %59 : vector<128x4xf32>
    %cst_81 = arith.constant 5.000000e-01 : f32
    %61 = vector.broadcast %cst_81 : f32 to vector<128x4xf32>
    %62 = arith.mulf %61, %60 : vector<128x4xf32>
    %cst_82 = arith.constant 0.707106769 : f32
    %63 = vector.broadcast %cst_82 : f32 to vector<128x4xf32>
    %64 = arith.mulf %60, %63 : vector<128x4xf32>
    %cst_83 = arith.constant 0.000000e+00 : f32
    %65 = vector.broadcast %cst_83 : f32 to vector<128x4xf32>
    %66 = arith.cmpf oge, %64, %65 : vector<128x4xf32>
    %cst_84 = arith.constant 1.000000e+00 : f32
    %cst_85 = arith.constant -1.000000e+00 : f32
    %67 = vector.broadcast %cst_84 : f32 to vector<128x4xf32>
    %68 = vector.broadcast %cst_85 : f32 to vector<128x4xf32>
    %69 = arith.select %66, %67, %68 : vector<128x4xi1>, vector<128x4xf32>
    %70 = math.absf %64 : vector<128x4xf32>
    %cst_86 = arith.constant 0.327591091 : f32
    %71 = vector.broadcast %cst_86 : f32 to vector<128x4xf32>
    %72 = arith.mulf %71, %70 : vector<128x4xf32>
    %cst_87 = arith.constant 1.000000e+00 : f32
    %73 = vector.broadcast %cst_87 : f32 to vector<128x4xf32>
    %74 = arith.addf %73, %72 : vector<128x4xf32>
    %75 = tpu.reciprocal %74 {approx = true} : vector<128x4xf32> -> vector<128x4xf32>
    %cst_88 = arith.constant 1.06140542 : f32
    %76 = vector.broadcast %cst_88 : f32 to vector<128x4xf32>
    %77 = arith.mulf %76, %75 : vector<128x4xf32>
    %cst_89 = arith.constant -1.45315206 : f32
    %78 = vector.broadcast %cst_89 : f32 to vector<128x4xf32>
    %79 = arith.addf %77, %78 : vector<128x4xf32>
    %80 = arith.mulf %79, %75 : vector<128x4xf32>
    %cst_90 = arith.constant 1.42141378 : f32
    %81 = vector.broadcast %cst_90 : f32 to vector<128x4xf32>
    %82 = arith.addf %80, %81 : vector<128x4xf32>
    %83 = arith.mulf %82, %75 : vector<128x4xf32>
    %cst_91 = arith.constant -0.284496725 : f32
    %84 = vector.broadcast %cst_91 : f32 to vector<128x4xf32>
    %85 = arith.addf %83, %84 : vector<128x4xf32>
    %86 = arith.mulf %85, %75 : vector<128x4xf32>
    %cst_92 = arith.constant 0.254829586 : f32
    %87 = vector.broadcast %cst_92 : f32 to vector<128x4xf32>
    %88 = arith.addf %86, %87 : vector<128x4xf32>
    %89 = arith.mulf %88, %75 : vector<128x4xf32>
    %cst_93 = arith.constant 0.000000e+00 : f32
    %90 = vector.broadcast %cst_93 : f32 to vector<128x4xf32>
    %91 = arith.subf %90, %70 : vector<128x4xf32>
    %92 = arith.mulf %91, %70 : vector<128x4xf32>
    %93 = math.exp %92 : vector<128x4xf32>
    %94 = arith.mulf %89, %93 : vector<128x4xf32>
    %cst_94 = arith.constant 1.000000e+00 : f32
    %95 = vector.broadcast %cst_94 : f32 to vector<128x4xf32>
    %96 = arith.subf %95, %94 : vector<128x4xf32>
    %97 = arith.mulf %69, %96 : vector<128x4xf32>
    %cst_95 = arith.constant 1.000000e+00 : f32
    %98 = vector.broadcast %cst_95 : f32 to vector<128x4xf32>
    %99 = arith.addf %98, %97 : vector<128x4xf32>
    %100 = arith.mulf %62, %99 : vector<128x4xf32>
    %101 = vector.shape_cast %100 : vector<128x4xf32> to vector<2x8x8x4xf32>
    %c0_96 = arith.constant 0 : index
    %c0_97 = arith.constant 0 : index
    %c0_98 = arith.constant 0 : index
    %c0_99 = arith.constant 0 : index
    %102 = vector.load %arg5[%c0_96, %c0_97, %c0_98, %c0_99] : memref<2x8x8x4xf32, #tpu.memory_space<vmem>>, vector<2x8x8x4xf32>
    tpu.vector_store %arg5[%c0_96, %c0_97, %c0_98, %c0_99], %101 {strides = array<i32>} : memref<2x8x8x4xf32, #tpu.memory_space<vmem>>, vector<2x8x8x4xf32>,
    return
  }
}

module attributes {stable_mosaic.version = 11 : i64} {
  func.func @_conv_bn_gelu_kernel(%arg0: memref<2x8x8x4xf32, #tpu.memory_space<vmem>>, %arg1: memref<36x8xbf16, #tpu.memory_space<vmem>>, %arg2: memref<1x8xf32, #tpu.memory_space<vmem>>, %arg3: memref<1x8xf32, #tpu.memory_space<vmem>>, %arg4: memref<2x8x8x8xf32, #tpu.memory_space<vmem>>, %arg5: memref<2x10x10x4xf32, #tpu.memory_space<vmem>>) attributes {dimension_semantics = [], scalar_prefetch = 0 : i64, scratch_operands = 1 : i64, tpu.core_type = #tpu.core_type<tc>} {
    %c0 = arith.constant 0 : index
    %c0_0 = arith.constant 0 : index
    %c0_1 = arith.constant 0 : index
    %c0_2 = arith.constant 0 : index
    %0 = vector.load %arg0[%c0, %c0_0, %c0_1, %c0_2] : memref<2x8x8x4xf32, #tpu.memory_space<vmem>>, vector<2x8x8x4xf32>
    %c0_3 = arith.constant 0 : index
    %c0_4 = arith.constant 0 : index
    %1 = vector.load %arg1[%c0_3, %c0_4] : memref<36x8xbf16, #tpu.memory_space<vmem>>, vector<36x8xbf16>
    %cst = arith.constant 0.000000e+00 : f32
    %2 = vector.broadcast %cst : f32 to vector<2x10x10x4xf32>
    %c0_5 = arith.constant 0 : index
    %c0_6 = arith.constant 0 : index
    %c0_7 = arith.constant 0 : index
    %c0_8 = arith.constant 0 : index
    %3 = vector.load %arg5[%c0_5, %c0_6, %c0_7, %c0_8] : memref<2x10x10x4xf32, #tpu.memory_space<vmem>>, vector<2x10x10x4xf32>
    tpu.vector_store %arg5[%c0_5, %c0_6, %c0_7, %c0_8], %2 {strides = array<i32>} : memref<2x10x10x4xf32, #tpu.memory_space<vmem>>, vector<2x10x10x4xf32>,
    %c0_9 = arith.constant 0 : index
    %c1 = arith.constant 1 : index
    %c1_10 = arith.constant 1 : index
    %c0_11 = arith.constant 0 : index
    %4 = vector.load %arg5[%c0_9, %c1, %c1_10, %c0_11] : memref<2x10x10x4xf32, #tpu.memory_space<vmem>>, vector<2x8x8x4xf32>
    tpu.vector_store %arg5[%c0_9, %c1, %c1_10, %c0_11], %0 {strides = array<i32>} : memref<2x10x10x4xf32, #tpu.memory_space<vmem>>, vector<2x8x8x4xf32>,
    %c0_12 = arith.constant 0 : index
    %c0_13 = arith.constant 0 : index
    %c0_14 = arith.constant 0 : index
    %c0_15 = arith.constant 0 : index
    %5 = vector.load %arg5[%c0_12, %c0_13, %c0_14, %c0_15] : memref<2x10x10x4xf32, #tpu.memory_space<vmem>>, vector<2x8x8x4xf32>
    %6 = vector.shape_cast %5 : vector<2x8x8x4xf32> to vector<128x4xf32>
    %c0_16 = arith.constant 0 : index
    %c0_17 = arith.constant 0 : index
    %c1_18 = arith.constant 1 : index
    %c0_19 = arith.constant 0 : index
    %7 = vector.load %arg5[%c0_16, %c0_17, %c1_18, %c0_19] : memref<2x10x10x4xf32, #tpu.memory_space<vmem>>, vector<2x8x8x4xf32>
    %8 = vector.shape_cast %7 : vector<2x8x8x4xf32> to vector<128x4xf32>
    %c0_20 = arith.constant 0 : index
    %c0_21 = arith.constant 0 : index
    %c2 = arith.constant 2 : index
    %c0_22 = arith.constant 0 : index
    %9 = vector.load %arg5[%c0_20, %c0_21, %c2, %c0_22] : memref<2x10x10x4xf32, #tpu.memory_space<vmem>>, vector<2x8x8x4xf32>
    %10 = vector.shape_cast %9 : vector<2x8x8x4xf32> to vector<128x4xf32>
    %c0_23 = arith.constant 0 : index
    %c1_24 = arith.constant 1 : index
    %c0_25 = arith.constant 0 : index
    %c0_26 = arith.constant 0 : index
    %11 = vector.load %arg5[%c0_23, %c1_24, %c0_25, %c0_26] : memref<2x10x10x4xf32, #tpu.memory_space<vmem>>, vector<2x8x8x4xf32>
    %12 = vector.shape_cast %11 : vector<2x8x8x4xf32> to vector<128x4xf32>
    %c0_27 = arith.constant 0 : index
    %c1_28 = arith.constant 1 : index
    %c1_29 = arith.constant 1 : index
    %c0_30 = arith.constant 0 : index
    %13 = vector.load %arg5[%c0_27, %c1_28, %c1_29, %c0_30] : memref<2x10x10x4xf32, #tpu.memory_space<vmem>>, vector<2x8x8x4xf32>
    %14 = vector.shape_cast %13 : vector<2x8x8x4xf32> to vector<128x4xf32>
    %c0_31 = arith.constant 0 : index
    %c1_32 = arith.constant 1 : index
    %c2_33 = arith.constant 2 : index
    %c0_34 = arith.constant 0 : index
    %15 = vector.load %arg5[%c0_31, %c1_32, %c2_33, %c0_34] : memref<2x10x10x4xf32, #tpu.memory_space<vmem>>, vector<2x8x8x4xf32>
    %16 = vector.shape_cast %15 : vector<2x8x8x4xf32> to vector<128x4xf32>
    %c0_35 = arith.constant 0 : index
    %c2_36 = arith.constant 2 : index
    %c0_37 = arith.constant 0 : index
    %c0_38 = arith.constant 0 : index
    %17 = vector.load %arg5[%c0_35, %c2_36, %c0_37, %c0_38] : memref<2x10x10x4xf32, #tpu.memory_space<vmem>>, vector<2x8x8x4xf32>
    %18 = vector.shape_cast %17 : vector<2x8x8x4xf32> to vector<128x4xf32>
    %c0_39 = arith.constant 0 : index
    %c2_40 = arith.constant 2 : index
    %c1_41 = arith.constant 1 : index
    %c0_42 = arith.constant 0 : index
    %19 = vector.load %arg5[%c0_39, %c2_40, %c1_41, %c0_42] : memref<2x10x10x4xf32, #tpu.memory_space<vmem>>, vector<2x8x8x4xf32>
    %20 = vector.shape_cast %19 : vector<2x8x8x4xf32> to vector<128x4xf32>
    %c0_43 = arith.constant 0 : index
    %c2_44 = arith.constant 2 : index
    %c2_45 = arith.constant 2 : index
    %c0_46 = arith.constant 0 : index
    %21 = vector.load %arg5[%c0_43, %c2_44, %c2_45, %c0_46] : memref<2x10x10x4xf32, #tpu.memory_space<vmem>>, vector<2x8x8x4xf32>
    %22 = vector.shape_cast %21 : vector<2x8x8x4xf32> to vector<128x4xf32>
    %23 = tpu.concatenate %6, %8, %10, %12, %14, %16, %18, %20, %22 in 1 : vector<128x4xf32>, vector<128x4xf32>, vector<128x4xf32>, vector<128x4xf32>, vector<128x4xf32>, vector<128x4xf32>, vector<128x4xf32>, vector<128x4xf32>, vector<128x4xf32> -> vector<128x36xf32>
    %24 = arith.truncf %23 : vector<128x36xf32> to vector<128x36xbf16>
    %cst_47 = arith.constant dense<0.000000e+00> : vector<128x8xf32>
    %25 = tpu.matmul %24, %1, %cst_47 {dimension_numbers = #tpu.dot_dimension_numbers<[1], [0], [0], [1], [0, 0, 1, 1], [], []>} : vector<128x36xbf16>, vector<36x8xbf16>, vector<128x8xf32> -> vector<128x8xf32>
    %c0_48 = arith.constant 0 : index
    %c0_49 = arith.constant 0 : index
    %26 = vector.load %arg2[%c0_48, %c0_49] : memref<1x8xf32, #tpu.memory_space<vmem>>, vector<1x8xf32>
    %c0_50 = arith.constant 0 : index
    %c0_51 = arith.constant 0 : index
    %27 = vector.load %arg3[%c0_50, %c0_51] : memref<1x8xf32, #tpu.memory_space<vmem>>, vector<1x8xf32>
    %cst_52 = arith.constant dense<0.000000e+00> : vector<8xf32>
    %28 = vector.multi_reduction <add>, %25, %cst_52 [0] : vector<128x8xf32> to vector<8xf32>
    %29 = vector.shape_cast %28 : vector<8xf32> to vector<1x8xf32>
    %cst_53 = arith.constant 1.280000e+02 : f32
    %30 = vector.broadcast %cst_53 : f32 to vector<1x8xf32>
    %31 = arith.divf %29, %30 : vector<1x8xf32>
    %32 = vector.broadcast %31 : vector<1x8xf32> to vector<128x8xf32>
    %33 = arith.subf %25, %32 : vector<128x8xf32>
    %34 = arith.mulf %33, %33 : vector<128x8xf32>
    %cst_54 = arith.constant dense<0.000000e+00> : vector<8xf32>
    %35 = vector.multi_reduction <add>, %34, %cst_54 [0] : vector<128x8xf32> to vector<8xf32>
    %36 = vector.shape_cast %35 : vector<8xf32> to vector<1x8xf32>
    %cst_55 = arith.constant 1.280000e+02 : f32
    %37 = vector.broadcast %cst_55 : f32 to vector<1x8xf32>
    %38 = arith.divf %36, %37 : vector<1x8xf32>
    %39 = vector.broadcast %31 : vector<1x8xf32> to vector<128x8xf32>
    %40 = arith.subf %25, %39 : vector<128x8xf32>
    %cst_56 = arith.constant 9.99999974E-6 : f32
    %41 = vector.broadcast %cst_56 : f32 to vector<1x8xf32>
    %42 = arith.addf %38, %41 : vector<1x8xf32>
    %43 = math.rsqrt %42 : vector<1x8xf32>
    %44 = vector.broadcast %43 : vector<1x8xf32> to vector<128x8xf32>
    %45 = arith.mulf %40, %44 : vector<128x8xf32>
    %46 = vector.broadcast %26 : vector<1x8xf32> to vector<128x8xf32>
    %47 = arith.mulf %45, %46 : vector<128x8xf32>
    %48 = vector.broadcast %27 : vector<1x8xf32> to vector<128x8xf32>
    %49 = arith.addf %47, %48 : vector<128x8xf32>
    %cst_57 = arith.constant 5.000000e-01 : f32
    %50 = vector.broadcast %cst_57 : f32 to vector<128x8xf32>
    %51 = arith.mulf %50, %49 : vector<128x8xf32>
    %cst_58 = arith.constant 0.707106769 : f32
    %52 = vector.broadcast %cst_58 : f32 to vector<128x8xf32>
    %53 = arith.mulf %49, %52 : vector<128x8xf32>
    %cst_59 = arith.constant 0.000000e+00 : f32
    %54 = vector.broadcast %cst_59 : f32 to vector<128x8xf32>
    %55 = arith.cmpf oge, %53, %54 : vector<128x8xf32>
    %cst_60 = arith.constant 1.000000e+00 : f32
    %cst_61 = arith.constant -1.000000e+00 : f32
    %56 = vector.broadcast %cst_60 : f32 to vector<128x8xf32>
    %57 = vector.broadcast %cst_61 : f32 to vector<128x8xf32>
    %58 = arith.select %55, %56, %57 : vector<128x8xi1>, vector<128x8xf32>
    %59 = math.absf %53 : vector<128x8xf32>
    %cst_62 = arith.constant 0.327591091 : f32
    %60 = vector.broadcast %cst_62 : f32 to vector<128x8xf32>
    %61 = arith.mulf %60, %59 : vector<128x8xf32>
    %cst_63 = arith.constant 1.000000e+00 : f32
    %62 = vector.broadcast %cst_63 : f32 to vector<128x8xf32>
    %63 = arith.addf %62, %61 : vector<128x8xf32>
    %64 = tpu.reciprocal %63 {approx = true} : vector<128x8xf32> -> vector<128x8xf32>
    %cst_64 = arith.constant 1.06140542 : f32
    %65 = vector.broadcast %cst_64 : f32 to vector<128x8xf32>
    %66 = arith.mulf %65, %64 : vector<128x8xf32>
    %cst_65 = arith.constant -1.45315206 : f32
    %67 = vector.broadcast %cst_65 : f32 to vector<128x8xf32>
    %68 = arith.addf %66, %67 : vector<128x8xf32>
    %69 = arith.mulf %68, %64 : vector<128x8xf32>
    %cst_66 = arith.constant 1.42141378 : f32
    %70 = vector.broadcast %cst_66 : f32 to vector<128x8xf32>
    %71 = arith.addf %69, %70 : vector<128x8xf32>
    %72 = arith.mulf %71, %64 : vector<128x8xf32>
    %cst_67 = arith.constant -0.284496725 : f32
    %73 = vector.broadcast %cst_67 : f32 to vector<128x8xf32>
    %74 = arith.addf %72, %73 : vector<128x8xf32>
    %75 = arith.mulf %74, %64 : vector<128x8xf32>
    %cst_68 = arith.constant 0.254829586 : f32
    %76 = vector.broadcast %cst_68 : f32 to vector<128x8xf32>
    %77 = arith.addf %75, %76 : vector<128x8xf32>
    %78 = arith.mulf %77, %64 : vector<128x8xf32>
    %cst_69 = arith.constant 0.000000e+00 : f32
    %79 = vector.broadcast %cst_69 : f32 to vector<128x8xf32>
    %80 = arith.subf %79, %59 : vector<128x8xf32>
    %81 = arith.mulf %80, %59 : vector<128x8xf32>
    %82 = math.exp %81 : vector<128x8xf32>
    %83 = arith.mulf %78, %82 : vector<128x8xf32>
    %cst_70 = arith.constant 1.000000e+00 : f32
    %84 = vector.broadcast %cst_70 : f32 to vector<128x8xf32>
    %85 = arith.subf %84, %83 : vector<128x8xf32>
    %86 = arith.mulf %58, %85 : vector<128x8xf32>
    %cst_71 = arith.constant 1.000000e+00 : f32
    %87 = vector.broadcast %cst_71 : f32 to vector<128x8xf32>
    %88 = arith.addf %87, %86 : vector<128x8xf32>
    %89 = arith.mulf %51, %88 : vector<128x8xf32>
    %90 = vector.shape_cast %89 : vector<128x8xf32> to vector<2x8x8x8xf32>
    %c0_72 = arith.constant 0 : index
    %c0_73 = arith.constant 0 : index
    %c0_74 = arith.constant 0 : index
    %c0_75 = arith.constant 0 : index
    %91 = vector.load %arg4[%c0_72, %c0_73, %c0_74, %c0_75] : memref<2x8x8x8xf32, #tpu.memory_space<vmem>>, vector<2x8x8x8xf32>
    tpu.vector_store %arg4[%c0_72, %c0_73, %c0_74, %c0_75], %90 {strides = array<i32>} : memref<2x8x8x8xf32, #tpu.memory_space<vmem>>, vector<2x8x8x8xf32>,
    return
  }
}

module attributes {stable_mosaic.version = 11 : i64} {
  func.func @_conv_bn_addres_gelu_kernel(%arg0: memref<2x8x8x4xf32, #tpu.memory_space<vmem>>, %arg1: memref<2x8x8x4xf32, #tpu.memory_space<vmem>>, %arg2: memref<36x4xbf16, #tpu.memory_space<vmem>>, %arg3: memref<1x4xf32, #tpu.memory_space<vmem>>, %arg4: memref<1x4xf32, #tpu.memory_space<vmem>>, %arg5: memref<2x8x8x4xf32, #tpu.memory_space<vmem>>, %arg6: memref<2x10x10x4xf32, #tpu.memory_space<vmem>>) attributes {dimension_semantics = [], scalar_prefetch = 0 : i64, scratch_operands = 1 : i64, tpu.core_type = #tpu.core_type<tc>} {
    %c0 = arith.constant 0 : index
    %c0_0 = arith.constant 0 : index
    %c0_1 = arith.constant 0 : index
    %c0_2 = arith.constant 0 : index
    %0 = vector.load %arg0[%c0, %c0_0, %c0_1, %c0_2] : memref<2x8x8x4xf32, #tpu.memory_space<vmem>>, vector<2x8x8x4xf32>
    %c0_3 = arith.constant 0 : index
    %c0_4 = arith.constant 0 : index
    %1 = vector.load %arg2[%c0_3, %c0_4] : memref<36x4xbf16, #tpu.memory_space<vmem>>, vector<36x4xbf16>
    %cst = arith.constant 0.000000e+00 : f32
    %2 = vector.broadcast %cst : f32 to vector<2x10x10x4xf32>
    %c0_5 = arith.constant 0 : index
    %c0_6 = arith.constant 0 : index
    %c0_7 = arith.constant 0 : index
    %c0_8 = arith.constant 0 : index
    %3 = vector.load %arg6[%c0_5, %c0_6, %c0_7, %c0_8] : memref<2x10x10x4xf32, #tpu.memory_space<vmem>>, vector<2x10x10x4xf32>
    tpu.vector_store %arg6[%c0_5, %c0_6, %c0_7, %c0_8], %2 {strides = array<i32>} : memref<2x10x10x4xf32, #tpu.memory_space<vmem>>, vector<2x10x10x4xf32>,
    %c0_9 = arith.constant 0 : index
    %c1 = arith.constant 1 : index
    %c1_10 = arith.constant 1 : index
    %c0_11 = arith.constant 0 : index
    %4 = vector.load %arg6[%c0_9, %c1, %c1_10, %c0_11] : memref<2x10x10x4xf32, #tpu.memory_space<vmem>>, vector<2x8x8x4xf32>
    tpu.vector_store %arg6[%c0_9, %c1, %c1_10, %c0_11], %0 {strides = array<i32>} : memref<2x10x10x4xf32, #tpu.memory_space<vmem>>, vector<2x8x8x4xf32>,
    %c0_12 = arith.constant 0 : index
    %c0_13 = arith.constant 0 : index
    %c0_14 = arith.constant 0 : index
    %c0_15 = arith.constant 0 : index
    %5 = vector.load %arg6[%c0_12, %c0_13, %c0_14, %c0_15] : memref<2x10x10x4xf32, #tpu.memory_space<vmem>>, vector<2x8x8x4xf32>
    %6 = vector.shape_cast %5 : vector<2x8x8x4xf32> to vector<128x4xf32>
    %c0_16 = arith.constant 0 : index
    %c0_17 = arith.constant 0 : index
    %c1_18 = arith.constant 1 : index
    %c0_19 = arith.constant 0 : index
    %7 = vector.load %arg6[%c0_16, %c0_17, %c1_18, %c0_19] : memref<2x10x10x4xf32, #tpu.memory_space<vmem>>, vector<2x8x8x4xf32>
    %8 = vector.shape_cast %7 : vector<2x8x8x4xf32> to vector<128x4xf32>
    %c0_20 = arith.constant 0 : index
    %c0_21 = arith.constant 0 : index
    %c2 = arith.constant 2 : index
    %c0_22 = arith.constant 0 : index
    %9 = vector.load %arg6[%c0_20, %c0_21, %c2, %c0_22] : memref<2x10x10x4xf32, #tpu.memory_space<vmem>>, vector<2x8x8x4xf32>
    %10 = vector.shape_cast %9 : vector<2x8x8x4xf32> to vector<128x4xf32>
    %c0_23 = arith.constant 0 : index
    %c1_24 = arith.constant 1 : index
    %c0_25 = arith.constant 0 : index
    %c0_26 = arith.constant 0 : index
    %11 = vector.load %arg6[%c0_23, %c1_24, %c0_25, %c0_26] : memref<2x10x10x4xf32, #tpu.memory_space<vmem>>, vector<2x8x8x4xf32>
    %12 = vector.shape_cast %11 : vector<2x8x8x4xf32> to vector<128x4xf32>
    %c0_27 = arith.constant 0 : index
    %c1_28 = arith.constant 1 : index
    %c1_29 = arith.constant 1 : index
    %c0_30 = arith.constant 0 : index
    %13 = vector.load %arg6[%c0_27, %c1_28, %c1_29, %c0_30] : memref<2x10x10x4xf32, #tpu.memory_space<vmem>>, vector<2x8x8x4xf32>
    %14 = vector.shape_cast %13 : vector<2x8x8x4xf32> to vector<128x4xf32>
    %c0_31 = arith.constant 0 : index
    %c1_32 = arith.constant 1 : index
    %c2_33 = arith.constant 2 : index
    %c0_34 = arith.constant 0 : index
    %15 = vector.load %arg6[%c0_31, %c1_32, %c2_33, %c0_34] : memref<2x10x10x4xf32, #tpu.memory_space<vmem>>, vector<2x8x8x4xf32>
    %16 = vector.shape_cast %15 : vector<2x8x8x4xf32> to vector<128x4xf32>
    %c0_35 = arith.constant 0 : index
    %c2_36 = arith.constant 2 : index
    %c0_37 = arith.constant 0 : index
    %c0_38 = arith.constant 0 : index
    %17 = vector.load %arg6[%c0_35, %c2_36, %c0_37, %c0_38] : memref<2x10x10x4xf32, #tpu.memory_space<vmem>>, vector<2x8x8x4xf32>
    %18 = vector.shape_cast %17 : vector<2x8x8x4xf32> to vector<128x4xf32>
    %c0_39 = arith.constant 0 : index
    %c2_40 = arith.constant 2 : index
    %c1_41 = arith.constant 1 : index
    %c0_42 = arith.constant 0 : index
    %19 = vector.load %arg6[%c0_39, %c2_40, %c1_41, %c0_42] : memref<2x10x10x4xf32, #tpu.memory_space<vmem>>, vector<2x8x8x4xf32>
    %20 = vector.shape_cast %19 : vector<2x8x8x4xf32> to vector<128x4xf32>
    %c0_43 = arith.constant 0 : index
    %c2_44 = arith.constant 2 : index
    %c2_45 = arith.constant 2 : index
    %c0_46 = arith.constant 0 : index
    %21 = vector.load %arg6[%c0_43, %c2_44, %c2_45, %c0_46] : memref<2x10x10x4xf32, #tpu.memory_space<vmem>>, vector<2x8x8x4xf32>
    %22 = vector.shape_cast %21 : vector<2x8x8x4xf32> to vector<128x4xf32>
    %23 = tpu.concatenate %6, %8, %10, %12, %14, %16, %18, %20, %22 in 1 : vector<128x4xf32>, vector<128x4xf32>, vector<128x4xf32>, vector<128x4xf32>, vector<128x4xf32>, vector<128x4xf32>, vector<128x4xf32>, vector<128x4xf32>, vector<128x4xf32> -> vector<128x36xf32>
    %24 = arith.truncf %23 : vector<128x36xf32> to vector<128x36xbf16>
    %cst_47 = arith.constant dense<0.000000e+00> : vector<128x4xf32>
    %25 = tpu.matmul %24, %1, %cst_47 {dimension_numbers = #tpu.dot_dimension_numbers<[1], [0], [0], [1], [0, 0, 1, 1], [], []>} : vector<128x36xbf16>, vector<36x4xbf16>, vector<128x4xf32> -> vector<128x4xf32>
    %c0_48 = arith.constant 0 : index
    %c0_49 = arith.constant 0 : index
    %26 = vector.load %arg3[%c0_48, %c0_49] : memref<1x4xf32, #tpu.memory_space<vmem>>, vector<1x4xf32>
    %c0_50 = arith.constant 0 : index
    %c0_51 = arith.constant 0 : index
    %27 = vector.load %arg4[%c0_50, %c0_51] : memref<1x4xf32, #tpu.memory_space<vmem>>, vector<1x4xf32>
    %cst_52 = arith.constant dense<0.000000e+00> : vector<4xf32>
    %28 = vector.multi_reduction <add>, %25, %cst_52 [0] : vector<128x4xf32> to vector<4xf32>
    %29 = vector.shape_cast %28 : vector<4xf32> to vector<1x4xf32>
    %cst_53 = arith.constant 1.280000e+02 : f32
    %30 = vector.broadcast %cst_53 : f32 to vector<1x4xf32>
    %31 = arith.divf %29, %30 : vector<1x4xf32>
    %32 = vector.broadcast %31 : vector<1x4xf32> to vector<128x4xf32>
    %33 = arith.subf %25, %32 : vector<128x4xf32>
    %34 = arith.mulf %33, %33 : vector<128x4xf32>
    %cst_54 = arith.constant dense<0.000000e+00> : vector<4xf32>
    %35 = vector.multi_reduction <add>, %34, %cst_54 [0] : vector<128x4xf32> to vector<4xf32>
    %36 = vector.shape_cast %35 : vector<4xf32> to vector<1x4xf32>
    %cst_55 = arith.constant 1.280000e+02 : f32
    %37 = vector.broadcast %cst_55 : f32 to vector<1x4xf32>
    %38 = arith.divf %36, %37 : vector<1x4xf32>
    %39 = vector.broadcast %31 : vector<1x4xf32> to vector<128x4xf32>
    %40 = arith.subf %25, %39 : vector<128x4xf32>
    %cst_56 = arith.constant 9.99999974E-6 : f32
    %41 = vector.broadcast %cst_56 : f32 to vector<1x4xf32>
    %42 = arith.addf %38, %41 : vector<1x4xf32>
    %43 = math.rsqrt %42 : vector<1x4xf32>
    %44 = vector.broadcast %43 : vector<1x4xf32> to vector<128x4xf32>
    %45 = arith.mulf %40, %44 : vector<128x4xf32>
    %46 = vector.broadcast %26 : vector<1x4xf32> to vector<128x4xf32>
    %47 = arith.mulf %45, %46 : vector<128x4xf32>
    %48 = vector.broadcast %27 : vector<1x4xf32> to vector<128x4xf32>
    %49 = arith.addf %47, %48 : vector<128x4xf32>
    %c0_57 = arith.constant 0 : index
    %c0_58 = arith.constant 0 : index
    %c0_59 = arith.constant 0 : index
    %c0_60 = arith.constant 0 : index
    %50 = vector.load %arg1[%c0_57, %c0_58, %c0_59, %c0_60] : memref<2x8x8x4xf32, #tpu.memory_space<vmem>>, vector<2x8x8x4xf32>
    %51 = vector.shape_cast %50 : vector<2x8x8x4xf32> to vector<128x4xf32>
    %52 = arith.addf %51, %49 : vector<128x4xf32>
    %cst_61 = arith.constant 5.000000e-01 : f32
    %53 = vector.broadcast %cst_61 : f32 to vector<128x4xf32>
    %54 = arith.mulf %53, %52 : vector<128x4xf32>
    %cst_62 = arith.constant 0.707106769 : f32
    %55 = vector.broadcast %cst_62 : f32 to vector<128x4xf32>
    %56 = arith.mulf %52, %55 : vector<128x4xf32>
    %cst_63 = arith.constant 0.000000e+00 : f32
    %57 = vector.broadcast %cst_63 : f32 to vector<128x4xf32>
    %58 = arith.cmpf oge, %56, %57 : vector<128x4xf32>
    %cst_64 = arith.constant 1.000000e+00 : f32
    %cst_65 = arith.constant -1.000000e+00 : f32
    %59 = vector.broadcast %cst_64 : f32 to vector<128x4xf32>
    %60 = vector.broadcast %cst_65 : f32 to vector<128x4xf32>
    %61 = arith.select %58, %59, %60 : vector<128x4xi1>, vector<128x4xf32>
    %62 = math.absf %56 : vector<128x4xf32>
    %cst_66 = arith.constant 0.327591091 : f32
    %63 = vector.broadcast %cst_66 : f32 to vector<128x4xf32>
    %64 = arith.mulf %63, %62 : vector<128x4xf32>
    %cst_67 = arith.constant 1.000000e+00 : f32
    %65 = vector.broadcast %cst_67 : f32 to vector<128x4xf32>
    %66 = arith.addf %65, %64 : vector<128x4xf32>
    %67 = tpu.reciprocal %66 {approx = true} : vector<128x4xf32> -> vector<128x4xf32>
    %cst_68 = arith.constant 1.06140542 : f32
    %68 = vector.broadcast %cst_68 : f32 to vector<128x4xf32>
    %69 = arith.mulf %68, %67 : vector<128x4xf32>
    %cst_69 = arith.constant -1.45315206 : f32
    %70 = vector.broadcast %cst_69 : f32 to vector<128x4xf32>
    %71 = arith.addf %69, %70 : vector<128x4xf32>
    %72 = arith.mulf %71, %67 : vector<128x4xf32>
    %cst_70 = arith.constant 1.42141378 : f32
    %73 = vector.broadcast %cst_70 : f32 to vector<128x4xf32>
    %74 = arith.addf %72, %73 : vector<128x4xf32>
    %75 = arith.mulf %74, %67 : vector<128x4xf32>
    %cst_71 = arith.constant -0.284496725 : f32
    %76 = vector.broadcast %cst_71 : f32 to vector<128x4xf32>
    %77 = arith.addf %75, %76 : vector<128x4xf32>
    %78 = arith.mulf %77, %67 : vector<128x4xf32>
    %cst_72 = arith.constant 0.254829586 : f32
    %79 = vector.broadcast %cst_72 : f32 to vector<128x4xf32>
    %80 = arith.addf %78, %79 : vector<128x4xf32>
    %81 = arith.mulf %80, %67 : vector<128x4xf32>
    %cst_73 = arith.constant 0.000000e+00 : f32
    %82 = vector.broadcast %cst_73 : f32 to vector<128x4xf32>
    %83 = arith.subf %82, %62 : vector<128x4xf32>
    %84 = arith.mulf %83, %62 : vector<128x4xf32>
    %85 = math.exp %84 : vector<128x4xf32>
    %86 = arith.mulf %81, %85 : vector<128x4xf32>
    %cst_74 = arith.constant 1.000000e+00 : f32
    %87 = vector.broadcast %cst_74 : f32 to vector<128x4xf32>
    %88 = arith.subf %87, %86 : vector<128x4xf32>
    %89 = arith.mulf %61, %88 : vector<128x4xf32>
    %cst_75 = arith.constant 1.000000e+00 : f32
    %90 = vector.broadcast %cst_75 : f32 to vector<128x4xf32>
    %91 = arith.addf %90, %89 : vector<128x4xf32>
    %92 = arith.mulf %54, %91 : vector<128x4xf32>
    %93 = vector.shape_cast %92 : vector<128x4xf32> to vector<2x8x8x4xf32>
    %c0_76 = arith.constant 0 : index
    %c0_77 = arith.constant 0 : index
    %c0_78 = arith.constant 0 : index
    %c0_79 = arith.constant 0 : index
    %94 = vector.load %arg5[%c0_76, %c0_77, %c0_78, %c0_79] : memref<2x8x8x4xf32, #tpu.memory_space<vmem>>, vector<2x8x8x4xf32>
    tpu.vector_store %arg5[%c0_76, %c0_77, %c0_78, %c0_79], %93 {strides = array<i32>} : memref<2x8x8x4xf32, #tpu.memory_space<vmem>>, vector<2x8x8x4xf32>,
    return
  }
}

module attributes {stable_mosaic.version = 11 : i64} {
  func.func @_conv_bn_bn_kernel(%arg0: memref<2x8x8x8xf32, #tpu.memory_space<vmem>>, %arg1: memref<72x8xbf16, #tpu.memory_space<vmem>>, %arg2: memref<1x8xf32, #tpu.memory_space<vmem>>, %arg3: memref<1x8xf32, #tpu.memory_space<vmem>>, %arg4: memref<1x8xf32, #tpu.memory_space<vmem>>, %arg5: memref<1x8xf32, #tpu.memory_space<vmem>>, %arg6: memref<2x8x8x8xf32, #tpu.memory_space<vmem>>, %arg7: memref<2x10x10x8xf32, #tpu.memory_space<vmem>>) attributes {dimension_semantics = [], scalar_prefetch = 0 : i64, scratch_operands = 1 : i64, tpu.core_type = #tpu.core_type<tc>} {
    %c0 = arith.constant 0 : index
    %c0_0 = arith.constant 0 : index
    %c0_1 = arith.constant 0 : index
    %c0_2 = arith.constant 0 : index
    %0 = vector.load %arg0[%c0, %c0_0, %c0_1, %c0_2] : memref<2x8x8x8xf32, #tpu.memory_space<vmem>>, vector<2x8x8x8xf32>
    %c0_3 = arith.constant 0 : index
    %c0_4 = arith.constant 0 : index
    %1 = vector.load %arg1[%c0_3, %c0_4] : memref<72x8xbf16, #tpu.memory_space<vmem>>, vector<72x8xbf16>
    %cst = arith.constant 0.000000e+00 : f32
    %2 = vector.broadcast %cst : f32 to vector<2x10x10x8xf32>
    %c0_5 = arith.constant 0 : index
    %c0_6 = arith.constant 0 : index
    %c0_7 = arith.constant 0 : index
    %c0_8 = arith.constant 0 : index
    %3 = vector.load %arg7[%c0_5, %c0_6, %c0_7, %c0_8] : memref<2x10x10x8xf32, #tpu.memory_space<vmem>>, vector<2x10x10x8xf32>
    tpu.vector_store %arg7[%c0_5, %c0_6, %c0_7, %c0_8], %2 {strides = array<i32>} : memref<2x10x10x8xf32, #tpu.memory_space<vmem>>, vector<2x10x10x8xf32>,
    %c0_9 = arith.constant 0 : index
    %c1 = arith.constant 1 : index
    %c1_10 = arith.constant 1 : index
    %c0_11 = arith.constant 0 : index
    %4 = vector.load %arg7[%c0_9, %c1, %c1_10, %c0_11] : memref<2x10x10x8xf32, #tpu.memory_space<vmem>>, vector<2x8x8x8xf32>
    tpu.vector_store %arg7[%c0_9, %c1, %c1_10, %c0_11], %0 {strides = array<i32>} : memref<2x10x10x8xf32, #tpu.memory_space<vmem>>, vector<2x8x8x8xf32>,
    %c0_12 = arith.constant 0 : index
    %c0_13 = arith.constant 0 : index
    %c0_14 = arith.constant 0 : index
    %c0_15 = arith.constant 0 : index
    %5 = vector.load %arg7[%c0_12, %c0_13, %c0_14, %c0_15] : memref<2x10x10x8xf32, #tpu.memory_space<vmem>>, vector<2x8x8x8xf32>
    %6 = vector.shape_cast %5 : vector<2x8x8x8xf32> to vector<128x8xf32>
    %c0_16 = arith.constant 0 : index
    %c0_17 = arith.constant 0 : index
    %c1_18 = arith.constant 1 : index
    %c0_19 = arith.constant 0 : index
    %7 = vector.load %arg7[%c0_16, %c0_17, %c1_18, %c0_19] : memref<2x10x10x8xf32, #tpu.memory_space<vmem>>, vector<2x8x8x8xf32>
    %8 = vector.shape_cast %7 : vector<2x8x8x8xf32> to vector<128x8xf32>
    %c0_20 = arith.constant 0 : index
    %c0_21 = arith.constant 0 : index
    %c2 = arith.constant 2 : index
    %c0_22 = arith.constant 0 : index
    %9 = vector.load %arg7[%c0_20, %c0_21, %c2, %c0_22] : memref<2x10x10x8xf32, #tpu.memory_space<vmem>>, vector<2x8x8x8xf32>
    %10 = vector.shape_cast %9 : vector<2x8x8x8xf32> to vector<128x8xf32>
    %c0_23 = arith.constant 0 : index
    %c1_24 = arith.constant 1 : index
    %c0_25 = arith.constant 0 : index
    %c0_26 = arith.constant 0 : index
    %11 = vector.load %arg7[%c0_23, %c1_24, %c0_25, %c0_26] : memref<2x10x10x8xf32, #tpu.memory_space<vmem>>, vector<2x8x8x8xf32>
    %12 = vector.shape_cast %11 : vector<2x8x8x8xf32> to vector<128x8xf32>
    %c0_27 = arith.constant 0 : index
    %c1_28 = arith.constant 1 : index
    %c1_29 = arith.constant 1 : index
    %c0_30 = arith.constant 0 : index
    %13 = vector.load %arg7[%c0_27, %c1_28, %c1_29, %c0_30] : memref<2x10x10x8xf32, #tpu.memory_space<vmem>>, vector<2x8x8x8xf32>
    %14 = vector.shape_cast %13 : vector<2x8x8x8xf32> to vector<128x8xf32>
    %c0_31 = arith.constant 0 : index
    %c1_32 = arith.constant 1 : index
    %c2_33 = arith.constant 2 : index
    %c0_34 = arith.constant 0 : index
    %15 = vector.load %arg7[%c0_31, %c1_32, %c2_33, %c0_34] : memref<2x10x10x8xf32, #tpu.memory_space<vmem>>, vector<2x8x8x8xf32>
    %16 = vector.shape_cast %15 : vector<2x8x8x8xf32> to vector<128x8xf32>
    %c0_35 = arith.constant 0 : index
    %c2_36 = arith.constant 2 : index
    %c0_37 = arith.constant 0 : index
    %c0_38 = arith.constant 0 : index
    %17 = vector.load %arg7[%c0_35, %c2_36, %c0_37, %c0_38] : memref<2x10x10x8xf32, #tpu.memory_space<vmem>>, vector<2x8x8x8xf32>
    %18 = vector.shape_cast %17 : vector<2x8x8x8xf32> to vector<128x8xf32>
    %c0_39 = arith.constant 0 : index
    %c2_40 = arith.constant 2 : index
    %c1_41 = arith.constant 1 : index
    %c0_42 = arith.constant 0 : index
    %19 = vector.load %arg7[%c0_39, %c2_40, %c1_41, %c0_42] : memref<2x10x10x8xf32, #tpu.memory_space<vmem>>, vector<2x8x8x8xf32>
    %20 = vector.shape_cast %19 : vector<2x8x8x8xf32> to vector<128x8xf32>
    %c0_43 = arith.constant 0 : index
    %c2_44 = arith.constant 2 : index
    %c2_45 = arith.constant 2 : index
    %c0_46 = arith.constant 0 : index
    %21 = vector.load %arg7[%c0_43, %c2_44, %c2_45, %c0_46] : memref<2x10x10x8xf32, #tpu.memory_space<vmem>>, vector<2x8x8x8xf32>
    %22 = vector.shape_cast %21 : vector<2x8x8x8xf32> to vector<128x8xf32>
    %23 = tpu.concatenate %6, %8, %10, %12, %14, %16, %18, %20, %22 in 1 : vector<128x8xf32>, vector<128x8xf32>, vector<128x8xf32>, vector<128x8xf32>, vector<128x8xf32>, vector<128x8xf32>, vector<128x8xf32>, vector<128x8xf32>, vector<128x8xf32> -> vector<128x72xf32>
    %24 = arith.truncf %23 : vector<128x72xf32> to vector<128x72xbf16>
    %cst_47 = arith.constant dense<0.000000e+00> : vector<128x8xf32>
    %25 = tpu.matmul %24, %1, %cst_47 {dimension_numbers = #tpu.dot_dimension_numbers<[1], [0], [0], [1], [0, 0, 1, 1], [], []>} : vector<128x72xbf16>, vector<72x8xbf16>, vector<128x8xf32> -> vector<128x8xf32>
    %c0_48 = arith.constant 0 : index
    %c0_49 = arith.constant 0 : index
    %26 = vector.load %arg2[%c0_48, %c0_49] : memref<1x8xf32, #tpu.memory_space<vmem>>, vector<1x8xf32>
    %c0_50 = arith.constant 0 : index
    %c0_51 = arith.constant 0 : index
    %27 = vector.load %arg3[%c0_50, %c0_51] : memref<1x8xf32, #tpu.memory_space<vmem>>, vector<1x8xf32>
    %cst_52 = arith.constant dense<0.000000e+00> : vector<8xf32>
    %28 = vector.multi_reduction <add>, %25, %cst_52 [0] : vector<128x8xf32> to vector<8xf32>
    %29 = vector.shape_cast %28 : vector<8xf32> to vector<1x8xf32>
    %cst_53 = arith.constant 1.280000e+02 : f32
    %30 = vector.broadcast %cst_53 : f32 to vector<1x8xf32>
    %31 = arith.divf %29, %30 : vector<1x8xf32>
    %32 = vector.broadcast %31 : vector<1x8xf32> to vector<128x8xf32>
    %33 = arith.subf %25, %32 : vector<128x8xf32>
    %34 = arith.mulf %33, %33 : vector<128x8xf32>
    %cst_54 = arith.constant dense<0.000000e+00> : vector<8xf32>
    %35 = vector.multi_reduction <add>, %34, %cst_54 [0] : vector<128x8xf32> to vector<8xf32>
    %36 = vector.shape_cast %35 : vector<8xf32> to vector<1x8xf32>
    %cst_55 = arith.constant 1.280000e+02 : f32
    %37 = vector.broadcast %cst_55 : f32 to vector<1x8xf32>
    %38 = arith.divf %36, %37 : vector<1x8xf32>
    %39 = vector.broadcast %31 : vector<1x8xf32> to vector<128x8xf32>
    %40 = arith.subf %25, %39 : vector<128x8xf32>
    %cst_56 = arith.constant 9.99999974E-6 : f32
    %41 = vector.broadcast %cst_56 : f32 to vector<1x8xf32>
    %42 = arith.addf %38, %41 : vector<1x8xf32>
    %43 = math.rsqrt %42 : vector<1x8xf32>
    %44 = vector.broadcast %43 : vector<1x8xf32> to vector<128x8xf32>
    %45 = arith.mulf %40, %44 : vector<128x8xf32>
    %46 = vector.broadcast %26 : vector<1x8xf32> to vector<128x8xf32>
    %47 = arith.mulf %45, %46 : vector<128x8xf32>
    %48 = vector.broadcast %27 : vector<1x8xf32> to vector<128x8xf32>
    %49 = arith.addf %47, %48 : vector<128x8xf32>
    %c0_57 = arith.constant 0 : index
    %c0_58 = arith.constant 0 : index
    %50 = vector.load %arg4[%c0_57, %c0_58] : memref<1x8xf32, #tpu.memory_space<vmem>>, vector<1x8xf32>
    %c0_59 = arith.constant 0 : index
    %c0_60 = arith.constant 0 : index
    %51 = vector.load %arg5[%c0_59, %c0_60] : memref<1x8xf32, #tpu.memory_space<vmem>>, vector<1x8xf32>
    %cst_61 = arith.constant dense<0.000000e+00> : vector<8xf32>
    %52 = vector.multi_reduction <add>, %49, %cst_61 [0] : vector<128x8xf32> to vector<8xf32>
    %53 = vector.shape_cast %52 : vector<8xf32> to vector<1x8xf32>
    %cst_62 = arith.constant 1.280000e+02 : f32
    %54 = vector.broadcast %cst_62 : f32 to vector<1x8xf32>
    %55 = arith.divf %53, %54 : vector<1x8xf32>
    %56 = vector.broadcast %55 : vector<1x8xf32> to vector<128x8xf32>
    %57 = arith.subf %49, %56 : vector<128x8xf32>
    %58 = arith.mulf %57, %57 : vector<128x8xf32>
    %cst_63 = arith.constant dense<0.000000e+00> : vector<8xf32>
    %59 = vector.multi_reduction <add>, %58, %cst_63 [0] : vector<128x8xf32> to vector<8xf32>
    %60 = vector.shape_cast %59 : vector<8xf32> to vector<1x8xf32>
    %cst_64 = arith.constant 1.280000e+02 : f32
    %61 = vector.broadcast %cst_64 : f32 to vector<1x8xf32>
    %62 = arith.divf %60, %61 : vector<1x8xf32>
    %63 = vector.broadcast %55 : vector<1x8xf32> to vector<128x8xf32>
    %64 = arith.subf %49, %63 : vector<128x8xf32>
    %cst_65 = arith.constant 9.99999974E-6 : f32
    %65 = vector.broadcast %cst_65 : f32 to vector<1x8xf32>
    %66 = arith.addf %62, %65 : vector<1x8xf32>
    %67 = math.rsqrt %66 : vector<1x8xf32>
    %68 = vector.broadcast %67 : vector<1x8xf32> to vector<128x8xf32>
    %69 = arith.mulf %64, %68 : vector<128x8xf32>
    %70 = vector.broadcast %50 : vector<1x8xf32> to vector<128x8xf32>
    %71 = arith.mulf %69, %70 : vector<128x8xf32>
    %72 = vector.broadcast %51 : vector<1x8xf32> to vector<128x8xf32>
    %73 = arith.addf %71, %72 : vector<128x8xf32>
    %74 = vector.shape_cast %73 : vector<128x8xf32> to vector<2x8x8x8xf32>
    %c0_66 = arith.constant 0 : index
    %c0_67 = arith.constant 0 : index
    %c0_68 = arith.constant 0 : index
    %c0_69 = arith.constant 0 : index
    %75 = vector.load %arg6[%c0_66, %c0_67, %c0_68, %c0_69] : memref<2x8x8x8xf32, #tpu.memory_space<vmem>>, vector<2x8x8x8xf32>
    tpu.vector_store %arg6[%c0_66, %c0_67, %c0_68, %c0_69], %74 {strides = array<i32>} : memref<2x8x8x8xf32, #tpu.memory_space<vmem>>, vector<2x8x8x8xf32>,
    return
  }
}

</mosaic_0001>

<bundles_post_ra>
// kernel: downsample_forward.4
= control target key start
LH: loop header
LB: loop body
LE: loop exit
PB: predicated region body
PF: predicated region fallthrough
CT: control target
= control target key end

     0   :  { %vm135_vm0 = vcmask 31744   ;;  %vm158_vm1 = vcmask 25600   ;;  %v2270_v3 = vmov 0.0   ;;  %s2271_s29 = smov 8   ;;  %s2272_s30 = smov 4   ;;  %vm1055_vm2 = vcmask 1041408   ;;  %s3514_s0 = inlined_call_operand.vmem [shape: f32[2,2,2,8,8,4], index: 0, kind: input, shape index: {}]   ;;  %s3515_s4 = inlined_call_operand.vmem [shape: f32[2,8,8,4], index: 4, kind: output, shape index: {0}]   ;;  %s3516_s1 = inlined_call_operand.vmem [shape: bf16[36,4], index: 1, kind: input, shape index: {}]   ;;  %s3517_s2 = inlined_call_operand.vmem [shape: f32[1,4], index: 2, kind: input, shape index: {}]   ;;  %s3518_s3 = inlined_call_operand.vmem [shape: f32[1,4], index: 3, kind: input, shape index: {}]   ;;  %s3519_s5 = inlined_call_operand.vmem [shape: f32[2,8,8,4], index: 5, kind: output, shape index: {1}]  }
   0x1   :  { %v20_v0 = vld [vmem:[%s3514_s0] sm:$0xff]  ;;  %157 = vst.msk [vmem:[#allocation2] sm:$0xff] %vm135_vm0, %v2270_v3  ;;  %160 = vst.msk [vmem:[#allocation2 + $0x10] sm:$0xff] %vm135_vm0, %v2270_v3  ;;  %v21_v6 = vld [vmem:[%s3514_s0 + $0x8] sm:$0xff]  ;;  %s2273_s22 = smov 12   ;;  %s2274_s16 = smov 16  }
   0x2   :  { %v1769_v1 = vld [vmem:[%s3514_s0 + $0x80] sm:$0xff]  ;;  %159 = vst.msk [vmem:[#allocation2 + $0x8] sm:$0x3] %vm158_vm1, %v2270_v3  ;;  %161 = vst.msk [vmem:[#allocation2 + $0x18] sm:$0x3] %vm158_vm1, %v2270_v3  ;;  %v22_v7 = vld [vmem:[%s3514_s0 + $0x10] sm:$0xff] }
   0x3   :  { %v1785_v2 = vld [vmem:[%s3514_s0 + $0x100] sm:$0xff]  ;;  %162 = vst.msk [vmem:[#allocation2 + $0x20] sm:$0xff] %vm135_vm0, %v2270_v3  ;;  %164 = vst.msk [vmem:[#allocation2 + $0x30] sm:$0xff] %vm135_vm0, %v2270_v3  ;;  %v53_v4 = vmax.f32 %v20_v0, %v1769_v1  ;;  %v1770_v9 = vld [vmem:[%s3514_s0 + $0x88] sm:$0xff]  ;;  %s2275_s23 = smov 20   ;;  %s2276_s15 = smov 24  }
   0x4   :  { %163 = vst.msk [vmem:[#allocation2 + $0x28] sm:$0x3] %vm158_vm1, %v2270_v3  ;;  %165 = vst.msk [vmem:[#allocation2 + $0x38] sm:$0x3] %vm158_vm1, %v2270_v3  ;;  %v1801_v5 = vld [vmem:[%s3514_s0 + $0x180] sm:$0xff]  ;;  %v1771_v10 = vld [vmem:[%s3514_s0 + $0x90] sm:$0xff]  ;;  %v54_v12 = vmax.f32 %v21_v6, %v1770_v9 }
   0x5   :  { %166 = vst.msk [vmem:[#allocation2 + $0x40] sm:$0xff] %vm135_vm0, %v2270_v3  ;;  %168 = vst.msk [vmem:[#allocation2 + $0x50] sm:$0xff] %vm135_vm0, %v2270_v3  ;;  %v103_v8 = vmax.f32 %v1785_v2, %v1801_v5  ;;  %v1786_v11 = vld [vmem:[%s3514_s0 + $0x108] sm:$0xff]  ;;  %v55_v13 = vmax.f32 %v22_v7, %v1771_v10  ;;  %v1787_v14 = vld [vmem:[%s3514_s0 + $0x110] sm:$0xff]  ;;  %s2277_s26 = smov 28   ;;  %vm888_vm3 = vcmask 64512  }
   0x6   :  { %167 = vst.msk [vmem:[#allocation2 + $0x48] sm:$0x3] %vm158_vm1, %v2270_v3  ;;  %169 = vst.msk [vmem:[#allocation2 + $0x58] sm:$0x3] %vm158_vm1, %v2270_v3  ;;  %v1802_v15 = vld [vmem:[%s3514_s0 + $0x188] sm:$0xff]  ;;  %v1803_v16 = vld [vmem:[%s3514_s0 + $0x190] sm:$0xff] }
   0x7   :  { %170 = vst.msk [vmem:[#allocation2 + $0x60] sm:$0xff] %vm135_vm0, %v2270_v3  ;;  %172 = vst.msk [vmem:[#allocation2 + $0x70] sm:$0xff] %vm135_vm0, %v2270_v3  ;;  %v119_v17 = vmax.f32 %v53_v4, %v103_v8  ;;  %v104_v18 = vmax.f32 %v1786_v11, %v1802_v15  ;;  %v105_v19 = vmax.f32 %v1787_v14, %v1803_v16  ;;  %v23_v20 = vld [vmem:[%s3514_s0 + $0x18] sm:$0xff]  ;;  %v24_v25 = vld [vmem:[%s3514_s0 + $0x20] sm:$0xff]  ;;  %vm905_vm4 = vcmask 97280  }
   0x8   :  { %171 = vst.msk [vmem:[#allocation2 + $0x68] sm:$0x3] %vm158_vm1, %v2270_v3  ;;  %173 = vst.msk [vmem:[#allocation2 + $0x78] sm:$0x3] %vm158_vm1, %v2270_v3  ;;  %v1772_v21 = vld [vmem:[%s3514_s0 + $0x98] sm:$0xff]  ;;  %v1773_v26 = vld [vmem:[%s3514_s0 + $0xa0] sm:$0xff] }
   0x9   :  { %174 = vst.msk [vmem:[#allocation2 + $0x80] sm:$0xff] %vm135_vm0, %v2270_v3  ;;  %176 = vst.msk [vmem:[#allocation2 + $0x90] sm:$0xff] %vm135_vm0, %v2270_v3  ;;  %v1788_v22 = vld [vmem:[%s3514_s0 + $0x118] sm:$0xff]  ;;  %v56_v23 = vmax.f32 %v23_v20, %v1772_v21  ;;  %v120_v27 = vmax.f32 %v54_v12, %v104_v18  ;;  %v121_v28 = vmax.f32 %v55_v13, %v105_v19  ;;  %v1789_v31 = vld [vmem:[%s3514_s0 + $0x120] sm:$0xff]  ;;  %vm922_vm5 = vcmask 130048  }
   0xa   :  { %175 = vst.msk [vmem:[#allocation2 + $0x88] sm:$0x3] %vm158_vm1, %v2270_v3  ;;  %177 = vst.msk [vmem:[#allocation2 + $0x98] sm:$0x3] %vm158_vm1, %v2270_v3  ;;  %v1804_v24 = vld [vmem:[%s3514_s0 + $0x198] sm:$0xff]  ;;  %v57_v30 = vmax.f32 %v24_v25, %v1773_v26  ;;  %v1805_v32 = vld [vmem:[%s3514_s0 + $0x1a0] sm:$0xff] }
   0xb   :  { %178 = vst.msk [vmem:[#allocation2 + $0xa0] sm:$0xff] %vm135_vm0, %v2270_v3  ;;  %180 = vst.msk [vmem:[#allocation2 + $0xb0] sm:$0xff] %vm135_vm0, %v2270_v3  ;;  %v106_v29 = vmax.f32 %v1788_v22, %v1804_v24  ;;  %v25_v33 = vld [vmem:[%s3514_s0 + $0x28] sm:$0xff]  ;;  %v107_v34 = vmax.f32 %v1789_v31, %v1805_v32  ;;  %v26_v35 = vld [vmem:[%s3514_s0 + $0x30] sm:$0xff]  ;;  %vm939_vm6 = vcmask 162816   ;;  %vm956_vm7 = vcmask 195584  }
   0xc   :  { %179 = vst.msk [vmem:[#allocation2 + $0xa8] sm:$0x3] %vm158_vm1, %v2270_v3  ;;  %181 = vst.msk [vmem:[#allocation2 + $0xb8] sm:$0x3] %vm158_vm1, %v2270_v3  ;;  %v1774_v37 = vld [vmem:[%s3514_s0 + $0xa8] sm:$0xff]  ;;  %v1775_v38 = vld [vmem:[%s3514_s0 + $0xb0] sm:$0xff] }
   0xd   :  { %182 = vst.msk [vmem:[#allocation2 + $0xc0] sm:$0xff] %vm135_vm0, %v2270_v3  ;;  %184 = vst.msk [vmem:[#allocation2 + $0xd0] sm:$0xff] %vm135_vm0, %v2270_v3  ;;  %v122_v36 = vmax.f32 %v56_v23, %v106_v29  ;;  %v1790_v39 = vld [vmem:[%s3514_s0 + $0x128] sm:$0xff]  ;;  %v123_v40 = vmax.f32 %v57_v30, %v107_v34  ;;  %v58_v41 = vmax.f32 %v25_v33, %v1774_v37  ;;  %v1791_v43 = vld [vmem:[%s3514_s0 + $0x130] sm:$0xff]  ;;  %vm973_vm8 = vcmask 228352  }
   0xe   :  { %183 = vst.msk [vmem:[#allocation2 + $0xc8] sm:$0x3] %vm158_vm1, %v2270_v3  ;;  %185 = vst.msk [vmem:[#allocation2 + $0xd8] sm:$0x3] %vm158_vm1, %v2270_v3  ;;  %v59_v42 = vmax.f32 %v26_v35, %v1775_v38  ;;  %v1806_v44 = vld [vmem:[%s3514_s0 + $0x1a8] sm:$0xff]  ;;  %v1807_v45 = vld [vmem:[%s3514_s0 + $0x1b0] sm:$0xff] }
   0xf   :  { %186 = vst.msk [vmem:[#allocation2 + $0xe0] sm:$0xff] %vm135_vm0, %v2270_v3  ;;  %188 = vst.msk [vmem:[#allocation2 + $0xf0] sm:$0xff] %vm135_vm0, %v2270_v3  ;;  %v108_v46 = vmax.f32 %v1790_v39, %v1806_v44  ;;  %v109_v47 = vmax.f32 %v1791_v43, %v1807_v45  ;;  %v27_v48 = vld [vmem:[%s3514_s0 + $0x38] sm:$0xff]  ;;  %v247_v51 = vld [vmem:[#allocation2 + $0x2] sm:$0xff]  ;;  %vm990_vm9 = vcmask 261120   ;;  %vm1030_vm10 = vcmask 293888  }
  0x10   :  { %187 = vst.msk [vmem:[#allocation2 + $0xe8] sm:$0x3] %vm158_vm1, %v2270_v3  ;;  %189 = vst.msk [vmem:[#allocation2 + $0xf8] sm:$0x3] %vm158_vm1, %v2270_v3  ;;  %v1776_v49 = vld [vmem:[%s3514_s0 + $0xb8] sm:$0xff]  ;;  %v231_v52 = vld [vmem:[#allocation2 + $0x1] sm:$0xff] }
  0x11   :  { %190 = vst.msk [vmem:[#allocation2 + $0x100] sm:$0xff] %vm135_vm0, %v2270_v3  ;;  %192 = vst.msk [vmem:[#allocation2 + $0x110] sm:$0xff] %vm135_vm0, %v2270_v3  ;;  %v1792_v50 = vld [vmem:[%s3514_s0 + $0x138] sm:$0xff]  ;;  %v60_v53 = vmax.f32 %v27_v48, %v1776_v49  ;;  %v124_v55 = vmax.f32 %v58_v41, %v108_v46  ;;  %v125_v56 = vmax.f32 %v59_v42, %v109_v47  ;;  %v28_v58 = vld [vmem:[%s3514_s0 + $0x40] sm:$0xff] }
  0x12   :  { %191 = vst.msk [vmem:[#allocation2 + $0x108] sm:$0x3] %vm158_vm1, %v2270_v3  ;;  %193 = vst.msk [vmem:[#allocation2 + $0x118] sm:$0x3] %vm158_vm1, %v2270_v3  ;;  %v1808_v54 = vld [vmem:[%s3514_s0 + $0x1b8] sm:$0xff]  ;;  %v1777_v59 = vld [vmem:[%s3514_s0 + $0xc0] sm:$0xff] }
  0x13   :  { %194 = vst.msk [vmem:[#allocation2 + $0x120] sm:$0xff] %vm135_vm0, %v2270_v3  ;;  %196 = vst.msk [vmem:[#allocation2 + $0x130] sm:$0xff] %vm135_vm0, %v2270_v3  ;;  %v110_v57 = vmax.f32 %v1792_v50, %v1808_v54  ;;  %v1793_v60 = vld [vmem:[%s3514_s0 + $0x140] sm:$0xff]  ;;  %v61_v63 = vmax.f32 %v28_v58, %v1777_v59  ;;  %v29_v16 = vld [vmem:[%s3514_s0 + $0x48] sm:$0xff] }
  0x14   :  { %195 = vst.msk [vmem:[#allocation2 + $0x128] sm:$0x3] %vm158_vm1, %v2270_v3  ;;  %197 = vst.msk [vmem:[#allocation2 + $0x138] sm:$0x3] %vm158_vm1, %v2270_v3  ;;  %v1809_v3 = vld [vmem:[%s3514_s0 + $0x1c0] sm:$0xff]  ;;  %v1778_v20 = vld [vmem:[%s3514_s0 + $0xc8] sm:$0xff] }
  0x15   :  { %199 = vst.msk [vmem:[#allocation2 + $0x11] sm:$0xff] %vm135_vm0, %v119_v17  ;;  %136 = vst.msk [vmem:[%s3515_s4] sm:$0xff] %vm135_vm0, %v119_v17  ;;  %v126_v2 = vmax.f32 %v60_v53, %v110_v57  ;;  %v111_v7 = vmax.f32 %v1793_v60, %v1809_v3  ;;  %v30_v17 = vld [vmem:[%s3514_s0 + $0x50] sm:$0xff]  ;;  %v1794_v23 = vld [vmem:[%s3514_s0 + $0x148] sm:$0xff]  ;;  %v62_v25 = vmax.f32 %v29_v16, %v1778_v20 }
  0x16   :  { %138 = vst.msk [vmem:[%s3515_s4 + $0x10] sm:$0xff] %vm135_vm0, %v121_v28  ;;  %200 = vst.msk [vmem:[#allocation2 + $0x21] sm:$0xff] %vm135_vm0, %v120_v27  ;;  %v1779_v21 = vld [vmem:[%s3514_s0 + $0xd0] sm:$0xff]  ;;  %v1810_v30 = vld [vmem:[%s3514_s0 + $0x1c8] sm:$0xff] }
  0x17   :  { %201 = vst.msk [vmem:[#allocation2 + $0x31] sm:$0xff] %vm135_vm0, %v121_v28  ;;  %137 = vst.msk [vmem:[%s3515_s4 + $0x8] sm:$0xff] %vm135_vm0, %v120_v27  ;;  %v127_v15 = vmax.f32 %v61_v63, %v111_v7  ;;  %v1795_v24 = vld [vmem:[%s3514_s0 + $0x150] sm:$0xff]  ;;  %v63_v26 = vmax.f32 %v30_v17, %v1779_v21  ;;  %v112_v32 = vmax.f32 %v1794_v23, %v1810_v30  ;;  %v31_v34 = vld [vmem:[%s3514_s0 + $0x58] sm:$0xff] }
  0x18   :  { %139 = vst.msk [vmem:[%s3515_s4 + $0x18] sm:$0xff] %vm135_vm0, %v122_v36  ;;  %202 = vst.msk [vmem:[#allocation2 + $0x41] sm:$0xff] %vm135_vm0, %v122_v36  ;;  %v1811_v31 = vld [vmem:[%s3514_s0 + $0x1d0] sm:$0xff]  ;;  %v1780_v35 = vld [vmem:[%s3514_s0 + $0xd8] sm:$0xff] }
  0x19   :  { %140 = vst.msk [vmem:[%s3515_s4 + $0x20] sm:$0xff] %vm135_vm0, %v123_v40  ;;  %203 = vst.msk [vmem:[#allocation2 + $0x51] sm:$0xff] %vm135_vm0, %v123_v40  ;;  %v113_v33 = vmax.f32 %v1795_v24, %v1811_v31  ;;  %v1796_v36 = vld [vmem:[%s3514_s0 + $0x158] sm:$0xff]  ;;  %v64_v37 = vmax.f32 %v31_v34, %v1780_v35  ;;  %v128_v40 = vmax.f32 %v62_v25, %v112_v32  ;;  %v32_v42 = vld [vmem:[%s3514_s0 + $0x60] sm:$0xff] }
  0x1a   :  { %142 = vst.msk [vmem:[%s3515_s4 + $0x30] sm:$0xff] %vm135_vm0, %v125_v56  ;;  %204 = vst.msk [vmem:[#allocation2 + $0x61] sm:$0xff] %vm135_vm0, %v124_v55  ;;  %v1812_v38 = vld [vmem:[%s3514_s0 + $0x1d8] sm:$0xff]  ;;  %v1781_v43 = vld [vmem:[%s3514_s0 + $0xe0] sm:$0xff] }
  0x1b   :  { %205 = vst.msk [vmem:[#allocation2 + $0x71] sm:$0xff] %vm135_vm0, %v125_v56  ;;  %141 = vst.msk [vmem:[%s3515_s4 + $0x28] sm:$0xff] %vm135_vm0, %v124_v55  ;;  %v129_v41 = vmax.f32 %v63_v26, %v113_v33  ;;  %v114_v46 = vmax.f32 %v1796_v36, %v1812_v38  ;;  %v65_v47 = vmax.f32 %v32_v42, %v1781_v43  ;;  %v1797_v48 = vld [vmem:[%s3514_s0 + $0x160] sm:$0xff]  ;;  %v1782_v53 = vld [vmem:[%s3514_s0 + $0xe8] sm:$0xff] }
  0x1c   :  { %v2480_v61 = vld [vmem:[#allocation2 + $0x12] sm:$0xff]  ;;  %143 = vst.msk [vmem:[%s3515_s4 + $0x38] sm:$0xff] %vm135_vm0, %v126_v2  ;;  %206 = vst.msk [vmem:[#allocation2 + $0x81] sm:$0xff] %vm135_vm0, %v126_v2  ;;  %v1813_v49 = vld [vmem:[%s3514_s0 + $0x1e0] sm:$0xff] }
  0x1d   :  { %v2482_v62 = vld [vmem:[#allocation2 + $0x11] sm:$0xff]  ;;  %v1891_v0 = vpack.i.bf16 %v2480_v61, %v247_v51  ;;  %v2499_v4 = vld [vmem:[#allocation2 + $0x22] sm:$0xff]  ;;  %207 = vst.msk [vmem:[#allocation2 + $0xb1] sm:$0xff] %vm135_vm0, %v127_v15  ;;  %144 = vst.msk [vmem:[%s3515_s4 + $0x40] sm:$0xff] %vm135_vm0, %v127_v15  ;;  %v115_v50 = vmax.f32 %v1797_v48, %v1813_v49  ;;  %v130_v54 = vmax.f32 %v64_v37, %v114_v46 }
  0x1e   :  { %v1881_v1 = vpack.i.bf16 %v2482_v62, %v231_v52  ;;  %v2501_v5 = vld [vmem:[#allocation2 + $0x32] sm:$0xff]  ;;  %v233_v6 = vld [vmem:[#allocation2 + $0x21] sm:$0xff]  ;;  %v1921_v39 = vpack.i.bf16 %v2499_v4, %v2480_v61  ;;  %146 = vst.msk [vmem:[%s3515_s4 + $0x50] sm:$0xff] %vm135_vm0, %v129_v41  ;;  %208 = vst.msk [vmem:[#allocation2 + $0xc1] sm:$0xff] %vm135_vm0, %v128_v40 }
  0x1f   :  { %1892 = vrot.lane.b32.xlu1 %v1891_v0, %s2271_s29  ;;  %v2507_v8 = vpack.i.bf16 %v2501_v5, %v2499_v4  ;;  %v234_v9 = vld [vmem:[#allocation2 + $0x31] sm:$0xff]  ;;  %v2520_v13 = vld [vmem:[#allocation2 + $0x40] sm:$0xff]  ;;  %v1911_v28 = vpack.i.bf16 %v233_v6, %v2482_v62  ;;  %209 = vst.msk [vmem:[#allocation2 + $0xd1] sm:$0xff] %vm135_vm0, %v129_v41  ;;  %145 = vst.msk [vmem:[%s3515_s4 + $0x48] sm:$0xff] %vm135_vm0, %v128_v40  ;;  %v131_v60 = vmax.f32 %v65_v47, %v115_v50 }
  0x20   :  { %1882 = vrot.lane.b32.xlu0 %v1881_v1, %s2272_s30  ;;  %v2509_v10 = vld [vmem:[#allocation2 + $0x10] sm:$0xff]  ;;  %v2516_v11 = vpack.i.bf16 %v234_v9, %v233_v6  ;;  %v2522_v14 = vld [vmem:[#allocation2 + $0x20] sm:$0xff]  ;;  %v33_v51 = vld [vmem:[%s3514_s0 + $0x68] sm:$0xff]  ;;  %147 = vst.msk [vmem:[%s3515_s4 + $0x58] sm:$0xff] %vm135_vm0, %v130_v54 }
  0x21   :  { %v2518_v12 = vld [vmem:[#allocation2 + $0x30] sm:$0xff]  ;;  %v1901_v19 = vpack.i.bf16 %v2522_v14, %v2509_v10  ;;  %v2549_v22 = vld [vmem:[#allocation2 + $0x41] sm:$0xff]  ;;  %v66_v56 = vmax.f32 %v33_v51, %v1782_v53  ;;  %v35_v0 = vld [vmem:[%s3514_s0 + $0x78] sm:$0xff]  ;;  %210 = vst.msk [vmem:[#allocation2 + $0xe1] sm:$0xff] %vm135_vm0, %v130_v54 }
  0x22   :  { %v1906_v18 = vpack.i.bf16 %v2520_v13, %v2518_v12  ;;  %v1916_v27 = vpack.i.bf16 %v2549_v22, %v234_v9  ;;  %v2561_v29 = vld [vmem:[#allocation2 + $0x42] sm:$0xff]  ;;  %v2593_v45 = vld [vmem:[#allocation2 + $0x50] sm:$0xff]  ;;  %v1931_v59 = vpack.i.bf16 %v2518_v12, %v2522_v14  ;;  %v1784_v4 = vld [vmem:[%s3514_s0 + $0xf8] sm:$0xff]  ;;  %148 = vst.msk [vmem:[%s3515_s4 + $0x60] sm:$0xff] %vm135_vm0, %v131_v60 }
  0x23   :  { %1897 = vrot.lane.b32.xlu1 %v2507_v8, %s2271_s29  ;;  %v1926_v44 = vpack.i.bf16 %v2561_v29, %v2501_v5  ;;  %v34_v52 = vld [vmem:[%s3514_s0 + $0x70] sm:$0xff]  ;;  %v1798_v57 = vld [vmem:[%s3514_s0 + $0x168] sm:$0xff]  ;;  %v1936_v1 = vpack.i.bf16 %v2593_v45, %v2520_v13  ;;  %v1800_v5 = vld [vmem:[%s3514_s0 + $0x178] sm:$0xff]  ;;  %211 = vst.msk [vmem:[#allocation2 + $0xf1] sm:$0xff] %vm135_vm0, %v131_v60  ;;  %v68_v7 = vmax.f32 %v35_v0, %v1784_v4 }
  0x24   :  { %1887 = vrot.lane.b32.xlu0 %v2516_v11, %s2272_s30  ;;  %v1783_v55 = vld [vmem:[%s3514_s0 + $0xf0] sm:$0xff]  ;;  %v1814_v62 = vld [vmem:[%s3514_s0 + $0x1e8] sm:$0xff]  ;;  %v1816_v9 = vld [vmem:[%s3514_s0 + $0x1f8] sm:$0xff] }
  0x25   :  { %v1799_v58 = vld [vmem:[%s3514_s0 + $0x170] sm:$0xff]  ;;  %v67_v61 = vmax.f32 %v34_v52, %v1783_v55  ;;  %v116_v2 = vmax.f32 %v1798_v57, %v1814_v62  ;;  %v118_v17 = vmax.f32 %v1800_v5, %v1816_v9  ;;  %v237_v24 = vld [vmem:[#allocation2 + $0x61] sm:$0xff] }
  0x26   :  { %v1815_v63 = vld [vmem:[%s3514_s0 + $0x1f0] sm:$0xff]  ;;  %v253_v30 = vld [vmem:[#allocation2 + $0x62] sm:$0xff] }
  0x27   :  { %1907 = vrot.lane.b32.xlu1 %v1906_v18, %s2273_s22  ;;  %v117_v3 = vmax.f32 %v1799_v58, %v1815_v63  ;;  %v2655_v6 = vld [vmem:[#allocation2 + $0x51] sm:$0xff]  ;;  %v132_v15 = vmax.f32 %v66_v56, %v116_v2  ;;  %v2201_v18 = vld [vmem:[%s3516_s1 + $0x10] ss:$0 sps:$4 sm:$0x33]   ;;  %v134_v21 = vmax.f32 %v68_v7, %v118_v17  ;;  %v270_v33 = vld [vmem:[#allocation2 + $0x80] sm:$0xff] }
  0x28   :  { %1902 = vrot.lane.b32.xlu0 %v1901_v19, %s2273_s22  ;;  %v2202_v19 = vld [vmem:[%s3516_s1 + $0x8] sm:$0xff]   ;;  %v1946_v20 = vpack.i.bf16 %v2655_v6, %v2549_v22  ;;  %v1057_v23 = vsel %vm1055_vm2, %v2201_v18, 0  ;;  %1869 = vmatprep.subr.msk.bf16.mxu0 %vm1055_vm2, %v2201_v18  ;;  %v2203_v22 = vld [vmem:[%s3516_s1] sm:$0xff]   ;;  %v238_v25 = vld [vmem:[#allocation2 + $0x71] sm:$0xff]  ;;  %v1991_v37 = vpack.i.bf16 %v237_v24, %v2655_v6 }
  0x29   :  { %v133_v16 = vmax.f32 %v67_v61, %v117_v3  ;;  %212 = vst.msk [vmem:[#allocation2 + $0x101] sm:$0xff] %vm135_vm0, %v132_v15  ;;  %149 = vst.msk [vmem:[%s3515_s4 + $0x68] sm:$0xff] %vm135_vm0, %v132_v15  ;;  %1870 = vmatprep.subr.msk.bf16.mxu1 %vm1055_vm2, %v2201_v18  ;;  %1842 = vmatpush3.bf16.msra.mxu0 %v1057_v23  ;;  %v347_v26 = vld [vmem:[#allocation2 + $0x52] sm:$0xff]  ;;  %v2707_v34 = vld [vmem:[#allocation2 + $0x60] sm:$0xff] }
  0x2a   :  { %151 = vst.msk [vmem:[%s3515_s4 + $0x78] sm:$0xff] %vm135_vm0, %v134_v21  ;;  %214 = vst.msk [vmem:[#allocation2 + $0x121] sm:$0xff] %vm135_vm0, %v134_v21  ;;  %1866 = vmatpush3.bf16.msra.mxu1 %v1057_v23  ;;  %1843 = vmatprep.subr.bf16.mxu0 %v2202_v19  ;;  %v254_v31 = vld [vmem:[#allocation2 + $0x72] sm:$0xff]  ;;  %v286_v35 = vld [vmem:[#allocation2 + $0x81] sm:$0xff]  ;;  %v2001_v40 = vpack.i.bf16 %v253_v30, %v347_v26 }
  0x2b   :  { %1917 = vrot.lane.b32.xlu1 %v1916_v27, %s2274_s16  ;;  %150 = vst.msk [vmem:[%s3515_s4 + $0x70] sm:$0xff] %vm135_vm0, %v133_v16  ;;  %213 = vst.msk [vmem:[#allocation2 + $0x111] sm:$0xff] %vm135_vm0, %v133_v16  ;;  %1864 = vmatprep.subr.bf16.mxu1 %v2202_v19  ;;  %s2278_s4 = smov 32   ;;  %v1966_v27 = vpack.i.bf16 %v238_v25, %v237_v24  ;;  %v2705_v32 = vld [vmem:[#allocation2 + $0x70] sm:$0xff]  ;;  %v1996_v36 = vpack.i.bf16 %v286_v35, %v238_v25  ;;  %v302_v38 = vld [vmem:[#allocation2 + $0x82] sm:$0xff] }
  0x2c   :  { %1912 = vrot.lane.b32.xlu0 %v1911_v28, %s2274_s16  ;;  %v1961_v28 = vpack.i.bf16 %v347_v26, %v2561_v29  ;;  %v1981_v29 = vpack.i.bf16 %v2707_v34, %v2593_v45  ;;  %v319_v41 = vld [vmem:[#allocation2 + $0x90] sm:$0xff]  ;;  %v2011_v43 = vpack.i.bf16 %v2705_v32, %v2707_v34  ;;  %v239_v47 = vld [vmem:[#allocation2 + $0xa1] sm:$0xff] }
  0x2d   :  { %1844 = vmatpush3.bf16.msra.mxu0 %v2202_v19  ;;  %v2016_v42 = vpack.i.bf16 %v319_v41, %v270_v33  ;;  %v240_v48 = vld [vmem:[#allocation2 + $0xb1] sm:$0xff]  ;;  %v241_v50 = vld [vmem:[#allocation2 + $0xc1] sm:$0xff] }
  0x2e   :  { %1867 = vmatpush3.bf16.msra.mxu1 %v2202_v19  ;;  %1845 = vmatprep.subr.bf16.mxu0 %v2203_v22  ;;  %v2036_v49 = vpack.i.bf16 %v240_v48, %v239_v47  ;;  %v242_v51 = vld [vmem:[#allocation2 + $0xd1] sm:$0xff]  ;;  %v255_v55 = vld [vmem:[#allocation2 + $0xa2] sm:$0xff]  ;;  %v2071_v5 = vpack.i.bf16 %v241_v50, %v240_v48 }
  0x2f   :  { %1927 = vrot.lane.b32.xlu1 %v1926_v44, %s2275_s23  ;;  %1865 = vmatprep.subr.bf16.mxu1 %v2203_v22  ;;  %v335_v44 = vld [vmem:[#allocation2 + $0x91] sm:$0xff]  ;;  %v2046_v53 = vpack.i.bf16 %v242_v51, %v241_v50  ;;  %v257_v56 = vld [vmem:[#allocation2 + $0xc2] sm:$0xff] }
  0x30   :  { %1922 = vrot.lane.b32.xlu0 %v1921_v39, %s2275_s23  ;;  %v2006_v39 = vpack.i.bf16 %v302_v38, %v254_v31  ;;  %v2026_v46 = vpack.i.bf16 %v335_v44, %v286_v35  ;;  %v351_v52 = vld [vmem:[#allocation2 + $0x92] sm:$0xff]  ;;  %v2735_v63 = vld [vmem:[#allocation2 + $0xe0] sm:$0xff] }
  0x31   :  { %1846 = vmatpush3.bf16.msra.mxu0 %v2203_v22  ;;  %v2041_v54 = vpack.i.bf16 %v351_v52, %v302_v38  ;;  %v258_v57 = vld [vmem:[#allocation2 + $0xd2] sm:$0xff]  ;;  %v2737_v0 = vld [vmem:[#allocation2 + $0xc0] sm:$0xff] }
  0x32   :  { %1868 = vmatpush3.bf16.msra.mxu1 %v2203_v22  ;;  %v256_v58 = vld [vmem:[#allocation2 + $0xb2] sm:$0xff]  ;;  %v290_v3 = vld [vmem:[#allocation2 + $0xe1] sm:$0xff] }
  0x33   :  { %1937 = vrot.lane.b32.xlu1 %v1936_v1, %s2276_s15  ;;  %v2051_v60 = vpack.i.bf16 %v256_v58, %v255_v55  ;;  %v2731_v61 = vld [vmem:[#allocation2 + $0xb0] sm:$0xff]  ;;  %v2076_v4 = vpack.i.bf16 %v290_v3, %v242_v51  ;;  %v306_v6 = vld [vmem:[#allocation2 + $0xe2] sm:$0xff]  ;;  %v2081_v9 = vpack.i.bf16 %v257_v56, %v256_v58 }
  0x34   :  { %1932 = vrot.lane.b32.xlu0 %v1931_v59, %s2276_s15  ;;  %v2056_v59 = vpack.i.bf16 %v258_v57, %v257_v56  ;;  %v2733_v62 = vld [vmem:[#allocation2 + $0xd0] sm:$0xff]  ;;  %v2061_v2 = vpack.i.bf16 %v2737_v0, %v2731_v61  ;;  %v2086_v7 = vpack.i.bf16 %v306_v6, %v258_v57  ;;  %v261_v25 = vld [vmem:[#allocation2 + $0x102] sm:$0xff] }
  0x35   :  { %v2066_v1 = vpack.i.bf16 %v2735_v63, %v2733_v62  ;;  %v2749_v15 = vld [vmem:[#allocation2 + $0xf0] sm:$0xff]  ;;  %v2091_v17 = vpack.i.bf16 %v2733_v62, %v2737_v0  ;;  %v215_v57 = vld [vmem:[#allocation2] sm:$0xff] }
  0x36   :  { %v2096_v16 = vpack.i.bf16 %v2749_v15, %v2735_v63  ;;  %v339_v18 = vld [vmem:[#allocation2 + $0xf1] sm:$0xff] }
  0x37   :  { %1947 = vrot.lane.b32.xlu1 %v1946_v20, %s2277_s26  ;;  %v2106_v19 = vpack.i.bf16 %v339_v18, %v290_v3  ;;  %v246_v21 = vld [vmem:[#allocation2 + $0x111] sm:$0xff] }
  0x38   :  { %1942 = vrot.lane.b32.xlu0 %v2516_v11, %s2277_s26  ;;  %v1976_v11 = vpack.i.bf16 %v254_v31, %v253_v30  ;;  %v355_v23 = vld [vmem:[#allocation2 + $0xf2] sm:$0xff]  ;;  %v278_v30 = vld [vmem:[#allocation2 + $0x120] sm:$0xff] }
  0x39   :  { %v2121_v24 = vpack.i.bf16 %v355_v23, %v306_v6  ;;  %v262_v26 = vld [vmem:[#allocation2 + $0x112] sm:$0xff]  ;;  %v2767_v31 = vld [vmem:[#allocation2 + $0x100] sm:$0xff]  ;;  %v2161_v38 = vpack.i.bf16 %v261_v25, %v355_v23 }
  0x3a   :  { %v359_v47 = vld [vmem:[#allocation2 + $0x132] sm:$0xff] }
  0x3b   :  { %1957 = vrot.lane.b32.xlu1 %v1946_v20, %s2272_s30  ;;  %v245_v20 = vld [vmem:[#allocation2 + $0x101] sm:$0xff] }
  0x3c   :  { %1952 = vrot.lane.b32.xlu0 %v2507_v8, %s2278_s4  ;;  %v1986_v8 = vpack.i.bf16 %v270_v33, %v2705_v32  ;;  %v2126_v22 = vpack.i.bf16 %v246_v21, %v245_v20  ;;  %v2141_v33 = vpack.i.bf16 %v2767_v31, %v2749_v15  ;;  %v2151_v35 = vpack.i.bf16 %v245_v20, %v339_v18 }
  0x3f   :  { %1967 = vrot.lane.b32.xlu1 %v1966_v27, %s2272_s30 }
  0x40   :  { %1962 = vrot.lane.b32.xlu0 %v1961_v28, %s2278_s4 }
  0x43   :  { %1977 = vrot.lane.b32.xlu1 %v1976_v11, %s2271_s29 }
  0x44   :  { %1972 = vrot.lane.b32.xlu0 %v1961_v28, %s2271_s29  ;;  %v2765_v28 = vld [vmem:[#allocation2 + $0x110] sm:$0xff] }
  0x45   :  { %v2171_v41 = vpack.i.bf16 %v2765_v28, %v2767_v31 }
  0x47   :  { %1987 = vrot.lane.b32.xlu1 %v1986_v8, %s2273_s22  ;;  %v294_v8 = vld [vmem:[#allocation2 + $0x121] sm:$0xff] }
  0x48   :  { %1982 = vrot.lane.b32.xlu0 %v1981_v29, %s2273_s22  ;;  %v2156_v29 = vpack.i.bf16 %v294_v8, %v246_v21 }
  0x4b   :  { %1997 = vrot.lane.b32.xlu1 %v1996_v36, %s2274_s16  ;;  %v310_v36 = vld [vmem:[#allocation2 + $0x122] sm:$0xff] }
  0x4c   :  { %1992 = vrot.lane.b32.xlu0 %v1991_v37, %s2274_s16  ;;  %v2166_v37 = vpack.i.bf16 %v310_v36, %v262_v26  ;;  %v2196_v50 = vpack.i.bf16 %v359_v47, %v310_v36 }
  0x4f   :  { %2007 = vrot.lane.b32.xlu1 %v2006_v39, %s2275_s23  ;;  %v327_v39 = vld [vmem:[#allocation2 + $0x130] sm:$0xff] }
  0x50   :  { %2002 = vrot.lane.b32.xlu0 %v2001_v40, %s2275_s23  ;;  %v2176_v40 = vpack.i.bf16 %v327_v39, %v278_v30 }
  0x53   :  { %2017 = vrot.lane.b32.xlu1 %v2016_v42, %s2276_s15  ;;  %v343_v42 = vld [vmem:[#allocation2 + $0x131] sm:$0xff] }
  0x54   :  { %2012 = vrot.lane.b32.xlu0 %v2011_v43, %s2276_s15 }
  0x57   :  { %2027 = vrot.lane.b32.xlu1 %v2026_v46, %s2277_s26  ;;  %v2186_v46 = vpack.i.bf16 %v343_v42, %v294_v8 }
  0x58   :  { %2022 = vrot.lane.b32.xlu0 %v1966_v27, %s2277_s26  ;;  %v2136_v27 = vpack.i.bf16 %v262_v26, %v261_v25 }
  0x5b   :  { %2037 = vrot.lane.b32.xlu1 %v2036_v49, %s2272_s30 }
  0x5c   :  { %2032 = vrot.lane.b32.xlu0 %v1976_v11, %s2278_s4  ;;  %v2146_v11 = vpack.i.bf16 %v278_v30, %v2765_v28 }
  0x5f   :  { %2047 = vrot.lane.b32.xlu1 %v2046_v53, %s2272_s30 }
  0x60   :  { %2042 = vrot.lane.b32.xlu0 %v2041_v54, %s2278_s4 }
  0x63   :  { %2057 = vrot.lane.b32.xlu1 %v2056_v59, %s2271_s29 }
  0x64   :  { %2052 = vrot.lane.b32.xlu0 %v2051_v60, %s2271_s29 }
  0x67   :  { %2067 = vrot.lane.b32.xlu1 %v2066_v1, %s2273_s22 }
  0x68   :  { %2062 = vrot.lane.b32.xlu0 %v2061_v2, %s2273_s22 }
  0x6b   :  { %2077 = vrot.lane.b32.xlu1 %v2076_v4, %s2274_s16 }
  0x6c   :  { %2072 = vrot.lane.b32.xlu0 %v2071_v5, %s2274_s16 }
  0x6f   :  { %2087 = vrot.lane.b32.xlu1 %v2086_v7, %s2275_s23 }
  0x70   :  { %2082 = vrot.lane.b32.xlu0 %v2081_v9, %s2275_s23 }
  0x73   :  { %2097 = vrot.lane.b32.xlu1 %v2096_v16, %s2276_s15 }
  0x74   :  { %2092 = vrot.lane.b32.xlu0 %v2091_v17, %s2276_s15 }
  0x77   :  { %2107 = vrot.lane.b32.xlu1 %v2106_v19, %s2277_s26 }
  0x78   :  { %2102 = vrot.lane.b32.xlu0 %v2046_v53, %s2277_s26 }
  0x7b   :  { %2117 = vrot.lane.b32.xlu1 %v2106_v19, %s2272_s30 }
  0x7c   :  { %2112 = vrot.lane.b32.xlu0 %v2056_v59, %s2278_s4 }
  0x7f   :  { %2127 = vrot.lane.b32.xlu1 %v2126_v22, %s2272_s30 }
  0x80   :  { %2122 = vrot.lane.b32.xlu0 %v2121_v24, %s2278_s4 }
  0x83   :  { %2137 = vrot.lane.b32.xlu1 %v2136_v27, %s2271_s29 }
  0x84   :  { %2132 = vrot.lane.b32.xlu0 %v2121_v24, %s2271_s29 }
  0x87   :  { %2147 = vrot.lane.b32.xlu1 %v2146_v11, %s2273_s22 }
  0x88   :  { %2142 = vrot.lane.b32.xlu0 %v2141_v33, %s2273_s22 }
  0x8b   :  { %2157 = vrot.lane.b32.xlu1 %v2156_v29, %s2274_s16 }
  0x8c   :  { %2152 = vrot.lane.b32.xlu0 %v2151_v35, %s2274_s16 }
  0x8f   :  { %2167 = vrot.lane.b32.xlu1 %v2166_v37, %s2275_s23 }
  0x90   :  { %2162 = vrot.lane.b32.xlu0 %v2161_v38, %s2275_s23 }
  0x91   :  { %v1893_v43 = vpop.permute.xlu1 %1892 }
  0x92   :  { %v1883_v44 = vpop.permute.xlu0 %1882  ;;  %v1895_v2 = vunpack.i.h.bf16 %v1893_v43  ;;  %v1894_v3 = vunpack.i.l.bf16 %v1893_v43 }
  0x93   :  { %2177 = vrot.lane.b32.xlu1 %v2176_v40, %s2276_s15  ;;  %v1885_v55 = vunpack.i.h.bf16 %v1883_v44  ;;  %v1884_v56 = vunpack.i.l.bf16 %v1883_v44 }
  0x94   :  { %2172 = vrot.lane.b32.xlu0 %v2171_v41, %s2276_s15 }
  0x95   :  { %v1898_v48 = vpop.permute.xlu1 %1897  ;;  %v872_v4 = vsel %vm135_vm0, %v215_v57, %v1884_v56  ;;  %v873_v5 = vsel %vm135_vm0, %v2509_v10, %v1885_v55 }
  0x96   :  { %v1888_v49 = vpop.permute.xlu0 %1887  ;;  %v1900_v6 = vunpack.i.h.bf16 %v1898_v48  ;;  %v1899_v7 = vunpack.i.l.bf16 %v1898_v48  ;;  %v890_v10 = vsel %vm888_vm3, %v873_v5, %v1895_v2 }
  0x97   :  { %2187 = vrot.lane.b32.xlu1 %v2186_v46, %s2277_s26  ;;  %v1890_v58 = vunpack.i.h.bf16 %v1888_v49  ;;  %v1889_v59 = vunpack.i.l.bf16 %v1888_v49 }
  0x98   :  { %2182 = vrot.lane.b32.xlu0 %v2126_v22, %s2277_s26  ;;  %v889_v22 = vsel %vm888_vm3, %v872_v4, %v1894_v3 }
  0x99   :  { %v1908_v51 = vpop.permute.xlu1 %1907  ;;  %v875_v9 = vsel %vm135_vm0, %v2518_v12, %v1890_v58  ;;  %v874_v16 = vsel %vm135_vm0, %v2522_v14, %v1889_v59 }
  0x9a   :  { %v1903_v52 = vpop.permute.xlu0 %1902  ;;  %v1910_v17 = vunpack.i.h.bf16 %v1908_v51  ;;  %v1909_v18 = vunpack.i.l.bf16 %v1908_v51  ;;  %v891_v24 = vsel %vm888_vm3, %v874_v16, %v1899_v7  ;;  %v892_v12 = vsel %vm888_vm3, %v875_v9, %v1900_v6 }
  0x9b   :  { %2197 = vrot.lane.b32.xlu1 %v2196_v50, %s2278_s4  ;;  %v1905_v21 = vunpack.i.h.bf16 %v1903_v52  ;;  %v1904_v23 = vunpack.i.l.bf16 %v1903_v52 }
  0x9c   :  { %2192 = vrot.lane.b32.xlu0 %v2136_v27, %s2278_s4  ;;  %v908_v26 = vsel %vm905_vm4, %v891_v24, %v1909_v18  ;;  %v909_v27 = vsel %vm905_vm4, %v892_v12, %v1910_v17 }
  0x9d   :  { %v2788_v53 = vpop.permute.xlu1 %1917  ;;  %v906_v29 = vsel %vm905_vm4, %v889_v22, %v1904_v23  ;;  %v907_v35 = vsel %vm905_vm4, %v890_v10, %v1905_v21 }
  0x9e   :  { %v1913_v54 = vpop.permute.xlu0 %1912  ;;  %v1920_v38 = vunpack.i.h.bf16 %v2788_v53  ;;  %v1919_v39 = vunpack.i.l.bf16 %v2788_v53 }
  0x9f   :  { %v1915_v25 = vunpack.i.h.bf16 %v1913_v54  ;;  %v1914_v14 = vunpack.i.l.bf16 %v1913_v54 }
  0xa0   :  { %v926_v2 = vsel %vm922_vm5, %v909_v27, %v1920_v38 }
  0xa1   :  { %v2790_v60 = vpop.permute.xlu1 %1927  ;;  %v923_v42 = vsel %vm922_vm5, %v906_v29, %v1914_v14  ;;  %v924_v43 = vsel %vm922_vm5, %v907_v35, %v1915_v25 }
  0xa2   :  { %v1923_v1 = vpop.permute.xlu0 %1922  ;;  %v1930_v44 = vunpack.i.h.bf16 %v2790_v60  ;;  %v1929_v46 = vunpack.i.l.bf16 %v2790_v60 }
  0xa3   :  { %v1925_v30 = vunpack.i.h.bf16 %v1923_v1  ;;  %v1924_v11 = vunpack.i.l.bf16 %v1923_v1  ;;  %v925_v1 = vsel %vm922_vm5, %v908_v26, %v1919_v39 }
  0xa4   :  { %v942_v5 = vsel %vm939_vm6, %v925_v1, %v1929_v46  ;;  %v943_v6 = vsel %vm939_vm6, %v926_v2, %v1930_v44 }
  0xa5   :  { %v1938_v19 = vpop.permute.xlu1 %1937  ;;  %v940_v47 = vsel %vm939_vm6, %v923_v42, %v1924_v11  ;;  %v941_v48 = vsel %vm939_vm6, %v924_v43, %v1925_v30 }
  0xa6   :  { %v1933_v20 = vpop.permute.xlu0 %1932  ;;  %v1940_v49 = vunpack.i.h.bf16 %v1938_v19  ;;  %v1939_v50 = vunpack.i.l.bf16 %v1938_v19 }
  0xa7   :  { %v1935_v36 = vunpack.i.h.bf16 %v1933_v20  ;;  %v1934_v37 = vunpack.i.l.bf16 %v1933_v20 }
  0xa8   :  { %v959_v17 = vsel %vm956_vm7, %v942_v5, %v1939_v50  ;;  %v960_v18 = vsel %vm956_vm7, %v943_v6, %v1940_v49 }
  0xa9   :  { %v1948_v33 = vpop.permute.xlu1 %1947  ;;  %v957_v53 = vsel %vm956_vm7, %v940_v47, %v1934_v37  ;;  %v958_v54 = vsel %vm956_vm7, %v941_v48, %v1935_v36 }
  0xaa   :  { %v1943_v8 = vpop.permute.xlu0 %1942  ;;  %v1950_v57 = vunpack.i.h.bf16 %v1948_v33  ;;  %v1949_v58 = vunpack.i.l.bf16 %v1948_v33 }
  0xab   :  { %v1945_v40 = vunpack.i.h.bf16 %v1943_v8  ;;  %v1944_v41 = vunpack.i.l.bf16 %v1943_v8 }
  0xac   :  { %v976_v21 = vsel %vm973_vm8, %v959_v17, %v1949_v58  ;;  %v977_v23 = vsel %vm973_vm8, %v960_v18, %v1950_v57 }
  0xad   :  { %v1958_v51 = vpop.permute.xlu1 %1957  ;;  %v974_v59 = vsel %vm973_vm8, %v957_v53, %v1944_v41  ;;  %v975_v60 = vsel %vm973_vm8, %v958_v54, %v1945_v40 }
  0xae   :  { %v1953_v52 = vpop.permute.xlu0 %1952  ;;  %v1960_v35 = vunpack.i.h.bf16 %v1958_v51  ;;  %v1959_v36 = vunpack.i.l.bf16 %v1958_v51 }
  0xaf   :  { %v1955_v55 = vunpack.i.h.bf16 %v1953_v52  ;;  %v1954_v56 = vunpack.i.l.bf16 %v1953_v52 }
  0xb0   :  { %v877_v50 = vsel %vm135_vm0, %v2593_v45, %v1960_v35  ;;  %v876_v51 = vsel %vm135_vm0, %v2520_v13, %v1959_v36 }
  0xb1   :  { %v991_v3 = vsel %vm990_vm9, %v974_v59, %v1954_v56  ;;  %v992_v4 = vsel %vm990_vm9, %v975_v60, %v1955_v55  ;;  %v1968_v7 = vpop.permute.xlu1 %1967 }
  0xb2   :  { %v1963_v9 = vpop.permute.xlu0 %1962  ;;  %v1007_v16 = vpack.c.bf16 %v992_v4, %v991_v3  ;;  %v1970_v8 = vunpack.i.h.bf16 %v1968_v7  ;;  %v1969_v29 = vunpack.i.l.bf16 %v1968_v7 }
  0xb3   :  { %v1965_v19 = vunpack.i.h.bf16 %v1963_v9  ;;  %v1964_v20 = vunpack.i.l.bf16 %v1963_v9 }
  0xb4   :  { %1847 = vmatprep.mubr.msk.bf16.mxu0 %vm1030_vm10, %v1007_v16  ;;  %v879_v46 = vsel %vm135_vm0, %v2705_v32, %v1970_v8  ;;  %v878_v47 = vsel %vm135_vm0, %v2707_v34, %v1969_v29 }
  0xb5   :  { %v993_v22 = vsel %vm990_vm9, %v976_v21, %v1964_v20  ;;  %v994_v10 = vsel %vm990_vm9, %v977_v23, %v1965_v19  ;;  %v1978_v12 = vpop.permute.xlu1 %1977 }
  0xb6   :  { %v1008_v24 = vpack.c.bf16 %v994_v10, %v993_v22  ;;  %v1973_v25 = vpop.permute.xlu0 %1972  ;;  %v1980_v37 = vunpack.i.h.bf16 %v1978_v12  ;;  %v1979_v38 = vunpack.i.l.bf16 %v1978_v12 }
  0xb7   :  { %v1975_v39 = vunpack.i.h.bf16 %v1973_v25  ;;  %v1974_v40 = vunpack.i.l.bf16 %v1973_v25 }
  0xb8   :  { %1848 = vmatmul.mubr.msk.bf16.vlgmr.msra.gmra.mxu0 %vm1030_vm10, %v1008_v24  ;;  %v895_v52 = vsel %vm888_vm3, %v878_v47, %v1979_v38  ;;  %v896_v53 = vsel %vm888_vm3, %v879_v46, %v1980_v37 }
  0xb9   :  { %v1988_v14 = vpop.permute.xlu1 %1987  ;;  %v894_v54 = vsel %vm888_vm3, %v877_v50, %v1975_v39  ;;  %v893_v55 = vsel %vm888_vm3, %v876_v51, %v1974_v40 }
  0xba   :  { %v1983_v26 = vpop.permute.xlu0 %1982  ;;  %v1990_v41 = vunpack.i.h.bf16 %v1988_v14  ;;  %v1989_v42 = vunpack.i.l.bf16 %v1988_v14 }
  0xbb   :  { %v1985_v48 = vunpack.i.h.bf16 %v1983_v26  ;;  %v1984_v49 = vunpack.i.l.bf16 %v1983_v26 }
  0xbc   :  { %v912_v34 = vsel %vm905_vm4, %v895_v52, %v1989_v42  ;;  %v913_v57 = vsel %vm905_vm4, %v896_v53, %v1990_v41 }
  0xbd   :  { %v2833_v27 = vpop.permute.xlu1 %1997  ;;  %v910_v13 = vsel %vm905_vm4, %v893_v55, %v1984_v49  ;;  %v911_v1 = vsel %vm905_vm4, %v894_v54, %v1985_v48 }
  0xbe   :  { %v1993_v30 = vpop.permute.xlu0 %1992  ;;  %v2000_v4 = vunpack.i.h.bf16 %v2833_v27  ;;  %v1999_v5 = vunpack.i.l.bf16 %v2833_v27 }
  0xbf   :  { %v1995_v32 = vunpack.i.h.bf16 %v1993_v30  ;;  %v1994_v56 = vunpack.i.l.bf16 %v1993_v30 }
  0xc0   :  { %v930_v8 = vsel %vm922_vm5, %v913_v57, %v2000_v4 }
  0xc1   :  { %v2835_v11 = vpop.permute.xlu1 %2007  ;;  %v927_v9 = vsel %vm922_vm5, %v910_v13, %v1994_v56  ;;  %v928_v16 = vsel %vm922_vm5, %v911_v1, %v1995_v32  ;;  %v223_v1 = vld [vmem:[#allocation2 + $0xa0] sm:$0xff] }
  0xc2   :  { %v2003_v33 = vpop.permute.xlu0 %2002  ;;  %v2010_v17 = vunpack.i.h.bf16 %v2835_v11  ;;  %v2009_v18 = vunpack.i.l.bf16 %v2835_v11 }
  0xc3   :  { %v2005_v58 = vunpack.i.h.bf16 %v2003_v33  ;;  %v2004_v59 = vunpack.i.l.bf16 %v2003_v33  ;;  %v929_v33 = vsel %vm922_vm5, %v912_v34, %v1999_v5 }
  0xc4   :  { %v946_v36 = vsel %vm939_vm6, %v929_v33, %v2009_v18  ;;  %v947_v37 = vsel %vm939_vm6, %v930_v8, %v2010_v17 }
  0xc5   :  { %v2018_v43 = vpop.permute.xlu1 %2017  ;;  %v944_v19 = vsel %vm939_vm6, %v927_v9, %v2004_v59  ;;  %v945_v20 = vsel %vm939_vm6, %v928_v16, %v2005_v58 }
  0xc6   :  { %v2013_v44 = vpop.permute.xlu0 %2012  ;;  %v2020_v21 = vunpack.i.h.bf16 %v2018_v43  ;;  %v2019_v23 = vunpack.i.l.bf16 %v2018_v43 }
  0xc7   :  { %v2015_v2 = vunpack.i.h.bf16 %v2013_v44  ;;  %v2014_v3 = vunpack.i.l.bf16 %v2013_v44 }
  0xc8   :  { %v963_v41 = vsel %vm956_vm7, %v946_v36, %v2019_v23  ;;  %v964_v42 = vsel %vm956_vm7, %v947_v37, %v2020_v21 }
  0xc9   :  { %v2028_v45 = vpop.permute.xlu1 %2027  ;;  %v961_v24 = vsel %vm956_vm7, %v944_v19, %v2014_v3  ;;  %v962_v12 = vsel %vm956_vm7, %v945_v20, %v2015_v2 }
  0xca   :  { %v2023_v60 = vpop.permute.xlu0 %2022  ;;  %v2030_v26 = vunpack.i.h.bf16 %v2028_v45  ;;  %v2029_v27 = vunpack.i.l.bf16 %v2028_v45 }
  0xcb   :  { %v2025_v6 = vunpack.i.h.bf16 %v2023_v60  ;;  %v2024_v7 = vunpack.i.l.bf16 %v2023_v60 }
  0xcc   :  { %v980_v46 = vsel %vm973_vm8, %v963_v41, %v2029_v27  ;;  %v981_v47 = vsel %vm973_vm8, %v964_v42, %v2030_v26 }
  0xcd   :  { %v2038_v22 = vpop.permute.xlu1 %2037  ;;  %v978_v30 = vsel %vm973_vm8, %v961_v24, %v2024_v7  ;;  %v979_v11 = vsel %vm973_vm8, %v962_v12, %v2025_v6 }
  0xce   :  { %v2033_v10 = vpop.permute.xlu0 %2032  ;;  %v2040_v59 = vunpack.i.h.bf16 %v2038_v22  ;;  %v2039_v45 = vunpack.i.l.bf16 %v2038_v22 }
  0xcf   :  { %v2035_v25 = vunpack.i.h.bf16 %v2033_v10  ;;  %v2034_v14 = vunpack.i.l.bf16 %v2033_v10 }
  0xd0   :  { %v881_v19 = vsel %vm135_vm0, %v2731_v61, %v2040_v59  ;;  %v880_v20 = vsel %vm135_vm0, %v223_v1, %v2039_v45 }
  0xd1   :  { %v995_v29 = vsel %vm990_vm9, %v978_v30, %v2034_v14  ;;  %v996_v35 = vsel %vm990_vm9, %v979_v11, %v2035_v25  ;;  %v2048_v39 = vpop.permute.xlu1 %2047 }
  0xd2   :  { %v1009_v38 = vpack.c.bf16 %v996_v35, %v995_v29  ;;  %v2043_v40 = vpop.permute.xlu0 %2042  ;;  %v2050_v57 = vunpack.i.h.bf16 %v2048_v39  ;;  %v2049_v58 = vunpack.i.l.bf16 %v2048_v39 }
  0xd3   :  { %v2045_v43 = vunpack.i.h.bf16 %v2043_v40  ;;  %v2044_v44 = vunpack.i.l.bf16 %v2043_v40 }
  0xd4   :  { %1851 = vmatprep.mubr.msk.bf16.mxu0 %vm1030_vm10, %v1009_v38  ;;  %v883_v9 = vsel %vm135_vm0, %v2733_v62, %v2050_v57  ;;  %v882_v16 = vsel %vm135_vm0, %v2737_v0, %v2049_v58 }
  0xd5   :  { %v998_v48 = vsel %vm990_vm9, %v981_v47, %v2045_v43  ;;  %v997_v49 = vsel %vm990_vm9, %v980_v46, %v2044_v44  ;;  %v2058_v51 = vpop.permute.xlu1 %2057 }
  0xd6   :  { %v1010_v50 = vpack.c.bf16 %v998_v48, %v997_v49  ;;  %v2053_v52 = vpop.permute.xlu0 %2052  ;;  %v2060_v60 = vunpack.i.h.bf16 %v2058_v51  ;;  %v2059_v13 = vunpack.i.l.bf16 %v2058_v51 }
  0xd7   :  { %v2055_v2 = vunpack.i.h.bf16 %v2053_v52  ;;  %v2054_v3 = vunpack.i.l.bf16 %v2053_v52 }
  0xd8   :  { %1852 = vmatmul.mubr.msk.bf16.gmra.mxu0 %vm1030_vm10, %v1010_v50  ;;  %v899_v21 = vsel %vm888_vm3, %v882_v16, %v2059_v13  ;;  %v900_v23 = vsel %vm888_vm3, %v883_v9, %v2060_v60 }
  0xd9   :  { %v2068_v53 = vpop.permute.xlu1 %2067  ;;  %v898_v22 = vsel %vm888_vm3, %v881_v19, %v2055_v2  ;;  %v897_v10 = vsel %vm888_vm3, %v880_v20, %v2054_v3 }
  0xda   :  { %v2063_v54 = vpop.permute.xlu0 %2062  ;;  %v2070_v4 = vunpack.i.h.bf16 %v2068_v53  ;;  %v2069_v5 = vunpack.i.l.bf16 %v2068_v53 }
  0xdb   :  { %v2065_v17 = vunpack.i.h.bf16 %v2063_v54  ;;  %v2064_v18 = vunpack.i.l.bf16 %v2063_v54 }
  0xdc   :  { %v916_v12 = vsel %vm905_vm4, %v899_v21, %v2069_v5  ;;  %v917_v0 = vsel %vm905_vm4, %v900_v23, %v2070_v4 }
  0xdd   :  { %v2879_v55 = vpop.permute.xlu1 %2077  ;;  %v914_v27 = vsel %vm905_vm4, %v897_v10, %v2064_v18  ;;  %v915_v30 = vsel %vm905_vm4, %v898_v22, %v2065_v17 }
  0xde   :  { %v2073_v32 = vpop.permute.xlu0 %2072  ;;  %v2080_v8 = vunpack.i.h.bf16 %v2879_v55  ;;  %v2079_v29 = vunpack.i.l.bf16 %v2879_v55 }
  0xdf   :  { %v2075_v24 = vunpack.i.h.bf16 %v2073_v32  ;;  %v2074_v62 = vunpack.i.l.bf16 %v2073_v32 }
  0xe0   :  { %v933_v32 = vsel %vm922_vm5, %v916_v12, %v2079_v29 }
  0xe1   :  { %v2881_v56 = vpop.permute.xlu1 %2087  ;;  %v931_v37 = vsel %vm922_vm5, %v914_v27, %v2074_v62  ;;  %v932_v38 = vsel %vm922_vm5, %v915_v30, %v2075_v24 }
  0xe2   :  { %v2083_v34 = vpop.permute.xlu0 %2082  ;;  %v2090_v39 = vunpack.i.h.bf16 %v2881_v56  ;;  %v2089_v40 = vunpack.i.l.bf16 %v2881_v56  ;;  %v934_v56 = vsel %vm922_vm5, %v917_v0, %v2080_v8 }
  0xe3   :  { %v2085_v25 = vunpack.i.h.bf16 %v2083_v34  ;;  %v2084_v14 = vunpack.i.l.bf16 %v2083_v34 }
  0xe4   :  { %v950_v58 = vsel %vm939_vm6, %v933_v32, %v2089_v40  ;;  %v951_v59 = vsel %vm939_vm6, %v934_v56, %v2090_v39 }
  0xe5   :  { %v2098_v6 = vpop.permute.xlu1 %2097  ;;  %v948_v41 = vsel %vm939_vm6, %v931_v37, %v2084_v14  ;;  %v949_v42 = vsel %vm939_vm6, %v932_v38, %v2085_v25 }
  0xe6   :  { %v2093_v7 = vpop.permute.xlu0 %2092  ;;  %v2100_v43 = vunpack.i.h.bf16 %v2098_v6  ;;  %v2099_v44 = vunpack.i.l.bf16 %v2098_v6 }
  0xe7   :  { %v2095_v11 = vunpack.i.h.bf16 %v2093_v7  ;;  %v2094_v33 = vunpack.i.l.bf16 %v2093_v7 }
  0xe8   :  { %v967_v1 = vsel %vm956_vm7, %v950_v58, %v2099_v44  ;;  %v968_v2 = vsel %vm956_vm7, %v951_v59, %v2100_v43 }
  0xe9   :  { %v2108_v26 = vpop.permute.xlu1 %2107  ;;  %v965_v48 = vsel %vm956_vm7, %v948_v41, %v2094_v33  ;;  %v966_v49 = vsel %vm956_vm7, %v949_v42, %v2095_v11 }
  0xea   :  { %v2103_v61 = vpop.permute.xlu0 %2102  ;;  %v2110_v52 = vunpack.i.h.bf16 %v2108_v26  ;;  %v2109_v53 = vunpack.i.l.bf16 %v2108_v26 }
  0xeb   :  { %v2105_v35 = vunpack.i.h.bf16 %v2103_v61  ;;  %v2104_v36 = vunpack.i.l.bf16 %v2103_v61 }
  0xec   :  { %v984_v5 = vsel %vm973_vm8, %v967_v1, %v2109_v53  ;;  %v985_v6 = vsel %vm973_vm8, %v968_v2, %v2110_v52 }
  0xed   :  { %v2118_v46 = vpop.permute.xlu1 %2117  ;;  %v982_v54 = vsel %vm973_vm8, %v965_v48, %v2104_v36  ;;  %v983_v55 = vsel %vm973_vm8, %v966_v49, %v2105_v35 }
  0xee   :  { %v2113_v47 = vpop.permute.xlu0 %2112  ;;  %v2120_v22 = vunpack.i.h.bf16 %v2118_v46  ;;  %v2119_v10 = vunpack.i.l.bf16 %v2118_v46 }
  0xef   :  { %v2115_v50 = vunpack.i.h.bf16 %v2113_v47  ;;  %v2114_v51 = vunpack.i.l.bf16 %v2113_v47 }
  0xf0   :  { %v885_v8 = vsel %vm135_vm0, %v2749_v15, %v2120_v22  ;;  %v884_v29 = vsel %vm135_vm0, %v2735_v63, %v2119_v10 }
  0xf1   :  { %v999_v34 = vsel %vm990_vm9, %v982_v54, %v2114_v51  ;;  %v1000_v57 = vsel %vm990_vm9, %v983_v55, %v2115_v50  ;;  %v2128_v45 = vpop.permute.xlu1 %2127 }
  0xf2   :  { %v2123_v60 = vpop.permute.xlu0 %2122  ;;  %v1011_v13 = vpack.c.bf16 %v1000_v57, %v999_v34  ;;  %v2130_v24 = vunpack.i.h.bf16 %v2128_v45  ;;  %v2129_v62 = vunpack.i.l.bf16 %v2128_v45 }
  0xf3   :  { %v2125_v3 = vunpack.i.h.bf16 %v2123_v60  ;;  %v2124_v4 = vunpack.i.l.bf16 %v2123_v60 }
  0xf4   :  { %1855 = vmatprep.mubr.msk.bf16.mxu1 %vm1030_vm10, %v1011_v13  ;;  %v887_v35 = vsel %vm135_vm0, %v2765_v28, %v2130_v24  ;;  %v886_v36 = vsel %vm135_vm0, %v2767_v31, %v2129_v62 }
  0xf5   :  { %v1002_v7 = vsel %vm990_vm9, %v985_v6, %v2125_v3  ;;  %v1001_v9 = vsel %vm990_vm9, %v984_v5, %v2124_v4  ;;  %v2138_v17 = vpop.permute.xlu1 %2137 }
  0xf6   :  { %v1012_v16 = vpack.c.bf16 %v1002_v7, %v1001_v9  ;;  %v2133_v18 = vpop.permute.xlu0 %2132  ;;  %v2140_v12 = vunpack.i.h.bf16 %v2138_v17  ;;  %v2139_v0 = vunpack.i.l.bf16 %v2138_v17 }
  0xf7   :  { %v2135_v25 = vunpack.i.h.bf16 %v2133_v18  ;;  %v2134_v14 = vunpack.i.l.bf16 %v2133_v18 }
  0xf8   :  { %1856 = vmatmul.mubr.msk.bf16.vlgmr.msra.gmra.mxu1 %vm1030_vm10, %v1012_v16  ;;  %v903_v37 = vsel %vm888_vm3, %v886_v36, %v2139_v0  ;;  %v904_v38 = vsel %vm888_vm3, %v887_v35, %v2140_v12 }
  0xf9   :  { %v2148_v19 = vpop.permute.xlu1 %2147  ;;  %v902_v39 = vsel %vm888_vm3, %v885_v8, %v2135_v25  ;;  %v901_v40 = vsel %vm888_vm3, %v884_v29, %v2134_v14 }
  0xfa   :  { %v2143_v20 = vpop.permute.xlu0 %2142  ;;  %v2150_v27 = vunpack.i.h.bf16 %v2148_v19  ;;  %v2149_v30 = vunpack.i.l.bf16 %v2148_v19 }
  0xfb   :  { %v2145_v11 = vunpack.i.h.bf16 %v2143_v20  ;;  %v2144_v33 = vunpack.i.l.bf16 %v2143_v20 }
  0xfc   :  { %v920_v46 = vsel %vm905_vm4, %v903_v37, %v2149_v30  ;;  %v921_v28 = vsel %vm905_vm4, %v904_v38, %v2150_v27 }
  0xfd   :  { %v2158_v21 = vpop.permute.xlu1 %2157  ;;  %v918_v31 = vsel %vm905_vm4, %v901_v40, %v2144_v33  ;;  %v919_v47 = vsel %vm905_vm4, %v902_v39, %v2145_v11 }
  0xfe   :  { %v2153_v23 = vpop.permute.xlu0 %2152  ;;  %v2160_v15 = vunpack.i.h.bf16 %v2158_v21  ;;  %v2159_v43 = vunpack.i.l.bf16 %v2158_v21 }
  0xff   :  { %v2155_v44 = vunpack.i.h.bf16 %v2153_v23  ;;  %v2154_v63 = vunpack.i.l.bf16 %v2153_v23 }
 0x100   :  { %v937_v34 = vsel %vm922_vm5, %v920_v46, %v2159_v43  ;;  %v938_v57 = vsel %vm922_vm5, %v921_v28, %v2160_v15 }
 0x101   :  { %v2168_v26 = vpop.permute.xlu1 %2167  ;;  %v935_v58 = vsel %vm922_vm5, %v918_v31, %v2154_v63  ;;  %v936_v59 = vsel %vm922_vm5, %v919_v47, %v2155_v44 }
 0x102   :  { %v2163_v61 = vpop.permute.xlu0 %2162  ;;  %v2170_v48 = vunpack.i.h.bf16 %v2168_v26  ;;  %v2169_v49 = vunpack.i.l.bf16 %v2168_v26 }
 0x103   :  { %v2165_v50 = vunpack.i.h.bf16 %v2163_v61  ;;  %v2164_v51 = vunpack.i.l.bf16 %v2163_v61 }
 0x104   :  { %v954_v2 = vsel %vm939_vm6, %v937_v34, %v2169_v49  ;;  %v955_v3 = vsel %vm939_vm6, %v938_v57, %v2170_v48 }
 0x105   :  { %v2178_v41 = vpop.permute.xlu1 %2177  ;;  %v952_v4 = vsel %vm939_vm6, %v935_v58, %v2164_v51  ;;  %v953_v5 = vsel %vm939_vm6, %v936_v59, %v2165_v50 }
 0x106   :  { %v2173_v42 = vpop.permute.xlu0 %2172  ;;  %v2180_v52 = vunpack.i.h.bf16 %v2178_v41  ;;  %v2179_v53 = vunpack.i.l.bf16 %v2178_v41 }
 0x107   :  { %v2175_v54 = vunpack.i.h.bf16 %v2173_v42  ;;  %v2174_v55 = vunpack.i.l.bf16 %v2173_v42 }
 0x108   :  { %v971_v6 = vsel %vm956_vm7, %v954_v2, %v2179_v53  ;;  %v972_v7 = vsel %vm956_vm7, %v955_v3, %v2180_v52 }
 0x109   :  { %v2188_v32 = vpop.permute.xlu1 %2187  ;;  %v969_v9 = vsel %vm956_vm7, %v952_v4, %v2174_v55  ;;  %v970_v16 = vsel %vm956_vm7, %v953_v5, %v2175_v54 }
 0x10a   :  { %v2183_v56 = vpop.permute.xlu0 %2182  ;;  %v2190_v45 = vunpack.i.h.bf16 %v2188_v32  ;;  %v2189_v60 = vunpack.i.l.bf16 %v2188_v32 }
 0x10b   :  { %v2185_v13 = vunpack.i.h.bf16 %v2183_v56  ;;  %v2184_v1 = vunpack.i.l.bf16 %v2183_v56 }
 0x10c   :  { %v988_v22 = vsel %vm973_vm8, %v971_v6, %v2189_v60  ;;  %v989_v10 = vsel %vm973_vm8, %v972_v7, %v2190_v45 }
 0x10d   :  { %v2198_v17 = vpop.permute.xlu1 %2197  ;;  %v986_v24 = vsel %vm973_vm8, %v969_v9, %v2184_v1  ;;  %v987_v62 = vsel %vm973_vm8, %v970_v16, %v2185_v13 }
 0x10e   :  { %v2193_v18 = vpop.permute.xlu0 %2192  ;;  %v2200_v19 = vunpack.i.h.bf16 %v2198_v17  ;;  %v2199_v20 = vunpack.i.l.bf16 %v2198_v17 }
 0x10f   :  { %v2195_v21 = vunpack.i.h.bf16 %v2193_v18  ;;  %v2194_v23 = vunpack.i.l.bf16 %v2193_v18 }
 0x110   :  { %v1005_v12 = vsel %vm990_vm9, %v988_v22, %v2199_v20  ;;  %v1006_v0 = vsel %vm990_vm9, %v989_v10, %v2200_v19 }
 0x111   :  { %v1003_v25 = vsel %vm990_vm9, %v986_v24, %v2194_v23  ;;  %v1004_v14 = vsel %vm990_vm9, %v987_v62, %v2195_v21  ;;  %v1014_v26 = vpack.c.bf16 %v1006_v0, %v1005_v12 }
 0x112   :  { %v1013_v61 = vpack.c.bf16 %v1004_v14, %v1003_v25 }
 0x114   :  { %1859 = vmatprep.mubr.msk.bf16.mxu1 %vm1030_vm10, %v1013_v61 }
 0x115   :  { %1860 = vmatmul.mubr.msk.bf16.gmra.mxu1 %vm1030_vm10, %v1014_v26 }
 0x178   :  { %v1849_v27 = vpop.f32.mrf.mxu0 }
 0x179   :  { %v1161_v39 = vsel %vm135_vm0, %v1849_v27, 0.0 }
 0x17a   :  { %v1093_v30 = vpop.f32.mrf.mxu0 }
 0x17b   :  { %v1158_v36 = vsel %vm135_vm0, %v1093_v30, 0.0 }
 0x17c   :  { %v1850_v11 = vpop.f32.mrf.mxu0 }
 0x17d   :  { %v1163_v15 = vsel %vm135_vm0, %v1850_v11, 0.0 }
 0x17e   :  { %v1096_v33 = vpop.f32.mrf.mxu0 }
 0x17f   :  { %v1159_v29 = vsel %vm135_vm0, %v1096_v33, 0.0 }
 0x180   :  { %v1160_v37 = vadd.f32 %v1159_v29, %v1158_v36 }
 0x182   :  { %v1162_v40 = vadd.f32 %v1161_v39, %v1160_v37 }
 0x184   :  { %v1164_v44 = vadd.f32 %v1163_v15, %v1162_v40 }
 0x198   :  { %v2962_v8 = vpop.f32.mrf.mxu0 }
 0x199   :  { %v1169_v48 = vsel %vm135_vm0, %v2962_v8, 0.0 }
 0x19a   :  { %v1109_v35 = vpop.f32.mrf.mxu0 }
 0x19b   :  { %v1165_v43 = vsel %vm135_vm0, %v1109_v35, 0.0 }
 0x19c   :  { %v1854_v38 = vpop.f32.mrf.mxu0  ;;  %v1166_v46 = vadd.f32 %v1165_v43, %v1164_v44 }
 0x19d   :  { %v1171_v51 = vsel %vm135_vm0, %v1854_v38, 0.0 }
 0x19e   :  { %v1112_v41 = vpop.f32.mrf.mxu0 }
 0x19f   :  { %v1167_v63 = vsel %vm135_vm0, %v1112_v41, 0.0 }
 0x1a0   :  { %v1168_v31 = vadd.f32 %v1167_v63, %v1166_v46 }
 0x1a2   :  { %v1170_v49 = vadd.f32 %v1169_v48, %v1168_v31 }
 0x1a4   :  { %v1172_v53 = vadd.f32 %v1171_v51, %v1170_v49 }
 0x1b8   :  { %v2967_v42 = vpop.f32.mrf.mxu1 }
 0x1b9   :  { %v1177_v56 = vsel %vm135_vm0, %v2967_v42, 0.0 }
 0x1ba   :  { %v1125_v28 = vpop.f32.mrf.mxu1 }
 0x1bb   :  { %v1173_v52 = vsel %vm135_vm0, %v1125_v28, 0.0 }
 0x1bc   :  { %v2972_v47 = vpop.f32.mrf.mxu1  ;;  %v1174_v55 = vadd.f32 %v1173_v52, %v1172_v53 }
 0x1bd   :  { %v1179_v59 = vsel %vm135_vm0, %v2972_v47, 0.0 }
 0x1be   :  { %v1128_v50 = vpop.f32.mrf.mxu1 }
 0x1bf   :  { %v1175_v54 = vsel %vm135_vm0, %v1128_v50, 0.0 }
 0x1c0   :  { %v1176_v32 = vadd.f32 %v1175_v54, %v1174_v55 }
 0x1c2   :  { %v1178_v34 = vadd.f32 %v1177_v56, %v1176_v32 }
 0x1c4   :  { %v1180_v60 = vadd.f32 %v1179_v59, %v1178_v34 }
 0x1d5   :  { %v2981_v57 = vpop.f32.mrf.mxu1 }
 0x1d6   :  { %v1185_v5 = vsel %vm135_vm0, %v2981_v57, 0.0 }
 0x1d7   :  { %v1141_v58 = vpop.f32.mrf.mxu1 }
 0x1d8   :  { %v1181_v45 = vsel %vm135_vm0, %v1141_v58, 0.0 }
 0x1d9   :  { %v2986_v13 = vpop.f32.mrf.mxu1  ;;  %v1182_v1 = vadd.f32 %v1181_v45, %v1180_v60 }
 0x1da   :  { %v1187_v7 = vsel %vm135_vm0, %v2986_v13, 0.0 }
 0x1db   :  { %v1144_v2 = vpop.f32.mrf.mxu1 }
 0x1dc   :  { %v1183_v3 = vsel %vm135_vm0, %v1144_v2, 0.0 }
 0x1dd   :  { %v1184_v4 = vadd.f32 %v1183_v3, %v1182_v1 }
 0x1df   :  { %v1186_v6 = vadd.f32 %v1185_v5, %v1184_v4 }
 0x1e1   :  { %v1188_v9 = vadd.f32 %v1187_v7, %v1186_v6 }
 0x1e3   :  { %v1189_v16 = vrot.slane %v1188_v9, 4 }
 0x1e5   :  { %v1190_v17 = vadd.f32 %v1189_v16, %v1188_v9 }
 0x1e7   :  { %v1191_v18 = vrot.slane %v1190_v17, 2 }
 0x1e9   :  { %v1192_v19 = vadd.f32 %v1191_v18, %v1190_v17 }
 0x1eb   :  { %v1193_v20 = vrot.slane %v1192_v19, 1 }
 0x1ed   :  { %v1194_v21 = vadd.f32 %v1193_v20, %v1192_v19 }
 0x1ef   :  { %v1196_v23 = vmul.f32 0.0078125, %v1194_v21 }
 0x1f1   :  { %v2993_v22 = vsub.f32 %v1093_v30, %v1196_v23  ;;  %v2995_v10 = vsub.f32 %v1096_v33, %v1196_v23  ;;  %v2997_v24 = vsub.f32 %v1849_v27, %v1196_v23  ;;  %v2999_v62 = vsub.f32 %v1850_v11, %v1196_v23 }
 0x1f2   :  { %v3005_v25 = vsub.f32 %v1109_v35, %v1196_v23  ;;  %v3009_v26 = vsub.f32 %v1112_v41, %v1196_v23  ;;  %v3016_v33 = vsub.f32 %v2962_v8, %v1196_v23  ;;  %v3021_v37 = vsub.f32 %v1854_v38, %v1196_v23 }
 0x1f3   :  { %v1213_v12 = vmul.f32 %v2993_v22, %v2993_v22  ;;  %v1214_v0 = vmul.f32 %v2995_v10, %v2995_v10  ;;  %v1215_v14 = vmul.f32 %v2997_v24, %v2997_v24  ;;  %v1216_v61 = vmul.f32 %v2999_v62, %v2999_v62 }
 0x1f4   :  { %v1217_v29 = vmul.f32 %v3005_v25, %v3005_v25  ;;  %v1218_v39 = vmul.f32 %v3009_v26, %v3009_v26  ;;  %v3026_v15 = vsub.f32 %v1125_v28, %v1196_v23  ;;  %v1219_v8 = vmul.f32 %v3016_v33, %v3016_v33 }
 0x1f5   :  { %v1229_v27 = vsel %vm135_vm0, %v1213_v12, 0.0  ;;  %v1230_v30 = vsel %vm135_vm0, %v1214_v0, 0.0  ;;  %v1232_v35 = vsel %vm135_vm0, %v1215_v14, 0.0  ;;  %v1234_v40 = vsel %vm135_vm0, %v1216_v61, 0.0 }
 0x1f6   :  { %v1231_v11 = vadd.f32 %v1230_v30, %v1229_v27  ;;  %v1236_v43 = vsel %vm135_vm0, %v1217_v29, 0.0  ;;  %v1206_v63 = vsub.f32 %v1128_v50, %v1196_v23  ;;  %v1220_v46 = vmul.f32 %v3021_v37, %v3021_v37 }
 0x1f7   :  { %v1238_v38 = vsel %vm135_vm0, %v1218_v39, 0.0  ;;  %v1207_v48 = vsub.f32 %v2967_v42, %v1196_v23  ;;  %v1221_v49 = vmul.f32 %v3026_v15, %v3026_v15  ;;  %v1240_v28 = vsel %vm135_vm0, %v1219_v8, 0.0  ;;  %v1828_v39 = vld [vmem:[%s3517_s2] ss:$0 sm:$0xff] }
 0x1f8   :  { %v1233_v36 = vadd.f32 %v1232_v35, %v1231_v11  ;;  %v1208_v52 = vsub.f32 %v2972_v47, %v1196_v23  ;;  %v1222_v53 = vmul.f32 %v1206_v63, %v1206_v63  ;;  %v1242_v54 = vsel %vm135_vm0, %v1220_v46, 0.0 }
 0x1f9   :  { %v1209_v55 = vsub.f32 %v1141_v58, %v1196_v23  ;;  %v1223_v32 = vmul.f32 %v1207_v48, %v1207_v48  ;;  %v1244_v56 = vsel %vm135_vm0, %v1221_v49, 0.0  ;;  %v1210_v59 = vsub.f32 %v1144_v2, %v1196_v23 }
 0x1fa   :  { %v1235_v41 = vadd.f32 %v1234_v40, %v1233_v36  ;;  %v1224_v45 = vmul.f32 %v1208_v52, %v1208_v52  ;;  %v1246_v42 = vsel %vm135_vm0, %v1222_v53, 0.0  ;;  %v1211_v1 = vsub.f32 %v2981_v57, %v1196_v23 }
 0x1fb   :  { %v1225_v3 = vmul.f32 %v1209_v55, %v1209_v55  ;;  %v1248_v4 = vsel %vm135_vm0, %v1223_v32, 0.0  ;;  %v1212_v5 = vsub.f32 %v2986_v13, %v1196_v23  ;;  %v1226_v6 = vmul.f32 %v1210_v59, %v1210_v59 }
 0x1fc   :  { %v1237_v44 = vadd.f32 %v1236_v43, %v1235_v41  ;;  %v1250_v58 = vsel %vm135_vm0, %v1224_v45, 0.0  ;;  %v1227_v9 = vmul.f32 %v1211_v1, %v1211_v1 }
 0x1fd   :  { %v1252_v16 = vsel %vm135_vm0, %v1225_v3, 0.0  ;;  %v1228_v17 = vmul.f32 %v1212_v5, %v1212_v5  ;;  %v1254_v18 = vsel %vm135_vm0, %v1226_v6, 0.0 }
 0x1fe   :  { %v1239_v31 = vadd.f32 %v1238_v38, %v1237_v44  ;;  %v1256_v57 = vsel %vm135_vm0, %v1227_v9, 0.0 }
 0x1ff   :  { %v1258_v21 = vsel %vm135_vm0, %v1228_v17, 0.0 }
 0x200   :  { %v1241_v51 = vadd.f32 %v1240_v28, %v1239_v31 }
 0x202   :  { %v1243_v50 = vadd.f32 %v1242_v54, %v1241_v51 }
 0x204   :  { %v1245_v34 = vadd.f32 %v1244_v56, %v1243_v50 }
 0x206   :  { %v1247_v60 = vadd.f32 %v1246_v42, %v1245_v34 }
 0x208   :  { %v1249_v47 = vadd.f32 %v1248_v4, %v1247_v60 }
 0x20a   :  { %v1251_v7 = vadd.f32 %v1250_v58, %v1249_v47 }
 0x20c   :  { %v1253_v2 = vadd.f32 %v1252_v16, %v1251_v7 }
 0x20e   :  { %v1255_v19 = vadd.f32 %v1254_v18, %v1253_v2 }
 0x210   :  { %v1257_v20 = vadd.f32 %v1256_v57, %v1255_v19 }
 0x212   :  { %v1259_v12 = vadd.f32 %v1258_v21, %v1257_v20 }
 0x214   :  { %v1260_v0 = vrot.slane %v1259_v12, 4 }
 0x216   :  { %v1261_v13 = vadd.f32 %v1260_v0, %v1259_v12 }
 0x218   :  { %v1262_v23 = vrot.slane %v1261_v13, 2 }
 0x21a   :  { %v1263_v14 = vadd.f32 %v1262_v23, %v1261_v13 }
 0x21c   :  { %v1264_v61 = vrot.slane %v1263_v14, 1 }
 0x21e   :  { %v1265_v27 = vadd.f32 %v1264_v61, %v1263_v14 }
 0x220   :  { %v1266_v30 = vmul.f32 0.0078125, %v1265_v27 }
 0x222   :  { %v1267_v11 = vadd.f32 1e-05, %v1266_v30 }
 0x224   :  { %2204 = vrsqrt.f32 %v1267_v11 }
 0x231   :  { %v2205_v29 = vpop.eup %2204 }
 0x232   :  { %v1269_v35 = vmul.f32 %v2205_v29, %v2993_v22  ;;  %v1270_v36 = vmul.f32 %v2205_v29, %v2995_v10  ;;  %v1271_v40 = vmul.f32 %v2205_v29, %v2997_v24  ;;  %v1272_v41 = vmul.f32 %v2205_v29, %v2999_v62  ;;  %v1829_v24 = vld [vmem:[%s3518_s3] ss:$0 sm:$0xff] }
 0x233   :  { %v1273_v8 = vmul.f32 %v2205_v29, %v3005_v25  ;;  %v1274_v43 = vmul.f32 %v2205_v29, %v3009_v26  ;;  %v1275_v44 = vmul.f32 %v2205_v29, %v3016_v33  ;;  %v1276_v46 = vmul.f32 %v2205_v29, %v3021_v37 }
 0x234   :  { %v1277_v22 = vmul.f32 %v2205_v29, %v3026_v15  ;;  %v1278_v38 = vmul.f32 %v2205_v29, %v1206_v63  ;;  %v1279_v10 = vmul.f32 %v2205_v29, %v1207_v48  ;;  %v1280_v31 = vmul.f32 %v2205_v29, %v1208_v52 }
 0x235   :  { %v1281_v49 = vmul.f32 %v2205_v29, %v1209_v55  ;;  %v1282_v28 = vmul.f32 %v2205_v29, %v1210_v59  ;;  %v1291_v51 = vmul.f32 %v1828_v39, %v1269_v35  ;;  %v1292_v53 = vmul.f32 %v1828_v39, %v1270_v36 }
 0x236   :  { %v1293_v62 = vmul.f32 %v1828_v39, %v1271_v40  ;;  %v1294_v25 = vmul.f32 %v1828_v39, %v1272_v41  ;;  %v1295_v26 = vmul.f32 %v1828_v39, %v1273_v8  ;;  %v1296_v54 = vmul.f32 %v1828_v39, %v1274_v43 }
 0x237   :  { %v1297_v33 = vmul.f32 %v1828_v39, %v1275_v44  ;;  %v1298_v50 = vmul.f32 %v1828_v39, %v1276_v46  ;;  %v1299_v37 = vmul.f32 %v1828_v39, %v1277_v22  ;;  %v1300_v32 = vmul.f32 %v1828_v39, %v1278_v38 }
 0x238   :  { %v1283_v15 = vmul.f32 %v2205_v29, %v1211_v1  ;;  %v1301_v63 = vmul.f32 %v1828_v39, %v1279_v10  ;;  %v1302_v48 = vmul.f32 %v1828_v39, %v1280_v31  ;;  %v1303_v52 = vmul.f32 %v1828_v39, %v1281_v49 }
 0x239   :  { %v1284_v55 = vmul.f32 %v2205_v29, %v1212_v5  ;;  %v1304_v56 = vmul.f32 %v1828_v39, %v1282_v28  ;;  %v1313_v34 = vadd.f32 %v1829_v24, %v1291_v51  ;;  %v1314_v59 = vadd.f32 %v1829_v24, %v1292_v53 }
 0x23a   :  { %v1315_v45 = vadd.f32 %v1829_v24, %v1293_v62  ;;  %v1316_v42 = vadd.f32 %v1829_v24, %v1294_v25  ;;  %v1317_v60 = vadd.f32 %v1829_v24, %v1295_v26  ;;  %v1318_v3 = vadd.f32 %v1829_v24, %v1296_v54 }
 0x23b   :  { %v1319_v4 = vadd.f32 %v1829_v24, %v1297_v33  ;;  %v1320_v47 = vadd.f32 %v1829_v24, %v1298_v50  ;;  %v1321_v6 = vadd.f32 %v1829_v24, %v1299_v37  ;;  %v1322_v58 = vadd.f32 %v1829_v24, %v1300_v32 }
 0x23c   :  { %v1305_v7 = vmul.f32 %v1828_v39, %v1283_v15  ;;  %v1323_v9 = vadd.f32 %v1829_v24, %v1301_v63  ;;  %v1324_v16 = vadd.f32 %v1829_v24, %v1302_v48  ;;  %v1325_v2 = vadd.f32 %v1829_v24, %v1303_v52 }
 0x23d   :  { %v1306_v1 = vmul.f32 %v1828_v39, %v1284_v55  ;;  %v1326_v17 = vadd.f32 %v1829_v24, %v1304_v56  ;;  %v3065_v18 = vmul.f32 0.5, %v1313_v34  ;;  %v3067_v5 = vmul.f32 0.5, %v1314_v59 }
 0x23e   :  { %v3069_v19 = vmul.f32 0.5, %v1315_v45  ;;  %v3071_v57 = vmul.f32 0.5, %v1316_v42  ;;  %v3073_v20 = vmul.f32 0.5, %v1317_v60  ;;  %v3075_v21 = vmul.f32 0.5, %v1318_v3 }
 0x23f   :  { %3526 = vst [vmem:[#allocation3_spill] sm:$0xff] %v3065_v18  ;;  %3527 = vst [vmem:[#allocation4_spill] sm:$0xff] %v3067_v5  ;;  %v3077_v12 = vmul.f32 0.5, %v1319_v4  ;;  %v3079_v0 = vmul.f32 0.5, %v1320_v47  ;;  %v3081_v13 = vmul.f32 0.5, %v1321_v6  ;;  %v3083_v23 = vmul.f32 0.5, %v1322_v58 }
 0x240   :  { %3528 = vst [vmem:[#allocation5_spill] sm:$0xff] %v3069_v19  ;;  %3529 = vst [vmem:[#allocation6_spill] sm:$0xff] %v3071_v57  ;;  %v3085_v14 = vmul.f32 0.5, %v1323_v9  ;;  %v3087_v61 = vmul.f32 0.5, %v1324_v16  ;;  %v3089_v27 = vmul.f32 0.5, %v1325_v2  ;;  %v3091_v11 = vadd.f32 %v1829_v24, %v1305_v7 }
 0x241   :  { %3530 = vst [vmem:[#allocation7_spill] sm:$0xff] %v3073_v20  ;;  %3531 = vst [vmem:[#allocation8_spill] sm:$0xff] %v3075_v21  ;;  %v1345_v30 = vmul.f32 0.70710677, %v1313_v34  ;;  %v1346_v29 = vmul.f32 0.70710677, %v1314_v59  ;;  %v3093_v39 = vadd.f32 %v1829_v24, %v1306_v1 }
 0x242   :  { %3532 = vst [vmem:[#allocation9_spill] sm:$0xff] %v3077_v12  ;;  %3533 = vst [vmem:[#allocation10_spill] sm:$0xff] %v3079_v0  ;;  %v1347_v35 = vmul.f32 0.70710677, %v1315_v45  ;;  %v1348_v36 = vmul.f32 0.70710677, %v1316_v42 }
 0x243   :  { %3534 = vst [vmem:[#allocation11_spill] sm:$0xff] %v3081_v13  ;;  %3535 = vst [vmem:[#allocation12_spill] sm:$0xff] %v3083_v23  ;;  %v1349_v40 = vmul.f32 0.70710677, %v1317_v60  ;;  %v1350_v41 = vmul.f32 0.70710677, %v1318_v3 }
 0x244   :  { %3536 = vst [vmem:[#allocation13_spill] sm:$0xff] %v3085_v14  ;;  %3537 = vst [vmem:[#allocation14_spill] sm:$0xff] %v3087_v61  ;;  %v1351_v8 = vmul.f32 0.70710677, %v1319_v4  ;;  %v1352_v43 = vmul.f32 0.70710677, %v1320_v47 }
 0x245   :  { %3538 = vst [vmem:[#allocation15_spill] sm:$0xff] %v3089_v27  ;;  %3539 = vst [vmem:[#allocation16_spill] sm:$0xff] %v3091_v11  ;;  %v1353_v44 = vmul.f32 0.70710677, %v1321_v6  ;;  %v1354_v46 = vmul.f32 0.70710677, %v1322_v58 }
 0x246   :  { %3540 = vst [vmem:[#allocation17_spill] sm:$0xff] %v3093_v39  ;;  %v3095_v22 = vmul.f32 0.70710677, %v1323_v9  ;;  %v3097_v38 = vmul.f32 0.70710677, %v1324_v16  ;;  %v3101_v31 = vmul.f32 0.5, %v1326_v17 }
 0x247   :  { %v3099_v10 = vmul.f32 0.70710677, %v1325_v2  ;;  %v3103_v49 = vmul.f32 0.70710677, %v1326_v17  ;;  %v3106_v28 = vmul.f32 0.70710677, %v3091_v11 }
 0x248   :  { %3541 = vst [vmem:[#allocation18_spill] sm:$0xff] %v3101_v31  ;;  %vm1361_vm11 = vcmp.ge.f32.partialorder %v1345_v30, 0.0  ;;  %v3109_v51 = vmul.f32 0.70710677, %v3093_v39  ;;  %vm1362_vm12 = vcmp.ge.f32.partialorder %v1346_v29, 0.0  ;;  %vm1363_vm13 = vcmp.ge.f32.partialorder %v1347_v35, 0.0 }
 0x249   :  { %vm1364_vm14 = vcmp.ge.f32.partialorder %v1348_v36, 0.0  ;;  %vm1365_vm15 = vcmp.ge.f32.partialorder %v1349_v40, 0.0  ;;  %vm1366_vm1 = vcmp.ge.f32.partialorder %v1350_v41, 0.0  ;;  %vm1367_vm2 = vcmp.ge.f32.partialorder %v1351_v8, 0.0 }
 0x24a   :  { %3542 = vst [vmem:[#allocation19_spill] sm:$0xff] %v3109_v51  ;;  %vm1368_vm3 = vcmp.ge.f32.partialorder %v1352_v43, 0.0  ;;  %vm1369_vm4 = vcmp.ge.f32.partialorder %v1353_v44, 0.0  ;;  %vm1370_vm5 = vcmp.ge.f32.partialorder %v1354_v46, 0.0  ;;  %v3522_v53 = vmov -1.0  }
 0x24b   :  { %v3112_v24 = vsel %vm1361_vm11, 1.0, %v3522_v53  ;;  %v3114_v62 = vand.u32 2147483647, %v1345_v30  ;;  %v3117_v25 = vsel %vm1362_vm12, 1.0, %v3522_v53  ;;  %v3120_v26 = vsel %vm1363_vm13, 1.0, %v3522_v53 }
 0x24c   :  { %v3123_v54 = vsel %vm1364_vm14, 1.0, %v3522_v53  ;;  %v3125_v33 = vand.u32 2147483647, %v1346_v29  ;;  %v3128_v50 = vsel %vm1365_vm15, 1.0, %v3522_v53  ;;  %v3131_v37 = vsel %vm1366_vm1, 1.0, %v3522_v53 }
 0x24d   :  { %3543 = vst [vmem:[#allocation20_spill] sm:$0xff] %v3128_v50  ;;  %3544 = vst [vmem:[#allocation21_spill] sm:$0xff] %v3131_v37  ;;  %v3133_v32 = vand.u32 2147483647, %v1347_v35  ;;  %v3135_v15 = vand.u32 2147483647, %v1348_v36 }
 0x24e   :  { %vm1371_vm6 = vcmp.ge.f32.partialorder %v3095_v22, 0.0  ;;  %v3138_v63 = vand.u32 2147483647, %v1349_v40  ;;  %v3140_v48 = vand.u32 2147483647, %v1350_v41  ;;  %vm1372_vm7 = vcmp.ge.f32.partialorder %v3097_v38, 0.0 }
 0x24f   :  { %v3142_v52 = vand.u32 2147483647, %v1351_v8  ;;  %v3145_v55 = vand.u32 2147483647, %v1352_v43  ;;  %v3147_v56 = vand.u32 2147483647, %v1353_v44 }
 0x250   :  { %v1409_v34 = vmul.f32 0.3275911, %v3114_v62  ;;  %v3150_v59 = vand.u32 2147483647, %v1354_v46  ;;  %v3153_v45 = vand.u32 2147483647, %v3095_v22 }
 0x251   :  { %v1410_v42 = vmul.f32 0.3275911, %v3125_v33  ;;  %v3157_v60 = vand.u32 2147483647, %v3097_v38  ;;  %v3160_v3 = vand.u32 2147483647, %v3099_v10 }
 0x252   :  { %v1411_v4 = vmul.f32 0.3275911, %v3133_v32  ;;  %v3164_v47 = vand.u32 2147483647, %v3103_v49  ;;  %v3167_v6 = vand.u32 2147483647, %v3106_v28 }
 0x253   :  { %v1412_v58 = vmul.f32 0.3275911, %v3135_v15  ;;  %v3172_v7 = vsel %vm1367_vm2, 1.0, %v3522_v53  ;;  %v3175_v9 = vand.u32 2147483647, %v3109_v51  ;;  %v1425_v2 = vadd.f32 1.0, %v1409_v34 }
 0x254   :  { %3545 = vst [vmem:[#allocation22_spill] sm:$0xff] %v3172_v7  ;;  %v1413_v16 = vmul.f32 0.3275911, %v3138_v63  ;;  %v3180_v1 = vsel %vm1368_vm3, 1.0, %v3522_v53  ;;  %v1414_v17 = vmul.f32 0.3275911, %v3140_v48 }
 0x255   :  { %3546 = vst [vmem:[#allocation23_spill] sm:$0xff] %v3180_v1  ;;  %v1415_v30 = vmul.f32 0.3275911, %v3142_v52  ;;  %v1426_v29 = vadd.f32 1.0, %v1410_v42  ;;  %v3186_v35 = vsel %vm1369_vm4, 1.0, %v3522_v53  ;;  %v1427_v41 = vadd.f32 1.0, %v1411_v4 }
 0x256   :  { %3547 = vst [vmem:[#allocation24_spill] sm:$0xff] %v3186_v35  ;;  %v1416_v36 = vmul.f32 0.3275911, %v3145_v55  ;;  %v1417_v40 = vmul.f32 0.3275911, %v3147_v56  ;;  %v3192_v8 = vsel %vm1370_vm5, 1.0, %v3522_v53  ;;  %2206 = vrcp.f32 %v1425_v2 }
 0x257   :  { %3548 = vst [vmem:[#allocation25_spill] sm:$0xff] %v3192_v8  ;;  %v1418_v43 = vmul.f32 0.3275911, %v3150_v59  ;;  %v1419_v34 = vmul.f32 0.3275911, %v3153_v45  ;;  %v1428_v31 = vadd.f32 1.0, %v1412_v58  ;;  %2208 = vrcp.f32 %v1426_v29 }
 0x258   :  { %v1420_v42 = vmul.f32 0.3275911, %v3157_v60  ;;  %v1421_v44 = vmul.f32 0.3275911, %v3160_v3  ;;  %v1429_v39 = vadd.f32 1.0, %v1413_v16  ;;  %v1430_v4 = vadd.f32 1.0, %v1414_v17 }
 0x259   :  { %v1422_v27 = vmul.f32 0.3275911, %v3164_v47  ;;  %v1423_v11 = vmul.f32 0.3275911, %v3167_v6  ;;  %v3203_v46 = vsel %vm1371_vm6, 1.0, %v3522_v53  ;;  %v1431_v58 = vadd.f32 1.0, %v1415_v30 }
 0x25a   :  { %3549 = vst [vmem:[#allocation26_spill] sm:$0xff] %v3203_v46  ;;  %v1424_v61 = vmul.f32 0.3275911, %v3175_v9  ;;  %2210 = vrcp.f32 %v1427_v41  ;;  %v3209_v16 = vsel %vm1372_vm7, 1.0, %v3522_v53  ;;  %v1432_v2 = vadd.f32 1.0, %v1416_v36 }
 0x25b   :  { %3550 = vst [vmem:[#allocation27_spill] sm:$0xff] %v3209_v16  ;;  %v1433_v14 = vadd.f32 1.0, %v1417_v40  ;;  %2212 = vrcp.f32 %v1428_v31  ;;  %v1434_v23 = vadd.f32 1.0, %v1418_v43  ;;  %v1435_v17 = vadd.f32 1.0, %v1419_v34 }
 0x25c   :  { %v1436_v29 = vadd.f32 1.0, %v1420_v42  ;;  %2214 = vrcp.f32 %v1429_v39  ;;  %v1437_v13 = vadd.f32 1.0, %v1421_v44  ;;  %v1438_v22 = vadd.f32 1.0, %v1422_v27 }
 0x25d   :  { %v1439_v0 = vadd.f32 1.0, %v1423_v11  ;;  %2216 = vrcp.f32 %v1430_v4  ;;  %v1440_v12 = vadd.f32 1.0, %v1424_v61  ;;  %v1601_v30 = vsub.f32 0.0, %v3114_v62 }
 0x25e   :  { %2218 = vrcp.f32 %v1431_v58  ;;  %v1602_v41 = vsub.f32 0.0, %v3125_v33  ;;  %v1603_v38 = vsub.f32 0.0, %v3133_v32  ;;  %v1604_v36 = vsub.f32 0.0, %v3135_v15 }
 0x25f   :  { %2220 = vrcp.f32 %v1432_v2  ;;  %v1605_v31 = vsub.f32 0.0, %v3138_v63  ;;  %v1606_v39 = vsub.f32 0.0, %v3140_v48  ;;  %v1607_v27 = vsub.f32 0.0, %v3142_v52 }
 0x260   :  { %2222 = vrcp.f32 %v1433_v14  ;;  %v1608_v11 = vsub.f32 0.0, %v3145_v55  ;;  %v1609_v61 = vsub.f32 0.0, %v3147_v56  ;;  %v1610_v40 = vsub.f32 0.0, %v3150_v59 }
 0x261   :  { %2224 = vrcp.f32 %v1434_v23  ;;  %v1611_v43 = vsub.f32 0.0, %v3153_v45  ;;  %v1612_v34 = vsub.f32 0.0, %v3157_v60  ;;  %v1613_v42 = vsub.f32 0.0, %v3160_v3 }
 0x262   :  { %2226 = vrcp.f32 %v1435_v17  ;;  %v1614_v14 = vsub.f32 0.0, %v3164_v47  ;;  %v1615_v44 = vsub.f32 0.0, %v3167_v6  ;;  %v1616_v4 = vsub.f32 0.0, %v3175_v9 }
 0x263   :  { %2228 = vrcp.f32 %v1436_v29  ;;  %v1617_v23 = vmul.f32 %v1601_v30, %v3114_v62  ;;  %v1618_v58 = vmul.f32 %v1602_v41, %v3125_v33  ;;  %v1619_v2 = vmul.f32 %v1603_v38, %v3133_v32  ;;  %v3231_v53 = vpop.eup %2206 }
 0x264   :  { %2230 = vrcp.f32 %v1437_v13  ;;  %v1620_v17 = vmul.f32 %v1604_v36, %v3135_v15  ;;  %v1621_v16 = vmul.f32 %v1605_v31, %v3138_v63  ;;  %v1622_v29 = vmul.f32 %v1606_v39, %v3140_v48  ;;  %v3236_v8 = vpop.eup %2208 }
 0x265   :  { %2232 = vrcp.f32 %v1438_v22  ;;  %v1623_v46 = vmul.f32 %v1607_v27, %v3142_v52  ;;  %v1457_v13 = vmul.f32 1.0614054, %v3231_v53  ;;  %v1624_v62 = vmul.f32 %v1608_v11, %v3145_v55 }
 0x266   :  { %2234 = vrcp.f32 %v1439_v0  ;;  %v1625_v33 = vmul.f32 %v1609_v61, %v3147_v56  ;;  %v1626_v15 = vmul.f32 %v1610_v40, %v3150_v59  ;;  %v1627_v63 = vmul.f32 %v1611_v43, %v3153_v45 }
 0x267   :  { %v3241_v32 = vpop.eup %2210  ;;  %2236 = vrcp.f32 %v1440_v12  ;;  %v1633_v22 = vmul.f32 1.442695, %v1617_v23  ;;  %v1458_v52 = vmul.f32 1.0614054, %v3236_v8  ;;  %v1628_v0 = vmul.f32 %v1612_v34, %v3157_v60 }
 0x268   :  { %v3245_v48 = vpop.eup %2212  ;;  %v1635_v30 = vmul.f32 1.442695, %v1618_v58  ;;  %v3249_v41 = vmul.f32 1.442695, %v1619_v2  ;;  %v1459_v56 = vmul.f32 1.0614054, %v3241_v32  ;;  %v1629_v12 = vmul.f32 %v1613_v42, %v3160_v3 }
 0x269   :  { %v3251_v55 = vpop.eup %2214  ;;  %v3255_v38 = vmul.f32 1.442695, %v1620_v17  ;;  %v3257_v59 = vmul.f32 1.442695, %v1621_v16  ;;  %v1460_v36 = vmul.f32 1.0614054, %v3245_v48  ;;  %v1630_v60 = vmul.f32 %v1614_v14, %v3164_v47 }
 0x26a   :  { %v3259_v45 = vpop.eup %2216  ;;  %v1473_v31 = vadd.f32 -1.4531521, %v1457_v13  ;;  %v3263_v39 = vmul.f32 1.442695, %v1622_v29  ;;  %v1631_v11 = vmul.f32 %v1615_v44, %v3167_v6  ;;  %v3268_v61 = vmul.f32 1.442695, %v1623_v46 }
 0x26b   :  { %v3265_v27 = vpop.eup %2218  ;;  %v3270_v3 = vmul.f32 1.442695, %v1624_v62  ;;  %v3272_v40 = vmul.f32 1.442695, %v1625_v33  ;;  %v1474_v43 = vadd.f32 -1.4531521, %v1458_v52  ;;  %v1632_v34 = vmul.f32 %v1616_v4, %v3175_v9 }
 0x26c   :  { %v3274_v16 = vpop.eup %2220  ;;  %v3277_v42 = vmul.f32 1.442695, %v1626_v15  ;;  %v3279_v47 = vmul.f32 1.442695, %v1627_v63  ;;  %v1461_v23 = vmul.f32 1.0614054, %v3251_v55  ;;  %v1489_v9 = vmul.f32 %v3231_v53, %v1473_v31 }
 0x26d   :  { %v3281_v14 = vpop.eup %2222  ;;  %v1475_v6 = vadd.f32 -1.4531521, %v1459_v56  ;;  %v3284_v46 = vmul.f32 1.442695, %v1628_v0  ;;  %v1462_v58 = vmul.f32 1.0614054, %v3259_v45  ;;  %v1490_v63 = vmul.f32 %v3236_v8, %v1474_v43 }
 0x26e   :  { %v3286_v44 = vpop.eup %2224  ;;  %v1463_v2 = vmul.f32 1.0614054, %v3265_v27  ;;  %v1476_v17 = vadd.f32 -1.4531521, %v1460_v36  ;;  %v1464_v29 = vmul.f32 1.0614054, %v3274_v16  ;;  %2238 = vpow2.f32 %v1633_v22 }
 0x26f   :  { %v3291_v4 = vpop.eup %2226  ;;  %v3294_v13 = vmul.f32 1.442695, %v1629_v12  ;;  %v3296_v62 = vmul.f32 1.442695, %v1630_v60  ;;  %v1465_v15 = vmul.f32 1.0614054, %v3281_v14  ;;  %v1491_v60 = vmul.f32 %v3241_v32, %v1475_v6 }
 0x270   :  { %v3298_v33 = vpop.eup %2228  ;;  %v3302_v52 = vmul.f32 1.442695, %v1631_v11  ;;  %v3304_v0 = vmul.f32 1.442695, %v1632_v34  ;;  %v1466_v36 = vmul.f32 1.0614054, %v3286_v44  ;;  %v1492_v21 = vmul.f32 %v3245_v48, %v1476_v17 }
 0x271   :  { %3551 = vst [vmem:[#allocation28_spill] sm:$0xff] %v3294_v13  ;;  %3552 = vst [vmem:[#allocation29_spill] sm:$0xff] %v3296_v62  ;;  %v3306_v56 = vpop.eup %2230  ;;  %v1467_v31 = vmul.f32 1.0614054, %v3291_v4  ;;  %v1477_v12 = vadd.f32 -1.4531521, %v1461_v23  ;;  %2240 = vpow2.f32 %v1635_v30 }
 0x272   :  { %3553 = vst [vmem:[#allocation30_spill] sm:$0xff] %v3302_v52  ;;  %3554 = vst [vmem:[#allocation31_spill] sm:$0xff] %v3304_v0  ;;  %v3311_v35 = vpop.eup %2232  ;;  %v1478_v1 = vadd.f32 -1.4531521, %v1462_v58  ;;  %v1479_v7 = vadd.f32 -1.4531521, %v1463_v2  ;;  %2242 = vpow2.f32 %v3249_v41 }
 0x273   :  { %v1505_v43 = vadd.f32 1.4214138, %v1489_v9  ;;  %v3314_v11 = vpop.eup %2234  ;;  %v1468_v34 = vmul.f32 1.0614054, %v3298_v33  ;;  %v1469_v20 = vmul.f32 1.0614054, %v3306_v56  ;;  %v1493_v9 = vmul.f32 %v3251_v55, %v1477_v12 }
 0x274   :  { %v1480_v37 = vadd.f32 -1.4531521, %v1464_v29  ;;  %v3318_v57 = vpop.eup %2236  ;;  %v1470_v23 = vmul.f32 1.0614054, %v3311_v35  ;;  %v1471_v6 = vmul.f32 1.0614054, %v3314_v11  ;;  %v1494_v19 = vmul.f32 %v3259_v45, %v1478_v1 }
 0x275   :  { %v1481_v50 = vadd.f32 -1.4531521, %v1465_v15  ;;  %v1472_v58 = vmul.f32 1.0614054, %v3318_v57  ;;  %v1482_v2 = vadd.f32 -1.4531521, %v1466_v36  ;;  %v1495_v52 = vmul.f32 %v3265_v27, %v1479_v7 }
 0x276   :  { %v1483_v17 = vadd.f32 -1.4531521, %v1467_v31  ;;  %v1506_v5 = vadd.f32 1.4214138, %v1490_v63  ;;  %v1507_v0 = vadd.f32 1.4214138, %v1491_v60  ;;  %v1496_v62 = vmul.f32 %v3274_v16, %v1480_v37 }
 0x277   :  { %v1508_v29 = vadd.f32 1.4214138, %v1492_v21  ;;  %v1484_v22 = vadd.f32 -1.4531521, %v1468_v34  ;;  %v1485_v18 = vadd.f32 -1.4531521, %v1469_v20  ;;  %v1497_v51 = vmul.f32 %v3281_v14, %v1481_v50 }
 0x278   :  { %v1486_v13 = vadd.f32 -1.4531521, %v1470_v23  ;;  %v1487_v15 = vadd.f32 -1.4531521, %v1471_v6  ;;  %v1488_v30 = vadd.f32 -1.4531521, %v1472_v58  ;;  %v1498_v36 = vmul.f32 %v3286_v44, %v1482_v2 }
 0x279   :  { %v1499_v31 = vmul.f32 %v3291_v4, %v1483_v17  ;;  %v1509_v12 = vadd.f32 1.4214138, %v1493_v9  ;;  %v1521_v1 = vmul.f32 %v3231_v53, %v1505_v43  ;;  %v1510_v63 = vadd.f32 1.4214138, %v1494_v19 }
 0x27a   :  { %v1522_v21 = vmul.f32 %v3236_v8, %v1506_v5  ;;  %v1523_v20 = vmul.f32 %v3241_v32, %v1507_v0  ;;  %v1524_v7 = vmul.f32 %v3245_v48, %v1508_v29  ;;  %v1500_v37 = vmul.f32 %v3298_v33, %v1484_v22 }
 0x27b   :  { %v1501_v60 = vmul.f32 %v3306_v56, %v1485_v18  ;;  %v1511_v34 = vadd.f32 1.4214138, %v1495_v52  ;;  %v1512_v50 = vadd.f32 1.4214138, %v1496_v62  ;;  %v1502_v23 = vmul.f32 %v3311_v35, %v1486_v13  ;;  %v2239_v29 = vpop.eup %2238 }
 0x27c   :  { %v1503_v6 = vmul.f32 %v3314_v11, %v1487_v15  ;;  %v1504_v58 = vmul.f32 %v3318_v57, %v1488_v30  ;;  %v1513_v43 = vadd.f32 1.4214138, %v1497_v51  ;;  %v1514_v19 = vadd.f32 1.4214138, %v1498_v36 }
 0x27d   :  { %v1515_v2 = vadd.f32 1.4214138, %v1499_v31  ;;  %v1537_v5 = vadd.f32 -0.28449672, %v1521_v1  ;;  %v1538_v0 = vadd.f32 -0.28449672, %v1522_v21  ;;  %2244 = vpow2.f32 %v3255_v38 }
 0x27e   :  { %v1539_v17 = vadd.f32 -0.28449672, %v1523_v20  ;;  %v1540_v9 = vadd.f32 -0.28449672, %v1524_v7  ;;  %v1516_v18 = vadd.f32 1.4214138, %v1500_v37  ;;  %v1525_v62 = vmul.f32 %v3251_v55, %v1509_v12  ;;  %v2241_v36 = vpop.eup %2240 }
 0x27f   :  { %v1517_v52 = vadd.f32 1.4214138, %v1501_v60  ;;  %v1526_v13 = vmul.f32 %v3259_v45, %v1510_v63  ;;  %v1518_v22 = vadd.f32 1.4214138, %v1502_v23  ;;  %v1519_v15 = vadd.f32 1.4214138, %v1503_v6 }
 0x280   :  { %v1520_v51 = vadd.f32 1.4214138, %v1504_v58  ;;  %v1527_v30 = vmul.f32 %v3265_v27, %v1511_v34  ;;  %v1528_v41 = vmul.f32 %v3274_v16, %v1512_v50  ;;  %v1529_v31 = vmul.f32 %v3281_v14, %v1513_v43 }
 0x281   :  { %v1530_v1 = vmul.f32 %v3286_v44, %v1514_v19  ;;  %v1553_v38 = vmul.f32 %v3231_v53, %v1537_v5  ;;  %v1531_v21 = vmul.f32 %v3291_v4, %v1515_v2  ;;  %v1554_v12 = vmul.f32 %v3236_v8, %v1538_v0 }
 0x282   :  { %v1555_v63 = vmul.f32 %v3241_v32, %v1539_v17  ;;  %v1556_v20 = vmul.f32 %v3245_v48, %v1540_v9  ;;  %v1532_v7 = vmul.f32 %v3298_v33, %v1516_v18  ;;  %v1533_v37 = vmul.f32 %v3306_v56, %v1517_v52 }
 0x283   :  { %v1541_v60 = vadd.f32 -0.28449672, %v1525_v62  ;;  %v1542_v34 = vadd.f32 -0.28449672, %v1526_v13  ;;  %v1534_v50 = vmul.f32 %v3311_v35, %v1518_v22  ;;  %v1535_v23 = vmul.f32 %v3314_v11, %v1519_v15 }
 0x284   :  { %v1536_v6 = vmul.f32 %v3318_v57, %v1520_v51  ;;  %v1543_v58 = vadd.f32 -0.28449672, %v1527_v30  ;;  %v1544_v43 = vadd.f32 -0.28449672, %v1528_v41  ;;  %v1545_v19 = vadd.f32 -0.28449672, %v1529_v31  ;;  %v2243_v31 = vpop.eup %2242 }
 0x285   :  { %v1569_v2 = vadd.f32 0.2548296, %v1553_v38  ;;  %2246 = vpow2.f32 %v3257_v59  ;;  %v1570_v5 = vadd.f32 0.2548296, %v1554_v12  ;;  %v1571_v0 = vadd.f32 0.2548296, %v1555_v63 }
 0x286   :  { %v1572_v17 = vadd.f32 0.2548296, %v1556_v20  ;;  %2248 = vpow2.f32 %v3263_v39  ;;  %v1546_v9 = vadd.f32 -0.28449672, %v1530_v1  ;;  %v1547_v18 = vadd.f32 -0.28449672, %v1531_v21 }
 0x287   :  { %v1557_v52 = vmul.f32 %v3251_v55, %v1541_v60  ;;  %v1558_v62 = vmul.f32 %v3259_v45, %v1542_v34  ;;  %v1548_v13 = vadd.f32 -0.28449672, %v1532_v7  ;;  %v1549_v22 = vadd.f32 -0.28449672, %v1533_v37 }
 0x288   :  { %v1550_v15 = vadd.f32 -0.28449672, %v1534_v50  ;;  %v1551_v51 = vadd.f32 -0.28449672, %v1535_v23  ;;  %v3361_v30 = vadd.f32 -0.28449672, %v1536_v6  ;;  %v1559_v41 = vmul.f32 %v3265_v27, %v1543_v58 }
 0x289   :  { %v1585_v59 = vmul.f32 %v3231_v53, %v1569_v2  ;;  %v1560_v38 = vmul.f32 %v3274_v16, %v1544_v43  ;;  %v1586_v39 = vmul.f32 %v3236_v8, %v1570_v5  ;;  %v1587_v1 = vmul.f32 %v3241_v32, %v1571_v0 }
 0x28a   :  { %v1588_v21 = vmul.f32 %v3245_v48, %v1572_v17  ;;  %v2245_v12 = vpop.eup %2244  ;;  %v1561_v63 = vmul.f32 %v3281_v14, %v1545_v19  ;;  %v1562_v20 = vmul.f32 %v3286_v44, %v1546_v9  ;;  %v1573_v7 = vadd.f32 0.2548296, %v1557_v52  ;;  %v3555_v9 = vld [vmem:[#allocation19_spill] sm:$0xff]  ;;  %v3556_v52 = vld [vmem:[#allocation28_spill] sm:$0xff] }
 0x28b   :  { %v1574_v37 = vadd.f32 0.2548296, %v1558_v62  ;;  %v1563_v60 = vmul.f32 %v3291_v4, %v1547_v18  ;;  %v1564_v53 = vmul.f32 %v3298_v33, %v1548_v13  ;;  %v1565_v34 = vmul.f32 %v3306_v56, %v1549_v22 }
 0x28c   :  { %v3375_v50 = vmul.f32 %v3311_v35, %v1550_v15  ;;  %v3378_v8 = vmul.f32 %v3314_v11, %v1551_v51  ;;  %v1575_v32 = vadd.f32 0.2548296, %v1559_v41  ;;  %2250 = vpow2.f32 %v3268_v61 }
 0x28d   :  { %v1665_v48 = vmul.f32 %v2239_v29, %v1585_v59  ;;  %vm1373_vm8 = vcmp.ge.f32.partialorder %v3099_v10, 0.0  ;;  %2252 = vpow2.f32 %v3270_v3  ;;  %v1666_v23 = vmul.f32 %v2241_v36, %v1586_v39  ;;  %v3562_v39 = vld [vmem:[#allocation5_spill] sm:$0xff] }
 0x28e   :  { %v1667_v6 = vmul.f32 %v2243_v31, %v1587_v1  ;;  %v1668_v58 = vmul.f32 %v2245_v12, %v1588_v21  ;;  %vm1374_vm9 = vcmp.ge.f32.partialorder %v3103_v49, 0.0  ;;  %v1589_v43 = vmul.f32 %v3251_v55, %v1573_v7  ;;  %v3561_v31 = vld [vmem:[#allocation4_spill] sm:$0xff]  ;;  %v3564_v7 = vld [vmem:[#allocation6_spill] sm:$0xff] }
 0x28f   :  { %v1590_v19 = vmul.f32 %v3259_v45, %v1574_v37  ;;  %2254 = vpow2.f32 %v3272_v40  ;;  %v1681_v2 = vsub.f32 1.0, %v1665_v48  ;;  %v1682_v61 = vsub.f32 1.0, %v1666_v23  ;;  %v3568_v49 = vld [vmem:[#allocation8_spill] sm:$0xff] }
 0x290   :  { %2256 = vpow2.f32 %v3277_v42  ;;  %v1683_v29 = vsub.f32 1.0, %v1667_v6  ;;  %v1684_v5 = vsub.f32 1.0, %v1668_v58  ;;  %v1576_v0 = vadd.f32 0.2548296, %v1560_v38  ;;  %v3565_v58 = vld [vmem:[#allocation21_spill] sm:$0xff] }
 0x291   :  { %v1577_v17 = vadd.f32 0.2548296, %v1561_v63  ;;  %2258 = vpow2.f32 %v3279_v47  ;;  %v1697_v3 = vmul.f32 %v1681_v2, %v3112_v24  ;;  %vm1375_vm10 = vcmp.ge.f32.partialorder %v3106_v28, 0.0  ;;  %v3557_v24 = vld [vmem:[#allocation29_spill] sm:$0xff]  ;;  %v3563_v63 = vld [vmem:[#allocation20_spill] sm:$0xff] }
 0x292   :  { %v2247_v36 = vpop.eup %2246  ;;  %2260 = vpow2.f32 %v3284_v46  ;;  %v1698_v55 = vmul.f32 %v1682_v61, %v3117_v25  ;;  %v1699_v45 = vmul.f32 %v1683_v29, %v3120_v26  ;;  %v1700_v40 = vmul.f32 %v1684_v5, %v3123_v54  ;;  %v3558_v46 = vld [vmem:[#allocation30_spill] sm:$0xff]  ;;  %v3559_v26 = vld [vmem:[#allocation3_spill] sm:$0xff] }
 0x293   :  { %v2249_v42 = vpop.eup %2248  ;;  %vm1376_vm11 = vcmp.ge.f32.partialorder %v3555_v9, 0.0  ;;  %v1578_v18 = vadd.f32 0.2548296, %v1562_v20  ;;  %2262 = vpow2.f32 %v3556_v52  ;;  %v1669_v47 = vmul.f32 %v2247_v36, %v1589_v43  ;;  %v3560_v54 = vld [vmem:[#allocation31_spill] sm:$0xff] }
 0x294   :  { %v1713_v62 = vadd.f32 1.0, %v1697_v3  ;;  %2264 = vpow2.f32 %v3557_v24  ;;  %v1670_v13 = vmul.f32 %v2249_v42, %v1590_v19  ;;  %v1714_v22 = vadd.f32 1.0, %v1698_v55 }
 0x295   :  { %v1715_v15 = vadd.f32 1.0, %v1699_v45  ;;  %2266 = vpow2.f32 %v3558_v46  ;;  %v1685_v25 = vsub.f32 1.0, %v1669_v47  ;;  %v1716_v51 = vadd.f32 1.0, %v1700_v40 }
 0x296   :  { %v1729_v41 = vmul.f32 %v1713_v62, %v3559_v26  ;;  %2268 = vpow2.f32 %v3560_v54  ;;  %v1686_v59 = vsub.f32 1.0, %v1670_v13  ;;  %v1730_v38 = vmul.f32 %v1714_v22, %v3561_v31  ;;  %v3569_v22 = vld [vmem:[#allocation22_spill] sm:$0xff]  ;;  %v3571_v31 = vld [vmem:[#allocation24_spill] sm:$0xff] }
 0x297   :  { %v1731_v1 = vmul.f32 %v1715_v15, %v3562_v39  ;;  %v1579_v21 = vadd.f32 0.2548296, %v1563_v60  ;;  %v1591_v12 = vmul.f32 %v3265_v27, %v1575_v32  ;;  %v1701_v20 = vmul.f32 %v1685_v25, %v3563_v63 }
 0x298   :  { %v1732_v37 = vmul.f32 %v1716_v51, %v3564_v7  ;;  %1745 = vst.msk [vmem:[%s3519_s5] sm:$0xff] %vm135_vm0, %v1729_v41  ;;  %v1568_v48 = vmul.f32 %v3318_v57, %v3361_v30  ;;  %v1580_v23 = vadd.f32 0.2548296, %v1564_v53  ;;  %v1592_v6 = vmul.f32 %v3274_v16, %v1576_v0  ;;  %1746 = vst.msk [vmem:[%s3519_s5 + $0x8] sm:$0xff] %vm135_vm0, %v1730_v38  ;;  %v3567_v0 = vld [vmem:[#allocation7_spill] sm:$0xff] }
 0x299   :  { %v1702_v43 = vmul.f32 %v1686_v59, %v3565_v58  ;;  %1747 = vst.msk [vmem:[%s3519_s5 + $0x10] sm:$0xff] %vm135_vm0, %v1731_v1  ;;  %v3566_v27 = vmov -1.0   ;;  %v1581_v30 = vadd.f32 0.2548296, %v1565_v34  ;;  %v1593_v53 = vmul.f32 %v3281_v14, %v1577_v17  ;;  %v2251_v32 = vpop.eup %2250 }
 0x29a   :  { %v1389_v60 = vsel %vm1373_vm8, 1.0, %v3566_v27  ;;  %v1717_v16 = vadd.f32 1.0, %v1701_v20  ;;  %1748 = vst.msk [vmem:[%s3519_s5 + $0x18] sm:$0xff] %vm135_vm0, %v1732_v37  ;;  %v1390_v19 = vsel %vm1374_vm9, 1.0, %v3566_v27  ;;  %v1582_v2 = vadd.f32 0.2548296, %v3375_v50  ;;  %v2253_v29 = vpop.eup %2252 }
 0x29b   :  { %v1594_v61 = vmul.f32 %v3286_v44, %v1578_v18  ;;  %v1718_v10 = vadd.f32 1.0, %v1702_v43  ;;  %v1583_v34 = vadd.f32 0.2548296, %v3378_v8  ;;  %v1595_v14 = vmul.f32 %v3291_v4, %v1579_v21 }
 0x29c   :  { %v1671_v5 = vmul.f32 %v2251_v32, %v1591_v12  ;;  %v1733_v17 = vmul.f32 %v1717_v16, %v3567_v0  ;;  %v2255_v3 = vpop.eup %2254  ;;  %v1584_v36 = vadd.f32 0.2548296, %v1568_v48  ;;  %v1596_v55 = vmul.f32 %v3298_v33, %v1580_v23  ;;  %v3572_v12 = vld [vmem:[#allocation25_spill] sm:$0xff] }
 0x29d   :  { %v1672_v45 = vmul.f32 %v2253_v29, %v1592_v6  ;;  %v1734_v40 = vmul.f32 %v1718_v10, %v3568_v49  ;;  %v2257_v42 = vpop.eup %2256  ;;  %v1391_v44 = vsel %vm1375_vm10, 1.0, %v3566_v27  ;;  %v1597_v50 = vmul.f32 %v3306_v56, %v1581_v30 }
 0x29e   :  { %v1673_v8 = vmul.f32 %v2255_v3, %v1593_v53  ;;  %v1687_v18 = vsub.f32 1.0, %v1671_v5  ;;  %1749 = vst.msk [vmem:[%s3519_s5 + $0x20] sm:$0xff] %vm135_vm0, %v1733_v17  ;;  %v2259_v4 = vpop.eup %2258  ;;  %v1392_v33 = vsel %vm1376_vm11, 1.0, %v3566_v27  ;;  %v1598_v52 = vmul.f32 %v3311_v35, %v1582_v2  ;;  %v3570_v35 = vld [vmem:[#allocation23_spill] sm:$0xff]  ;;  %v3576_v5 = vld [vmem:[#allocation10_spill] sm:$0xff] }
 0x29f   :  { %v1674_v47 = vmul.f32 %v2257_v42, %v1594_v61  ;;  %v1688_v62 = vsub.f32 1.0, %v1672_v45  ;;  %1750 = vst.msk [vmem:[%s3519_s5 + $0x28] sm:$0xff] %vm135_vm0, %v1734_v40  ;;  %v2261_v28 = vpop.eup %2260  ;;  %v1599_v56 = vmul.f32 %v3314_v11, %v1583_v34  ;;  %v1675_v24 = vmul.f32 %v2259_v4, %v1595_v14  ;;  %v3574_v27 = vld [vmem:[#allocation27_spill] sm:$0xff]  ;;  %v3575_v61 = vld [vmem:[#allocation9_spill] sm:$0xff]  ;;  %v3578_v45 = vld [vmem:[#allocation12_spill] sm:$0xff] }
 0x2a0   :  { %v1689_v13 = vsub.f32 1.0, %v1673_v8  ;;  %v1703_v15 = vmul.f32 %v1687_v18, %v3569_v22  ;;  %v2263_v46 = vpop.eup %2262  ;;  %v1600_v9 = vmul.f32 %v3318_v57, %v1584_v36  ;;  %v1676_v25 = vmul.f32 %v2261_v28, %v1596_v55  ;;  %v3573_v57 = vld [vmem:[#allocation26_spill] sm:$0xff]  ;;  %v3577_v36 = vld [vmem:[#allocation11_spill] sm:$0xff]  ;;  %v3579_v42 = vld [vmem:[#allocation13_spill] sm:$0xff] }
 0x2a1   :  { %v1690_v51 = vsub.f32 1.0, %v1674_v47  ;;  %v1704_v26 = vmul.f32 %v1688_v62, %v3570_v35  ;;  %v2265_v41 = vpop.eup %2264  ;;  %v1677_v54 = vmul.f32 %v2263_v46, %v1597_v50  ;;  %v1691_v59 = vsub.f32 1.0, %v1675_v24  ;;  %v3580_v8 = vld [vmem:[#allocation14_spill] sm:$0xff] }
 0x2a2   :  { %v1705_v38 = vmul.f32 %v1689_v13, %v3571_v31  ;;  %v1719_v39 = vadd.f32 1.0, %v1703_v15  ;;  %v2267_v1 = vpop.eup %2266  ;;  %v1678_v21 = vmul.f32 %v2265_v41, %v1598_v52  ;;  %v1692_v11 = vsub.f32 1.0, %v1676_v25  ;;  %v3582_v52 = vld [vmem:[#allocation15_spill] sm:$0xff] }
 0x2a3   :  { %v1706_v63 = vmul.f32 %v1690_v51, %v3572_v12  ;;  %v1720_v20 = vadd.f32 1.0, %v1704_v26  ;;  %v2269_v7 = vpop.eup %2268  ;;  %v1679_v37 = vmul.f32 %v2267_v1, %v1599_v56  ;;  %v1693_v48 = vsub.f32 1.0, %v1677_v54  ;;  %v3584_v56 = vld [vmem:[#allocation18_spill] sm:$0xff] }
 0x2a4   :  { %v1707_v23 = vmul.f32 %v1691_v59, %v3573_v57  ;;  %v1721_v6 = vadd.f32 1.0, %v1705_v38  ;;  %v1680_v58 = vmul.f32 %v2269_v7, %v1600_v9  ;;  %v1694_v43 = vsub.f32 1.0, %v1678_v21 }
 0x2a5   :  { %v1708_v30 = vmul.f32 %v1692_v11, %v3574_v27  ;;  %v1722_v53 = vadd.f32 1.0, %v1706_v63  ;;  %v1695_v16 = vsub.f32 1.0, %v1679_v37  ;;  %v1709_v32 = vmul.f32 %v1693_v48, %v1389_v60 }
 0x2a6   :  { %v1723_v2 = vadd.f32 1.0, %v1707_v23  ;;  %v1735_v10 = vmul.f32 %v1719_v39, %v3575_v61  ;;  %v1696_v29 = vsub.f32 1.0, %v1680_v58  ;;  %v1710_v34 = vmul.f32 %v1694_v43, %v1390_v19 }
 0x2a7   :  { %v1724_v14 = vadd.f32 1.0, %v1708_v30  ;;  %v1736_v0 = vmul.f32 %v1720_v20, %v3576_v5  ;;  %v1711_v17 = vmul.f32 %v1695_v16, %v1391_v44  ;;  %v1725_v3 = vadd.f32 1.0, %v1709_v32  ;;  %v3581_v44 = vld [vmem:[#allocation16_spill] sm:$0xff] }
 0x2a8   :  { %v1737_v55 = vmul.f32 %v1721_v6, %v3577_v36  ;;  %v1738_v49 = vmul.f32 %v1722_v53, %v3578_v45  ;;  %1751 = vst.msk [vmem:[%s3519_s5 + $0x30] sm:$0xff] %vm135_vm0, %v1735_v10  ;;  %v1712_v60 = vmul.f32 %v1696_v29, %v1392_v33  ;;  %v1726_v40 = vadd.f32 1.0, %v1710_v34  ;;  %v3583_v33 = vld [vmem:[#allocation17_spill] sm:$0xff] }
 0x2a9   :  { %v1739_v50 = vmul.f32 %v1723_v2, %v3579_v42  ;;  %v1740_v19 = vmul.f32 %v1724_v14, %v3580_v8  ;;  %1752 = vst.msk [vmem:[%s3519_s5 + $0x38] sm:$0xff] %vm135_vm0, %v1736_v0  ;;  %v1343_v18 = vmul.f32 0.5, %v3581_v44  ;;  %v1727_v4 = vadd.f32 1.0, %v1711_v17 }
 0x2aa   :  { %v1741_v47 = vmul.f32 %v1725_v3, %v3582_v52  ;;  %1753 = vst.msk [vmem:[%s3519_s5 + $0x40] sm:$0xff] %vm135_vm0, %v1737_v55  ;;  %1754 = vst.msk [vmem:[%s3519_s5 + $0x48] sm:$0xff] %vm135_vm0, %v1738_v49  ;;  %v1344_v62 = vmul.f32 0.5, %v3583_v33  ;;  %v1728_v28 = vadd.f32 1.0, %v1712_v60  ;;  %v1742_v24 = vmul.f32 %v1726_v40, %v3584_v56 }
 0x2ab   :  { %1755 = vst.msk [vmem:[%s3519_s5 + $0x50] sm:$0xff] %vm135_vm0, %v1739_v50  ;;  %1756 = vst.msk [vmem:[%s3519_s5 + $0x58] sm:$0xff] %vm135_vm0, %v1740_v19  ;;  %v1743_v13 = vmul.f32 %v1727_v4, %v1343_v18 }
 0x2ac   :  { %1757 = vst.msk [vmem:[%s3519_s5 + $0x60] sm:$0xff] %vm135_vm0, %v1741_v47  ;;  %v1744_v22 = vmul.f32 %v1728_v28, %v1344_v62  ;;  %1758 = vst.msk [vmem:[%s3519_s5 + $0x68] sm:$0xff] %vm135_vm0, %v1742_v24 }
 0x2ad   :  { %1759 = vst.msk [vmem:[%s3519_s5 + $0x70] sm:$0xff] %vm135_vm0, %v1743_v13 }
 0x2ae   :  { %1760 = vst.msk [vmem:[%s3519_s5 + $0x78] sm:$0xff] %vm135_vm0, %v1744_v22 }

// kernel: downsample_forward.5
= control target key start
LH: loop header
LB: loop body
LE: loop exit
PB: predicated region body
PF: predicated region fallthrough
CT: control target
= control target key end

     0   :  { %vm42_vm0 = vcmask 31744   ;;  %vm44_vm1 = vcmask 25600   ;;  %v2136_v1 = vmov 0.0   ;;  %s2137_s25 = smov 8   ;;  %s2138_s26 = smov 4   ;;  %vm941_vm2 = vcmask 1041408   ;;  %s3181_s0 = inlined_call_operand.vmem [shape: f32[2,8,8,4], index: 0, kind: input, shape index: {}]   ;;  %s3182_s2 = inlined_call_operand.vmem [shape: bf16[36,4], index: 2, kind: input, shape index: {}]   ;;  %s3183_s3 = inlined_call_operand.vmem [shape: f32[1,4], index: 3, kind: input, shape index: {}]   ;;  %s3184_s4 = inlined_call_operand.vmem [shape: f32[1,4], index: 4, kind: input, shape index: {}]   ;;  %s3185_s1 = inlined_call_operand.vmem [shape: f32[2,8,8,4], index: 1, kind: input, shape index: {}]   ;;  %s3186_s5 = inlined_call_operand.vmem [shape: f32[2,8,8,4], index: 5, kind: output, shape index: {}]  }
   0x1   :  { %v21_v0 = vld [vmem:[%s3181_s0] sm:$0xff]  ;;  %43 = vst.msk [vmem:[#allocation2] sm:$0xff] %vm42_vm0, %v2136_v1  ;;  %46 = vst.msk [vmem:[#allocation2 + $0x10] sm:$0xff] %vm42_vm0, %v2136_v1  ;;  %v22_v2 = vld [vmem:[%s3181_s0 + $0x8] sm:$0xff]  ;;  %s2140_s27 = smov 16   ;;  %s2141_s28 = smov 20  }
   0x2   :  { %45 = vst.msk [vmem:[#allocation2 + $0x8] sm:$0x3] %vm44_vm1, %v2136_v1  ;;  %47 = vst.msk [vmem:[#allocation2 + $0x18] sm:$0x3] %vm44_vm1, %v2136_v1  ;;  %v23_v3 = vld [vmem:[%s3181_s0 + $0x10] sm:$0xff]  ;;  %v24_v4 = vld [vmem:[%s3181_s0 + $0x18] sm:$0xff] }
   0x3   :  { %48 = vst.msk [vmem:[#allocation2 + $0x20] sm:$0xff] %vm42_vm0, %v2136_v1  ;;  %50 = vst.msk [vmem:[#allocation2 + $0x30] sm:$0xff] %vm42_vm0, %v2136_v1  ;;  %v25_v5 = vld [vmem:[%s3181_s0 + $0x20] sm:$0xff]  ;;  %v26_v6 = vld [vmem:[%s3181_s0 + $0x28] sm:$0xff]  ;;  %s2142_s8 = smov 24   ;;  %s2143_s11 = smov 28  }
   0x4   :  { %49 = vst.msk [vmem:[#allocation2 + $0x28] sm:$0x3] %vm44_vm1, %v2136_v1  ;;  %51 = vst.msk [vmem:[#allocation2 + $0x38] sm:$0x3] %vm44_vm1, %v2136_v1  ;;  %v27_v7 = vld [vmem:[%s3181_s0 + $0x30] sm:$0xff]  ;;  %v28_v8 = vld [vmem:[%s3181_s0 + $0x38] sm:$0xff] }
   0x5   :  { %52 = vst.msk [vmem:[#allocation2 + $0x40] sm:$0xff] %vm42_vm0, %v2136_v1  ;;  %54 = vst.msk [vmem:[#allocation2 + $0x50] sm:$0xff] %vm42_vm0, %v2136_v1  ;;  %v29_v9 = vld [vmem:[%s3181_s0 + $0x40] sm:$0xff]  ;;  %v30_v10 = vld [vmem:[%s3181_s0 + $0x48] sm:$0xff]  ;;  %s2144_s12 = smov 32   ;;  %vm774_vm3 = vcmask 64512  }
   0x6   :  { %53 = vst.msk [vmem:[#allocation2 + $0x48] sm:$0x3] %vm44_vm1, %v2136_v1  ;;  %55 = vst.msk [vmem:[#allocation2 + $0x58] sm:$0x3] %vm44_vm1, %v2136_v1  ;;  %v31_v11 = vld [vmem:[%s3181_s0 + $0x50] sm:$0xff]  ;;  %v32_v12 = vld [vmem:[%s3181_s0 + $0x58] sm:$0xff] }
   0x7   :  { %56 = vst.msk [vmem:[#allocation2 + $0x60] sm:$0xff] %vm42_vm0, %v2136_v1  ;;  %58 = vst.msk [vmem:[#allocation2 + $0x70] sm:$0xff] %vm42_vm0, %v2136_v1  ;;  %v33_v13 = vld [vmem:[%s3181_s0 + $0x60] sm:$0xff]  ;;  %v34_v14 = vld [vmem:[%s3181_s0 + $0x68] sm:$0xff]  ;;  %vm791_vm4 = vcmask 97280   ;;  %vm808_vm5 = vcmask 130048  }
   0x8   :  { %57 = vst.msk [vmem:[#allocation2 + $0x68] sm:$0x3] %vm44_vm1, %v2136_v1  ;;  %59 = vst.msk [vmem:[#allocation2 + $0x78] sm:$0x3] %vm44_vm1, %v2136_v1  ;;  %v35_v15 = vld [vmem:[%s3181_s0 + $0x70] sm:$0xff]  ;;  %v36_v16 = vld [vmem:[%s3181_s0 + $0x78] sm:$0xff] }
   0x9   :  { %60 = vst.msk [vmem:[#allocation2 + $0x80] sm:$0xff] %vm42_vm0, %v2136_v1  ;;  %62 = vst.msk [vmem:[#allocation2 + $0x90] sm:$0xff] %vm42_vm0, %v2136_v1  ;;  %v133_v17 = vld [vmem:[#allocation2 + $0x2] sm:$0xff]  ;;  %s2139_s0 = smov 12   ;;  %vm825_vm6 = vcmask 162816   ;;  %vm842_vm7 = vcmask 195584  }
   0xa   :  { %61 = vst.msk [vmem:[#allocation2 + $0x88] sm:$0x3] %vm44_vm1, %v2136_v1  ;;  %63 = vst.msk [vmem:[#allocation2 + $0x98] sm:$0x3] %vm44_vm1, %v2136_v1  ;;  %v117_v18 = vld [vmem:[#allocation2 + $0x1] sm:$0xff]  ;;  %vm859_vm8 = vcmask 228352  }
   0xb   :  { %64 = vst.msk [vmem:[#allocation2 + $0xa0] sm:$0xff] %vm42_vm0, %v2136_v1  ;;  %66 = vst.msk [vmem:[#allocation2 + $0xb0] sm:$0xff] %vm42_vm0, %v2136_v1  ;;  %v2067_v45 = vld [vmem:[%s3182_s2 + $0x10] ss:$0 sps:$4 sm:$0x33]   ;;  %v2068_v46 = vld [vmem:[%s3182_s2 + $0x8] sm:$0xff]  }
   0xc   :  { %65 = vst.msk [vmem:[#allocation2 + $0xa8] sm:$0x3] %vm44_vm1, %v2136_v1  ;;  %67 = vst.msk [vmem:[#allocation2 + $0xb8] sm:$0x3] %vm44_vm1, %v2136_v1  ;;  %1735 = vmatprep.subr.msk.bf16.mxu0 %vm941_vm2, %v2067_v45  ;;  %v943_v47 = vsel %vm941_vm2, %v2067_v45, 0  ;;  %1736 = vmatprep.subr.msk.bf16.mxu1 %vm941_vm2, %v2067_v45  ;;  %v2069_v49 = vld [vmem:[%s3182_s2] sm:$0xff]  }
   0xd   :  { %68 = vst.msk [vmem:[#allocation2 + $0xc0] sm:$0xff] %vm42_vm0, %v2136_v1  ;;  %70 = vst.msk [vmem:[#allocation2 + $0xd0] sm:$0xff] %vm42_vm0, %v2136_v1  ;;  %1708 = vmatpush3.bf16.msra.mxu0 %v943_v47  ;;  %1732 = vmatpush3.bf16.msra.mxu1 %v943_v47  ;;  %vm876_vm9 = vcmask 261120   ;;  %vm916_vm10 = vcmask 293888  }
   0xe   :  { %69 = vst.msk [vmem:[#allocation2 + $0xc8] sm:$0x3] %vm44_vm1, %v2136_v1  ;;  %71 = vst.msk [vmem:[#allocation2 + $0xd8] sm:$0x3] %vm44_vm1, %v2136_v1  ;;  %1709 = vmatprep.subr.bf16.mxu0 %v2068_v46  ;;  %1730 = vmatprep.subr.bf16.mxu1 %v2068_v46 }
   0xf   :  { %72 = vst.msk [vmem:[#allocation2 + $0xe0] sm:$0xff] %vm42_vm0, %v2136_v1  ;;  %74 = vst.msk [vmem:[#allocation2 + $0xf0] sm:$0xff] %vm42_vm0, %v2136_v1 }
  0x10   :  { %73 = vst.msk [vmem:[#allocation2 + $0xe8] sm:$0x3] %vm44_vm1, %v2136_v1  ;;  %75 = vst.msk [vmem:[#allocation2 + $0xf8] sm:$0x3] %vm44_vm1, %v2136_v1 }
  0x11   :  { %76 = vst.msk [vmem:[#allocation2 + $0x100] sm:$0xff] %vm42_vm0, %v2136_v1  ;;  %78 = vst.msk [vmem:[#allocation2 + $0x110] sm:$0xff] %vm42_vm0, %v2136_v1  ;;  %1710 = vmatpush3.bf16.msra.mxu0 %v2068_v46  ;;  %1733 = vmatpush3.bf16.msra.mxu1 %v2068_v46 }
  0x12   :  { %77 = vst.msk [vmem:[#allocation2 + $0x108] sm:$0x3] %vm44_vm1, %v2136_v1  ;;  %79 = vst.msk [vmem:[#allocation2 + $0x118] sm:$0x3] %vm44_vm1, %v2136_v1  ;;  %1711 = vmatprep.subr.bf16.mxu0 %v2069_v49  ;;  %1731 = vmatprep.subr.bf16.mxu1 %v2069_v49 }
  0x13   :  { %80 = vst.msk [vmem:[#allocation2 + $0x120] sm:$0xff] %vm42_vm0, %v2136_v1  ;;  %82 = vst.msk [vmem:[#allocation2 + $0x130] sm:$0xff] %vm42_vm0, %v2136_v1 }
  0x14   :  { %81 = vst.msk [vmem:[#allocation2 + $0x128] sm:$0x3] %vm44_vm1, %v2136_v1  ;;  %83 = vst.msk [vmem:[#allocation2 + $0x138] sm:$0x3] %vm44_vm1, %v2136_v1 }
  0x15   :  { %85 = vst.msk [vmem:[#allocation2 + $0x11] sm:$0xff] %vm42_vm0, %v21_v0  ;;  %86 = vst.msk [vmem:[#allocation2 + $0x21] sm:$0xff] %vm42_vm0, %v22_v2  ;;  %1712 = vmatpush3.bf16.msra.mxu0 %v2069_v49  ;;  %1734 = vmatpush3.bf16.msra.mxu1 %v2069_v49 }
  0x16   :  { %87 = vst.msk [vmem:[#allocation2 + $0x31] sm:$0xff] %vm42_vm0, %v23_v3  ;;  %88 = vst.msk [vmem:[#allocation2 + $0x41] sm:$0xff] %vm42_vm0, %v24_v4 }
  0x17   :  { %89 = vst.msk [vmem:[#allocation2 + $0x51] sm:$0xff] %vm42_vm0, %v25_v5  ;;  %90 = vst.msk [vmem:[#allocation2 + $0x61] sm:$0xff] %vm42_vm0, %v26_v6  ;;  %v205_v5 = vld [vmem:[#allocation2 + $0x90] sm:$0xff] }
  0x18   :  { %91 = vst.msk [vmem:[#allocation2 + $0x71] sm:$0xff] %vm42_vm0, %v27_v7  ;;  %92 = vst.msk [vmem:[#allocation2 + $0x81] sm:$0xff] %vm42_vm0, %v28_v8  ;;  %v221_v8 = vld [vmem:[#allocation2 + $0x91] sm:$0xff] }
  0x19   :  { %93 = vst.msk [vmem:[#allocation2 + $0xb1] sm:$0xff] %vm42_vm0, %v29_v9  ;;  %94 = vst.msk [vmem:[#allocation2 + $0xc1] sm:$0xff] %vm42_vm0, %v30_v10  ;;  %v125_v10 = vld [vmem:[#allocation2 + $0xa1] sm:$0xff] }
  0x1a   :  { %95 = vst.msk [vmem:[#allocation2 + $0xd1] sm:$0xff] %vm42_vm0, %v31_v11  ;;  %96 = vst.msk [vmem:[#allocation2 + $0xe1] sm:$0xff] %vm42_vm0, %v32_v12 }
  0x1b   :  { %97 = vst.msk [vmem:[#allocation2 + $0xf1] sm:$0xff] %vm42_vm0, %v33_v13  ;;  %98 = vst.msk [vmem:[#allocation2 + $0x101] sm:$0xff] %vm42_vm0, %v34_v14 }
  0x1c   :  { %99 = vst.msk [vmem:[#allocation2 + $0x111] sm:$0xff] %vm42_vm0, %v35_v15  ;;  %100 = vst.msk [vmem:[#allocation2 + $0x121] sm:$0xff] %vm42_vm0, %v36_v16  ;;  %v134_v19 = vld [vmem:[#allocation2 + $0x12] sm:$0xff]  ;;  %v135_v21 = vld [vmem:[#allocation2 + $0x22] sm:$0xff] }
  0x1d   :  { %v118_v20 = vld [vmem:[#allocation2 + $0x11] sm:$0xff]  ;;  %v1757_v22 = vpack.i.bf16 %v134_v19, %v133_v17  ;;  %v119_v25 = vld [vmem:[#allocation2 + $0x21] sm:$0xff]  ;;  %v1787_v40 = vpack.i.bf16 %v135_v21, %v134_v19 }
  0x1e   :  { %v1747_v23 = vpack.i.bf16 %v118_v20, %v117_v18  ;;  %v136_v24 = vld [vmem:[#allocation2 + $0x32] sm:$0xff]  ;;  %v2284_v30 = vld [vmem:[#allocation2 + $0x40] sm:$0xff]  ;;  %v1777_v37 = vpack.i.bf16 %v119_v25, %v118_v20 }
  0x1f   :  { %v120_v26 = vld [vmem:[#allocation2 + $0x31] sm:$0xff]  ;;  %1758 = vrot.lane.b32.xlu1 %v1757_v22, %s2137_s25  ;;  %v1762_v27 = vpack.i.bf16 %v136_v24, %v135_v21  ;;  %v2288_v32 = vld [vmem:[#allocation2 + $0x20] sm:$0xff] }
  0x20   :  { %1748 = vrot.lane.b32.xlu0 %v1747_v23, %s2138_s26  ;;  %v1752_v28 = vpack.i.bf16 %v120_v26, %v119_v25  ;;  %v2282_v29 = vld [vmem:[#allocation2 + $0x30] sm:$0xff]  ;;  %v168_v35 = vld [vmem:[#allocation2 + $0x41] sm:$0xff] }
  0x21   :  { %v2286_v31 = vld [vmem:[#allocation2 + $0x10] sm:$0xff]  ;;  %v1772_v33 = vpack.i.bf16 %v2284_v30, %v2282_v29  ;;  %v1782_v36 = vpack.i.bf16 %v168_v35, %v120_v26  ;;  %v184_v38 = vld [vmem:[#allocation2 + $0x42] sm:$0xff]  ;;  %v1797_v43 = vpack.i.bf16 %v2282_v29, %v2288_v32 }
  0x22   :  { %v1767_v34 = vpack.i.bf16 %v2288_v32, %v2286_v31  ;;  %v1792_v39 = vpack.i.bf16 %v184_v38, %v136_v24  ;;  %v2300_v41 = vld [vmem:[#allocation2 + $0x50] sm:$0xff]  ;;  %v123_v50 = vld [vmem:[#allocation2 + $0x61] sm:$0xff] }
  0x23   :  { %1763 = vrot.lane.b32.xlu1 %v1762_v27, %s2137_s25  ;;  %v1802_v42 = vpack.i.bf16 %v2300_v41, %v2284_v30  ;;  %v217_v44 = vld [vmem:[#allocation2 + $0x51] sm:$0xff]  ;;  %v139_v55 = vld [vmem:[#allocation2 + $0x62] sm:$0xff] }
  0x24   :  { %1753 = vrot.lane.b32.xlu0 %v1752_v28, %s2138_s26  ;;  %v1812_v48 = vpack.i.bf16 %v217_v44, %v168_v35  ;;  %v124_v51 = vld [vmem:[#allocation2 + $0x71] sm:$0xff]  ;;  %v156_v59 = vld [vmem:[#allocation2 + $0x80] sm:$0xff]  ;;  %v1857_v1 = vpack.i.bf16 %v123_v50, %v217_v44 }
  0x25   :  { %v233_v52 = vld [vmem:[#allocation2 + $0x52] sm:$0xff]  ;;  %v1832_v53 = vpack.i.bf16 %v124_v51, %v123_v50  ;;  %v2327_v60 = vld [vmem:[#allocation2 + $0x60] sm:$0xff]  ;;  %v1882_v6 = vpack.i.bf16 %v205_v5, %v156_v59 }
  0x26   :  { %v1827_v54 = vpack.i.bf16 %v233_v52, %v184_v38  ;;  %v140_v56 = vld [vmem:[#allocation2 + $0x72] sm:$0xff]  ;;  %v1847_v62 = vpack.i.bf16 %v2327_v60, %v2300_v41  ;;  %v172_v63 = vld [vmem:[#allocation2 + $0x81] sm:$0xff]  ;;  %v1867_v4 = vpack.i.bf16 %v139_v55, %v233_v52 }
  0x27   :  { %1773 = vrot.lane.b32.xlu1 %v1772_v33, %s2139_s0  ;;  %v1842_v57 = vpack.i.bf16 %v140_v56, %v139_v55  ;;  %v2325_v58 = vld [vmem:[#allocation2 + $0x70] sm:$0xff]  ;;  %v1862_v0 = vpack.i.bf16 %v172_v63, %v124_v51  ;;  %v188_v2 = vld [vmem:[#allocation2 + $0x82] sm:$0xff]  ;;  %v1892_v9 = vpack.i.bf16 %v221_v8, %v172_v63 }
  0x28   :  { %1768 = vrot.lane.b32.xlu0 %v1767_v34, %s2139_s0  ;;  %v1852_v61 = vpack.i.bf16 %v156_v59, %v2325_v58  ;;  %v1872_v3 = vpack.i.bf16 %v188_v2, %v140_v56  ;;  %v1877_v7 = vpack.i.bf16 %v2325_v58, %v2327_v60  ;;  %v126_v11 = vld [vmem:[#allocation2 + $0xb1] sm:$0xff]  ;;  %v127_v13 = vld [vmem:[#allocation2 + $0xc1] sm:$0xff] }
  0x29   :  { %v1902_v12 = vpack.i.bf16 %v126_v11, %v125_v10  ;;  %v128_v14 = vld [vmem:[#allocation2 + $0xd1] sm:$0xff]  ;;  %v143_v18 = vld [vmem:[#allocation2 + $0xc2] sm:$0xff] }
  0x2a   :  { %v237_v15 = vld [vmem:[#allocation2 + $0x92] sm:$0xff]  ;;  %v1912_v16 = vpack.i.bf16 %v128_v14, %v127_v13  ;;  %v141_v20 = vld [vmem:[#allocation2 + $0xa2] sm:$0xff] }
  0x2b   :  { %1783 = vrot.lane.b32.xlu1 %v1782_v36, %s2140_s27  ;;  %v1907_v17 = vpack.i.bf16 %v237_v15, %v188_v2  ;;  %v144_v19 = vld [vmem:[#allocation2 + $0xd2] sm:$0xff]  ;;  %v2352_v25 = vld [vmem:[#allocation2 + $0xe0] sm:$0xff]  ;;  %v1937_v36 = vpack.i.bf16 %v127_v13, %v126_v11 }
  0x2c   :  { %1778 = vrot.lane.b32.xlu0 %v1777_v37, %s2140_s27  ;;  %v142_v21 = vld [vmem:[#allocation2 + $0xb2] sm:$0xff]  ;;  %v1922_v22 = vpack.i.bf16 %v144_v19, %v143_v18  ;;  %v176_v34 = vld [vmem:[#allocation2 + $0xe1] sm:$0xff] }
  0x2d   :  { %v1917_v23 = vpack.i.bf16 %v142_v21, %v141_v20  ;;  %v2350_v24 = vld [vmem:[#allocation2 + $0xd0] sm:$0xff]  ;;  %v1942_v35 = vpack.i.bf16 %v176_v34, %v128_v14  ;;  %v192_v37 = vld [vmem:[#allocation2 + $0xe2] sm:$0xff] }
  0x2e   :  { %v2354_v26 = vld [vmem:[#allocation2 + $0xb0] sm:$0xff]  ;;  %v1952_v38 = vpack.i.bf16 %v192_v37, %v144_v19  ;;  %v131_v46 = vld [vmem:[#allocation2 + $0x101] sm:$0xff] }
  0x2f   :  { %1793 = vrot.lane.b32.xlu1 %v1792_v39, %s2141_s28  ;;  %v1947_v39 = vpack.i.bf16 %v143_v18, %v142_v21  ;;  %v225_v44 = vld [vmem:[#allocation2 + $0xf1] sm:$0xff]  ;;  %v147_v51 = vld [vmem:[#allocation2 + $0x102] sm:$0xff] }
  0x30   :  { %1788 = vrot.lane.b32.xlu0 %v1787_v40, %s2141_s28  ;;  %v2368_v40 = vld [vmem:[#allocation2 + $0xf0] sm:$0xff]  ;;  %v1972_v45 = vpack.i.bf16 %v225_v44, %v176_v34  ;;  %v164_v55 = vld [vmem:[#allocation2 + $0x120] sm:$0xff]  ;;  %v2017_v63 = vpack.i.bf16 %v131_v46, %v225_v44 }
  0x31   :  { %v132_v47 = vld [vmem:[#allocation2 + $0x111] sm:$0xff]  ;;  %v2386_v56 = vld [vmem:[#allocation2 + $0x100] sm:$0xff] }
  0x32   :  { %v1992_v49 = vpack.i.bf16 %v132_v47, %v131_v46  ;;  %v148_v52 = vld [vmem:[#allocation2 + $0x112] sm:$0xff]  ;;  %v2007_v59 = vpack.i.bf16 %v2386_v56, %v2368_v40  ;;  %v101_v20 = vld [vmem:[#allocation2] sm:$0xff] }
  0x33   :  { %1803 = vrot.lane.b32.xlu1 %v1802_v42, %s2142_s8  ;;  %v1962_v42 = vpack.i.bf16 %v2368_v40, %v2352_v25  ;;  %v245_v10 = vld [vmem:[#allocation2 + $0x132] sm:$0xff] }
  0x34   :  { %1798 = vrot.lane.b32.xlu0 %v1797_v43, %s2142_s8 }
  0x37   :  { %1813 = vrot.lane.b32.xlu1 %v1812_v48, %s2143_s11 }
  0x38   :  { %1808 = vrot.lane.b32.xlu0 %v1752_v28, %s2143_s11  ;;  %v1932_v28 = vpack.i.bf16 %v2352_v25, %v2350_v24 }
  0x3b   :  { %1823 = vrot.lane.b32.xlu1 %v1812_v48, %s2138_s26  ;;  %v241_v48 = vld [vmem:[#allocation2 + $0xf2] sm:$0xff] }
  0x3c   :  { %1818 = vrot.lane.b32.xlu0 %v1762_v27, %s2144_s12  ;;  %v2356_v27 = vld [vmem:[#allocation2 + $0xc0] sm:$0xff]  ;;  %v1987_v50 = vpack.i.bf16 %v241_v48, %v192_v37  ;;  %v2027_v2 = vpack.i.bf16 %v147_v51, %v241_v48 }
  0x3d   :  { %v1927_v33 = vpack.i.bf16 %v2356_v27, %v2354_v26  ;;  %v1957_v43 = vpack.i.bf16 %v2350_v24, %v2356_v27 }
  0x3f   :  { %1833 = vrot.lane.b32.xlu1 %v1832_v53, %s2138_s26 }
  0x40   :  { %1828 = vrot.lane.b32.xlu0 %v1827_v54, %s2144_s12 }
  0x43   :  { %1843 = vrot.lane.b32.xlu1 %v1842_v57, %s2137_s25 }
  0x44   :  { %1838 = vrot.lane.b32.xlu0 %v1827_v54, %s2137_s25  ;;  %v2384_v54 = vld [vmem:[#allocation2 + $0x110] sm:$0xff] }
  0x45   :  { %v2037_v5 = vpack.i.bf16 %v2384_v54, %v2386_v56 }
  0x47   :  { %1853 = vrot.lane.b32.xlu1 %v1852_v61, %s2139_s0  ;;  %v180_v61 = vld [vmem:[#allocation2 + $0x121] sm:$0xff] }
  0x48   :  { %1848 = vrot.lane.b32.xlu0 %v1847_v62, %s2139_s0  ;;  %v2022_v62 = vpack.i.bf16 %v180_v61, %v132_v47 }
  0x4b   :  { %1863 = vrot.lane.b32.xlu1 %v1862_v0, %s2140_s27  ;;  %v196_v0 = vld [vmem:[#allocation2 + $0x122] sm:$0xff] }
  0x4c   :  { %1858 = vrot.lane.b32.xlu0 %v1857_v1, %s2140_s27  ;;  %v2032_v1 = vpack.i.bf16 %v196_v0, %v148_v52  ;;  %v2062_v13 = vpack.i.bf16 %v245_v10, %v196_v0 }
  0x4f   :  { %1873 = vrot.lane.b32.xlu1 %v1872_v3, %s2141_s28  ;;  %v213_v3 = vld [vmem:[#allocation2 + $0x130] sm:$0xff] }
  0x50   :  { %1868 = vrot.lane.b32.xlu0 %v1867_v4, %s2141_s28  ;;  %v2042_v4 = vpack.i.bf16 %v213_v3, %v164_v55 }
  0x53   :  { %1883 = vrot.lane.b32.xlu1 %v1882_v6, %s2142_s8  ;;  %v229_v6 = vld [vmem:[#allocation2 + $0x131] sm:$0xff] }
  0x54   :  { %1878 = vrot.lane.b32.xlu0 %v1877_v7, %s2142_s8 }
  0x57   :  { %1893 = vrot.lane.b32.xlu1 %v1892_v9, %s2143_s11  ;;  %v2052_v9 = vpack.i.bf16 %v229_v6, %v180_v61 }
  0x58   :  { %1888 = vrot.lane.b32.xlu0 %v1832_v53, %s2143_s11  ;;  %v2002_v53 = vpack.i.bf16 %v148_v52, %v147_v51 }
  0x5b   :  { %1903 = vrot.lane.b32.xlu1 %v1902_v12, %s2138_s26 }
  0x5c   :  { %1898 = vrot.lane.b32.xlu0 %v1842_v57, %s2144_s12  ;;  %v2012_v57 = vpack.i.bf16 %v164_v55, %v2384_v54 }
  0x5f   :  { %1913 = vrot.lane.b32.xlu1 %v1912_v16, %s2138_s26 }
  0x60   :  { %1908 = vrot.lane.b32.xlu0 %v1907_v17, %s2144_s12 }
  0x63   :  { %1923 = vrot.lane.b32.xlu1 %v1922_v22, %s2137_s25 }
  0x64   :  { %1918 = vrot.lane.b32.xlu0 %v1917_v23, %s2137_s25 }
  0x67   :  { %1933 = vrot.lane.b32.xlu1 %v1932_v28, %s2139_s0 }
  0x68   :  { %1928 = vrot.lane.b32.xlu0 %v1927_v33, %s2139_s0 }
  0x6b   :  { %1943 = vrot.lane.b32.xlu1 %v1942_v35, %s2140_s27 }
  0x6c   :  { %1938 = vrot.lane.b32.xlu0 %v1937_v36, %s2140_s27 }
  0x6f   :  { %1953 = vrot.lane.b32.xlu1 %v1952_v38, %s2141_s28 }
  0x70   :  { %1948 = vrot.lane.b32.xlu0 %v1947_v39, %s2141_s28 }
  0x73   :  { %1963 = vrot.lane.b32.xlu1 %v1962_v42, %s2142_s8 }
  0x74   :  { %1958 = vrot.lane.b32.xlu0 %v1957_v43, %s2142_s8 }
  0x77   :  { %1973 = vrot.lane.b32.xlu1 %v1972_v45, %s2143_s11 }
  0x78   :  { %1968 = vrot.lane.b32.xlu0 %v1912_v16, %s2143_s11 }
  0x7b   :  { %1983 = vrot.lane.b32.xlu1 %v1972_v45, %s2138_s26 }
  0x7c   :  { %1978 = vrot.lane.b32.xlu0 %v1922_v22, %s2144_s12 }
  0x7f   :  { %1993 = vrot.lane.b32.xlu1 %v1992_v49, %s2138_s26 }
  0x80   :  { %1988 = vrot.lane.b32.xlu0 %v1987_v50, %s2144_s12 }
  0x83   :  { %2003 = vrot.lane.b32.xlu1 %v2002_v53, %s2137_s25 }
  0x84   :  { %1998 = vrot.lane.b32.xlu0 %v1987_v50, %s2137_s25 }
  0x87   :  { %2013 = vrot.lane.b32.xlu1 %v2012_v57, %s2139_s0 }
  0x88   :  { %2008 = vrot.lane.b32.xlu0 %v2007_v59, %s2139_s0 }
  0x8b   :  { %2023 = vrot.lane.b32.xlu1 %v2022_v62, %s2140_s27 }
  0x8c   :  { %2018 = vrot.lane.b32.xlu0 %v2017_v63, %s2140_s27 }
  0x8f   :  { %2033 = vrot.lane.b32.xlu1 %v2032_v1, %s2141_s28 }
  0x90   :  { %2028 = vrot.lane.b32.xlu0 %v2027_v2, %s2141_s28 }
  0x91   :  { %v1759_v7 = vpop.permute.xlu1 %1758 }
  0x92   :  { %v1749_v8 = vpop.permute.xlu0 %1748  ;;  %v1761_v33 = vunpack.i.h.bf16 %v1759_v7  ;;  %v1760_v34 = vunpack.i.l.bf16 %v1759_v7 }
  0x93   :  { %2043 = vrot.lane.b32.xlu1 %v2042_v4, %s2142_s8  ;;  %v1751_v18 = vunpack.i.h.bf16 %v1749_v8  ;;  %v1750_v19 = vunpack.i.l.bf16 %v1749_v8 }
  0x94   :  { %2038 = vrot.lane.b32.xlu0 %v2037_v5, %s2142_s8 }
  0x95   :  { %v1764_v11 = vpop.permute.xlu1 %1763  ;;  %v758_v35 = vsel %vm42_vm0, %v101_v20, %v1750_v19  ;;  %v759_v36 = vsel %vm42_vm0, %v2286_v31, %v1751_v18 }
  0x96   :  { %v1754_v12 = vpop.permute.xlu0 %1753  ;;  %v1766_v37 = vunpack.i.h.bf16 %v1764_v11  ;;  %v1765_v38 = vunpack.i.l.bf16 %v1764_v11  ;;  %v776_v31 = vsel %vm774_vm3, %v759_v36, %v1761_v33 }
  0x97   :  { %2053 = vrot.lane.b32.xlu1 %v2052_v9, %s2143_s11  ;;  %v1756_v21 = vunpack.i.h.bf16 %v1754_v12  ;;  %v1755_v22 = vunpack.i.l.bf16 %v1754_v12 }
  0x98   :  { %2048 = vrot.lane.b32.xlu0 %v1992_v49, %s2143_s11  ;;  %v775_v49 = vsel %vm774_vm3, %v758_v35, %v1760_v34 }
  0x99   :  { %v1774_v14 = vpop.permute.xlu1 %1773  ;;  %v761_v39 = vsel %vm42_vm0, %v2282_v29, %v1756_v21  ;;  %v760_v42 = vsel %vm42_vm0, %v2288_v32, %v1755_v22 }
  0x9a   :  { %v1769_v15 = vpop.permute.xlu0 %1768  ;;  %v1776_v43 = vunpack.i.h.bf16 %v1774_v14  ;;  %v1775_v44 = vunpack.i.l.bf16 %v1774_v14  ;;  %v777_v50 = vsel %vm774_vm3, %v760_v42, %v1765_v38  ;;  %v778_v29 = vsel %vm774_vm3, %v761_v39, %v1766_v37 }
  0x9b   :  { %2063 = vrot.lane.b32.xlu1 %v2062_v13, %s2144_s12  ;;  %v1771_v47 = vunpack.i.h.bf16 %v1769_v15  ;;  %v1770_v48 = vunpack.i.l.bf16 %v1769_v15 }
  0x9c   :  { %2058 = vrot.lane.b32.xlu0 %v2002_v53, %s2144_s12  ;;  %v794_v52 = vsel %vm791_vm4, %v777_v50, %v1775_v44  ;;  %v795_v53 = vsel %vm791_vm4, %v778_v29, %v1776_v43 }
  0x9d   :  { %v2407_v16 = vpop.permute.xlu1 %1783  ;;  %v792_v62 = vsel %vm791_vm4, %v775_v49, %v1770_v48  ;;  %v793_v63 = vsel %vm791_vm4, %v776_v31, %v1771_v47 }
  0x9e   :  { %v1779_v17 = vpop.permute.xlu0 %1778  ;;  %v1786_v2 = vunpack.i.h.bf16 %v2407_v16  ;;  %v1785_v3 = vunpack.i.l.bf16 %v2407_v16 }
  0x9f   :  { %v1781_v51 = vunpack.i.h.bf16 %v1779_v17  ;;  %v1780_v32 = vunpack.i.l.bf16 %v1779_v17 }
  0xa0   :  { %v812_v33 = vsel %vm808_vm5, %v795_v53, %v1786_v2 }
  0xa1   :  { %v2409_v23 = vpop.permute.xlu1 %1793  ;;  %v809_v6 = vsel %vm808_vm5, %v792_v62, %v1780_v32  ;;  %v810_v7 = vsel %vm808_vm5, %v793_v63, %v1781_v51 }
  0xa2   :  { %v1789_v28 = vpop.permute.xlu0 %1788  ;;  %v1796_v8 = vunpack.i.h.bf16 %v2409_v23  ;;  %v1795_v9 = vunpack.i.l.bf16 %v2409_v23 }
  0xa3   :  { %v1791_v55 = vunpack.i.h.bf16 %v1789_v28  ;;  %v1790_v57 = vunpack.i.l.bf16 %v1789_v28  ;;  %v811_v28 = vsel %vm808_vm5, %v794_v52, %v1785_v3 }
  0xa4   :  { %v828_v36 = vsel %vm825_vm6, %v811_v28, %v1795_v9  ;;  %v829_v37 = vsel %vm825_vm6, %v812_v33, %v1796_v8 }
  0xa5   :  { %v1804_v45 = vpop.permute.xlu1 %1803  ;;  %v826_v10 = vsel %vm825_vm6, %v809_v6, %v1790_v57  ;;  %v827_v11 = vsel %vm825_vm6, %v810_v7, %v1791_v55 }
  0xa6   :  { %v1799_v46 = vpop.permute.xlu0 %1798  ;;  %v1806_v12 = vunpack.i.h.bf16 %v1804_v45  ;;  %v1805_v13 = vunpack.i.l.bf16 %v1804_v45 }
  0xa7   :  { %v1801_v0 = vunpack.i.h.bf16 %v1799_v46  ;;  %v1800_v1 = vunpack.i.l.bf16 %v1799_v46 }
  0xa8   :  { %v845_v43 = vsel %vm842_vm7, %v828_v36, %v1805_v13  ;;  %v846_v44 = vsel %vm842_vm7, %v829_v37, %v1806_v12 }
  0xa9   :  { %v1814_v59 = vpop.permute.xlu1 %1813  ;;  %v843_v16 = vsel %vm842_vm7, %v826_v10, %v1800_v1  ;;  %v844_v17 = vsel %vm842_vm7, %v827_v11, %v1801_v0 }
  0xaa   :  { %v1809_v61 = vpop.permute.xlu0 %1808  ;;  %v1816_v20 = vunpack.i.h.bf16 %v1814_v59  ;;  %v1815_v21 = vunpack.i.l.bf16 %v1814_v59 }
  0xab   :  { %v1811_v4 = vunpack.i.h.bf16 %v1809_v61  ;;  %v1810_v5 = vunpack.i.l.bf16 %v1809_v61 }
  0xac   :  { %v862_v47 = vsel %vm859_vm8, %v845_v43, %v1815_v21  ;;  %v863_v48 = vsel %vm859_vm8, %v846_v44, %v1816_v20 }
  0xad   :  { %v1824_v14 = vpop.permute.xlu1 %1823  ;;  %v860_v22 = vsel %vm859_vm8, %v843_v16, %v1810_v5  ;;  %v861_v23 = vsel %vm859_vm8, %v844_v17, %v1811_v4 }
  0xae   :  { %v1819_v15 = vpop.permute.xlu0 %1818  ;;  %v1826_v63 = vunpack.i.h.bf16 %v1824_v14  ;;  %v1825_v0 = vunpack.i.l.bf16 %v1824_v14 }
  0xaf   :  { %v1821_v18 = vunpack.i.h.bf16 %v1819_v15  ;;  %v1820_v19 = vunpack.i.l.bf16 %v1819_v15 }
  0xb0   :  { %v763_v13 = vsel %vm42_vm0, %v2300_v41, %v1826_v63  ;;  %v762_v14 = vsel %vm42_vm0, %v2284_v30, %v1825_v0 }
  0xb1   :  { %v877_v34 = vsel %vm876_vm9, %v860_v22, %v1820_v19  ;;  %v878_v35 = vsel %vm876_vm9, %v861_v23, %v1821_v18  ;;  %v1834_v38 = vpop.permute.xlu1 %1833 }
  0xb2   :  { %v1829_v39 = vpop.permute.xlu0 %1828  ;;  %v893_v42 = vpack.c.bf16 %v878_v35, %v877_v34  ;;  %v1836_v61 = vunpack.i.h.bf16 %v1834_v38  ;;  %v1835_v62 = vunpack.i.l.bf16 %v1834_v38 }
  0xb3   :  { %v1831_v45 = vunpack.i.h.bf16 %v1829_v39  ;;  %v1830_v46 = vunpack.i.l.bf16 %v1829_v39 }
  0xb4   :  { %1713 = vmatprep.mubr.msk.bf16.mxu0 %vm916_vm10, %v893_v42  ;;  %v765_v9 = vsel %vm42_vm0, %v2325_v58, %v1836_v61  ;;  %v764_v10 = vsel %vm42_vm0, %v2327_v60, %v1835_v62 }
  0xb5   :  { %v879_v49 = vsel %vm876_vm9, %v862_v47, %v1830_v46  ;;  %v880_v31 = vsel %vm876_vm9, %v863_v48, %v1831_v45  ;;  %v1844_v29 = vpop.permute.xlu1 %1843 }
  0xb6   :  { %v894_v50 = vpack.c.bf16 %v880_v31, %v879_v49  ;;  %v1839_v51 = vpop.permute.xlu0 %1838  ;;  %v1846_v1 = vunpack.i.h.bf16 %v1844_v29  ;;  %v1845_v2 = vunpack.i.l.bf16 %v1844_v29 }
  0xb7   :  { %v1841_v3 = vunpack.i.h.bf16 %v1839_v51  ;;  %v1840_v4 = vunpack.i.l.bf16 %v1839_v51 }
  0xb8   :  { %1714 = vmatmul.mubr.msk.bf16.vlgmr.msra.gmra.mxu0 %vm916_vm10, %v894_v50  ;;  %v781_v15 = vsel %vm774_vm3, %v764_v10, %v1845_v2  ;;  %v782_v16 = vsel %vm774_vm3, %v765_v9, %v1846_v1 }
  0xb9   :  { %v1854_v32 = vpop.permute.xlu1 %1853  ;;  %v780_v17 = vsel %vm774_vm3, %v763_v13, %v1841_v3  ;;  %v779_v18 = vsel %vm774_vm3, %v762_v14, %v1840_v4 }
  0xba   :  { %v1849_v52 = vpop.permute.xlu0 %1848  ;;  %v1856_v5 = vunpack.i.h.bf16 %v1854_v32  ;;  %v1855_v6 = vunpack.i.l.bf16 %v1854_v32 }
  0xbb   :  { %v1851_v11 = vunpack.i.h.bf16 %v1849_v52  ;;  %v1850_v12 = vunpack.i.l.bf16 %v1849_v52 }
  0xbc   :  { %v798_v60 = vsel %vm791_vm4, %v781_v15, %v1855_v6  ;;  %v799_v20 = vsel %vm791_vm4, %v782_v16, %v1856_v5 }
  0xbd   :  { %v2452_v53 = vpop.permute.xlu1 %1863  ;;  %v796_v30 = vsel %vm791_vm4, %v779_v18, %v1850_v12  ;;  %v797_v28 = vsel %vm791_vm4, %v780_v17, %v1851_v11 }
  0xbe   :  { %v1859_v55 = vpop.permute.xlu0 %1858  ;;  %v1866_v35 = vunpack.i.h.bf16 %v2452_v53  ;;  %v1865_v36 = vunpack.i.l.bf16 %v2452_v53 }
  0xbf   :  { %v1861_v58 = vunpack.i.h.bf16 %v1859_v55  ;;  %v1860_v19 = vunpack.i.l.bf16 %v1859_v55 }
  0xc0   :  { %v816_v61 = vsel %vm808_vm5, %v799_v20, %v1866_v35 }
  0xc1   :  { %v2454_v57 = vpop.permute.xlu1 %1873  ;;  %v813_v39 = vsel %vm808_vm5, %v796_v30, %v1860_v19  ;;  %v814_v42 = vsel %vm808_vm5, %v797_v28, %v1861_v58  ;;  %v109_v28 = vld [vmem:[#allocation2 + $0xa0] sm:$0xff] }
  0xc2   :  { %v1869_v59 = vpop.permute.xlu0 %1868  ;;  %v1876_v43 = vunpack.i.h.bf16 %v2454_v57  ;;  %v1875_v44 = vunpack.i.l.bf16 %v2454_v57 }
  0xc3   :  { %v1871_v21 = vunpack.i.h.bf16 %v1869_v59  ;;  %v1870_v22 = vunpack.i.l.bf16 %v1869_v59  ;;  %v815_v59 = vsel %vm808_vm5, %v798_v60, %v1865_v36 }
  0xc4   :  { %v832_v0 = vsel %vm825_vm6, %v815_v59, %v1875_v44  ;;  %v833_v1 = vsel %vm825_vm6, %v816_v61, %v1876_v43 }
  0xc5   :  { %v1884_v7 = vpop.permute.xlu1 %1883  ;;  %v830_v45 = vsel %vm825_vm6, %v813_v39, %v1870_v22  ;;  %v831_v46 = vsel %vm825_vm6, %v814_v42, %v1871_v21 }
  0xc6   :  { %v1879_v8 = vpop.permute.xlu0 %1878  ;;  %v1886_v47 = vunpack.i.h.bf16 %v1884_v7  ;;  %v1885_v48 = vunpack.i.l.bf16 %v1884_v7 }
  0xc7   :  { %v1881_v33 = vunpack.i.h.bf16 %v1879_v8  ;;  %v1880_v34 = vunpack.i.l.bf16 %v1879_v8 }
  0xc8   :  { %v849_v5 = vsel %vm842_vm7, %v832_v0, %v1885_v48  ;;  %v850_v6 = vsel %vm842_vm7, %v833_v1, %v1886_v47 }
  0xc9   :  { %v1894_v41 = vpop.permute.xlu1 %1893  ;;  %v847_v50 = vsel %vm842_vm7, %v830_v45, %v1880_v34  ;;  %v848_v29 = vsel %vm842_vm7, %v831_v46, %v1881_v33 }
  0xca   :  { %v1889_v23 = vpop.permute.xlu0 %1888  ;;  %v1896_v52 = vunpack.i.h.bf16 %v1894_v41  ;;  %v1895_v53 = vunpack.i.l.bf16 %v1894_v41 }
  0xcb   :  { %v1891_v37 = vunpack.i.h.bf16 %v1889_v23  ;;  %v1890_v38 = vunpack.i.l.bf16 %v1889_v23 }
  0xcc   :  { %v866_v9 = vsel %vm859_vm8, %v849_v5, %v1895_v53  ;;  %v867_v10 = vsel %vm859_vm8, %v850_v6, %v1896_v52 }
  0xcd   :  { %v1904_v49 = vpop.permute.xlu1 %1903  ;;  %v864_v55 = vsel %vm859_vm8, %v847_v50, %v1890_v38  ;;  %v865_v57 = vsel %vm859_vm8, %v848_v29, %v1891_v37 }
  0xce   :  { %v1899_v31 = vpop.permute.xlu0 %1898  ;;  %v1906_v22 = vunpack.i.h.bf16 %v1904_v49  ;;  %v1905_v41 = vunpack.i.l.bf16 %v1904_v49 }
  0xcf   :  { %v1901_v51 = vunpack.i.h.bf16 %v1899_v31  ;;  %v1900_v32 = vunpack.i.l.bf16 %v1899_v31 }
  0xd0   :  { %v767_v45 = vsel %vm42_vm0, %v2354_v26, %v1906_v22  ;;  %v766_v46 = vsel %vm42_vm0, %v109_v28, %v1905_v41 }
  0xd1   :  { %v881_v62 = vsel %vm876_vm9, %v864_v55, %v1900_v32  ;;  %v882_v63 = vsel %vm876_vm9, %v865_v57, %v1901_v51  ;;  %v1914_v3 = vpop.permute.xlu1 %1913 }
  0xd2   :  { %v895_v2 = vpack.c.bf16 %v882_v63, %v881_v62  ;;  %v1909_v4 = vpop.permute.xlu0 %1908  ;;  %v1916_v20 = vunpack.i.h.bf16 %v1914_v3  ;;  %v1915_v21 = vunpack.i.l.bf16 %v1914_v3 }
  0xd3   :  { %v1911_v7 = vunpack.i.h.bf16 %v1909_v4  ;;  %v1910_v8 = vunpack.i.l.bf16 %v1909_v4 }
  0xd4   :  { %1717 = vmatprep.mubr.msk.bf16.mxu0 %vm916_vm10, %v895_v2  ;;  %v769_v39 = vsel %vm42_vm0, %v2350_v24, %v1916_v20  ;;  %v768_v42 = vsel %vm42_vm0, %v2356_v27, %v1915_v21 }
  0xd5   :  { %v884_v11 = vsel %vm876_vm9, %v867_v10, %v1911_v7  ;;  %v883_v12 = vsel %vm876_vm9, %v866_v9, %v1910_v8  ;;  %v1924_v14 = vpop.permute.xlu1 %1923 }
  0xd6   :  { %v896_v13 = vpack.c.bf16 %v884_v11, %v883_v12  ;;  %v1919_v15 = vpop.permute.xlu0 %1918  ;;  %v1926_v23 = vunpack.i.h.bf16 %v1924_v14  ;;  %v1925_v30 = vunpack.i.l.bf16 %v1924_v14 }
  0xd7   :  { %v1921_v33 = vunpack.i.h.bf16 %v1919_v15  ;;  %v1920_v34 = vunpack.i.l.bf16 %v1919_v15 }
  0xd8   :  { %1718 = vmatmul.mubr.msk.bf16.gmra.mxu0 %vm916_vm10, %v896_v13  ;;  %v785_v47 = vsel %vm774_vm3, %v768_v42, %v1925_v30  ;;  %v786_v48 = vsel %vm774_vm3, %v769_v39, %v1926_v23 }
  0xd9   :  { %v1934_v16 = vpop.permute.xlu1 %1933  ;;  %v784_v49 = vsel %vm774_vm3, %v767_v45, %v1921_v33  ;;  %v783_v31 = vsel %vm774_vm3, %v766_v46, %v1920_v34 }
  0xda   :  { %v1929_v17 = vpop.permute.xlu0 %1928  ;;  %v1936_v35 = vunpack.i.h.bf16 %v1934_v16  ;;  %v1935_v36 = vunpack.i.l.bf16 %v1934_v16 }
  0xdb   :  { %v1931_v43 = vunpack.i.h.bf16 %v1929_v17  ;;  %v1930_v44 = vunpack.i.l.bf16 %v1929_v17 }
  0xdc   :  { %v802_v29 = vsel %vm791_vm4, %v785_v47, %v1935_v36  ;;  %v803_v27 = vsel %vm791_vm4, %v786_v48, %v1936_v35 }
  0xdd   :  { %v2498_v18 = vpop.permute.xlu1 %1943  ;;  %v800_v53 = vsel %vm791_vm4, %v783_v31, %v1930_v44  ;;  %v801_v55 = vsel %vm791_vm4, %v784_v49, %v1931_v43 }
  0xde   :  { %v1939_v58 = vpop.permute.xlu0 %1938  ;;  %v1946_v61 = vunpack.i.h.bf16 %v2498_v18  ;;  %v1945_v62 = vunpack.i.l.bf16 %v2498_v18 }
  0xdf   :  { %v1941_v50 = vunpack.i.h.bf16 %v1939_v58  ;;  %v1940_v24 = vunpack.i.l.bf16 %v1939_v58 }
  0xe0   :  { %v819_v58 = vsel %vm808_vm5, %v802_v29, %v1945_v62 }
  0xe1   :  { %v2500_v19 = vpop.permute.xlu1 %1953  ;;  %v817_v1 = vsel %vm808_vm5, %v800_v53, %v1940_v24  ;;  %v818_v2 = vsel %vm808_vm5, %v801_v55, %v1941_v50 }
  0xe2   :  { %v1949_v60 = vpop.permute.xlu0 %1948  ;;  %v1956_v3 = vunpack.i.h.bf16 %v2500_v19  ;;  %v1955_v4 = vunpack.i.l.bf16 %v2500_v19  ;;  %v820_v19 = vsel %vm808_vm5, %v803_v27, %v1946_v61 }
  0xe3   :  { %v1951_v51 = vunpack.i.h.bf16 %v1949_v60  ;;  %v1950_v32 = vunpack.i.l.bf16 %v1949_v60 }
  0xe4   :  { %v836_v21 = vsel %vm825_vm6, %v819_v58, %v1955_v4  ;;  %v837_v22 = vsel %vm825_vm6, %v820_v19, %v1956_v3 }
  0xe5   :  { %v1964_v37 = vpop.permute.xlu1 %1963  ;;  %v834_v5 = vsel %vm825_vm6, %v817_v1, %v1950_v32  ;;  %v835_v6 = vsel %vm825_vm6, %v818_v2, %v1951_v51 }
  0xe6   :  { %v1959_v38 = vpop.permute.xlu0 %1958  ;;  %v1966_v7 = vunpack.i.h.bf16 %v1964_v37  ;;  %v1965_v8 = vunpack.i.l.bf16 %v1964_v37 }
  0xe7   :  { %v1961_v57 = vunpack.i.h.bf16 %v1959_v38  ;;  %v1960_v59 = vunpack.i.l.bf16 %v1959_v38 }
  0xe8   :  { %v853_v28 = vsel %vm842_vm7, %v836_v21, %v1965_v8  ;;  %v854_v33 = vsel %vm842_vm7, %v837_v22, %v1966_v7 }
  0xe9   :  { %v1974_v52 = vpop.permute.xlu1 %1973  ;;  %v851_v11 = vsel %vm842_vm7, %v834_v5, %v1960_v59  ;;  %v852_v12 = vsel %vm842_vm7, %v835_v6, %v1961_v57 }
  0xea   :  { %v1969_v26 = vpop.permute.xlu0 %1968  ;;  %v1976_v15 = vunpack.i.h.bf16 %v1974_v52  ;;  %v1975_v16 = vunpack.i.l.bf16 %v1974_v52 }
  0xeb   :  { %v1971_v63 = vunpack.i.h.bf16 %v1969_v26  ;;  %v1970_v0 = vunpack.i.l.bf16 %v1969_v26 }
  0xec   :  { %v870_v36 = vsel %vm859_vm8, %v853_v28, %v1975_v16  ;;  %v871_v37 = vsel %vm859_vm8, %v854_v33, %v1976_v15 }
  0xed   :  { %v1984_v9 = vpop.permute.xlu1 %1983  ;;  %v868_v17 = vsel %vm859_vm8, %v851_v11, %v1970_v0  ;;  %v869_v18 = vsel %vm859_vm8, %v852_v12, %v1971_v63 }
  0xee   :  { %v1979_v10 = vpop.permute.xlu0 %1978  ;;  %v1986_v49 = vunpack.i.h.bf16 %v1984_v9  ;;  %v1985_v31 = vunpack.i.l.bf16 %v1984_v9 }
  0xef   :  { %v1981_v13 = vunpack.i.h.bf16 %v1979_v10  ;;  %v1980_v14 = vunpack.i.l.bf16 %v1979_v10 }
  0xf0   :  { %v771_v61 = vsel %vm42_vm0, %v2368_v40, %v1986_v49  ;;  %v770_v62 = vsel %vm42_vm0, %v2352_v25, %v1985_v31 }
  0xf1   :  { %v885_v60 = vsel %vm876_vm9, %v868_v17, %v1980_v14  ;;  %v886_v20 = vsel %vm876_vm9, %v869_v18, %v1981_v13  ;;  %v1994_v41 = vpop.permute.xlu1 %1993 }
  0xf2   :  { %v1989_v23 = vpop.permute.xlu0 %1988  ;;  %v897_v30 = vpack.c.bf16 %v886_v20, %v885_v60  ;;  %v1996_v50 = vunpack.i.h.bf16 %v1994_v41  ;;  %v1995_v24 = vunpack.i.l.bf16 %v1994_v41 }
  0xf3   :  { %v1991_v34 = vunpack.i.h.bf16 %v1989_v23  ;;  %v1990_v35 = vunpack.i.l.bf16 %v1989_v23 }
  0xf4   :  { %1721 = vmatprep.mubr.msk.bf16.mxu1 %vm916_vm10, %v897_v30  ;;  %v773_v63 = vsel %vm42_vm0, %v2384_v54, %v1996_v50  ;;  %v772_v0 = vsel %vm42_vm0, %v2386_v56, %v1995_v24 }
  0xf5   :  { %v888_v38 = vsel %vm876_vm9, %v871_v37, %v1991_v34  ;;  %v887_v39 = vsel %vm876_vm9, %v870_v36, %v1990_v35  ;;  %v2004_v43 = vpop.permute.xlu1 %2003 }
  0xf6   :  { %v898_v42 = vpack.c.bf16 %v888_v38, %v887_v39  ;;  %v1999_v44 = vpop.permute.xlu0 %1998  ;;  %v2006_v29 = vunpack.i.h.bf16 %v2004_v43  ;;  %v2005_v27 = vunpack.i.l.bf16 %v2004_v43 }
  0xf7   :  { %v2001_v51 = vunpack.i.h.bf16 %v1999_v44  ;;  %v2000_v32 = vunpack.i.l.bf16 %v1999_v44 }
  0xf8   :  { %1722 = vmatmul.mubr.msk.bf16.vlgmr.msra.gmra.mxu1 %vm916_vm10, %v898_v42  ;;  %v789_v1 = vsel %vm774_vm3, %v772_v0, %v2005_v27  ;;  %v790_v2 = vsel %vm774_vm3, %v773_v63, %v2006_v29 }
  0xf9   :  { %v2014_v45 = vpop.permute.xlu1 %2013  ;;  %v788_v3 = vsel %vm774_vm3, %v771_v61, %v2001_v51  ;;  %v787_v4 = vsel %vm774_vm3, %v770_v62, %v2000_v32 }
  0xfa   :  { %v2009_v46 = vpop.permute.xlu0 %2008  ;;  %v2016_v53 = vunpack.i.h.bf16 %v2014_v45  ;;  %v2015_v55 = vunpack.i.l.bf16 %v2014_v45 }
  0xfb   :  { %v2011_v57 = vunpack.i.h.bf16 %v2009_v46  ;;  %v2010_v59 = vunpack.i.l.bf16 %v2009_v46 }
  0xfc   :  { %v806_v9 = vsel %vm791_vm4, %v789_v1, %v2015_v55  ;;  %v807_v54 = vsel %vm791_vm4, %v790_v2, %v2016_v53 }
  0xfd   :  { %v2024_v47 = vpop.permute.xlu1 %2023  ;;  %v804_v56 = vsel %vm791_vm4, %v787_v4, %v2010_v59  ;;  %v805_v10 = vsel %vm791_vm4, %v788_v3, %v2011_v57 }
  0xfe   :  { %v2019_v48 = vpop.permute.xlu0 %2018  ;;  %v2026_v40 = vunpack.i.h.bf16 %v2024_v47  ;;  %v2025_v7 = vunpack.i.l.bf16 %v2024_v47 }
  0xff   :  { %v2021_v8 = vunpack.i.h.bf16 %v2019_v48  ;;  %v2020_v25 = vunpack.i.l.bf16 %v2019_v48 }
 0x100   :  { %v823_v60 = vsel %vm808_vm5, %v806_v9, %v2025_v7  ;;  %v824_v20 = vsel %vm808_vm5, %v807_v54, %v2026_v40 }
 0x101   :  { %v2034_v52 = vpop.permute.xlu1 %2033  ;;  %v821_v21 = vsel %vm808_vm5, %v804_v56, %v2020_v25  ;;  %v822_v22 = vsel %vm808_vm5, %v805_v10, %v2021_v8 }
 0x102   :  { %v2029_v26 = vpop.permute.xlu0 %2028  ;;  %v2036_v11 = vunpack.i.h.bf16 %v2034_v52  ;;  %v2035_v12 = vunpack.i.l.bf16 %v2034_v52 }
 0x103   :  { %v2031_v13 = vunpack.i.h.bf16 %v2029_v26  ;;  %v2030_v14 = vunpack.i.l.bf16 %v2029_v26 }
 0x104   :  { %v840_v33 = vsel %vm825_vm6, %v823_v60, %v2035_v12  ;;  %v841_v34 = vsel %vm825_vm6, %v824_v20, %v2036_v11 }
 0x105   :  { %v2044_v5 = vpop.permute.xlu1 %2043  ;;  %v838_v35 = vsel %vm825_vm6, %v821_v21, %v2030_v14  ;;  %v839_v36 = vsel %vm825_vm6, %v822_v22, %v2031_v13 }
 0x106   :  { %v2039_v6 = vpop.permute.xlu0 %2038  ;;  %v2046_v15 = vunpack.i.h.bf16 %v2044_v5  ;;  %v2045_v16 = vunpack.i.l.bf16 %v2044_v5 }
 0x107   :  { %v2041_v17 = vunpack.i.h.bf16 %v2039_v6  ;;  %v2040_v18 = vunpack.i.l.bf16 %v2039_v6 }
 0x108   :  { %v857_v37 = vsel %vm842_vm7, %v840_v33, %v2045_v16  ;;  %v858_v38 = vsel %vm842_vm7, %v841_v34, %v2046_v15 }
 0x109   :  { %v2054_v58 = vpop.permute.xlu1 %2053  ;;  %v855_v39 = vsel %vm842_vm7, %v838_v35, %v2040_v18  ;;  %v856_v42 = vsel %vm842_vm7, %v839_v36, %v2041_v17 }
 0x10a   :  { %v2049_v19 = vpop.permute.xlu0 %2048  ;;  %v2056_v41 = vunpack.i.h.bf16 %v2054_v58  ;;  %v2055_v23 = vunpack.i.l.bf16 %v2054_v58 }
 0x10b   :  { %v2051_v30 = vunpack.i.h.bf16 %v2049_v19  ;;  %v2050_v28 = vunpack.i.l.bf16 %v2049_v19 }
 0x10c   :  { %v874_v49 = vsel %vm859_vm8, %v857_v37, %v2055_v23  ;;  %v875_v31 = vsel %vm859_vm8, %v858_v38, %v2056_v41 }
 0x10d   :  { %v2064_v43 = vpop.permute.xlu1 %2063  ;;  %v872_v50 = vsel %vm859_vm8, %v855_v39, %v2050_v28  ;;  %v873_v24 = vsel %vm859_vm8, %v856_v42, %v2051_v30 }
 0x10e   :  { %v2059_v44 = vpop.permute.xlu0 %2058  ;;  %v2066_v45 = vunpack.i.h.bf16 %v2064_v43  ;;  %v2065_v46 = vunpack.i.l.bf16 %v2064_v43 }
 0x10f   :  { %v2061_v47 = vunpack.i.h.bf16 %v2059_v44  ;;  %v2060_v48 = vunpack.i.l.bf16 %v2059_v44 }
 0x110   :  { %v891_v29 = vsel %vm876_vm9, %v874_v49, %v2065_v46  ;;  %v892_v27 = vsel %vm876_vm9, %v875_v31, %v2066_v45 }
 0x111   :  { %v889_v51 = vsel %vm876_vm9, %v872_v50, %v2060_v48  ;;  %v890_v32 = vsel %vm876_vm9, %v873_v24, %v2061_v47  ;;  %v900_v52 = vpack.c.bf16 %v892_v27, %v891_v29 }
 0x112   :  { %v899_v26 = vpack.c.bf16 %v890_v32, %v889_v51 }
 0x114   :  { %1725 = vmatprep.mubr.msk.bf16.mxu1 %vm916_vm10, %v899_v26 }
 0x115   :  { %1726 = vmatmul.mubr.msk.bf16.gmra.mxu1 %vm916_vm10, %v900_v52 }
 0x178   :  { %v1715_v53 = vpop.f32.mrf.mxu0 }
 0x179   :  { %v1047_v3 = vsel %vm42_vm0, %v1715_v53, 0.0 }
 0x17a   :  { %v979_v55 = vpop.f32.mrf.mxu0 }
 0x17b   :  { %v1044_v0 = vsel %vm42_vm0, %v979_v55, 0.0 }
 0x17c   :  { %v1716_v57 = vpop.f32.mrf.mxu0 }
 0x17d   :  { %v1049_v40 = vsel %vm42_vm0, %v1716_v57, 0.0 }
 0x17e   :  { %v982_v59 = vpop.f32.mrf.mxu0 }
 0x17f   :  { %v1045_v62 = vsel %vm42_vm0, %v982_v59, 0.0 }
 0x180   :  { %v1046_v1 = vadd.f32 %v1045_v62, %v1044_v0 }
 0x182   :  { %v1048_v4 = vadd.f32 %v1047_v3, %v1046_v1 }
 0x184   :  { %v1050_v8 = vadd.f32 %v1049_v40, %v1048_v4 }
 0x198   :  { %v2581_v61 = vpop.f32.mrf.mxu0 }
 0x199   :  { %v1055_v11 = vsel %vm42_vm0, %v2581_v61, 0.0 }
 0x19a   :  { %v995_v63 = vpop.f32.mrf.mxu0 }
 0x19b   :  { %v1051_v7 = vsel %vm42_vm0, %v995_v63, 0.0 }
 0x19c   :  { %v1720_v2 = vpop.f32.mrf.mxu0  ;;  %v1052_v9 = vadd.f32 %v1051_v7, %v1050_v8 }
 0x19d   :  { %v1057_v14 = vsel %vm42_vm0, %v1720_v2, 0.0 }
 0x19e   :  { %v998_v5 = vpop.f32.mrf.mxu0 }
 0x19f   :  { %v1053_v25 = vsel %vm42_vm0, %v998_v5, 0.0 }
 0x1a0   :  { %v1054_v56 = vadd.f32 %v1053_v25, %v1052_v9 }
 0x1a2   :  { %v1056_v12 = vadd.f32 %v1055_v11, %v1054_v56 }
 0x1a4   :  { %v1058_v16 = vadd.f32 %v1057_v14, %v1056_v12 }
 0x1b8   :  { %v2586_v6 = vpop.f32.mrf.mxu1 }
 0x1b9   :  { %v1063_v19 = vsel %vm42_vm0, %v2586_v6, 0.0 }
 0x1ba   :  { %v1011_v54 = vpop.f32.mrf.mxu1 }
 0x1bb   :  { %v1059_v15 = vsel %vm42_vm0, %v1011_v54, 0.0 }
 0x1bc   :  { %v2591_v10 = vpop.f32.mrf.mxu1  ;;  %v1060_v18 = vadd.f32 %v1059_v15, %v1058_v16 }
 0x1bd   :  { %v1065_v22 = vsel %vm42_vm0, %v2591_v10, 0.0 }
 0x1be   :  { %v1014_v13 = vpop.f32.mrf.mxu1 }
 0x1bf   :  { %v1061_v17 = vsel %vm42_vm0, %v1014_v13, 0.0 }
 0x1c0   :  { %v1062_v58 = vadd.f32 %v1061_v17, %v1060_v18 }
 0x1c2   :  { %v1064_v60 = vadd.f32 %v1063_v19, %v1062_v58 }
 0x1c4   :  { %v1066_v23 = vadd.f32 %v1065_v22, %v1064_v60 }
 0x1d5   :  { %v2600_v20 = vpop.f32.mrf.mxu1 }
 0x1d6   :  { %v1071_v36 = vsel %vm42_vm0, %v2600_v20, 0.0 }
 0x1d7   :  { %v1027_v21 = vpop.f32.mrf.mxu1 }
 0x1d8   :  { %v1067_v41 = vsel %vm42_vm0, %v1027_v21, 0.0 }
 0x1d9   :  { %v2605_v30 = vpop.f32.mrf.mxu1  ;;  %v1068_v28 = vadd.f32 %v1067_v41, %v1066_v23 }
 0x1da   :  { %v1073_v38 = vsel %vm42_vm0, %v2605_v30, 0.0 }
 0x1db   :  { %v1030_v33 = vpop.f32.mrf.mxu1 }
 0x1dc   :  { %v1069_v34 = vsel %vm42_vm0, %v1030_v33, 0.0 }
 0x1dd   :  { %v1070_v35 = vadd.f32 %v1069_v34, %v1068_v28 }
 0x1df   :  { %v1072_v37 = vadd.f32 %v1071_v36, %v1070_v35 }
 0x1e1   :  { %v1074_v39 = vadd.f32 %v1073_v38, %v1072_v37 }
 0x1e3   :  { %v1075_v42 = vrot.slane %v1074_v39, 4 }
 0x1e5   :  { %v1076_v43 = vadd.f32 %v1075_v42, %v1074_v39 }
 0x1e7   :  { %v1077_v44 = vrot.slane %v1076_v43, 2 }
 0x1e9   :  { %v1078_v45 = vadd.f32 %v1077_v44, %v1076_v43 }
 0x1eb   :  { %v1079_v46 = vrot.slane %v1078_v45, 1 }
 0x1ed   :  { %v1080_v47 = vadd.f32 %v1079_v46, %v1078_v45 }
 0x1ef   :  { %v1082_v48 = vmul.f32 0.0078125, %v1080_v47 }
 0x1f1   :  { %v2612_v49 = vsub.f32 %v979_v55, %v1082_v48  ;;  %v2614_v31 = vsub.f32 %v982_v59, %v1082_v48  ;;  %v2616_v50 = vsub.f32 %v1715_v53, %v1082_v48  ;;  %v2618_v24 = vsub.f32 %v1716_v57, %v1082_v48 }
 0x1f2   :  { %v2624_v51 = vsub.f32 %v995_v63, %v1082_v48  ;;  %v2628_v52 = vsub.f32 %v998_v5, %v1082_v48  ;;  %v2635_v59 = vsub.f32 %v2581_v61, %v1082_v48  ;;  %v2640_v1 = vsub.f32 %v1720_v2, %v1082_v48 }
 0x1f3   :  { %v1099_v29 = vmul.f32 %v2612_v49, %v2612_v49  ;;  %v1100_v27 = vmul.f32 %v2614_v31, %v2614_v31  ;;  %v1101_v32 = vmul.f32 %v2616_v50, %v2616_v50  ;;  %v1102_v26 = vmul.f32 %v2618_v24, %v2618_v24 }
 0x1f4   :  { %v1103_v62 = vmul.f32 %v2624_v51, %v2624_v51  ;;  %v1104_v3 = vmul.f32 %v2628_v52, %v2628_v52  ;;  %v2645_v40 = vsub.f32 %v1011_v54, %v1082_v48  ;;  %v1105_v61 = vmul.f32 %v2635_v59, %v2635_v59 }
 0x1f5   :  { %v1115_v53 = vsel %vm42_vm0, %v1099_v29, 0.0  ;;  %v1116_v55 = vsel %vm42_vm0, %v1100_v27, 0.0  ;;  %v1118_v63 = vsel %vm42_vm0, %v1101_v32, 0.0  ;;  %v1120_v4 = vsel %vm42_vm0, %v1102_v26, 0.0 }
 0x1f6   :  { %v1117_v57 = vadd.f32 %v1116_v55, %v1115_v53  ;;  %v1122_v7 = vsel %vm42_vm0, %v1103_v62, 0.0  ;;  %v1092_v25 = vsub.f32 %v1014_v13, %v1082_v48  ;;  %v1106_v9 = vmul.f32 %v2640_v1, %v2640_v1 }
 0x1f7   :  { %v1124_v2 = vsel %vm42_vm0, %v1104_v3, 0.0  ;;  %v1093_v11 = vsub.f32 %v2586_v6, %v1082_v48  ;;  %v1107_v12 = vmul.f32 %v2645_v40, %v2645_v40  ;;  %v1126_v54 = vsel %vm42_vm0, %v1105_v61, 0.0  ;;  %v1694_v3 = vld [vmem:[%s3183_s3] ss:$0 sm:$0xff] }
 0x1f8   :  { %v1119_v0 = vadd.f32 %v1118_v63, %v1117_v57  ;;  %v1094_v15 = vsub.f32 %v2591_v10, %v1082_v48  ;;  %v1108_v16 = vmul.f32 %v1092_v25, %v1092_v25  ;;  %v1128_v17 = vsel %vm42_vm0, %v1106_v9, 0.0 }
 0x1f9   :  { %v1095_v18 = vsub.f32 %v1027_v21, %v1082_v48  ;;  %v1109_v58 = vmul.f32 %v1093_v11, %v1093_v11  ;;  %v1130_v19 = vsel %vm42_vm0, %v1107_v12, 0.0  ;;  %v1096_v22 = vsub.f32 %v1030_v33, %v1082_v48 }
 0x1fa   :  { %v1121_v5 = vadd.f32 %v1120_v4, %v1119_v0  ;;  %v1110_v41 = vmul.f32 %v1094_v15, %v1094_v15  ;;  %v1132_v6 = vsel %vm42_vm0, %v1108_v16, 0.0  ;;  %v1097_v28 = vsub.f32 %v2600_v20, %v1082_v48 }
 0x1fb   :  { %v1111_v34 = vmul.f32 %v1095_v18, %v1095_v18  ;;  %v1134_v35 = vsel %vm42_vm0, %v1109_v58, 0.0  ;;  %v1098_v36 = vsub.f32 %v2605_v30, %v1082_v48  ;;  %v1112_v37 = vmul.f32 %v1096_v22, %v1096_v22 }
 0x1fc   :  { %v1123_v8 = vadd.f32 %v1122_v7, %v1121_v5  ;;  %v1136_v21 = vsel %vm42_vm0, %v1110_v41, 0.0  ;;  %v1113_v39 = vmul.f32 %v1097_v28, %v1097_v28  ;;  %v1215_v41 = vld [vmem:[%s3185_s1] sm:$0xff] }
 0x1fd   :  { %v1138_v42 = vsel %vm42_vm0, %v1111_v34, 0.0  ;;  %v1114_v43 = vmul.f32 %v1098_v36, %v1098_v36  ;;  %v1140_v44 = vsel %vm42_vm0, %v1112_v37, 0.0 }
 0x1fe   :  { %v1125_v56 = vadd.f32 %v1124_v2, %v1123_v8  ;;  %v1142_v20 = vsel %vm42_vm0, %v1113_v39, 0.0 }
 0x1ff   :  { %v1144_v47 = vsel %vm42_vm0, %v1114_v43, 0.0  ;;  %v1221_v43 = vld [vmem:[%s3185_s1 + $0x30] sm:$0xff] }
 0x200   :  { %v1127_v14 = vadd.f32 %v1126_v54, %v1125_v56 }
 0x202   :  { %v1129_v13 = vadd.f32 %v1128_v17, %v1127_v14 }
 0x204   :  { %v1131_v60 = vadd.f32 %v1130_v19, %v1129_v13 }
 0x206   :  { %v1133_v23 = vadd.f32 %v1132_v6, %v1131_v60 }
 0x208   :  { %v1135_v10 = vadd.f32 %v1134_v35, %v1133_v23 }
 0x20a   :  { %v1137_v38 = vadd.f32 %v1136_v21, %v1135_v10  ;;  %v1216_v10 = vld [vmem:[%s3185_s1 + $0x8] sm:$0xff] }
 0x20c   :  { %v1139_v33 = vadd.f32 %v1138_v42, %v1137_v38  ;;  %v1219_v42 = vld [vmem:[%s3185_s1 + $0x20] sm:$0xff] }
 0x20e   :  { %v1141_v45 = vadd.f32 %v1140_v44, %v1139_v33  ;;  %v1220_v33 = vld [vmem:[%s3185_s1 + $0x28] sm:$0xff] }
 0x210   :  { %v1143_v46 = vadd.f32 %v1142_v20, %v1141_v45 }
 0x212   :  { %v1145_v29 = vadd.f32 %v1144_v47, %v1143_v46  ;;  %v1222_v47 = vld [vmem:[%s3185_s1 + $0x38] sm:$0xff] }
 0x214   :  { %v1146_v27 = vrot.slane %v1145_v29, 4 }
 0x216   :  { %v1147_v30 = vadd.f32 %v1146_v27, %v1145_v29  ;;  %v1223_v29 = vld [vmem:[%s3185_s1 + $0x40] sm:$0xff]  ;;  %v1224_v27 = vld [vmem:[%s3185_s1 + $0x48] sm:$0xff] }
 0x218   :  { %v1148_v48 = vrot.slane %v1147_v30, 2 }
 0x21a   :  { %v1149_v32 = vadd.f32 %v1148_v48, %v1147_v30 }
 0x21c   :  { %v1150_v26 = vrot.slane %v1149_v32, 1 }
 0x21e   :  { %v1151_v53 = vadd.f32 %v1150_v26, %v1149_v32  ;;  %v1225_v32 = vld [vmem:[%s3185_s1 + $0x50] sm:$0xff]  ;;  %v1226_v26 = vld [vmem:[%s3185_s1 + $0x58] sm:$0xff] }
 0x220   :  { %v1152_v55 = vmul.f32 0.0078125, %v1151_v53  ;;  %v1227_v53 = vld [vmem:[%s3185_s1 + $0x60] sm:$0xff] }
 0x222   :  { %v1153_v57 = vadd.f32 1e-05, %v1152_v55 }
 0x224   :  { %2070 = vrsqrt.f32 %v1153_v57 }
 0x231   :  { %v2071_v62 = vpop.eup %2070 }
 0x232   :  { %v1155_v63 = vmul.f32 %v2071_v62, %v2612_v49  ;;  %v1156_v0 = vmul.f32 %v2071_v62, %v2614_v31  ;;  %v1157_v4 = vmul.f32 %v2071_v62, %v2616_v50  ;;  %v1158_v5 = vmul.f32 %v2071_v62, %v2618_v24  ;;  %v1695_v50 = vld [vmem:[%s3184_s4] ss:$0 sm:$0xff] }
 0x233   :  { %v1159_v61 = vmul.f32 %v2071_v62, %v2624_v51  ;;  %v1160_v7 = vmul.f32 %v2071_v62, %v2628_v52  ;;  %v1161_v8 = vmul.f32 %v2071_v62, %v2635_v59  ;;  %v1162_v9 = vmul.f32 %v2071_v62, %v2640_v1 }
 0x234   :  { %v1163_v49 = vmul.f32 %v2071_v62, %v2645_v40  ;;  %v1164_v2 = vmul.f32 %v2071_v62, %v1092_v25  ;;  %v1165_v31 = vmul.f32 %v2071_v62, %v1093_v11  ;;  %v1166_v56 = vmul.f32 %v2071_v62, %v1094_v15 }
 0x235   :  { %v1167_v12 = vmul.f32 %v2071_v62, %v1095_v18  ;;  %v1168_v54 = vmul.f32 %v2071_v62, %v1096_v22  ;;  %v1177_v14 = vmul.f32 %v1694_v3, %v1155_v63  ;;  %v1178_v16 = vmul.f32 %v1694_v3, %v1156_v0 }
 0x236   :  { %v1179_v24 = vmul.f32 %v1694_v3, %v1157_v4  ;;  %v1180_v51 = vmul.f32 %v1694_v3, %v1158_v5  ;;  %v1181_v52 = vmul.f32 %v1694_v3, %v1159_v61  ;;  %v1182_v17 = vmul.f32 %v1694_v3, %v1160_v7 }
 0x237   :  { %v1183_v59 = vmul.f32 %v1694_v3, %v1161_v8  ;;  %v1184_v13 = vmul.f32 %v1694_v3, %v1162_v9  ;;  %v1185_v1 = vmul.f32 %v1694_v3, %v1163_v49  ;;  %v1186_v58 = vmul.f32 %v1694_v3, %v1164_v2 }
 0x238   :  { %v1169_v40 = vmul.f32 %v2071_v62, %v1097_v28  ;;  %v1187_v25 = vmul.f32 %v1694_v3, %v1165_v31  ;;  %v1188_v11 = vmul.f32 %v1694_v3, %v1166_v56  ;;  %v1189_v15 = vmul.f32 %v1694_v3, %v1167_v12  ;;  %v1217_v28 = vld [vmem:[%s3185_s1 + $0x10] sm:$0xff] }
 0x239   :  { %v1170_v18 = vmul.f32 %v2071_v62, %v1098_v36  ;;  %v1190_v19 = vmul.f32 %v1694_v3, %v1168_v54  ;;  %v1199_v60 = vadd.f32 %v1695_v50, %v1177_v14  ;;  %v1200_v22 = vadd.f32 %v1695_v50, %v1178_v16  ;;  %v1218_v36 = vld [vmem:[%s3185_s1 + $0x18] sm:$0xff]  ;;  %v1228_v62 = vld [vmem:[%s3185_s1 + $0x68] sm:$0xff]  ;;  %v1229_v16 = vld [vmem:[%s3185_s1 + $0x70] sm:$0xff] }
 0x23a   :  { %v1201_v6 = vadd.f32 %v1695_v50, %v1179_v24  ;;  %v1202_v23 = vadd.f32 %v1695_v50, %v1180_v51  ;;  %v1203_v34 = vadd.f32 %v1695_v50, %v1181_v52  ;;  %v1204_v35 = vadd.f32 %v1695_v50, %v1182_v17 }
 0x23b   :  { %v1205_v37 = vadd.f32 %v1695_v50, %v1183_v59  ;;  %v1206_v21 = vadd.f32 %v1695_v50, %v1184_v13  ;;  %v1207_v38 = vadd.f32 %v1695_v50, %v1185_v1  ;;  %v1208_v39 = vadd.f32 %v1695_v50, %v1186_v58 }
 0x23c   :  { %v1191_v44 = vmul.f32 %v1694_v3, %v1169_v40  ;;  %v1209_v45 = vadd.f32 %v1695_v50, %v1187_v25  ;;  %v1210_v20 = vadd.f32 %v1695_v50, %v1188_v11  ;;  %v1211_v46 = vadd.f32 %v1695_v50, %v1189_v15 }
 0x23d   :  { %v1192_v30 = vmul.f32 %v1694_v3, %v1170_v18  ;;  %v1212_v48 = vadd.f32 %v1695_v50, %v1190_v19  ;;  %v1231_v55 = vadd.f32 %v1215_v41, %v1199_v60  ;;  %v1232_v57 = vadd.f32 %v1216_v10, %v1200_v22 }
 0x23e   :  { %v1233_v63 = vadd.f32 %v1217_v28, %v1201_v6  ;;  %v1234_v0 = vadd.f32 %v1218_v36, %v1202_v23  ;;  %v1235_v3 = vadd.f32 %v1219_v42, %v1203_v34  ;;  %v1236_v4 = vadd.f32 %v1220_v33, %v1204_v35 }
 0x23f   :  { %v1237_v5 = vadd.f32 %v1221_v43, %v1205_v37  ;;  %v1238_v61 = vadd.f32 %v1222_v47, %v1206_v21  ;;  %v1239_v7 = vadd.f32 %v1223_v29, %v1207_v38  ;;  %v1240_v8 = vadd.f32 %v1224_v27, %v1208_v39 }
 0x240   :  { %v1213_v9 = vadd.f32 %v1695_v50, %v1191_v44  ;;  %v1241_v49 = vadd.f32 %v1225_v32, %v1209_v45  ;;  %v1242_v2 = vadd.f32 %v1226_v26, %v1210_v20  ;;  %v1243_v31 = vadd.f32 %v1227_v53, %v1211_v46 }
 0x241   :  { %v1214_v56 = vadd.f32 %v1695_v50, %v1192_v30  ;;  %v1244_v12 = vadd.f32 %v1228_v62, %v1212_v48  ;;  %v2726_v54 = vmul.f32 0.5, %v1231_v55  ;;  %v2728_v14 = vmul.f32 0.5, %v1232_v57  ;;  %v1230_v50 = vld [vmem:[%s3185_s1 + $0x78] sm:$0xff] }
 0x242   :  { %v2733_v24 = vmul.f32 0.5, %v1233_v63  ;;  %v2735_v51 = vmul.f32 0.5, %v1234_v0  ;;  %v2737_v52 = vmul.f32 0.5, %v1235_v3  ;;  %v2739_v17 = vmul.f32 0.5, %v1236_v4 }
 0x243   :  { %3193 = vst [vmem:[#allocation3_spill] sm:$0xff] %v2726_v54  ;;  %3194 = vst [vmem:[#allocation4_spill] sm:$0xff] %v2728_v14  ;;  %v2744_v59 = vmul.f32 0.5, %v1237_v5  ;;  %v2746_v13 = vmul.f32 0.5, %v1238_v61  ;;  %v2748_v1 = vmul.f32 0.5, %v1239_v7  ;;  %v2750_v58 = vmul.f32 0.5, %v1240_v8 }
 0x244   :  { %3195 = vst [vmem:[#allocation5_spill] sm:$0xff] %v2733_v24  ;;  %3196 = vst [vmem:[#allocation6_spill] sm:$0xff] %v2735_v51  ;;  %v2752_v40 = vmul.f32 0.5, %v1241_v49  ;;  %v2754_v25 = vmul.f32 0.5, %v1242_v2  ;;  %v2756_v11 = vmul.f32 0.5, %v1243_v31  ;;  %v2758_v18 = vadd.f32 %v1229_v16, %v1213_v9 }
 0x245   :  { %3197 = vst [vmem:[#allocation7_spill] sm:$0xff] %v2737_v52  ;;  %3198 = vst [vmem:[#allocation8_spill] sm:$0xff] %v2739_v17  ;;  %v1263_v15 = vmul.f32 0.70710677, %v1231_v55  ;;  %v1264_v19 = vmul.f32 0.70710677, %v1232_v57  ;;  %v2760_v41 = vadd.f32 %v1230_v50, %v1214_v56 }
 0x246   :  { %3199 = vst [vmem:[#allocation9_spill] sm:$0xff] %v2744_v59  ;;  %3200 = vst [vmem:[#allocation10_spill] sm:$0xff] %v2746_v13  ;;  %v1265_v60 = vmul.f32 0.70710677, %v1233_v63  ;;  %v1266_v22 = vmul.f32 0.70710677, %v1234_v0 }
 0x247   :  { %3201 = vst [vmem:[#allocation11_spill] sm:$0xff] %v2748_v1  ;;  %3202 = vst [vmem:[#allocation12_spill] sm:$0xff] %v2750_v58  ;;  %v1267_v6 = vmul.f32 0.70710677, %v1235_v3  ;;  %v1268_v23 = vmul.f32 0.70710677, %v1236_v4 }
 0x248   :  { %3203 = vst [vmem:[#allocation13_spill] sm:$0xff] %v2752_v40  ;;  %3204 = vst [vmem:[#allocation14_spill] sm:$0xff] %v2754_v25  ;;  %v1269_v34 = vmul.f32 0.70710677, %v1237_v5  ;;  %v1270_v35 = vmul.f32 0.70710677, %v1238_v61 }
 0x249   :  { %3205 = vst [vmem:[#allocation15_spill] sm:$0xff] %v2756_v11  ;;  %3206 = vst [vmem:[#allocation16_spill] sm:$0xff] %v2758_v18  ;;  %v1271_v10 = vmul.f32 0.70710677, %v1239_v7  ;;  %v1272_v28 = vmul.f32 0.70710677, %v1240_v8 }
 0x24a   :  { %3207 = vst [vmem:[#allocation17_spill] sm:$0xff] %v2760_v41  ;;  %v2762_v36 = vmul.f32 0.70710677, %v1241_v49  ;;  %v2764_v37 = vmul.f32 0.70710677, %v1242_v2  ;;  %v2768_v38 = vmul.f32 0.5, %v1244_v12 }
 0x24b   :  { %v2766_v21 = vmul.f32 0.70710677, %v1243_v31  ;;  %v2770_v39 = vmul.f32 0.70710677, %v1244_v12  ;;  %v2773_v42 = vmul.f32 0.70710677, %v2758_v18 }
 0x24c   :  { %3208 = vst [vmem:[#allocation18_spill] sm:$0xff] %v2768_v38  ;;  %vm1279_vm11 = vcmp.ge.f32.partialorder %v1263_v15, 0.0  ;;  %v2776_v33 = vmul.f32 0.70710677, %v2760_v41  ;;  %vm1280_vm12 = vcmp.ge.f32.partialorder %v1264_v19, 0.0  ;;  %vm1281_vm13 = vcmp.ge.f32.partialorder %v1265_v60, 0.0 }
 0x24d   :  { %vm1282_vm14 = vcmp.ge.f32.partialorder %v1266_v22, 0.0  ;;  %vm1283_vm15 = vcmp.ge.f32.partialorder %v1267_v6, 0.0  ;;  %vm1284_vm1 = vcmp.ge.f32.partialorder %v1268_v23, 0.0  ;;  %vm1285_vm2 = vcmp.ge.f32.partialorder %v1269_v34, 0.0 }
 0x24e   :  { %3209 = vst [vmem:[#allocation19_spill] sm:$0xff] %v2776_v33  ;;  %vm1286_vm3 = vcmp.ge.f32.partialorder %v1270_v35, 0.0  ;;  %vm1287_vm4 = vcmp.ge.f32.partialorder %v1271_v10, 0.0  ;;  %vm1288_vm5 = vcmp.ge.f32.partialorder %v1272_v28, 0.0  ;;  %v3189_v43 = vmov -1.0  }
 0x24f   :  { %v2779_v44 = vsel %vm1279_vm11, 1.0, %v3189_v43  ;;  %v2781_v45 = vand.u32 2147483647, %v1263_v15  ;;  %v2784_v20 = vsel %vm1280_vm12, 1.0, %v3189_v43  ;;  %v2787_v46 = vsel %vm1281_vm13, 1.0, %v3189_v43 }
 0x250   :  { %v2790_v47 = vsel %vm1282_vm14, 1.0, %v3189_v43  ;;  %v2792_v29 = vand.u32 2147483647, %v1264_v19  ;;  %v2795_v27 = vsel %vm1283_vm15, 1.0, %v3189_v43  ;;  %v2798_v30 = vsel %vm1284_vm1, 1.0, %v3189_v43 }
 0x251   :  { %3210 = vst [vmem:[#allocation20_spill] sm:$0xff] %v2795_v27  ;;  %3211 = vst [vmem:[#allocation21_spill] sm:$0xff] %v2798_v30  ;;  %v2800_v48 = vand.u32 2147483647, %v1265_v60  ;;  %v2802_v32 = vand.u32 2147483647, %v1266_v22 }
 0x252   :  { %vm1289_vm6 = vcmp.ge.f32.partialorder %v2762_v36, 0.0  ;;  %v2805_v26 = vand.u32 2147483647, %v1267_v6  ;;  %v2807_v53 = vand.u32 2147483647, %v1268_v23  ;;  %vm1290_vm7 = vcmp.ge.f32.partialorder %v2764_v37, 0.0 }
 0x253   :  { %v2809_v55 = vand.u32 2147483647, %v1269_v34  ;;  %v2812_v57 = vand.u32 2147483647, %v1270_v35  ;;  %v2814_v62 = vand.u32 2147483647, %v1271_v10 }
 0x254   :  { %v1327_v63 = vmul.f32 0.3275911, %v2781_v45  ;;  %v2817_v0 = vand.u32 2147483647, %v1272_v28  ;;  %v2820_v3 = vand.u32 2147483647, %v2762_v36 }
 0x255   :  { %v1328_v4 = vmul.f32 0.3275911, %v2792_v29  ;;  %v2824_v5 = vand.u32 2147483647, %v2764_v37  ;;  %v2827_v61 = vand.u32 2147483647, %v2766_v21 }
 0x256   :  { %v1329_v7 = vmul.f32 0.3275911, %v2800_v48  ;;  %v2831_v8 = vand.u32 2147483647, %v2770_v39  ;;  %v2834_v9 = vand.u32 2147483647, %v2773_v42 }
 0x257   :  { %v1330_v49 = vmul.f32 0.3275911, %v2802_v32  ;;  %v2839_v2 = vsel %vm1285_vm2, 1.0, %v3189_v43  ;;  %v2842_v31 = vand.u32 2147483647, %v2776_v33  ;;  %v1343_v12 = vadd.f32 1.0, %v1327_v63 }
 0x258   :  { %3212 = vst [vmem:[#allocation22_spill] sm:$0xff] %v2839_v2  ;;  %v1331_v56 = vmul.f32 0.3275911, %v2805_v26  ;;  %v2847_v16 = vsel %vm1286_vm3, 1.0, %v3189_v43  ;;  %v1332_v50 = vmul.f32 0.3275911, %v2807_v53 }
 0x259   :  { %3213 = vst [vmem:[#allocation23_spill] sm:$0xff] %v2847_v16  ;;  %v1333_v15 = vmul.f32 0.3275911, %v2809_v55  ;;  %v1344_v19 = vadd.f32 1.0, %v1328_v4  ;;  %v2853_v60 = vsel %vm1287_vm4, 1.0, %v3189_v43  ;;  %v1345_v23 = vadd.f32 1.0, %v1329_v7 }
 0x25a   :  { %3214 = vst [vmem:[#allocation24_spill] sm:$0xff] %v2853_v60  ;;  %v1334_v22 = vmul.f32 0.3275911, %v2812_v57  ;;  %v1335_v6 = vmul.f32 0.3275911, %v2814_v62  ;;  %v2859_v34 = vsel %vm1288_vm5, 1.0, %v3189_v43  ;;  %2072 = vrcp.f32 %v1343_v12 }
 0x25b   :  { %3215 = vst [vmem:[#allocation25_spill] sm:$0xff] %v2859_v34  ;;  %v1336_v35 = vmul.f32 0.3275911, %v2817_v0  ;;  %v1337_v63 = vmul.f32 0.3275911, %v2820_v3  ;;  %v1346_v38 = vadd.f32 1.0, %v1330_v49  ;;  %2074 = vrcp.f32 %v1344_v19 }
 0x25c   :  { %v1338_v4 = vmul.f32 0.3275911, %v2824_v5  ;;  %v1339_v10 = vmul.f32 0.3275911, %v2827_v61  ;;  %v1347_v41 = vadd.f32 1.0, %v1331_v56  ;;  %v1348_v7 = vadd.f32 1.0, %v1332_v50 }
 0x25d   :  { %v1340_v11 = vmul.f32 0.3275911, %v2831_v8  ;;  %v1341_v18 = vmul.f32 0.3275911, %v2834_v9  ;;  %v2870_v28 = vsel %vm1289_vm6, 1.0, %v3189_v43  ;;  %v1349_v49 = vadd.f32 1.0, %v1333_v15 }
 0x25e   :  { %3216 = vst [vmem:[#allocation26_spill] sm:$0xff] %v2870_v28  ;;  %v1342_v25 = vmul.f32 0.3275911, %v2842_v31  ;;  %2076 = vrcp.f32 %v1345_v23  ;;  %v2876_v56 = vsel %vm1290_vm7, 1.0, %v3189_v43  ;;  %v1350_v12 = vadd.f32 1.0, %v1334_v22 }
 0x25f   :  { %3217 = vst [vmem:[#allocation27_spill] sm:$0xff] %v2876_v56  ;;  %v1351_v40 = vadd.f32 1.0, %v1335_v6  ;;  %2078 = vrcp.f32 %v1346_v38  ;;  %v1352_v58 = vadd.f32 1.0, %v1336_v35  ;;  %v1353_v50 = vadd.f32 1.0, %v1337_v63 }
 0x260   :  { %v1354_v19 = vadd.f32 1.0, %v1338_v4  ;;  %2080 = vrcp.f32 %v1347_v41  ;;  %v1355_v1 = vadd.f32 1.0, %v1339_v10  ;;  %v1356_v36 = vadd.f32 1.0, %v1340_v11 }
 0x261   :  { %v1357_v13 = vadd.f32 1.0, %v1341_v18  ;;  %2082 = vrcp.f32 %v1348_v7  ;;  %v1358_v59 = vadd.f32 1.0, %v1342_v25  ;;  %v1519_v15 = vsub.f32 0.0, %v2781_v45 }
 0x262   :  { %2084 = vrcp.f32 %v1349_v49  ;;  %v1520_v23 = vsub.f32 0.0, %v2792_v29  ;;  %v1521_v37 = vsub.f32 0.0, %v2800_v48  ;;  %v1522_v22 = vsub.f32 0.0, %v2802_v32 }
 0x263   :  { %2086 = vrcp.f32 %v1350_v12  ;;  %v1523_v38 = vsub.f32 0.0, %v2805_v26  ;;  %v1524_v41 = vsub.f32 0.0, %v2807_v53  ;;  %v1525_v11 = vsub.f32 0.0, %v2809_v55 }
 0x264   :  { %2088 = vrcp.f32 %v1351_v40  ;;  %v1526_v18 = vsub.f32 0.0, %v2812_v57  ;;  %v1527_v25 = vsub.f32 0.0, %v2814_v62  ;;  %v1528_v6 = vsub.f32 0.0, %v2817_v0 }
 0x265   :  { %2090 = vrcp.f32 %v1352_v58  ;;  %v1529_v35 = vsub.f32 0.0, %v2820_v3  ;;  %v1530_v63 = vsub.f32 0.0, %v2824_v5  ;;  %v1531_v4 = vsub.f32 0.0, %v2827_v61 }
 0x266   :  { %2092 = vrcp.f32 %v1353_v50  ;;  %v1532_v40 = vsub.f32 0.0, %v2831_v8  ;;  %v1533_v10 = vsub.f32 0.0, %v2834_v9  ;;  %v1534_v7 = vsub.f32 0.0, %v2842_v31 }
 0x267   :  { %2094 = vrcp.f32 %v1354_v19  ;;  %v1535_v58 = vmul.f32 %v1519_v15, %v2781_v45  ;;  %v1536_v49 = vmul.f32 %v1520_v23, %v2792_v29  ;;  %v1537_v12 = vmul.f32 %v1521_v37, %v2800_v48  ;;  %v2898_v43 = vpop.eup %2072 }
 0x268   :  { %2096 = vrcp.f32 %v1355_v1  ;;  %v1538_v50 = vmul.f32 %v1522_v22, %v2802_v32  ;;  %v1539_v56 = vmul.f32 %v1523_v38, %v2805_v26  ;;  %v1540_v19 = vmul.f32 %v1524_v41, %v2807_v53  ;;  %v2903_v34 = vpop.eup %2074 }
 0x269   :  { %2098 = vrcp.f32 %v1356_v36  ;;  %v1541_v28 = vmul.f32 %v1525_v11, %v2809_v55  ;;  %v1375_v1 = vmul.f32 1.0614054, %v2898_v43  ;;  %v1542_v45 = vmul.f32 %v1526_v18, %v2812_v57 }
 0x26a   :  { %2100 = vrcp.f32 %v1357_v13  ;;  %v1543_v29 = vmul.f32 %v1527_v25, %v2814_v62  ;;  %v1544_v32 = vmul.f32 %v1528_v6, %v2817_v0  ;;  %v1545_v26 = vmul.f32 %v1529_v35, %v2820_v3 }
 0x26b   :  { %v2908_v48 = vpop.eup %2076  ;;  %2102 = vrcp.f32 %v1358_v59  ;;  %v1551_v36 = vmul.f32 1.442695, %v1535_v58  ;;  %v1376_v55 = vmul.f32 1.0614054, %v2903_v34  ;;  %v1546_v13 = vmul.f32 %v1530_v63, %v2824_v5 }
 0x26c   :  { %v2912_v53 = vpop.eup %2078  ;;  %v1553_v15 = vmul.f32 1.442695, %v1536_v49  ;;  %v2916_v23 = vmul.f32 1.442695, %v1537_v12  ;;  %v1377_v62 = vmul.f32 1.0614054, %v2908_v48  ;;  %v1547_v59 = vmul.f32 %v1531_v4, %v2827_v61 }
 0x26d   :  { %v2918_v57 = vpop.eup %2080  ;;  %v2922_v37 = vmul.f32 1.442695, %v1538_v50  ;;  %v2924_v0 = vmul.f32 1.442695, %v1539_v56  ;;  %v1378_v22 = vmul.f32 1.0614054, %v2912_v53  ;;  %v1548_v5 = vmul.f32 %v1532_v40, %v2831_v8 }
 0x26e   :  { %v2926_v3 = vpop.eup %2082  ;;  %v1391_v38 = vadd.f32 -1.4531521, %v1375_v1  ;;  %v2930_v41 = vmul.f32 1.442695, %v1540_v19  ;;  %v1549_v18 = vmul.f32 %v1533_v10, %v2834_v9  ;;  %v2935_v25 = vmul.f32 1.442695, %v1541_v28 }
 0x26f   :  { %v2932_v11 = vpop.eup %2084  ;;  %v2937_v61 = vmul.f32 1.442695, %v1542_v45  ;;  %v2939_v6 = vmul.f32 1.442695, %v1543_v29  ;;  %v1392_v35 = vadd.f32 -1.4531521, %v1376_v55  ;;  %v1550_v63 = vmul.f32 %v1534_v7, %v2842_v31 }
 0x270   :  { %v2941_v56 = vpop.eup %2086  ;;  %v2944_v4 = vmul.f32 1.442695, %v1544_v32  ;;  %v2946_v8 = vmul.f32 1.442695, %v1545_v26  ;;  %v1379_v58 = vmul.f32 1.0614054, %v2918_v57  ;;  %v1407_v31 = vmul.f32 %v2898_v43, %v1391_v38 }
 0x271   :  { %v2948_v40 = vpop.eup %2088  ;;  %v1393_v9 = vadd.f32 -1.4531521, %v1377_v62  ;;  %v2951_v28 = vmul.f32 1.442695, %v1546_v13  ;;  %v1380_v49 = vmul.f32 1.0614054, %v2926_v3  ;;  %v1408_v26 = vmul.f32 %v2903_v34, %v1392_v35 }
 0x272   :  { %v2953_v10 = vpop.eup %2090  ;;  %v1381_v12 = vmul.f32 1.0614054, %v2932_v11  ;;  %v1394_v50 = vadd.f32 -1.4531521, %v1378_v22  ;;  %v1382_v19 = vmul.f32 1.0614054, %v2941_v56  ;;  %2104 = vpow2.f32 %v1551_v36 }
 0x273   :  { %v2958_v7 = vpop.eup %2092  ;;  %v2961_v1 = vmul.f32 1.442695, %v1547_v59  ;;  %v2963_v45 = vmul.f32 1.442695, %v1548_v5  ;;  %v1383_v32 = vmul.f32 1.0614054, %v2948_v40  ;;  %v1409_v5 = vmul.f32 %v2908_v48, %v1393_v9 }
 0x274   :  { %v2965_v29 = vpop.eup %2094  ;;  %v2969_v55 = vmul.f32 1.442695, %v1549_v18  ;;  %v2971_v13 = vmul.f32 1.442695, %v1550_v63  ;;  %v1384_v22 = vmul.f32 1.0614054, %v2953_v10  ;;  %v1410_v17 = vmul.f32 %v2912_v53, %v1394_v50 }
 0x275   :  { %3218 = vst [vmem:[#allocation28_spill] sm:$0xff] %v2961_v1  ;;  %3219 = vst [vmem:[#allocation29_spill] sm:$0xff] %v2963_v45  ;;  %v2973_v62 = vpop.eup %2096  ;;  %v1385_v38 = vmul.f32 1.0614054, %v2958_v7  ;;  %v1395_v59 = vadd.f32 -1.4531521, %v1379_v58  ;;  %2106 = vpow2.f32 %v1553_v15 }
 0x276   :  { %3220 = vst [vmem:[#allocation30_spill] sm:$0xff] %v2969_v55  ;;  %3221 = vst [vmem:[#allocation31_spill] sm:$0xff] %v2971_v13  ;;  %v2978_v60 = vpop.eup %2098  ;;  %v1396_v16 = vadd.f32 -1.4531521, %v1380_v49  ;;  %v1397_v2 = vadd.f32 -1.4531521, %v1381_v12  ;;  %2108 = vpow2.f32 %v2916_v23 }
 0x277   :  { %v1423_v35 = vadd.f32 1.4214138, %v1407_v31  ;;  %v2981_v18 = vpop.eup %2100  ;;  %v1386_v63 = vmul.f32 1.0614054, %v2965_v29  ;;  %v1387_v52 = vmul.f32 1.0614054, %v2973_v62  ;;  %v1411_v31 = vmul.f32 %v2918_v57, %v1395_v59 }
 0x278   :  { %v1398_v30 = vadd.f32 -1.4531521, %v1382_v19  ;;  %v2985_v51 = vpop.eup %2102  ;;  %v1388_v58 = vmul.f32 1.0614054, %v2978_v60  ;;  %v1389_v9 = vmul.f32 1.0614054, %v2981_v18  ;;  %v1412_v24 = vmul.f32 %v2926_v3, %v1396_v16 }
 0x279   :  { %v1399_v27 = vadd.f32 -1.4531521, %v1383_v32  ;;  %v1390_v49 = vmul.f32 1.0614054, %v2985_v51  ;;  %v1400_v12 = vadd.f32 -1.4531521, %v1384_v22  ;;  %v1413_v55 = vmul.f32 %v2932_v11, %v1397_v2 }
 0x27a   :  { %v1401_v50 = vadd.f32 -1.4531521, %v1385_v38  ;;  %v1424_v14 = vadd.f32 1.4214138, %v1408_v26  ;;  %v1425_v13 = vadd.f32 1.4214138, %v1409_v5  ;;  %v1414_v45 = vmul.f32 %v2941_v56, %v1398_v30 }
 0x27b   :  { %v1426_v19 = vadd.f32 1.4214138, %v1410_v17  ;;  %v1402_v36 = vadd.f32 -1.4531521, %v1386_v63  ;;  %v1403_v54 = vadd.f32 -1.4531521, %v1387_v52  ;;  %v1415_v33 = vmul.f32 %v2948_v40, %v1399_v27 }
 0x27c   :  { %v1404_v1 = vadd.f32 -1.4531521, %v1388_v58  ;;  %v1405_v32 = vadd.f32 -1.4531521, %v1389_v9  ;;  %v1406_v15 = vadd.f32 -1.4531521, %v1390_v49  ;;  %v1416_v22 = vmul.f32 %v2953_v10, %v1400_v12 }
 0x27d   :  { %v1417_v38 = vmul.f32 %v2958_v7, %v1401_v50  ;;  %v1427_v59 = vadd.f32 1.4214138, %v1411_v31  ;;  %v1439_v16 = vmul.f32 %v2898_v43, %v1423_v35  ;;  %v1428_v26 = vadd.f32 1.4214138, %v1412_v24 }
 0x27e   :  { %v1440_v17 = vmul.f32 %v2903_v34, %v1424_v14  ;;  %v1441_v52 = vmul.f32 %v2908_v48, %v1425_v13  ;;  %v1442_v2 = vmul.f32 %v2912_v53, %v1426_v19  ;;  %v1418_v30 = vmul.f32 %v2965_v29, %v1402_v36 }
 0x27f   :  { %v1419_v5 = vmul.f32 %v2973_v62, %v1403_v54  ;;  %v1429_v63 = vadd.f32 1.4214138, %v1413_v55  ;;  %v1430_v27 = vadd.f32 1.4214138, %v1414_v45  ;;  %v1420_v58 = vmul.f32 %v2978_v60, %v1404_v1  ;;  %v2105_v19 = vpop.eup %2104 }
 0x280   :  { %v1421_v9 = vmul.f32 %v2981_v18, %v1405_v32  ;;  %v1422_v49 = vmul.f32 %v2985_v51, %v1406_v15  ;;  %v1431_v35 = vadd.f32 1.4214138, %v1415_v33  ;;  %v1432_v24 = vadd.f32 1.4214138, %v1416_v22 }
 0x281   :  { %v1433_v12 = vadd.f32 1.4214138, %v1417_v38  ;;  %v1455_v14 = vadd.f32 -0.28449672, %v1439_v16  ;;  %v1456_v13 = vadd.f32 -0.28449672, %v1440_v17  ;;  %2110 = vpow2.f32 %v2922_v37 }
 0x282   :  { %v1457_v50 = vadd.f32 -0.28449672, %v1441_v52  ;;  %v1458_v31 = vadd.f32 -0.28449672, %v1442_v2  ;;  %v1434_v54 = vadd.f32 1.4214138, %v1418_v30  ;;  %v1443_v45 = vmul.f32 %v2918_v57, %v1427_v59  ;;  %v2107_v22 = vpop.eup %2106 }
 0x283   :  { %v1435_v55 = vadd.f32 1.4214138, %v1419_v5  ;;  %v1444_v1 = vmul.f32 %v2926_v3, %v1428_v26  ;;  %v1436_v36 = vadd.f32 1.4214138, %v1420_v58  ;;  %v1437_v32 = vadd.f32 1.4214138, %v1421_v9 }
 0x284   :  { %v1438_v33 = vadd.f32 1.4214138, %v1422_v49  ;;  %v1445_v15 = vmul.f32 %v2932_v11, %v1429_v63  ;;  %v1446_v23 = vmul.f32 %v2941_v56, %v1430_v27  ;;  %v1447_v38 = vmul.f32 %v2948_v40, %v1431_v35 }
 0x285   :  { %v1448_v16 = vmul.f32 %v2953_v10, %v1432_v24  ;;  %v1471_v37 = vmul.f32 %v2898_v43, %v1455_v14  ;;  %v1449_v17 = vmul.f32 %v2958_v7, %v1433_v12  ;;  %v1472_v59 = vmul.f32 %v2903_v34, %v1456_v13 }
 0x286   :  { %v1473_v26 = vmul.f32 %v2908_v48, %v1457_v50  ;;  %v1474_v52 = vmul.f32 %v2912_v53, %v1458_v31  ;;  %v1450_v2 = vmul.f32 %v2965_v29, %v1434_v54  ;;  %v1451_v30 = vmul.f32 %v2973_v62, %v1435_v55 }
 0x287   :  { %v1459_v5 = vadd.f32 -0.28449672, %v1443_v45  ;;  %v1460_v63 = vadd.f32 -0.28449672, %v1444_v1  ;;  %v1452_v27 = vmul.f32 %v2978_v60, %v1436_v36  ;;  %v1453_v58 = vmul.f32 %v2981_v18, %v1437_v32 }
 0x288   :  { %v1454_v9 = vmul.f32 %v2985_v51, %v1438_v33  ;;  %v1461_v49 = vadd.f32 -0.28449672, %v1445_v15  ;;  %v1462_v35 = vadd.f32 -0.28449672, %v1446_v23  ;;  %v1463_v24 = vadd.f32 -0.28449672, %v1447_v38  ;;  %v2109_v38 = vpop.eup %2108 }
 0x289   :  { %v1487_v12 = vadd.f32 0.2548296, %v1471_v37  ;;  %2112 = vpow2.f32 %v2924_v0  ;;  %v1488_v14 = vadd.f32 0.2548296, %v1472_v59  ;;  %v1489_v13 = vadd.f32 0.2548296, %v1473_v26 }
 0x28a   :  { %v1490_v50 = vadd.f32 0.2548296, %v1474_v52  ;;  %2114 = vpow2.f32 %v2930_v41  ;;  %v1464_v31 = vadd.f32 -0.28449672, %v1448_v16  ;;  %v1465_v54 = vadd.f32 -0.28449672, %v1449_v17 }
 0x28b   :  { %v1475_v55 = vmul.f32 %v2918_v57, %v1459_v5  ;;  %v1476_v45 = vmul.f32 %v2926_v3, %v1460_v63  ;;  %v1466_v1 = vadd.f32 -0.28449672, %v1450_v2  ;;  %v1467_v36 = vadd.f32 -0.28449672, %v1451_v30 }
 0x28c   :  { %v1468_v32 = vadd.f32 -0.28449672, %v1452_v27  ;;  %v1469_v33 = vadd.f32 -0.28449672, %v1453_v58  ;;  %v3028_v15 = vadd.f32 -0.28449672, %v1454_v9  ;;  %v1477_v23 = vmul.f32 %v2932_v11, %v1461_v49 }
 0x28d   :  { %v1503_v0 = vmul.f32 %v2898_v43, %v1487_v12  ;;  %v1478_v37 = vmul.f32 %v2941_v56, %v1462_v35  ;;  %v1504_v41 = vmul.f32 %v2903_v34, %v1488_v14  ;;  %v1505_v16 = vmul.f32 %v2908_v48, %v1489_v13 }
 0x28e   :  { %v1506_v17 = vmul.f32 %v2912_v53, %v1490_v50  ;;  %v2111_v59 = vpop.eup %2110  ;;  %v1479_v26 = vmul.f32 %v2948_v40, %v1463_v24  ;;  %v1480_v52 = vmul.f32 %v2953_v10, %v1464_v31  ;;  %v1491_v2 = vadd.f32 0.2548296, %v1475_v55  ;;  %v3222_v31 = vld [vmem:[#allocation19_spill] sm:$0xff]  ;;  %v3223_v55 = vld [vmem:[#allocation28_spill] sm:$0xff] }
 0x28f   :  { %v1492_v30 = vadd.f32 0.2548296, %v1476_v45  ;;  %v1481_v5 = vmul.f32 %v2958_v7, %v1465_v54  ;;  %v1482_v43 = vmul.f32 %v2965_v29, %v1466_v1  ;;  %v1483_v63 = vmul.f32 %v2973_v62, %v1467_v36 }
 0x290   :  { %v3042_v27 = vmul.f32 %v2978_v60, %v1468_v32  ;;  %v3045_v34 = vmul.f32 %v2981_v18, %v1469_v33  ;;  %v1493_v48 = vadd.f32 0.2548296, %v1477_v23  ;;  %2116 = vpow2.f32 %v2935_v25 }
 0x291   :  { %v1583_v53 = vmul.f32 %v2105_v19, %v1503_v0  ;;  %vm1291_vm8 = vcmp.ge.f32.partialorder %v2766_v21, 0.0  ;;  %2118 = vpow2.f32 %v2937_v61  ;;  %v1584_v58 = vmul.f32 %v2107_v22, %v1504_v41  ;;  %v3229_v41 = vld [vmem:[#allocation5_spill] sm:$0xff] }
 0x292   :  { %v1585_v9 = vmul.f32 %v2109_v38, %v1505_v16  ;;  %v1586_v49 = vmul.f32 %v2111_v59, %v1506_v17  ;;  %vm1292_vm9 = vcmp.ge.f32.partialorder %v2770_v39, 0.0  ;;  %v1507_v35 = vmul.f32 %v2918_v57, %v1491_v2  ;;  %v3228_v38 = vld [vmem:[#allocation4_spill] sm:$0xff]  ;;  %v3231_v2 = vld [vmem:[#allocation6_spill] sm:$0xff] }
 0x293   :  { %v1508_v24 = vmul.f32 %v2926_v3, %v1492_v30  ;;  %2120 = vpow2.f32 %v2939_v6  ;;  %v1599_v12 = vsub.f32 1.0, %v1583_v53  ;;  %v1600_v25 = vsub.f32 1.0, %v1584_v58  ;;  %v3235_v39 = vld [vmem:[#allocation8_spill] sm:$0xff] }
 0x294   :  { %2122 = vpow2.f32 %v2944_v4  ;;  %v1601_v19 = vsub.f32 1.0, %v1585_v9  ;;  %v1602_v14 = vsub.f32 1.0, %v1586_v49  ;;  %v1494_v13 = vadd.f32 0.2548296, %v1478_v37  ;;  %v3232_v49 = vld [vmem:[#allocation21_spill] sm:$0xff] }
 0x295   :  { %v1495_v50 = vadd.f32 0.2548296, %v1479_v26  ;;  %2124 = vpow2.f32 %v2946_v8  ;;  %v1615_v61 = vmul.f32 %v1599_v12, %v2779_v44  ;;  %vm1293_vm10 = vcmp.ge.f32.partialorder %v2773_v42, 0.0  ;;  %v3224_v44 = vld [vmem:[#allocation29_spill] sm:$0xff]  ;;  %v3230_v26 = vld [vmem:[#allocation20_spill] sm:$0xff] }
 0x296   :  { %v2113_v22 = vpop.eup %2112  ;;  %2126 = vpow2.f32 %v2951_v28  ;;  %v1616_v57 = vmul.f32 %v1600_v25, %v2784_v20  ;;  %v1617_v3 = vmul.f32 %v1601_v19, %v2787_v46  ;;  %v1618_v6 = vmul.f32 %v1602_v14, %v2790_v47  ;;  %v3225_v28 = vld [vmem:[#allocation30_spill] sm:$0xff]  ;;  %v3226_v46 = vld [vmem:[#allocation3_spill] sm:$0xff] }
 0x297   :  { %v2115_v4 = vpop.eup %2114  ;;  %vm1294_vm11 = vcmp.ge.f32.partialorder %v3222_v31, 0.0  ;;  %v1496_v54 = vadd.f32 0.2548296, %v1480_v52  ;;  %2128 = vpow2.f32 %v3223_v55  ;;  %v1587_v8 = vmul.f32 %v2113_v22, %v1507_v35  ;;  %v3227_v47 = vld [vmem:[#allocation31_spill] sm:$0xff] }
 0x298   :  { %v1631_v45 = vadd.f32 1.0, %v1615_v61  ;;  %2130 = vpow2.f32 %v3224_v44  ;;  %v1588_v1 = vmul.f32 %v2115_v4, %v1508_v24  ;;  %v1632_v36 = vadd.f32 1.0, %v1616_v57 }
 0x299   :  { %v1633_v32 = vadd.f32 1.0, %v1617_v3  ;;  %2132 = vpow2.f32 %v3225_v28  ;;  %v1603_v20 = vsub.f32 1.0, %v1587_v8  ;;  %v1634_v33 = vadd.f32 1.0, %v1618_v6 }
 0x29a   :  { %v1647_v23 = vmul.f32 %v1631_v45, %v3226_v46  ;;  %2134 = vpow2.f32 %v3227_v47  ;;  %v1604_v0 = vsub.f32 1.0, %v1588_v1  ;;  %v1648_v37 = vmul.f32 %v1632_v36, %v3228_v38  ;;  %v3236_v36 = vld [vmem:[#allocation22_spill] sm:$0xff]  ;;  %v3238_v38 = vld [vmem:[#allocation24_spill] sm:$0xff] }
 0x29b   :  { %v1649_v16 = vmul.f32 %v1633_v32, %v3229_v41  ;;  %v1497_v17 = vadd.f32 0.2548296, %v1481_v5  ;;  %v1509_v59 = vmul.f32 %v2932_v11, %v1493_v48  ;;  %v1619_v52 = vmul.f32 %v1603_v20, %v3230_v26 }
 0x29c   :  { %v1650_v30 = vmul.f32 %v1634_v33, %v3231_v2  ;;  %1663 = vst.msk [vmem:[%s3186_s5] sm:$0xff] %vm42_vm0, %v1647_v23  ;;  %v1486_v53 = vmul.f32 %v2985_v51, %v3028_v15  ;;  %v1498_v58 = vadd.f32 0.2548296, %v1482_v43  ;;  %v1510_v9 = vmul.f32 %v2941_v56, %v1494_v13  ;;  %1664 = vst.msk [vmem:[%s3186_s5 + $0x8] sm:$0xff] %vm42_vm0, %v1648_v37  ;;  %v3234_v13 = vld [vmem:[#allocation7_spill] sm:$0xff] }
 0x29d   :  { %v1620_v35 = vmul.f32 %v1604_v0, %v3232_v49  ;;  %1665 = vst.msk [vmem:[%s3186_s5 + $0x10] sm:$0xff] %vm42_vm0, %v1649_v16  ;;  %v3233_v11 = vmov -1.0   ;;  %v1499_v15 = vadd.f32 0.2548296, %v1483_v63  ;;  %v1511_v43 = vmul.f32 %v2948_v40, %v1495_v50  ;;  %v2117_v48 = vpop.eup %2116 }
 0x29e   :  { %v1307_v5 = vsel %vm1291_vm8, 1.0, %v3233_v11  ;;  %v1635_v56 = vadd.f32 1.0, %v1619_v52  ;;  %1666 = vst.msk [vmem:[%s3186_s5 + $0x18] sm:$0xff] %vm42_vm0, %v1650_v30  ;;  %v1308_v24 = vsel %vm1292_vm9, 1.0, %v3233_v11  ;;  %v1500_v12 = vadd.f32 0.2548296, %v3042_v27  ;;  %v2119_v19 = vpop.eup %2118 }
 0x29f   :  { %v1512_v25 = vmul.f32 %v2953_v10, %v1496_v54  ;;  %v1636_v21 = vadd.f32 1.0, %v1620_v35  ;;  %v1501_v63 = vadd.f32 0.2548296, %v3045_v34  ;;  %v1513_v40 = vmul.f32 %v2958_v7, %v1497_v17 }
 0x2a0   :  { %v1589_v14 = vmul.f32 %v2117_v48, %v1509_v59  ;;  %v1651_v50 = vmul.f32 %v1635_v56, %v3234_v13  ;;  %v2121_v61 = vpop.eup %2120  ;;  %v1502_v22 = vadd.f32 0.2548296, %v1486_v53  ;;  %v1514_v57 = vmul.f32 %v2965_v29, %v1498_v58  ;;  %v3239_v59 = vld [vmem:[#allocation25_spill] sm:$0xff] }
 0x2a1   :  { %v1590_v3 = vmul.f32 %v2119_v19, %v1510_v9  ;;  %v1652_v6 = vmul.f32 %v1636_v21, %v3235_v39  ;;  %v2123_v4 = vpop.eup %2122  ;;  %v1309_v10 = vsel %vm1293_vm10, 1.0, %v3233_v11  ;;  %v1515_v27 = vmul.f32 %v2973_v62, %v1499_v15 }
 0x2a2   :  { %v1591_v34 = vmul.f32 %v2121_v61, %v1511_v43  ;;  %v1605_v54 = vsub.f32 1.0, %v1589_v14  ;;  %1667 = vst.msk [vmem:[%s3186_s5 + $0x20] sm:$0xff] %vm42_vm0, %v1651_v50  ;;  %v2125_v7 = vpop.eup %2124  ;;  %v1310_v29 = vsel %vm1294_vm11, 1.0, %v3233_v11  ;;  %v1516_v55 = vmul.f32 %v2978_v60, %v1500_v12  ;;  %v3237_v60 = vld [vmem:[#allocation23_spill] sm:$0xff]  ;;  %v3243_v14 = vld [vmem:[#allocation10_spill] sm:$0xff] }
 0x2a3   :  { %v1592_v8 = vmul.f32 %v2123_v4, %v1512_v25  ;;  %v1606_v45 = vsub.f32 1.0, %v1590_v3  ;;  %1668 = vst.msk [vmem:[%s3186_s5 + $0x28] sm:$0xff] %vm42_vm0, %v1652_v6  ;;  %v2127_v42 = vpop.eup %2126  ;;  %v1517_v62 = vmul.f32 %v2981_v18, %v1501_v63  ;;  %v1593_v44 = vmul.f32 %v2125_v7, %v1513_v40  ;;  %v3241_v11 = vld [vmem:[#allocation27_spill] sm:$0xff]  ;;  %v3242_v25 = vld [vmem:[#allocation9_spill] sm:$0xff]  ;;  %v3245_v3 = vld [vmem:[#allocation12_spill] sm:$0xff] }
 0x2a4   :  { %v1607_v1 = vsub.f32 1.0, %v1591_v34  ;;  %v1621_v32 = vmul.f32 %v1605_v54, %v3236_v36  ;;  %v2129_v28 = vpop.eup %2128  ;;  %v1518_v31 = vmul.f32 %v2985_v51, %v1502_v22  ;;  %v1594_v20 = vmul.f32 %v2127_v42, %v1514_v57  ;;  %v3240_v51 = vld [vmem:[#allocation26_spill] sm:$0xff]  ;;  %v3244_v22 = vld [vmem:[#allocation11_spill] sm:$0xff]  ;;  %v3246_v4 = vld [vmem:[#allocation13_spill] sm:$0xff] }
 0x2a5   :  { %v1608_v33 = vsub.f32 1.0, %v1592_v8  ;;  %v1622_v46 = vmul.f32 %v1606_v45, %v3237_v60  ;;  %v2131_v23 = vpop.eup %2130  ;;  %v1595_v47 = vmul.f32 %v2129_v28, %v1515_v27  ;;  %v1609_v0 = vsub.f32 1.0, %v1593_v44  ;;  %v3247_v34 = vld [vmem:[#allocation14_spill] sm:$0xff] }
 0x2a6   :  { %v1623_v37 = vmul.f32 %v1607_v1, %v3238_v38  ;;  %v1637_v41 = vadd.f32 1.0, %v1621_v32  ;;  %v2133_v16 = vpop.eup %2132  ;;  %v1596_v17 = vmul.f32 %v2131_v23, %v1516_v55  ;;  %v1610_v18 = vsub.f32 1.0, %v1594_v20  ;;  %v3249_v55 = vld [vmem:[#allocation15_spill] sm:$0xff] }
 0x2a7   :  { %v1624_v26 = vmul.f32 %v1608_v33, %v3239_v59  ;;  %v1638_v52 = vadd.f32 1.0, %v1622_v46  ;;  %v2135_v2 = vpop.eup %2134  ;;  %v1597_v30 = vmul.f32 %v2133_v16, %v1517_v62  ;;  %v1611_v53 = vsub.f32 1.0, %v1595_v47  ;;  %v3251_v62 = vld [vmem:[#allocation18_spill] sm:$0xff] }
 0x2a8   :  { %v1625_v58 = vmul.f32 %v1609_v0, %v3240_v51  ;;  %v1639_v9 = vadd.f32 1.0, %v1623_v37  ;;  %v1598_v49 = vmul.f32 %v2135_v2, %v1518_v31  ;;  %v1612_v35 = vsub.f32 1.0, %v1596_v17 }
 0x2a9   :  { %v1626_v15 = vmul.f32 %v1610_v18, %v3241_v11  ;;  %v1640_v43 = vadd.f32 1.0, %v1624_v26  ;;  %v1613_v56 = vsub.f32 1.0, %v1597_v30  ;;  %v1627_v48 = vmul.f32 %v1611_v53, %v1307_v5 }
 0x2aa   :  { %v1641_v12 = vadd.f32 1.0, %v1625_v58  ;;  %v1653_v21 = vmul.f32 %v1637_v41, %v3242_v25  ;;  %v1614_v19 = vsub.f32 1.0, %v1598_v49  ;;  %v1628_v63 = vmul.f32 %v1612_v35, %v1308_v24 }
 0x2ab   :  { %v1642_v40 = vadd.f32 1.0, %v1626_v15  ;;  %v1654_v13 = vmul.f32 %v1638_v52, %v3243_v14  ;;  %v1629_v50 = vmul.f32 %v1613_v56, %v1309_v10  ;;  %v1643_v61 = vadd.f32 1.0, %v1627_v48  ;;  %v3248_v10 = vld [vmem:[#allocation16_spill] sm:$0xff] }
 0x2ac   :  { %v1655_v57 = vmul.f32 %v1639_v9, %v3244_v22  ;;  %v1656_v39 = vmul.f32 %v1640_v43, %v3245_v3  ;;  %1669 = vst.msk [vmem:[%s3186_s5 + $0x30] sm:$0xff] %vm42_vm0, %v1653_v21  ;;  %v1630_v5 = vmul.f32 %v1614_v19, %v1310_v29  ;;  %v1644_v6 = vadd.f32 1.0, %v1628_v63  ;;  %v3250_v29 = vld [vmem:[#allocation17_spill] sm:$0xff] }
 0x2ad   :  { %v1657_v27 = vmul.f32 %v1641_v12, %v3246_v4  ;;  %v1658_v24 = vmul.f32 %v1642_v40, %v3247_v34  ;;  %1670 = vst.msk [vmem:[%s3186_s5 + $0x38] sm:$0xff] %vm42_vm0, %v1654_v13  ;;  %v1261_v54 = vmul.f32 0.5, %v3248_v10  ;;  %v1645_v7 = vadd.f32 1.0, %v1629_v50 }
 0x2ae   :  { %v1659_v8 = vmul.f32 %v1643_v61, %v3249_v55  ;;  %1671 = vst.msk [vmem:[%s3186_s5 + $0x40] sm:$0xff] %vm42_vm0, %v1655_v57  ;;  %1672 = vst.msk [vmem:[%s3186_s5 + $0x48] sm:$0xff] %vm42_vm0, %v1656_v39  ;;  %v1262_v45 = vmul.f32 0.5, %v3250_v29  ;;  %v1646_v42 = vadd.f32 1.0, %v1630_v5  ;;  %v1660_v44 = vmul.f32 %v1644_v6, %v3251_v62 }
 0x2af   :  { %1673 = vst.msk [vmem:[%s3186_s5 + $0x50] sm:$0xff] %vm42_vm0, %v1657_v27  ;;  %1674 = vst.msk [vmem:[%s3186_s5 + $0x58] sm:$0xff] %vm42_vm0, %v1658_v24  ;;  %v1661_v1 = vmul.f32 %v1645_v7, %v1261_v54 }
 0x2b0   :  { %1675 = vst.msk [vmem:[%s3186_s5 + $0x60] sm:$0xff] %vm42_vm0, %v1659_v8  ;;  %v1662_v36 = vmul.f32 %v1646_v42, %v1262_v45  ;;  %1676 = vst.msk [vmem:[%s3186_s5 + $0x68] sm:$0xff] %vm42_vm0, %v1660_v44 }
 0x2b1   :  { %1677 = vst.msk [vmem:[%s3186_s5 + $0x70] sm:$0xff] %vm42_vm0, %v1661_v1 }
 0x2b2   :  { %1678 = vst.msk [vmem:[%s3186_s5 + $0x78] sm:$0xff] %vm42_vm0, %v1662_v36 }

// kernel: downsample_forward.7
= control target key start
LH: loop header
LB: loop body
LE: loop exit
PB: predicated region body
PF: predicated region fallthrough
CT: control target
= control target key end

     0   :  { %vm49_vm0 = vcmask 64512   ;;  %vm51_vm1 = vcmask 58368   ;;  %v1832_v1 = vmov 0.0   ;;  %s1833_s29 = smov 16   ;;  %s1834_s30 = smov 8   ;;  %vm960_vm2 = vcmask 1043456   ;;  %s2667_s0 = inlined_call_operand.vmem [shape: f32[2,8,8,8], index: 0, kind: input, shape index: {}]   ;;  %s2668_s1 = inlined_call_operand.vmem [shape: bf16[72,8], index: 1, kind: input, shape index: {}]   ;;  %s2669_s2 = inlined_call_operand.vmem [shape: f32[1,8], index: 2, kind: input, shape index: {}]   ;;  %s2670_s3 = inlined_call_operand.vmem [shape: f32[1,8], index: 3, kind: input, shape index: {}]   ;;  %s2671_s4 = inlined_call_operand.vmem [shape: f32[1,8], index: 4, kind: input, shape index: {}]   ;;  %s2672_s5 = inlined_call_operand.vmem [shape: f32[1,8], index: 5, kind: input, shape index: {}]   ;;  %s2673_s6 = inlined_call_operand.vmem [shape: f32[2,8,8,8], index: 6, kind: output, shape index: {}]  }
   0x1   :  { %v24_v0 = vld [vmem:[%s2667_s0] sm:$0xff]  ;;  %50 = vst.msk [vmem:[#allocation2] sm:$0xff] %vm49_vm0, %v1832_v1  ;;  %53 = vst.msk [vmem:[#allocation2 + $0x10] sm:$0xff] %vm49_vm0, %v1832_v1  ;;  %v25_v2 = vld [vmem:[%s2667_s0 + $0x8] sm:$0xff]  ;;  %s1836_s7 = smov 32   ;;  %s1837_s8 = smov 40  }
   0x2   :  { %52 = vst.msk [vmem:[#allocation2 + $0x8] sm:$0x3] %vm51_vm1, %v1832_v1  ;;  %54 = vst.msk [vmem:[#allocation2 + $0x18] sm:$0x3] %vm51_vm1, %v1832_v1  ;;  %v26_v3 = vld [vmem:[%s2667_s0 + $0x10] sm:$0xff]  ;;  %v27_v4 = vld [vmem:[%s2667_s0 + $0x18] sm:$0xff] }
   0x3   :  { %55 = vst.msk [vmem:[#allocation2 + $0x20] sm:$0xff] %vm49_vm0, %v1832_v1  ;;  %57 = vst.msk [vmem:[#allocation2 + $0x30] sm:$0xff] %vm49_vm0, %v1832_v1  ;;  %v28_v5 = vld [vmem:[%s2667_s0 + $0x20] sm:$0xff]  ;;  %v29_v6 = vld [vmem:[%s2667_s0 + $0x28] sm:$0xff]  ;;  %s1838_s13 = smov 48   ;;  %s1839_s16 = smov 56  }
   0x4   :  { %56 = vst.msk [vmem:[#allocation2 + $0x28] sm:$0x3] %vm51_vm1, %v1832_v1  ;;  %58 = vst.msk [vmem:[#allocation2 + $0x38] sm:$0x3] %vm51_vm1, %v1832_v1  ;;  %v30_v7 = vld [vmem:[%s2667_s0 + $0x30] sm:$0xff]  ;;  %v31_v8 = vld [vmem:[%s2667_s0 + $0x38] sm:$0xff] }
   0x5   :  { %59 = vst.msk [vmem:[#allocation2 + $0x40] sm:$0xff] %vm49_vm0, %v1832_v1  ;;  %61 = vst.msk [vmem:[#allocation2 + $0x50] sm:$0xff] %vm49_vm0, %v1832_v1  ;;  %v32_v9 = vld [vmem:[%s2667_s0 + $0x40] sm:$0xff]  ;;  %v33_v10 = vld [vmem:[%s2667_s0 + $0x48] sm:$0xff]  ;;  %s1840_s19 = smov 64   ;;  %vm781_vm3 = vcmask 130048  }
   0x6   :  { %60 = vst.msk [vmem:[#allocation2 + $0x48] sm:$0x3] %vm51_vm1, %v1832_v1  ;;  %62 = vst.msk [vmem:[#allocation2 + $0x58] sm:$0x3] %vm51_vm1, %v1832_v1  ;;  %v34_v11 = vld [vmem:[%s2667_s0 + $0x50] sm:$0xff]  ;;  %v35_v12 = vld [vmem:[%s2667_s0 + $0x58] sm:$0xff] }
   0x7   :  { %63 = vst.msk [vmem:[#allocation2 + $0x60] sm:$0xff] %vm49_vm0, %v1832_v1  ;;  %65 = vst.msk [vmem:[#allocation2 + $0x70] sm:$0xff] %vm49_vm0, %v1832_v1  ;;  %v36_v13 = vld [vmem:[%s2667_s0 + $0x60] sm:$0xff]  ;;  %v37_v14 = vld [vmem:[%s2667_s0 + $0x68] sm:$0xff]  ;;  %vm798_vm4 = vcmask 195584   ;;  %vm815_vm5 = vcmask 261120  }
   0x8   :  { %64 = vst.msk [vmem:[#allocation2 + $0x68] sm:$0x3] %vm51_vm1, %v1832_v1  ;;  %66 = vst.msk [vmem:[#allocation2 + $0x78] sm:$0x3] %vm51_vm1, %v1832_v1  ;;  %v38_v15 = vld [vmem:[%s2667_s0 + $0x70] sm:$0xff]  ;;  %v39_v16 = vld [vmem:[%s2667_s0 + $0x78] sm:$0xff] }
   0x9   :  { %67 = vst.msk [vmem:[#allocation2 + $0x80] sm:$0xff] %vm49_vm0, %v1832_v1  ;;  %69 = vst.msk [vmem:[#allocation2 + $0x90] sm:$0xff] %vm49_vm0, %v1832_v1  ;;  %v140_v17 = vld [vmem:[#allocation2 + $0x2] sm:$0xff]  ;;  %s1835_s0 = smov 24   ;;  %v1823_v45 = vld [vmem:[%s2668_s1 + $0x20] ss:$0 sps:$4 sm:$0xff]  }
   0xa   :  { %68 = vst.msk [vmem:[#allocation2 + $0x88] sm:$0x3] %vm51_vm1, %v1832_v1  ;;  %70 = vst.msk [vmem:[#allocation2 + $0x98] sm:$0x3] %vm51_vm1, %v1832_v1  ;;  %v124_v18 = vld [vmem:[#allocation2 + $0x1] sm:$0xff]  ;;  %v1824_v46 = vld [vmem:[%s2668_s1 + $0x18] sm:$0xff]   ;;  %1492 = vmatprep.subr.msk.bf16.mxu0 %vm960_vm2, %v1823_v45  ;;  %1493 = vmatprep.subr.msk.bf16.mxu1 %vm960_vm2, %v1823_v45 }
   0xb   :  { %71 = vst.msk [vmem:[#allocation2 + $0xa0] sm:$0xff] %vm49_vm0, %v1832_v1  ;;  %73 = vst.msk [vmem:[#allocation2 + $0xb0] sm:$0xff] %vm49_vm0, %v1832_v1  ;;  %v962_v47 = vsel %vm960_vm2, %v1823_v45, 0  ;;  %v1825_v49 = vld [vmem:[%s2668_s1 + $0x10] sm:$0xff]   ;;  %v1826_v53 = vld [vmem:[%s2668_s1 + $0x8] sm:$0xff]   ;;  %vm832_vm6 = vcmask 326656  }
   0xc   :  { %72 = vst.msk [vmem:[#allocation2 + $0xa8] sm:$0x3] %vm51_vm1, %v1832_v1  ;;  %74 = vst.msk [vmem:[#allocation2 + $0xb8] sm:$0x3] %vm51_vm1, %v1832_v1  ;;  %1457 = vmatpush3.bf16.msra.mxu0 %v962_v47  ;;  %1487 = vmatpush3.bf16.msra.mxu1 %v962_v47  ;;  %v1827_v58 = vld [vmem:[%s2668_s1] sm:$0xff]   ;;  %vm849_vm7 = vcmask 392192  }
   0xd   :  { %75 = vst.msk [vmem:[#allocation2 + $0xc0] sm:$0xff] %vm49_vm0, %v1832_v1  ;;  %77 = vst.msk [vmem:[#allocation2 + $0xd0] sm:$0xff] %vm49_vm0, %v1832_v1  ;;  %1458 = vmatprep.subr.bf16.mxu0 %v1824_v46  ;;  %1483 = vmatprep.subr.bf16.mxu1 %v1824_v46  ;;  %vm866_vm8 = vcmask 457728   ;;  %vm883_vm9 = vcmask 523264   ;;  %vm935_vm10 = vcmask 588800  }
   0xe   :  { %76 = vst.msk [vmem:[#allocation2 + $0xc8] sm:$0x3] %vm51_vm1, %v1832_v1  ;;  %78 = vst.msk [vmem:[#allocation2 + $0xd8] sm:$0x3] %vm51_vm1, %v1832_v1 }
   0xf   :  { %79 = vst.msk [vmem:[#allocation2 + $0xe0] sm:$0xff] %vm49_vm0, %v1832_v1  ;;  %81 = vst.msk [vmem:[#allocation2 + $0xf0] sm:$0xff] %vm49_vm0, %v1832_v1 }
  0x10   :  { %80 = vst.msk [vmem:[#allocation2 + $0xe8] sm:$0x3] %vm51_vm1, %v1832_v1  ;;  %82 = vst.msk [vmem:[#allocation2 + $0xf8] sm:$0x3] %vm51_vm1, %v1832_v1  ;;  %1459 = vmatpush3.bf16.msra.mxu0 %v1824_v46  ;;  %1488 = vmatpush3.bf16.msra.mxu1 %v1824_v46 }
  0x11   :  { %83 = vst.msk [vmem:[#allocation2 + $0x100] sm:$0xff] %vm49_vm0, %v1832_v1  ;;  %85 = vst.msk [vmem:[#allocation2 + $0x110] sm:$0xff] %vm49_vm0, %v1832_v1  ;;  %1460 = vmatprep.subr.bf16.mxu0 %v1825_v49  ;;  %1484 = vmatprep.subr.bf16.mxu1 %v1825_v49 }
  0x12   :  { %84 = vst.msk [vmem:[#allocation2 + $0x108] sm:$0x3] %vm51_vm1, %v1832_v1  ;;  %86 = vst.msk [vmem:[#allocation2 + $0x118] sm:$0x3] %vm51_vm1, %v1832_v1 }
  0x13   :  { %87 = vst.msk [vmem:[#allocation2 + $0x120] sm:$0xff] %vm49_vm0, %v1832_v1  ;;  %89 = vst.msk [vmem:[#allocation2 + $0x130] sm:$0xff] %vm49_vm0, %v1832_v1 }
  0x14   :  { %88 = vst.msk [vmem:[#allocation2 + $0x128] sm:$0x3] %vm51_vm1, %v1832_v1  ;;  %90 = vst.msk [vmem:[#allocation2 + $0x138] sm:$0x3] %vm51_vm1, %v1832_v1  ;;  %1461 = vmatpush3.bf16.msra.mxu0 %v1825_v49  ;;  %1489 = vmatpush3.bf16.msra.mxu1 %v1825_v49 }
  0x15   :  { %92 = vst.msk [vmem:[#allocation2 + $0x11] sm:$0xff] %vm49_vm0, %v24_v0  ;;  %93 = vst.msk [vmem:[#allocation2 + $0x21] sm:$0xff] %vm49_vm0, %v25_v2  ;;  %1462 = vmatprep.subr.bf16.mxu0 %v1826_v53  ;;  %1485 = vmatprep.subr.bf16.mxu1 %v1826_v53 }
  0x16   :  { %94 = vst.msk [vmem:[#allocation2 + $0x31] sm:$0xff] %vm49_vm0, %v26_v3  ;;  %95 = vst.msk [vmem:[#allocation2 + $0x41] sm:$0xff] %vm49_vm0, %v27_v4 }
  0x17   :  { %96 = vst.msk [vmem:[#allocation2 + $0x51] sm:$0xff] %vm49_vm0, %v28_v5  ;;  %97 = vst.msk [vmem:[#allocation2 + $0x61] sm:$0xff] %vm49_vm0, %v29_v6 }
  0x18   :  { %98 = vst.msk [vmem:[#allocation2 + $0x71] sm:$0xff] %vm49_vm0, %v30_v7  ;;  %99 = vst.msk [vmem:[#allocation2 + $0x81] sm:$0xff] %vm49_vm0, %v31_v8  ;;  %1463 = vmatpush3.bf16.msra.mxu0 %v1826_v53  ;;  %1490 = vmatpush3.bf16.msra.mxu1 %v1826_v53  ;;  %v212_v7 = vld [vmem:[#allocation2 + $0x90] sm:$0xff] }
  0x19   :  { %100 = vst.msk [vmem:[#allocation2 + $0xb1] sm:$0xff] %vm49_vm0, %v32_v9  ;;  %101 = vst.msk [vmem:[#allocation2 + $0xc1] sm:$0xff] %vm49_vm0, %v33_v10  ;;  %1464 = vmatprep.subr.bf16.mxu0 %v1827_v58  ;;  %1486 = vmatprep.subr.bf16.mxu1 %v1827_v58  ;;  %v228_v10 = vld [vmem:[#allocation2 + $0x91] sm:$0xff] }
  0x1a   :  { %102 = vst.msk [vmem:[#allocation2 + $0xd1] sm:$0xff] %vm49_vm0, %v34_v11  ;;  %103 = vst.msk [vmem:[#allocation2 + $0xe1] sm:$0xff] %vm49_vm0, %v35_v12  ;;  %v132_v12 = vld [vmem:[#allocation2 + $0xa1] sm:$0xff] }
  0x1b   :  { %104 = vst.msk [vmem:[#allocation2 + $0xf1] sm:$0xff] %vm49_vm0, %v36_v13  ;;  %105 = vst.msk [vmem:[#allocation2 + $0x101] sm:$0xff] %vm49_vm0, %v37_v14 }
  0x1c   :  { %106 = vst.msk [vmem:[#allocation2 + $0x111] sm:$0xff] %vm49_vm0, %v38_v15  ;;  %107 = vst.msk [vmem:[#allocation2 + $0x121] sm:$0xff] %vm49_vm0, %v39_v16  ;;  %v141_v19 = vld [vmem:[#allocation2 + $0x12] sm:$0xff]  ;;  %v142_v21 = vld [vmem:[#allocation2 + $0x22] sm:$0xff]  ;;  %1465 = vmatpush3.bf16.msra.mxu0 %v1827_v58  ;;  %1491 = vmatpush3.bf16.msra.mxu1 %v1827_v58 }
  0x1d   :  { %v125_v20 = vld [vmem:[#allocation2 + $0x11] sm:$0xff]  ;;  %v1513_v22 = vpack.i.bf16 %v141_v19, %v140_v17  ;;  %v126_v25 = vld [vmem:[#allocation2 + $0x21] sm:$0xff]  ;;  %v1543_v40 = vpack.i.bf16 %v142_v21, %v141_v19 }
  0x1e   :  { %v1503_v23 = vpack.i.bf16 %v125_v20, %v124_v18  ;;  %v143_v24 = vld [vmem:[#allocation2 + $0x32] sm:$0xff]  ;;  %v1984_v30 = vld [vmem:[#allocation2 + $0x40] sm:$0xff]  ;;  %v1533_v37 = vpack.i.bf16 %v126_v25, %v125_v20 }
  0x1f   :  { %v127_v26 = vld [vmem:[#allocation2 + $0x31] sm:$0xff]  ;;  %1514 = vrot.lane.b32.xlu1 %v1513_v22, %s1833_s29  ;;  %v1518_v27 = vpack.i.bf16 %v143_v24, %v142_v21  ;;  %v1988_v32 = vld [vmem:[#allocation2 + $0x20] sm:$0xff] }
  0x20   :  { %1504 = vrot.lane.b32.xlu0 %v1503_v23, %s1834_s30  ;;  %v1508_v28 = vpack.i.bf16 %v127_v26, %v126_v25  ;;  %v1982_v29 = vld [vmem:[#allocation2 + $0x30] sm:$0xff]  ;;  %v175_v35 = vld [vmem:[#allocation2 + $0x41] sm:$0xff] }
  0x21   :  { %v1986_v31 = vld [vmem:[#allocation2 + $0x10] sm:$0xff]  ;;  %v1528_v33 = vpack.i.bf16 %v1984_v30, %v1982_v29  ;;  %v1538_v36 = vpack.i.bf16 %v175_v35, %v127_v26  ;;  %v191_v38 = vld [vmem:[#allocation2 + $0x42] sm:$0xff]  ;;  %v1553_v43 = vpack.i.bf16 %v1982_v29, %v1988_v32 }
  0x22   :  { %v1523_v34 = vpack.i.bf16 %v1988_v32, %v1986_v31  ;;  %v1548_v39 = vpack.i.bf16 %v191_v38, %v143_v24  ;;  %v2000_v41 = vld [vmem:[#allocation2 + $0x50] sm:$0xff]  ;;  %v130_v50 = vld [vmem:[#allocation2 + $0x61] sm:$0xff] }
  0x23   :  { %1519 = vrot.lane.b32.xlu1 %v1518_v27, %s1833_s29  ;;  %v1558_v42 = vpack.i.bf16 %v2000_v41, %v1984_v30  ;;  %v224_v44 = vld [vmem:[#allocation2 + $0x51] sm:$0xff]  ;;  %v146_v56 = vld [vmem:[#allocation2 + $0x62] sm:$0xff] }
  0x24   :  { %1509 = vrot.lane.b32.xlu0 %v1508_v28, %s1834_s30  ;;  %v1568_v48 = vpack.i.bf16 %v224_v44, %v175_v35  ;;  %v131_v51 = vld [vmem:[#allocation2 + $0x71] sm:$0xff]  ;;  %v163_v61 = vld [vmem:[#allocation2 + $0x80] sm:$0xff]  ;;  %v1613_v3 = vpack.i.bf16 %v130_v50, %v224_v44 }
  0x25   :  { %v240_v52 = vld [vmem:[#allocation2 + $0x52] sm:$0xff]  ;;  %v1588_v54 = vpack.i.bf16 %v131_v51, %v130_v50  ;;  %v2033_v62 = vld [vmem:[#allocation2 + $0x60] sm:$0xff]  ;;  %v1638_v8 = vpack.i.bf16 %v212_v7, %v163_v61 }
  0x26   :  { %v1583_v55 = vpack.i.bf16 %v240_v52, %v191_v38  ;;  %v147_v57 = vld [vmem:[#allocation2 + $0x72] sm:$0xff]  ;;  %v1603_v0 = vpack.i.bf16 %v2033_v62, %v2000_v41  ;;  %v179_v1 = vld [vmem:[#allocation2 + $0x81] sm:$0xff]  ;;  %v1623_v6 = vpack.i.bf16 %v146_v56, %v240_v52 }
  0x27   :  { %1529 = vrot.lane.b32.xlu1 %v1528_v33, %s1835_s0  ;;  %v1598_v59 = vpack.i.bf16 %v147_v57, %v146_v56  ;;  %v2031_v60 = vld [vmem:[#allocation2 + $0x70] sm:$0xff]  ;;  %v1618_v2 = vpack.i.bf16 %v179_v1, %v131_v51  ;;  %v195_v4 = vld [vmem:[#allocation2 + $0x82] sm:$0xff]  ;;  %v1648_v11 = vpack.i.bf16 %v228_v10, %v179_v1 }
  0x28   :  { %1524 = vrot.lane.b32.xlu0 %v1523_v34, %s1835_s0  ;;  %v1608_v63 = vpack.i.bf16 %v163_v61, %v2031_v60  ;;  %v1628_v5 = vpack.i.bf16 %v195_v4, %v147_v57  ;;  %v1633_v9 = vpack.i.bf16 %v2031_v60, %v2033_v62  ;;  %v133_v13 = vld [vmem:[#allocation2 + $0xb1] sm:$0xff]  ;;  %v134_v15 = vld [vmem:[#allocation2 + $0xc1] sm:$0xff] }
  0x29   :  { %v1658_v14 = vpack.i.bf16 %v133_v13, %v132_v12  ;;  %v135_v16 = vld [vmem:[#allocation2 + $0xd1] sm:$0xff]  ;;  %v150_v20 = vld [vmem:[#allocation2 + $0xc2] sm:$0xff]  ;;  %v1693_v38 = vpack.i.bf16 %v134_v15, %v133_v13 }
  0x2a   :  { %v244_v17 = vld [vmem:[#allocation2 + $0x92] sm:$0xff]  ;;  %v1668_v18 = vpack.i.bf16 %v135_v16, %v134_v15  ;;  %v148_v22 = vld [vmem:[#allocation2 + $0xa2] sm:$0xff] }
  0x2b   :  { %1539 = vrot.lane.b32.xlu1 %v1538_v36, %s1836_s7  ;;  %v1663_v19 = vpack.i.bf16 %v244_v17, %v195_v4  ;;  %v151_v21 = vld [vmem:[#allocation2 + $0xd2] sm:$0xff]  ;;  %v2062_v33 = vld [vmem:[#allocation2 + $0xc0] sm:$0xff] }
  0x2c   :  { %1534 = vrot.lane.b32.xlu0 %v1533_v37, %s1836_s7  ;;  %v149_v23 = vld [vmem:[#allocation2 + $0xb2] sm:$0xff]  ;;  %v1678_v24 = vpack.i.bf16 %v151_v21, %v150_v20  ;;  %v183_v36 = vld [vmem:[#allocation2 + $0xe1] sm:$0xff] }
  0x2d   :  { %v1673_v25 = vpack.i.bf16 %v149_v23, %v148_v22  ;;  %v2056_v26 = vld [vmem:[#allocation2 + $0xd0] sm:$0xff]  ;;  %v1698_v37 = vpack.i.bf16 %v183_v36, %v135_v16  ;;  %v154_v53 = vld [vmem:[#allocation2 + $0x102] sm:$0xff] }
  0x2e   :  { %v1713_v45 = vpack.i.bf16 %v2056_v26, %v2062_v33  ;;  %v232_v46 = vld [vmem:[#allocation2 + $0xf1] sm:$0xff]  ;;  %v171_v57 = vld [vmem:[#allocation2 + $0x120] sm:$0xff] }
  0x2f   :  { %1549 = vrot.lane.b32.xlu1 %v1548_v39, %s1837_s8  ;;  %v199_v39 = vld [vmem:[#allocation2 + $0xe2] sm:$0xff]  ;;  %v1728_v47 = vpack.i.bf16 %v232_v46, %v183_v36  ;;  %v139_v49 = vld [vmem:[#allocation2 + $0x111] sm:$0xff] }
  0x30   :  { %1544 = vrot.lane.b32.xlu0 %v1543_v40, %s1837_s8  ;;  %v1708_v40 = vpack.i.bf16 %v199_v39, %v151_v21  ;;  %v248_v50 = vld [vmem:[#allocation2 + $0xf2] sm:$0xff]  ;;  %v2092_v58 = vld [vmem:[#allocation2 + $0x100] sm:$0xff] }
  0x31   :  { %v1743_v52 = vpack.i.bf16 %v248_v50, %v199_v39  ;;  %v2090_v56 = vld [vmem:[#allocation2 + $0x110] sm:$0xff]  ;;  %v1783_v4 = vpack.i.bf16 %v154_v53, %v248_v50  ;;  %v108_v22 = vld [vmem:[#allocation2] sm:$0xff] }
  0x32   :  { %v1793_v7 = vpack.i.bf16 %v2090_v56, %v2092_v58  ;;  %v252_v12 = vld [vmem:[#allocation2 + $0x132] sm:$0xff] }
  0x33   :  { %1559 = vrot.lane.b32.xlu1 %v1558_v42, %s1838_s13  ;;  %v1703_v42 = vpack.i.bf16 %v150_v20, %v149_v23 }
  0x34   :  { %1554 = vrot.lane.b32.xlu0 %v1553_v43, %s1838_s13  ;;  %v2074_v43 = vld [vmem:[#allocation2 + $0xf0] sm:$0xff] }
  0x35   :  { %v1763_v61 = vpack.i.bf16 %v2092_v58, %v2074_v43 }
  0x37   :  { %1569 = vrot.lane.b32.xlu1 %v1568_v48, %s1839_s16 }
  0x38   :  { %1564 = vrot.lane.b32.xlu0 %v1508_v28, %s1839_s16  ;;  %v2060_v28 = vld [vmem:[#allocation2 + $0xb0] sm:$0xff] }
  0x39   :  { %v1683_v35 = vpack.i.bf16 %v2062_v33, %v2060_v28 }
  0x3b   :  { %1579 = vrot.lane.b32.xlu1 %v1568_v48, %s1834_s30  ;;  %v138_v48 = vld [vmem:[#allocation2 + $0x101] sm:$0xff] }
  0x3c   :  { %1574 = vrot.lane.b32.xlu0 %v1518_v27, %s1840_s19  ;;  %v2058_v27 = vld [vmem:[#allocation2 + $0xe0] sm:$0xff]  ;;  %v1748_v51 = vpack.i.bf16 %v139_v49, %v138_v48  ;;  %v1773_v1 = vpack.i.bf16 %v138_v48, %v232_v46 }
  0x3d   :  { %v1688_v34 = vpack.i.bf16 %v2058_v27, %v2056_v26  ;;  %v1718_v44 = vpack.i.bf16 %v2074_v43, %v2058_v27 }
  0x3f   :  { %1589 = vrot.lane.b32.xlu1 %v1588_v54, %s1834_s30 }
  0x40   :  { %1584 = vrot.lane.b32.xlu0 %v1583_v55, %s1840_s19 }
  0x43   :  { %1599 = vrot.lane.b32.xlu1 %v1598_v59, %s1833_s29 }
  0x44   :  { %1594 = vrot.lane.b32.xlu0 %v1583_v55, %s1833_s29 }
  0x47   :  { %1609 = vrot.lane.b32.xlu1 %v1608_v63, %s1835_s0  ;;  %v187_v63 = vld [vmem:[#allocation2 + $0x121] sm:$0xff] }
  0x48   :  { %1604 = vrot.lane.b32.xlu0 %v1603_v0, %s1835_s0  ;;  %v1778_v0 = vpack.i.bf16 %v187_v63, %v139_v49 }
  0x4b   :  { %1619 = vrot.lane.b32.xlu1 %v1618_v2, %s1836_s7  ;;  %v203_v2 = vld [vmem:[#allocation2 + $0x122] sm:$0xff] }
  0x4c   :  { %1614 = vrot.lane.b32.xlu0 %v1613_v3, %s1836_s7  ;;  %v1818_v15 = vpack.i.bf16 %v252_v12, %v203_v2 }
  0x4f   :  { %1629 = vrot.lane.b32.xlu1 %v1628_v5, %s1837_s8  ;;  %v220_v5 = vld [vmem:[#allocation2 + $0x130] sm:$0xff] }
  0x50   :  { %1624 = vrot.lane.b32.xlu0 %v1623_v6, %s1837_s8  ;;  %v1798_v6 = vpack.i.bf16 %v220_v5, %v171_v57 }
  0x53   :  { %1639 = vrot.lane.b32.xlu1 %v1638_v8, %s1838_s13  ;;  %v236_v8 = vld [vmem:[#allocation2 + $0x131] sm:$0xff] }
  0x54   :  { %1634 = vrot.lane.b32.xlu0 %v1633_v9, %s1838_s13 }
  0x57   :  { %1649 = vrot.lane.b32.xlu1 %v1648_v11, %s1839_s16  ;;  %v1808_v11 = vpack.i.bf16 %v236_v8, %v187_v63 }
  0x58   :  { %1644 = vrot.lane.b32.xlu0 %v1588_v54, %s1839_s16  ;;  %v155_v54 = vld [vmem:[#allocation2 + $0x112] sm:$0xff] }
  0x59   :  { %v1758_v55 = vpack.i.bf16 %v155_v54, %v154_v53  ;;  %v1788_v3 = vpack.i.bf16 %v203_v2, %v155_v54 }
  0x5b   :  { %1659 = vrot.lane.b32.xlu1 %v1658_v14, %s1834_s30 }
  0x5c   :  { %1654 = vrot.lane.b32.xlu0 %v1598_v59, %s1840_s19  ;;  %v1768_v59 = vpack.i.bf16 %v171_v57, %v2090_v56 }
  0x5f   :  { %1669 = vrot.lane.b32.xlu1 %v1668_v18, %s1834_s30 }
  0x60   :  { %1664 = vrot.lane.b32.xlu0 %v1663_v19, %s1840_s19 }
  0x63   :  { %1679 = vrot.lane.b32.xlu1 %v1678_v24, %s1833_s29 }
  0x64   :  { %1674 = vrot.lane.b32.xlu0 %v1673_v25, %s1833_s29 }
  0x67   :  { %1689 = vrot.lane.b32.xlu1 %v1688_v34, %s1835_s0 }
  0x68   :  { %1684 = vrot.lane.b32.xlu0 %v1683_v35, %s1835_s0 }
  0x6b   :  { %1699 = vrot.lane.b32.xlu1 %v1698_v37, %s1836_s7 }
  0x6c   :  { %1694 = vrot.lane.b32.xlu0 %v1693_v38, %s1836_s7 }
  0x6f   :  { %1709 = vrot.lane.b32.xlu1 %v1708_v40, %s1837_s8 }
  0x70   :  { %1704 = vrot.lane.b32.xlu0 %v1703_v42, %s1837_s8 }
  0x73   :  { %1719 = vrot.lane.b32.xlu1 %v1718_v44, %s1838_s13 }
  0x74   :  { %1714 = vrot.lane.b32.xlu0 %v1713_v45, %s1838_s13 }
  0x77   :  { %1729 = vrot.lane.b32.xlu1 %v1728_v47, %s1839_s16 }
  0x78   :  { %1724 = vrot.lane.b32.xlu0 %v1668_v18, %s1839_s16 }
  0x7b   :  { %1739 = vrot.lane.b32.xlu1 %v1728_v47, %s1834_s30 }
  0x7c   :  { %1734 = vrot.lane.b32.xlu0 %v1678_v24, %s1840_s19 }
  0x7f   :  { %1749 = vrot.lane.b32.xlu1 %v1748_v51, %s1834_s30 }
  0x80   :  { %1744 = vrot.lane.b32.xlu0 %v1743_v52, %s1840_s19 }
  0x83   :  { %1759 = vrot.lane.b32.xlu1 %v1758_v55, %s1833_s29 }
  0x84   :  { %1754 = vrot.lane.b32.xlu0 %v1743_v52, %s1833_s29 }
  0x87   :  { %1769 = vrot.lane.b32.xlu1 %v1768_v59, %s1835_s0 }
  0x88   :  { %1764 = vrot.lane.b32.xlu0 %v1763_v61, %s1835_s0 }
  0x8b   :  { %1779 = vrot.lane.b32.xlu1 %v1778_v0, %s1836_s7 }
  0x8c   :  { %1774 = vrot.lane.b32.xlu0 %v1773_v1, %s1836_s7 }
  0x8f   :  { %1789 = vrot.lane.b32.xlu1 %v1788_v3, %s1837_s8 }
  0x90   :  { %1784 = vrot.lane.b32.xlu0 %v1783_v4, %s1837_s8 }
  0x91   :  { %v1515_v9 = vpop.permute.xlu1 %1514 }
  0x92   :  { %v1505_v10 = vpop.permute.xlu0 %1504  ;;  %v1517_v35 = vunpack.i.h.bf16 %v1515_v9  ;;  %v1516_v36 = vunpack.i.l.bf16 %v1515_v9 }
  0x93   :  { %1799 = vrot.lane.b32.xlu1 %v1798_v6, %s1838_s13  ;;  %v1507_v20 = vunpack.i.h.bf16 %v1505_v10  ;;  %v1506_v21 = vunpack.i.l.bf16 %v1505_v10 }
  0x94   :  { %1794 = vrot.lane.b32.xlu0 %v1793_v7, %s1838_s13 }
  0x95   :  { %v1520_v13 = vpop.permute.xlu1 %1519  ;;  %v765_v37 = vsel %vm49_vm0, %v108_v22, %v1506_v21  ;;  %v766_v38 = vsel %vm49_vm0, %v1986_v31, %v1507_v20 }
  0x96   :  { %v1510_v14 = vpop.permute.xlu0 %1509  ;;  %v1522_v39 = vunpack.i.h.bf16 %v1520_v13  ;;  %v1521_v40 = vunpack.i.l.bf16 %v1520_v13  ;;  %v783_v31 = vsel %vm781_vm3, %v766_v38, %v1517_v35 }
  0x97   :  { %1809 = vrot.lane.b32.xlu1 %v1808_v11, %s1839_s16  ;;  %v1512_v23 = vunpack.i.h.bf16 %v1510_v14  ;;  %v1511_v24 = vunpack.i.l.bf16 %v1510_v14 }
  0x98   :  { %1804 = vrot.lane.b32.xlu0 %v1748_v51, %s1839_s16  ;;  %v782_v51 = vsel %vm781_vm3, %v765_v37, %v1516_v36 }
  0x99   :  { %v1530_v16 = vpop.permute.xlu1 %1529  ;;  %v768_v42 = vsel %vm49_vm0, %v1982_v29, %v1512_v23  ;;  %v767_v44 = vsel %vm49_vm0, %v1988_v32, %v1511_v24 }
  0x9a   :  { %v1525_v17 = vpop.permute.xlu0 %1524  ;;  %v1532_v45 = vunpack.i.h.bf16 %v1530_v16  ;;  %v1531_v46 = vunpack.i.l.bf16 %v1530_v16  ;;  %v784_v52 = vsel %vm781_vm3, %v767_v44, %v1521_v40  ;;  %v785_v29 = vsel %vm781_vm3, %v768_v42, %v1522_v39 }
  0x9b   :  { %1819 = vrot.lane.b32.xlu1 %v1818_v15, %s1840_s19  ;;  %v1527_v49 = vunpack.i.h.bf16 %v1525_v17  ;;  %v1526_v50 = vunpack.i.l.bf16 %v1525_v17 }
  0x9c   :  { %1814 = vrot.lane.b32.xlu0 %v1758_v55, %s1840_s19  ;;  %v801_v54 = vsel %vm798_vm4, %v784_v52, %v1531_v46  ;;  %v802_v55 = vsel %vm798_vm4, %v785_v29, %v1532_v45 }
  0x9d   :  { %v2113_v18 = vpop.permute.xlu1 %1539  ;;  %v799_v0 = vsel %vm798_vm4, %v782_v51, %v1526_v50  ;;  %v800_v1 = vsel %vm798_vm4, %v783_v31, %v1527_v49 }
  0x9e   :  { %v1535_v19 = vpop.permute.xlu0 %1534  ;;  %v1542_v4 = vunpack.i.h.bf16 %v2113_v18  ;;  %v1541_v5 = vunpack.i.l.bf16 %v2113_v18 }
  0x9f   :  { %v1537_v53 = vunpack.i.h.bf16 %v1535_v19  ;;  %v1536_v32 = vunpack.i.l.bf16 %v1535_v19 }
  0xa0   :  { %v819_v35 = vsel %vm815_vm5, %v802_v55, %v1542_v4 }
  0xa1   :  { %v2115_v25 = vpop.permute.xlu1 %1549  ;;  %v816_v8 = vsel %vm815_vm5, %v799_v0, %v1536_v32  ;;  %v817_v9 = vsel %vm815_vm5, %v800_v1, %v1537_v53 }
  0xa2   :  { %v1545_v34 = vpop.permute.xlu0 %1544  ;;  %v1552_v10 = vunpack.i.h.bf16 %v2115_v25  ;;  %v1551_v11 = vunpack.i.l.bf16 %v2115_v25 }
  0xa3   :  { %v1547_v57 = vunpack.i.h.bf16 %v1545_v34  ;;  %v1546_v59 = vunpack.i.l.bf16 %v1545_v34  ;;  %v818_v34 = vsel %vm815_vm5, %v801_v54, %v1541_v5 }
  0xa4   :  { %v835_v38 = vsel %vm832_vm6, %v818_v34, %v1551_v11  ;;  %v836_v39 = vsel %vm832_vm6, %v819_v35, %v1552_v10 }
  0xa5   :  { %v1560_v47 = vpop.permute.xlu1 %1559  ;;  %v833_v12 = vsel %vm832_vm6, %v816_v8, %v1546_v59  ;;  %v834_v13 = vsel %vm832_vm6, %v817_v9, %v1547_v57 }
  0xa6   :  { %v1555_v48 = vpop.permute.xlu0 %1554  ;;  %v1562_v14 = vunpack.i.h.bf16 %v1560_v47  ;;  %v1561_v15 = vunpack.i.l.bf16 %v1560_v47 }
  0xa7   :  { %v1557_v2 = vunpack.i.h.bf16 %v1555_v48  ;;  %v1556_v3 = vunpack.i.l.bf16 %v1555_v48 }
  0xa8   :  { %v852_v45 = vsel %vm849_vm7, %v835_v38, %v1561_v15  ;;  %v853_v46 = vsel %vm849_vm7, %v836_v39, %v1562_v14 }
  0xa9   :  { %v1570_v61 = vpop.permute.xlu1 %1569  ;;  %v850_v18 = vsel %vm849_vm7, %v833_v12, %v1556_v3  ;;  %v851_v19 = vsel %vm849_vm7, %v834_v13, %v1557_v2 }
  0xaa   :  { %v1565_v63 = vpop.permute.xlu0 %1564  ;;  %v1572_v22 = vunpack.i.h.bf16 %v1570_v61  ;;  %v1571_v23 = vunpack.i.l.bf16 %v1570_v61 }
  0xab   :  { %v1567_v6 = vunpack.i.h.bf16 %v1565_v63  ;;  %v1566_v7 = vunpack.i.l.bf16 %v1565_v63 }
  0xac   :  { %v869_v49 = vsel %vm866_vm8, %v852_v45, %v1571_v23  ;;  %v870_v50 = vsel %vm866_vm8, %v853_v46, %v1572_v22 }
  0xad   :  { %v1580_v16 = vpop.permute.xlu1 %1579  ;;  %v867_v24 = vsel %vm866_vm8, %v850_v18, %v1566_v7  ;;  %v868_v25 = vsel %vm866_vm8, %v851_v19, %v1567_v6 }
  0xae   :  { %v1575_v17 = vpop.permute.xlu0 %1574  ;;  %v1582_v1 = vunpack.i.h.bf16 %v1580_v16  ;;  %v1581_v2 = vunpack.i.l.bf16 %v1580_v16 }
  0xaf   :  { %v1577_v20 = vunpack.i.h.bf16 %v1575_v17  ;;  %v1576_v21 = vunpack.i.l.bf16 %v1575_v17 }
  0xb0   :  { %v770_v15 = vsel %vm49_vm0, %v2000_v41, %v1582_v1  ;;  %v769_v16 = vsel %vm49_vm0, %v1984_v30, %v1581_v2 }
  0xb1   :  { %v884_v36 = vsel %vm883_vm9, %v867_v24, %v1576_v21  ;;  %v885_v37 = vsel %vm883_vm9, %v868_v25, %v1577_v20  ;;  %v1590_v40 = vpop.permute.xlu1 %1589 }
  0xb2   :  { %v1585_v42 = vpop.permute.xlu0 %1584  ;;  %v900_v44 = vpack.c.bf16 %v885_v37, %v884_v36  ;;  %v1592_v63 = vunpack.i.h.bf16 %v1590_v40  ;;  %v1591_v0 = vunpack.i.l.bf16 %v1590_v40 }
  0xb3   :  { %v1587_v47 = vunpack.i.h.bf16 %v1585_v42  ;;  %v1586_v48 = vunpack.i.l.bf16 %v1585_v42 }
  0xb4   :  { %1466 = vmatprep.mubr.msk.bf16.mxu0 %vm935_vm10, %v900_v44  ;;  %v772_v11 = vsel %vm49_vm0, %v2031_v60, %v1592_v63  ;;  %v771_v12 = vsel %vm49_vm0, %v2033_v62, %v1591_v0 }
  0xb5   :  { %v886_v51 = vsel %vm883_vm9, %v869_v49, %v1586_v48  ;;  %v887_v31 = vsel %vm883_vm9, %v870_v50, %v1587_v47  ;;  %v1600_v29 = vpop.permute.xlu1 %1599 }
  0xb6   :  { %v901_v52 = vpack.c.bf16 %v887_v31, %v886_v51  ;;  %v1595_v53 = vpop.permute.xlu0 %1594  ;;  %v1602_v3 = vunpack.i.h.bf16 %v1600_v29  ;;  %v1601_v4 = vunpack.i.l.bf16 %v1600_v29 }
  0xb7   :  { %v1597_v5 = vunpack.i.h.bf16 %v1595_v53  ;;  %v1596_v6 = vunpack.i.l.bf16 %v1595_v53 }
  0xb8   :  { %1467 = vmatmul.mubr.msk.bf16.vlgmr.msra.gmra.mxu0 %vm935_vm10, %v901_v52  ;;  %v788_v17 = vsel %vm781_vm3, %v771_v12, %v1601_v4  ;;  %v789_v18 = vsel %vm781_vm3, %v772_v11, %v1602_v3 }
  0xb9   :  { %v1610_v32 = vpop.permute.xlu1 %1609  ;;  %v787_v19 = vsel %vm781_vm3, %v770_v15, %v1597_v5  ;;  %v786_v20 = vsel %vm781_vm3, %v769_v16, %v1596_v6 }
  0xba   :  { %v1605_v54 = vpop.permute.xlu0 %1604  ;;  %v1612_v7 = vunpack.i.h.bf16 %v1610_v32  ;;  %v1611_v8 = vunpack.i.l.bf16 %v1610_v32 }
  0xbb   :  { %v1607_v13 = vunpack.i.h.bf16 %v1605_v54  ;;  %v1606_v14 = vunpack.i.l.bf16 %v1605_v54 }
  0xbc   :  { %v805_v62 = vsel %vm798_vm4, %v788_v17, %v1611_v8  ;;  %v806_v22 = vsel %vm798_vm4, %v789_v18, %v1612_v7 }
  0xbd   :  { %v2158_v55 = vpop.permute.xlu1 %1619  ;;  %v803_v30 = vsel %vm798_vm4, %v786_v20, %v1606_v14  ;;  %v804_v34 = vsel %vm798_vm4, %v787_v19, %v1607_v13 }
  0xbe   :  { %v1615_v57 = vpop.permute.xlu0 %1614  ;;  %v1622_v37 = vunpack.i.h.bf16 %v2158_v55  ;;  %v1621_v38 = vunpack.i.l.bf16 %v2158_v55 }
  0xbf   :  { %v1617_v60 = vunpack.i.h.bf16 %v1615_v57  ;;  %v1616_v21 = vunpack.i.l.bf16 %v1615_v57 }
  0xc0   :  { %v823_v63 = vsel %vm815_vm5, %v806_v22, %v1622_v37 }
  0xc1   :  { %v2160_v59 = vpop.permute.xlu1 %1629  ;;  %v820_v42 = vsel %vm815_vm5, %v803_v30, %v1616_v21  ;;  %v821_v44 = vsel %vm815_vm5, %v804_v34, %v1617_v60  ;;  %v116_v34 = vld [vmem:[#allocation2 + $0xa0] sm:$0xff] }
  0xc2   :  { %v1625_v61 = vpop.permute.xlu0 %1624  ;;  %v1632_v45 = vunpack.i.h.bf16 %v2160_v59  ;;  %v1631_v46 = vunpack.i.l.bf16 %v2160_v59 }
  0xc3   :  { %v1627_v23 = vunpack.i.h.bf16 %v1625_v61  ;;  %v1626_v24 = vunpack.i.l.bf16 %v1625_v61  ;;  %v822_v61 = vsel %vm815_vm5, %v805_v62, %v1621_v38 }
  0xc4   :  { %v839_v2 = vsel %vm832_vm6, %v822_v61, %v1631_v46  ;;  %v840_v3 = vsel %vm832_vm6, %v823_v63, %v1632_v45 }
  0xc5   :  { %v1640_v9 = vpop.permute.xlu1 %1639  ;;  %v837_v47 = vsel %vm832_vm6, %v820_v42, %v1626_v24  ;;  %v838_v48 = vsel %vm832_vm6, %v821_v44, %v1627_v23 }
  0xc6   :  { %v1635_v10 = vpop.permute.xlu0 %1634  ;;  %v1642_v49 = vunpack.i.h.bf16 %v1640_v9  ;;  %v1641_v50 = vunpack.i.l.bf16 %v1640_v9 }
  0xc7   :  { %v1637_v35 = vunpack.i.h.bf16 %v1635_v10  ;;  %v1636_v36 = vunpack.i.l.bf16 %v1635_v10 }
  0xc8   :  { %v856_v7 = vsel %vm849_vm7, %v839_v2, %v1641_v50  ;;  %v857_v8 = vsel %vm849_vm7, %v840_v3, %v1642_v49 }
  0xc9   :  { %v1650_v41 = vpop.permute.xlu1 %1649  ;;  %v854_v52 = vsel %vm849_vm7, %v837_v47, %v1636_v36  ;;  %v855_v29 = vsel %vm849_vm7, %v838_v48, %v1637_v35 }
  0xca   :  { %v1645_v25 = vpop.permute.xlu0 %1644  ;;  %v1652_v54 = vunpack.i.h.bf16 %v1650_v41  ;;  %v1651_v55 = vunpack.i.l.bf16 %v1650_v41 }
  0xcb   :  { %v1647_v39 = vunpack.i.h.bf16 %v1645_v25  ;;  %v1646_v40 = vunpack.i.l.bf16 %v1645_v25 }
  0xcc   :  { %v873_v11 = vsel %vm866_vm8, %v856_v7, %v1651_v55  ;;  %v874_v12 = vsel %vm866_vm8, %v857_v8, %v1652_v54 }
  0xcd   :  { %v1660_v51 = vpop.permute.xlu1 %1659  ;;  %v871_v57 = vsel %vm866_vm8, %v854_v52, %v1646_v40  ;;  %v872_v59 = vsel %vm866_vm8, %v855_v29, %v1647_v39 }
  0xce   :  { %v1655_v31 = vpop.permute.xlu0 %1654  ;;  %v1662_v24 = vunpack.i.h.bf16 %v1660_v51  ;;  %v1661_v41 = vunpack.i.l.bf16 %v1660_v51 }
  0xcf   :  { %v1657_v53 = vunpack.i.h.bf16 %v1655_v31  ;;  %v1656_v32 = vunpack.i.l.bf16 %v1655_v31 }
  0xd0   :  { %v774_v47 = vsel %vm49_vm0, %v2060_v28, %v1662_v24  ;;  %v773_v48 = vsel %vm49_vm0, %v116_v34, %v1661_v41 }
  0xd1   :  { %v888_v0 = vsel %vm883_vm9, %v871_v57, %v1656_v32  ;;  %v889_v1 = vsel %vm883_vm9, %v872_v59, %v1657_v53  ;;  %v1670_v5 = vpop.permute.xlu1 %1669 }
  0xd2   :  { %v902_v4 = vpack.c.bf16 %v889_v1, %v888_v0  ;;  %v1665_v6 = vpop.permute.xlu0 %1664  ;;  %v1672_v22 = vunpack.i.h.bf16 %v1670_v5  ;;  %v1671_v23 = vunpack.i.l.bf16 %v1670_v5 }
  0xd3   :  { %v1667_v9 = vunpack.i.h.bf16 %v1665_v6  ;;  %v1666_v10 = vunpack.i.l.bf16 %v1665_v6 }
  0xd4   :  { %1470 = vmatprep.mubr.msk.bf16.mxu0 %vm935_vm10, %v902_v4  ;;  %v776_v42 = vsel %vm49_vm0, %v2056_v26, %v1672_v22  ;;  %v775_v44 = vsel %vm49_vm0, %v2062_v33, %v1671_v23 }
  0xd5   :  { %v891_v13 = vsel %vm883_vm9, %v874_v12, %v1667_v9  ;;  %v890_v14 = vsel %vm883_vm9, %v873_v11, %v1666_v10  ;;  %v1680_v16 = vpop.permute.xlu1 %1679 }
  0xd6   :  { %v903_v15 = vpack.c.bf16 %v891_v13, %v890_v14  ;;  %v1675_v17 = vpop.permute.xlu0 %1674  ;;  %v1682_v25 = vunpack.i.h.bf16 %v1680_v16  ;;  %v1681_v30 = vunpack.i.l.bf16 %v1680_v16 }
  0xd7   :  { %v1677_v35 = vunpack.i.h.bf16 %v1675_v17  ;;  %v1676_v36 = vunpack.i.l.bf16 %v1675_v17 }
  0xd8   :  { %1471 = vmatmul.mubr.msk.bf16.gmra.mxu0 %vm935_vm10, %v903_v15  ;;  %v792_v49 = vsel %vm781_vm3, %v775_v44, %v1681_v30  ;;  %v793_v50 = vsel %vm781_vm3, %v776_v42, %v1682_v25 }
  0xd9   :  { %v1690_v18 = vpop.permute.xlu1 %1689  ;;  %v791_v51 = vsel %vm781_vm3, %v774_v47, %v1677_v35  ;;  %v790_v31 = vsel %vm781_vm3, %v773_v48, %v1676_v36 }
  0xda   :  { %v1685_v19 = vpop.permute.xlu0 %1684  ;;  %v1692_v37 = vunpack.i.h.bf16 %v1690_v18  ;;  %v1691_v38 = vunpack.i.l.bf16 %v1690_v18 }
  0xdb   :  { %v1687_v45 = vunpack.i.h.bf16 %v1685_v19  ;;  %v1686_v46 = vunpack.i.l.bf16 %v1685_v19 }
  0xdc   :  { %v809_v29 = vsel %vm798_vm4, %v792_v49, %v1691_v38  ;;  %v810_v33 = vsel %vm798_vm4, %v793_v50, %v1692_v37 }
  0xdd   :  { %v2204_v20 = vpop.permute.xlu1 %1699  ;;  %v807_v55 = vsel %vm798_vm4, %v790_v31, %v1686_v46  ;;  %v808_v57 = vsel %vm798_vm4, %v791_v51, %v1687_v45 }
  0xde   :  { %v1695_v60 = vpop.permute.xlu0 %1694  ;;  %v1702_v63 = vunpack.i.h.bf16 %v2204_v20  ;;  %v1701_v0 = vunpack.i.l.bf16 %v2204_v20 }
  0xdf   :  { %v1697_v52 = vunpack.i.h.bf16 %v1695_v60  ;;  %v1696_v26 = vunpack.i.l.bf16 %v1695_v60 }
  0xe0   :  { %v826_v60 = vsel %vm815_vm5, %v809_v29, %v1701_v0 }
  0xe1   :  { %v2206_v21 = vpop.permute.xlu1 %1709  ;;  %v824_v3 = vsel %vm815_vm5, %v807_v55, %v1696_v26  ;;  %v825_v4 = vsel %vm815_vm5, %v808_v57, %v1697_v52 }
  0xe2   :  { %v1705_v62 = vpop.permute.xlu0 %1704  ;;  %v1712_v5 = vunpack.i.h.bf16 %v2206_v21  ;;  %v1711_v6 = vunpack.i.l.bf16 %v2206_v21  ;;  %v827_v21 = vsel %vm815_vm5, %v810_v33, %v1702_v63 }
  0xe3   :  { %v1707_v53 = vunpack.i.h.bf16 %v1705_v62  ;;  %v1706_v32 = vunpack.i.l.bf16 %v1705_v62 }
  0xe4   :  { %v843_v23 = vsel %vm832_vm6, %v826_v60, %v1711_v6  ;;  %v844_v24 = vsel %vm832_vm6, %v827_v21, %v1712_v5 }
  0xe5   :  { %v1720_v39 = vpop.permute.xlu1 %1719  ;;  %v841_v7 = vsel %vm832_vm6, %v824_v3, %v1706_v32  ;;  %v842_v8 = vsel %vm832_vm6, %v825_v4, %v1707_v53 }
  0xe6   :  { %v1715_v40 = vpop.permute.xlu0 %1714  ;;  %v1722_v9 = vunpack.i.h.bf16 %v1720_v39  ;;  %v1721_v10 = vunpack.i.l.bf16 %v1720_v39 }
  0xe7   :  { %v1717_v59 = vunpack.i.h.bf16 %v1715_v40  ;;  %v1716_v61 = vunpack.i.l.bf16 %v1715_v40 }
  0xe8   :  { %v860_v34 = vsel %vm849_vm7, %v843_v23, %v1721_v10  ;;  %v861_v35 = vsel %vm849_vm7, %v844_v24, %v1722_v9 }
  0xe9   :  { %v1730_v54 = vpop.permute.xlu1 %1729  ;;  %v858_v13 = vsel %vm849_vm7, %v841_v7, %v1716_v61  ;;  %v859_v14 = vsel %vm849_vm7, %v842_v8, %v1717_v59 }
  0xea   :  { %v1725_v28 = vpop.permute.xlu0 %1724  ;;  %v1732_v17 = vunpack.i.h.bf16 %v1730_v54  ;;  %v1731_v18 = vunpack.i.l.bf16 %v1730_v54 }
  0xeb   :  { %v1727_v1 = vunpack.i.h.bf16 %v1725_v28  ;;  %v1726_v2 = vunpack.i.l.bf16 %v1725_v28 }
  0xec   :  { %v877_v38 = vsel %vm866_vm8, %v860_v34, %v1731_v18  ;;  %v878_v39 = vsel %vm866_vm8, %v861_v35, %v1732_v17 }
  0xed   :  { %v1740_v11 = vpop.permute.xlu1 %1739  ;;  %v875_v19 = vsel %vm866_vm8, %v858_v13, %v1726_v2  ;;  %v876_v20 = vsel %vm866_vm8, %v859_v14, %v1727_v1 }
  0xee   :  { %v1735_v12 = vpop.permute.xlu0 %1734  ;;  %v1742_v51 = vunpack.i.h.bf16 %v1740_v11  ;;  %v1741_v31 = vunpack.i.l.bf16 %v1740_v11 }
  0xef   :  { %v1737_v15 = vunpack.i.h.bf16 %v1735_v12  ;;  %v1736_v16 = vunpack.i.l.bf16 %v1735_v12 }
  0xf0   :  { %v778_v63 = vsel %vm49_vm0, %v2074_v43, %v1742_v51  ;;  %v777_v0 = vsel %vm49_vm0, %v2058_v27, %v1741_v31 }
  0xf1   :  { %v892_v62 = vsel %vm883_vm9, %v875_v19, %v1736_v16  ;;  %v893_v22 = vsel %vm883_vm9, %v876_v20, %v1737_v15  ;;  %v1750_v41 = vpop.permute.xlu1 %1749 }
  0xf2   :  { %v1745_v25 = vpop.permute.xlu0 %1744  ;;  %v904_v30 = vpack.c.bf16 %v893_v22, %v892_v62  ;;  %v1752_v52 = vunpack.i.h.bf16 %v1750_v41  ;;  %v1751_v26 = vunpack.i.l.bf16 %v1750_v41 }
  0xf3   :  { %v1747_v36 = vunpack.i.h.bf16 %v1745_v25  ;;  %v1746_v37 = vunpack.i.l.bf16 %v1745_v25 }
  0xf4   :  { %1474 = vmatprep.mubr.msk.bf16.mxu1 %vm935_vm10, %v904_v30  ;;  %v780_v1 = vsel %vm49_vm0, %v2090_v56, %v1752_v52  ;;  %v779_v2 = vsel %vm49_vm0, %v2092_v58, %v1751_v26 }
  0xf5   :  { %v895_v40 = vsel %vm883_vm9, %v878_v39, %v1747_v36  ;;  %v894_v42 = vsel %vm883_vm9, %v877_v38, %v1746_v37  ;;  %v1760_v45 = vpop.permute.xlu1 %1759 }
  0xf6   :  { %v905_v44 = vpack.c.bf16 %v895_v40, %v894_v42  ;;  %v1755_v46 = vpop.permute.xlu0 %1754  ;;  %v1762_v29 = vunpack.i.h.bf16 %v1760_v45  ;;  %v1761_v33 = vunpack.i.l.bf16 %v1760_v45 }
  0xf7   :  { %v1757_v53 = vunpack.i.h.bf16 %v1755_v46  ;;  %v1756_v32 = vunpack.i.l.bf16 %v1755_v46 }
  0xf8   :  { %1475 = vmatmul.mubr.msk.bf16.vlgmr.msra.gmra.mxu1 %vm935_vm10, %v905_v44  ;;  %v796_v3 = vsel %vm781_vm3, %v779_v2, %v1761_v33  ;;  %v797_v4 = vsel %vm781_vm3, %v780_v1, %v1762_v29 }
  0xf9   :  { %v1770_v47 = vpop.permute.xlu1 %1769  ;;  %v795_v5 = vsel %vm781_vm3, %v778_v63, %v1757_v53  ;;  %v794_v6 = vsel %vm781_vm3, %v777_v0, %v1756_v32 }
  0xfa   :  { %v1765_v48 = vpop.permute.xlu0 %1764  ;;  %v1772_v55 = vunpack.i.h.bf16 %v1770_v47  ;;  %v1771_v57 = vunpack.i.l.bf16 %v1770_v47 }
  0xfb   :  { %v1767_v59 = vunpack.i.h.bf16 %v1765_v48  ;;  %v1766_v61 = vunpack.i.l.bf16 %v1765_v48 }
  0xfc   :  { %v813_v11 = vsel %vm798_vm4, %v796_v3, %v1771_v57  ;;  %v814_v56 = vsel %vm798_vm4, %v797_v4, %v1772_v55 }
  0xfd   :  { %v1780_v49 = vpop.permute.xlu1 %1779  ;;  %v811_v58 = vsel %vm798_vm4, %v794_v6, %v1766_v61  ;;  %v812_v12 = vsel %vm798_vm4, %v795_v5, %v1767_v59 }
  0xfe   :  { %v1775_v50 = vpop.permute.xlu0 %1774  ;;  %v1782_v43 = vunpack.i.h.bf16 %v1780_v49  ;;  %v1781_v9 = vunpack.i.l.bf16 %v1780_v49 }
  0xff   :  { %v1777_v10 = vunpack.i.h.bf16 %v1775_v50  ;;  %v1776_v27 = vunpack.i.l.bf16 %v1775_v50 }
 0x100   :  { %v830_v62 = vsel %vm815_vm5, %v813_v11, %v1781_v9  ;;  %v831_v22 = vsel %vm815_vm5, %v814_v56, %v1782_v43 }
 0x101   :  { %v1790_v54 = vpop.permute.xlu1 %1789  ;;  %v828_v23 = vsel %vm815_vm5, %v811_v58, %v1776_v27  ;;  %v829_v24 = vsel %vm815_vm5, %v812_v12, %v1777_v10 }
 0x102   :  { %v1785_v28 = vpop.permute.xlu0 %1784  ;;  %v1792_v13 = vunpack.i.h.bf16 %v1790_v54  ;;  %v1791_v14 = vunpack.i.l.bf16 %v1790_v54 }
 0x103   :  { %v1787_v15 = vunpack.i.h.bf16 %v1785_v28  ;;  %v1786_v16 = vunpack.i.l.bf16 %v1785_v28 }
 0x104   :  { %v847_v35 = vsel %vm832_vm6, %v830_v62, %v1791_v14  ;;  %v848_v36 = vsel %vm832_vm6, %v831_v22, %v1792_v13 }
 0x105   :  { %v1800_v7 = vpop.permute.xlu1 %1799  ;;  %v845_v37 = vsel %vm832_vm6, %v828_v23, %v1786_v16  ;;  %v846_v38 = vsel %vm832_vm6, %v829_v24, %v1787_v15 }
 0x106   :  { %v1795_v8 = vpop.permute.xlu0 %1794  ;;  %v1802_v17 = vunpack.i.h.bf16 %v1800_v7  ;;  %v1801_v18 = vunpack.i.l.bf16 %v1800_v7 }
 0x107   :  { %v1797_v19 = vunpack.i.h.bf16 %v1795_v8  ;;  %v1796_v20 = vunpack.i.l.bf16 %v1795_v8 }
 0x108   :  { %v864_v39 = vsel %vm849_vm7, %v847_v35, %v1801_v18  ;;  %v865_v40 = vsel %vm849_vm7, %v848_v36, %v1802_v17 }
 0x109   :  { %v1810_v60 = vpop.permute.xlu1 %1809  ;;  %v862_v42 = vsel %vm849_vm7, %v845_v37, %v1796_v20  ;;  %v863_v44 = vsel %vm849_vm7, %v846_v38, %v1797_v19 }
 0x10a   :  { %v1805_v21 = vpop.permute.xlu0 %1804  ;;  %v1812_v41 = vunpack.i.h.bf16 %v1810_v60  ;;  %v1811_v25 = vunpack.i.l.bf16 %v1810_v60 }
 0x10b   :  { %v1807_v30 = vunpack.i.h.bf16 %v1805_v21  ;;  %v1806_v34 = vunpack.i.l.bf16 %v1805_v21 }
 0x10c   :  { %v881_v51 = vsel %vm866_vm8, %v864_v39, %v1811_v25  ;;  %v882_v31 = vsel %vm866_vm8, %v865_v40, %v1812_v41 }
 0x10d   :  { %v1820_v45 = vpop.permute.xlu1 %1819  ;;  %v879_v52 = vsel %vm866_vm8, %v862_v42, %v1806_v34  ;;  %v880_v26 = vsel %vm866_vm8, %v863_v44, %v1807_v30 }
 0x10e   :  { %v1815_v46 = vpop.permute.xlu0 %1814  ;;  %v1822_v47 = vunpack.i.h.bf16 %v1820_v45  ;;  %v1821_v48 = vunpack.i.l.bf16 %v1820_v45 }
 0x10f   :  { %v1817_v49 = vunpack.i.h.bf16 %v1815_v46  ;;  %v1816_v50 = vunpack.i.l.bf16 %v1815_v46 }
 0x110   :  { %v898_v29 = vsel %vm883_vm9, %v881_v51, %v1821_v48  ;;  %v899_v33 = vsel %vm883_vm9, %v882_v31, %v1822_v47 }
 0x111   :  { %v896_v53 = vsel %vm883_vm9, %v879_v52, %v1816_v50  ;;  %v897_v32 = vsel %vm883_vm9, %v880_v26, %v1817_v49  ;;  %v907_v54 = vpack.c.bf16 %v899_v33, %v898_v29 }
 0x112   :  { %v906_v28 = vpack.c.bf16 %v897_v32, %v896_v53 }
 0x114   :  { %1478 = vmatprep.mubr.msk.bf16.mxu1 %vm935_vm10, %v906_v28 }
 0x115   :  { %1479 = vmatmul.mubr.msk.bf16.gmra.mxu1 %vm935_vm10, %v907_v54 }
 0x178   :  { %v1468_v55 = vpop.f32.mrf.mxu0 }
 0x179   :  { %v1066_v5 = vsel %vm49_vm0, %v1468_v55, 0.0 }
 0x17a   :  { %v998_v57 = vpop.f32.mrf.mxu0 }
 0x17b   :  { %v1063_v2 = vsel %vm49_vm0, %v998_v57, 0.0 }
 0x17c   :  { %v1469_v59 = vpop.f32.mrf.mxu0 }
 0x17d   :  { %v1068_v43 = vsel %vm49_vm0, %v1469_v59, 0.0 }
 0x17e   :  { %v1001_v61 = vpop.f32.mrf.mxu0 }
 0x17f   :  { %v1064_v0 = vsel %vm49_vm0, %v1001_v61, 0.0 }
 0x180   :  { %v1065_v3 = vadd.f32 %v1064_v0, %v1063_v2 }
 0x182   :  { %v1067_v6 = vadd.f32 %v1066_v5, %v1065_v3 }
 0x184   :  { %v1069_v10 = vadd.f32 %v1068_v43, %v1067_v6 }
 0x198   :  { %v2287_v63 = vpop.f32.mrf.mxu0 }
 0x199   :  { %v1074_v13 = vsel %vm49_vm0, %v2287_v63, 0.0 }
 0x19a   :  { %v1014_v1 = vpop.f32.mrf.mxu0 }
 0x19b   :  { %v1070_v9 = vsel %vm49_vm0, %v1014_v1, 0.0 }
 0x19c   :  { %v1473_v4 = vpop.f32.mrf.mxu0  ;;  %v1071_v11 = vadd.f32 %v1070_v9, %v1069_v10 }
 0x19d   :  { %v1076_v16 = vsel %vm49_vm0, %v1473_v4, 0.0 }
 0x19e   :  { %v1017_v7 = vpop.f32.mrf.mxu0 }
 0x19f   :  { %v1072_v27 = vsel %vm49_vm0, %v1017_v7, 0.0 }
 0x1a0   :  { %v1073_v58 = vadd.f32 %v1072_v27, %v1071_v11 }
 0x1a2   :  { %v1075_v14 = vadd.f32 %v1074_v13, %v1073_v58 }
 0x1a4   :  { %v1077_v18 = vadd.f32 %v1076_v16, %v1075_v14 }
 0x1b8   :  { %v2292_v8 = vpop.f32.mrf.mxu1 }
 0x1b9   :  { %v1082_v21 = vsel %vm49_vm0, %v2292_v8, 0.0 }
 0x1ba   :  { %v1030_v56 = vpop.f32.mrf.mxu1 }
 0x1bb   :  { %v1078_v17 = vsel %vm49_vm0, %v1030_v56, 0.0 }
 0x1bc   :  { %v2297_v12 = vpop.f32.mrf.mxu1  ;;  %v1079_v20 = vadd.f32 %v1078_v17, %v1077_v18 }
 0x1bd   :  { %v1084_v24 = vsel %vm49_vm0, %v2297_v12, 0.0 }
 0x1be   :  { %v1033_v15 = vpop.f32.mrf.mxu1 }
 0x1bf   :  { %v1080_v19 = vsel %vm49_vm0, %v1033_v15, 0.0 }
 0x1c0   :  { %v1081_v60 = vadd.f32 %v1080_v19, %v1079_v20 }
 0x1c2   :  { %v1083_v62 = vadd.f32 %v1082_v21, %v1081_v60 }
 0x1c4   :  { %v1085_v25 = vadd.f32 %v1084_v24, %v1083_v62 }
 0x1d5   :  { %v2306_v22 = vpop.f32.mrf.mxu1 }
 0x1d6   :  { %v1090_v38 = vsel %vm49_vm0, %v2306_v22, 0.0 }
 0x1d7   :  { %v1046_v23 = vpop.f32.mrf.mxu1 }
 0x1d8   :  { %v1086_v41 = vsel %vm49_vm0, %v1046_v23, 0.0 }
 0x1d9   :  { %v2311_v30 = vpop.f32.mrf.mxu1  ;;  %v1087_v34 = vadd.f32 %v1086_v41, %v1085_v25 }
 0x1da   :  { %v1092_v40 = vsel %vm49_vm0, %v2311_v30, 0.0 }
 0x1db   :  { %v1049_v35 = vpop.f32.mrf.mxu1 }
 0x1dc   :  { %v1088_v36 = vsel %vm49_vm0, %v1049_v35, 0.0 }
 0x1dd   :  { %v1089_v37 = vadd.f32 %v1088_v36, %v1087_v34 }
 0x1df   :  { %v1091_v39 = vadd.f32 %v1090_v38, %v1089_v37 }
 0x1e1   :  { %v1093_v42 = vadd.f32 %v1092_v40, %v1091_v39 }
 0x1e3   :  { %v1094_v44 = vrot.slane %v1093_v42, 4 }
 0x1e5   :  { %v1095_v45 = vadd.f32 %v1094_v44, %v1093_v42 }
 0x1e7   :  { %v1096_v46 = vrot.slane %v1095_v45, 2 }
 0x1e9   :  { %v1097_v47 = vadd.f32 %v1096_v46, %v1095_v45 }
 0x1eb   :  { %v1098_v48 = vrot.slane %v1097_v47, 1 }
 0x1ed   :  { %v1099_v49 = vadd.f32 %v1098_v48, %v1097_v47 }
 0x1ef   :  { %v1101_v50 = vmul.f32 0.0078125, %v1099_v49 }
 0x1f1   :  { %v2318_v51 = vsub.f32 %v998_v57, %v1101_v50  ;;  %v2320_v31 = vsub.f32 %v1001_v61, %v1101_v50  ;;  %v2322_v52 = vsub.f32 %v1468_v55, %v1101_v50  ;;  %v2324_v26 = vsub.f32 %v1469_v59, %v1101_v50 }
 0x1f2   :  { %v2330_v53 = vsub.f32 %v1014_v1, %v1101_v50  ;;  %v2334_v54 = vsub.f32 %v1017_v7, %v1101_v50  ;;  %v2341_v61 = vsub.f32 %v2287_v63, %v1101_v50  ;;  %v2346_v3 = vsub.f32 %v1473_v4, %v1101_v50 }
 0x1f3   :  { %v1118_v29 = vmul.f32 %v2318_v51, %v2318_v51  ;;  %v1119_v33 = vmul.f32 %v2320_v31, %v2320_v31  ;;  %v1120_v32 = vmul.f32 %v2322_v52, %v2322_v52  ;;  %v1121_v28 = vmul.f32 %v2324_v26, %v2324_v26 }
 0x1f4   :  { %v1122_v0 = vmul.f32 %v2330_v53, %v2330_v53  ;;  %v1123_v5 = vmul.f32 %v2334_v54, %v2334_v54  ;;  %v2351_v43 = vsub.f32 %v1030_v56, %v1101_v50  ;;  %v1124_v63 = vmul.f32 %v2341_v61, %v2341_v61 }
 0x1f5   :  { %v1134_v55 = vsel %vm49_vm0, %v1118_v29, 0.0  ;;  %v1135_v57 = vsel %vm49_vm0, %v1119_v33, 0.0  ;;  %v1137_v1 = vsel %vm49_vm0, %v1120_v32, 0.0  ;;  %v1139_v6 = vsel %vm49_vm0, %v1121_v28, 0.0 }
 0x1f6   :  { %v1136_v59 = vadd.f32 %v1135_v57, %v1134_v55  ;;  %v1141_v9 = vsel %vm49_vm0, %v1122_v0, 0.0  ;;  %v2356_v27 = vsub.f32 %v1033_v15, %v1101_v50  ;;  %v1125_v4 = vmul.f32 %v2346_v3, %v2346_v3 }
 0x1f7   :  { %v1143_v11 = vsel %vm49_vm0, %v1123_v5, 0.0  ;;  %v2362_v13 = vsub.f32 %v2292_v8, %v1101_v50  ;;  %v1126_v56 = vmul.f32 %v2351_v43, %v2351_v43  ;;  %v1145_v14 = vsel %vm49_vm0, %v1124_v63, 0.0  ;;  %v2408_v5 = vld [vmem:[%s2669_s2] ss:$0 sm:$0xff] }
 0x1f8   :  { %v1138_v2 = vadd.f32 %v1137_v1, %v1136_v59  ;;  %v2368_v17 = vsub.f32 %v2297_v12, %v1101_v50  ;;  %v1127_v15 = vmul.f32 %v2356_v27, %v2356_v27  ;;  %v1147_v18 = vsel %vm49_vm0, %v1125_v4, 0.0 }
 0x1f9   :  { %v2373_v20 = vsub.f32 %v1046_v23, %v1101_v50  ;;  %v1128_v8 = vmul.f32 %v2362_v13, %v2362_v13  ;;  %v1149_v60 = vsel %vm49_vm0, %v1126_v56, 0.0  ;;  %v2378_v62 = vsub.f32 %v1049_v35, %v1101_v50 }
 0x1fa   :  { %v1140_v7 = vadd.f32 %v1139_v6, %v1138_v2  ;;  %v1129_v12 = vmul.f32 %v2368_v17, %v2368_v17  ;;  %v1151_v24 = vsel %vm49_vm0, %v1127_v15, 0.0  ;;  %v2384_v25 = vsub.f32 %v2306_v22, %v1101_v50 }
 0x1fb   :  { %v1130_v23 = vmul.f32 %v2373_v20, %v2373_v20  ;;  %v1153_v34 = vsel %vm49_vm0, %v1128_v8, 0.0  ;;  %v2390_v37 = vsub.f32 %v2311_v30, %v1101_v50  ;;  %v1131_v35 = vmul.f32 %v2378_v62, %v2378_v62 }
 0x1fc   :  { %v1142_v10 = vadd.f32 %v1141_v9, %v1140_v7  ;;  %v1155_v38 = vsel %vm49_vm0, %v1129_v12, 0.0  ;;  %v1132_v40 = vmul.f32 %v2384_v25, %v2384_v25 }
 0x1fd   :  { %v1157_v22 = vsel %vm49_vm0, %v1130_v23, 0.0  ;;  %v1133_v44 = vmul.f32 %v2390_v37, %v2390_v37  ;;  %v1159_v45 = vsel %vm49_vm0, %v1131_v35, 0.0 }
 0x1fe   :  { %v1144_v58 = vadd.f32 %v1143_v11, %v1142_v10  ;;  %v1161_v30 = vsel %vm49_vm0, %v1132_v40, 0.0  ;;  %v2417_v10 = vld [vmem:[%s2670_s3] ss:$0 sm:$0xff] }
 0x1ff   :  { %v1163_v48 = vsel %vm49_vm0, %v1133_v44, 0.0 }
 0x200   :  { %v1146_v16 = vadd.f32 %v1145_v14, %v1144_v58 }
 0x202   :  { %v1148_v19 = vadd.f32 %v1147_v18, %v1146_v16 }
 0x204   :  { %v1150_v21 = vadd.f32 %v1149_v60, %v1148_v19 }
 0x206   :  { %v1152_v41 = vadd.f32 %v1151_v24, %v1150_v21 }
 0x208   :  { %v1154_v36 = vadd.f32 %v1153_v34, %v1152_v41 }
 0x20a   :  { %v1156_v39 = vadd.f32 %v1155_v38, %v1154_v36 }
 0x20c   :  { %v1158_v42 = vadd.f32 %v1157_v22, %v1156_v39 }
 0x20e   :  { %v1160_v46 = vadd.f32 %v1159_v45, %v1158_v42 }
 0x210   :  { %v1162_v47 = vadd.f32 %v1161_v30, %v1160_v46 }
 0x212   :  { %v1164_v49 = vadd.f32 %v1163_v48, %v1162_v47 }
 0x214   :  { %v1165_v50 = vrot.slane %v1164_v49, 4 }
 0x216   :  { %v1166_v29 = vadd.f32 %v1165_v50, %v1164_v49 }
 0x218   :  { %v1167_v33 = vrot.slane %v1166_v29, 2 }
 0x21a   :  { %v1168_v32 = vadd.f32 %v1167_v33, %v1166_v29 }
 0x21c   :  { %v1169_v28 = vrot.slane %v1168_v32, 1 }
 0x21e   :  { %v1170_v55 = vadd.f32 %v1169_v28, %v1168_v32 }
 0x220   :  { %v1171_v57 = vmul.f32 0.0078125, %v1170_v55 }
 0x222   :  { %v1172_v59 = vadd.f32 1e-05, %v1171_v57 }
 0x224   :  { %1828 = vrsqrt.f32 %v1172_v59 }
 0x231   :  { %v1829_v0 = vpop.eup %1828 }
 0x232   :  { %v1174_v1 = vmul.f32 %v1829_v0, %v2318_v51  ;;  %v1175_v2 = vmul.f32 %v1829_v0, %v2320_v31  ;;  %v1176_v6 = vmul.f32 %v1829_v0, %v2322_v52  ;;  %v1177_v7 = vmul.f32 %v1829_v0, %v2324_v26 }
 0x233   :  { %v1178_v51 = vmul.f32 %v1829_v0, %v2330_v53  ;;  %v1179_v4 = vmul.f32 %v1829_v0, %v2334_v54  ;;  %v1180_v58 = vmul.f32 %v1829_v0, %v2341_v61  ;;  %v1181_v53 = vmul.f32 %v1829_v0, %v2346_v3 }
 0x234   :  { %v1196_v63 = vmul.f32 %v2408_v5, %v1174_v1  ;;  %v1197_v9 = vmul.f32 %v2408_v5, %v1175_v2  ;;  %v1198_v31 = vmul.f32 %v2408_v5, %v1176_v6  ;;  %v1199_v11 = vmul.f32 %v2408_v5, %v1177_v7 }
 0x235   :  { %v1200_v56 = vmul.f32 %v2408_v5, %v1178_v51  ;;  %v1201_v16 = vmul.f32 %v2408_v5, %v1179_v4  ;;  %v1182_v61 = vmul.f32 %v1829_v0, %v2351_v43  ;;  %v1202_v8 = vmul.f32 %v2408_v5, %v1180_v58 }
 0x236   :  { %v2424_v52 = vadd.f32 %v2417_v10, %v1196_v63  ;;  %v2427_v26 = vadd.f32 %v2417_v10, %v1197_v9  ;;  %v2432_v14 = vadd.f32 %v2417_v10, %v1198_v31  ;;  %v2437_v54 = vadd.f32 %v2417_v10, %v1199_v11 }
 0x237   :  { %v2446_v60 = vadd.f32 %v2417_v10, %v1200_v56  ;;  %v1183_v12 = vmul.f32 %v1829_v0, %v2356_v27  ;;  %v1203_v24 = vmul.f32 %v2408_v5, %v1181_v53  ;;  %v2453_v41 = vadd.f32 %v2417_v10, %v1201_v16 }
 0x238   :  { %v1236_v15 = vsel %vm49_vm0, %v2424_v52, 0.0  ;;  %v1237_v18 = vsel %vm49_vm0, %v2427_v26, 0.0  ;;  %v1239_v3 = vsel %vm49_vm0, %v2432_v14, 0.0  ;;  %v1241_v23 = vsel %vm49_vm0, %v2437_v54, 0.0 }
 0x239   :  { %v1238_v19 = vadd.f32 %v1237_v18, %v1236_v15  ;;  %v1184_v34 = vmul.f32 %v1829_v0, %v2362_v13  ;;  %v1204_v36 = vmul.f32 %v2408_v5, %v1182_v61  ;;  %v1224_v35 = vadd.f32 %v2417_v10, %v1202_v8 }
 0x23a   :  { %v1243_v38 = vsel %vm49_vm0, %v2446_v60, 0.0  ;;  %v1185_v27 = vmul.f32 %v1829_v0, %v2368_v17  ;;  %v1205_v40 = vmul.f32 %v2408_v5, %v1183_v12  ;;  %v1225_v22 = vadd.f32 %v2417_v10, %v1203_v24 }
 0x23b   :  { %v1240_v21 = vadd.f32 %v1239_v3, %v1238_v19  ;;  %v1245_v42 = vsel %vm49_vm0, %v2453_v41, 0.0  ;;  %v1186_v13 = vmul.f32 %v1829_v0, %v2373_v20  ;;  %v1206_v45 = vmul.f32 %v2408_v5, %v1184_v34 }
 0x23c   :  { %v1226_v46 = vadd.f32 %v2417_v10, %v1204_v36  ;;  %v1247_v30 = vsel %vm49_vm0, %v1224_v35, 0.0  ;;  %v1187_v48 = vmul.f32 %v1829_v0, %v2378_v62  ;;  %v1207_v17 = vmul.f32 %v2408_v5, %v1185_v27 }
 0x23d   :  { %v1242_v43 = vadd.f32 %v1241_v23, %v1240_v21  ;;  %v1227_v49 = vadd.f32 %v2417_v10, %v1205_v40  ;;  %v1249_v50 = vsel %vm49_vm0, %v1225_v22, 0.0  ;;  %v1188_v33 = vmul.f32 %v1829_v0, %v2384_v25 }
 0x23e   :  { %v1208_v20 = vmul.f32 %v2408_v5, %v1186_v13  ;;  %v1228_v32 = vadd.f32 %v2417_v10, %v1206_v45  ;;  %v1251_v28 = vsel %vm49_vm0, %v1226_v46, 0.0  ;;  %v1189_v57 = vmul.f32 %v1829_v0, %v2390_v37 }
 0x23f   :  { %v1244_v39 = vadd.f32 %v1243_v38, %v1242_v43  ;;  %v1209_v62 = vmul.f32 %v2408_v5, %v1187_v48  ;;  %v1229_v59 = vadd.f32 %v2417_v10, %v1207_v17  ;;  %v1253_v1 = vsel %vm49_vm0, %v1227_v49, 0.0 }
 0x240   :  { %v1210_v6 = vmul.f32 %v2408_v5, %v1188_v33  ;;  %v1230_v25 = vadd.f32 %v2417_v10, %v1208_v20  ;;  %v1255_v7 = vsel %vm49_vm0, %v1228_v32, 0.0  ;;  %v1211_v9 = vmul.f32 %v2408_v5, %v1189_v57 }
 0x241   :  { %v1246_v44 = vadd.f32 %v1245_v42, %v1244_v39  ;;  %v1231_v51 = vadd.f32 %v2417_v10, %v1209_v62  ;;  %v1257_v37 = vsel %vm49_vm0, %v1229_v59, 0.0 }
 0x242   :  { %v1232_v31 = vadd.f32 %v2417_v10, %v1210_v6  ;;  %v1259_v4 = vsel %vm49_vm0, %v1230_v25, 0.0  ;;  %v1233_v58 = vadd.f32 %v2417_v10, %v1211_v9 }
 0x243   :  { %v1248_v47 = vadd.f32 %v1247_v30, %v1246_v44  ;;  %v1261_v56 = vsel %vm49_vm0, %v1231_v51, 0.0 }
 0x244   :  { %v1263_v16 = vsel %vm49_vm0, %v1232_v31, 0.0  ;;  %v1265_v5 = vsel %vm49_vm0, %v1233_v58, 0.0 }
 0x245   :  { %v1250_v29 = vadd.f32 %v1249_v50, %v1248_v47 }
 0x247   :  { %v1252_v55 = vadd.f32 %v1251_v28, %v1250_v29 }
 0x249   :  { %v1254_v2 = vadd.f32 %v1253_v1, %v1252_v55 }
 0x24b   :  { %v1256_v63 = vadd.f32 %v1255_v7, %v1254_v2 }
 0x24d   :  { %v1258_v0 = vadd.f32 %v1257_v37, %v1256_v63 }
 0x24f   :  { %v1260_v11 = vadd.f32 %v1259_v4, %v1258_v0 }
 0x251   :  { %v1262_v53 = vadd.f32 %v1261_v56, %v1260_v11 }
 0x253   :  { %v1264_v15 = vadd.f32 %v1263_v16, %v1262_v53 }
 0x255   :  { %v1266_v18 = vadd.f32 %v1265_v5, %v1264_v15 }
 0x257   :  { %v1267_v19 = vrot.slane %v1266_v18, 4 }
 0x259   :  { %v1268_v61 = vadd.f32 %v1267_v19, %v1266_v18 }
 0x25b   :  { %v1269_v8 = vrot.slane %v1268_v61, 2 }
 0x25d   :  { %v1270_v3 = vadd.f32 %v1269_v8, %v1268_v61 }
 0x25f   :  { %v1271_v21 = vrot.slane %v1270_v3, 1 }
 0x261   :  { %v1272_v12 = vadd.f32 %v1271_v21, %v1270_v3 }
 0x263   :  { %v1273_v24 = vmul.f32 0.0078125, %v1272_v12 }
 0x265   :  { %v2496_v23 = vsub.f32 %v2424_v52, %v1273_v24  ;;  %v2499_v10 = vsub.f32 %v2427_v26, %v1273_v24  ;;  %v2502_v43 = vsub.f32 %v2432_v14, %v1273_v24  ;;  %v2505_v34 = vsub.f32 %v2437_v54, %v1273_v24 }
 0x266   :  { %v2508_v36 = vsub.f32 %v2446_v60, %v1273_v24  ;;  %v2511_v38 = vsub.f32 %v2453_v41, %v1273_v24  ;;  %v2513_v39 = vsub.f32 %v1224_v35, %v1273_v24  ;;  %v2515_v27 = vsub.f32 %v1225_v22, %v1273_v24 }
 0x267   :  { %v2517_v52 = vsub.f32 %v1226_v46, %v1273_v24  ;;  %v2519_v26 = vsub.f32 %v1227_v49, %v1273_v24  ;;  %v2521_v40 = vsub.f32 %v1228_v32, %v1273_v24  ;;  %v2523_v14 = vsub.f32 %v1229_v59, %v1273_v24 }
 0x268   :  { %v2525_v54 = vsub.f32 %v1230_v25, %v1273_v24  ;;  %v2527_v42 = vsub.f32 %v1231_v51, %v1273_v24  ;;  %v2529_v60 = vsub.f32 %v1232_v31, %v1273_v24  ;;  %v2531_v41 = vsub.f32 %v1233_v58, %v1273_v24 }
 0x269   :  { %v1290_v35 = vmul.f32 %v2496_v23, %v2496_v23  ;;  %v1291_v22 = vmul.f32 %v2499_v10, %v2499_v10  ;;  %v1292_v44 = vmul.f32 %v2502_v43, %v2502_v43  ;;  %v1293_v13 = vmul.f32 %v2505_v34, %v2505_v34 }
 0x26a   :  { %v1294_v47 = vmul.f32 %v2508_v36, %v2508_v36  ;;  %v1295_v49 = vmul.f32 %v2511_v38, %v2511_v38  ;;  %v1296_v33 = vmul.f32 %v2513_v39, %v2513_v39  ;;  %v1297_v28 = vmul.f32 %v2515_v27, %v2515_v27 }
 0x26b   :  { %v1306_v45 = vsel %vm49_vm0, %v1290_v35, 0.0  ;;  %v1307_v46 = vsel %vm49_vm0, %v1291_v22, 0.0  ;;  %v1309_v48 = vsel %vm49_vm0, %v1292_v44, 0.0  ;;  %v1311_v50 = vsel %vm49_vm0, %v1293_v13, 0.0 }
 0x26c   :  { %v1308_v30 = vadd.f32 %v1307_v46, %v1306_v45  ;;  %v1313_v20 = vsel %vm49_vm0, %v1294_v47, 0.0  ;;  %v1315_v55 = vsel %vm49_vm0, %v1295_v49, 0.0  ;;  %v1298_v62 = vmul.f32 %v2517_v52, %v2517_v52 }
 0x26d   :  { %v1317_v59 = vsel %vm49_vm0, %v1296_v33, 0.0  ;;  %v1299_v2 = vmul.f32 %v2519_v26, %v2519_v26  ;;  %v1319_v6 = vsel %vm49_vm0, %v1297_v28, 0.0  ;;  %v1300_v7 = vmul.f32 %v2521_v40, %v2521_v40 }
 0x26e   :  { %v1310_v17 = vadd.f32 %v1309_v48, %v1308_v30  ;;  %v1321_v63 = vsel %vm49_vm0, %v1298_v62, 0.0  ;;  %v1301_v51 = vmul.f32 %v2523_v14, %v2523_v14  ;;  %v1302_v31 = vmul.f32 %v2525_v54, %v2525_v54 }
 0x26f   :  { %v1323_v37 = vsel %vm49_vm0, %v1299_v2, 0.0  ;;  %v1325_v4 = vsel %vm49_vm0, %v1300_v7, 0.0  ;;  %v1303_v58 = vmul.f32 %v2527_v42, %v2527_v42  ;;  %v1304_v16 = vmul.f32 %v2529_v60, %v2529_v60 }
 0x270   :  { %v1312_v29 = vadd.f32 %v1311_v50, %v1310_v17  ;;  %v1327_v56 = vsel %vm49_vm0, %v1301_v51, 0.0  ;;  %v1329_v15 = vsel %vm49_vm0, %v1302_v31, 0.0  ;;  %v1305_v18 = vmul.f32 %v2531_v41, %v2531_v41 }
 0x271   :  { %v1331_v19 = vsel %vm49_vm0, %v1303_v58, 0.0  ;;  %v1333_v8 = vsel %vm49_vm0, %v1304_v16, 0.0 }
 0x272   :  { %v1314_v32 = vadd.f32 %v1313_v20, %v1312_v29  ;;  %v1335_v21 = vsel %vm49_vm0, %v1305_v18, 0.0  ;;  %v1441_v29 = vld [vmem:[%s2671_s4] ss:$0 sm:$0xff] }
 0x274   :  { %v1316_v57 = vadd.f32 %v1315_v55, %v1314_v32 }
 0x276   :  { %v1318_v1 = vadd.f32 %v1317_v59, %v1316_v57 }
 0x278   :  { %v1320_v25 = vadd.f32 %v1319_v6, %v1318_v1 }
 0x27a   :  { %v1322_v9 = vadd.f32 %v1321_v63, %v1320_v25 }
 0x27c   :  { %v1324_v0 = vadd.f32 %v1323_v37, %v1322_v9 }
 0x27e   :  { %v1326_v11 = vadd.f32 %v1325_v4, %v1324_v0 }
 0x280   :  { %v1328_v53 = vadd.f32 %v1327_v56, %v1326_v11 }
 0x282   :  { %v1330_v5 = vadd.f32 %v1329_v15, %v1328_v53 }
 0x284   :  { %v1332_v61 = vadd.f32 %v1331_v19, %v1330_v5 }
 0x286   :  { %v1334_v3 = vadd.f32 %v1333_v8, %v1332_v61 }
 0x288   :  { %v1336_v12 = vadd.f32 %v1335_v21, %v1334_v3 }
 0x28a   :  { %v1337_v24 = vrot.slane %v1336_v12, 4 }
 0x28c   :  { %v1338_v35 = vadd.f32 %v1337_v24, %v1336_v12 }
 0x28e   :  { %v1339_v22 = vrot.slane %v1338_v35, 2 }
 0x290   :  { %v1340_v44 = vadd.f32 %v1339_v22, %v1338_v35 }
 0x292   :  { %v1341_v13 = vrot.slane %v1340_v44, 1 }
 0x294   :  { %v1342_v45 = vadd.f32 %v1341_v13, %v1340_v44 }
 0x296   :  { %v1343_v46 = vmul.f32 0.0078125, %v1342_v45 }
 0x298   :  { %v1344_v30 = vadd.f32 1e-05, %v1343_v46 }
 0x29a   :  { %1830 = vrsqrt.f32 %v1344_v30 }
 0x2a7   :  { %v1831_v47 = vpop.eup %1830 }
 0x2a8   :  { %v1346_v48 = vmul.f32 %v1831_v47, %v2496_v23  ;;  %v1347_v17 = vmul.f32 %v1831_v47, %v2499_v10  ;;  %v1348_v49 = vmul.f32 %v1831_v47, %v2502_v43  ;;  %v1349_v50 = vmul.f32 %v1831_v47, %v2505_v34 }
 0x2a9   :  { %v1350_v33 = vmul.f32 %v1831_v47, %v2508_v36  ;;  %v1351_v20 = vmul.f32 %v1831_v47, %v2511_v38  ;;  %v1352_v32 = vmul.f32 %v1831_v47, %v2513_v39  ;;  %v1353_v28 = vmul.f32 %v1831_v47, %v2515_v27 }
 0x2aa   :  { %v1354_v23 = vmul.f32 %v1831_v47, %v2517_v52  ;;  %v1355_v10 = vmul.f32 %v1831_v47, %v2519_v26  ;;  %v1356_v43 = vmul.f32 %v1831_v47, %v2521_v40  ;;  %v1357_v34 = vmul.f32 %v1831_v47, %v2523_v14  ;;  %v1442_v52 = vld [vmem:[%s2672_s5] ss:$0 sm:$0xff] }
 0x2ab   :  { %v1358_v55 = vmul.f32 %v1831_v47, %v2525_v54  ;;  %v1359_v57 = vmul.f32 %v1831_v47, %v2527_v42  ;;  %v1360_v36 = vmul.f32 %v1831_v47, %v2529_v60  ;;  %v1361_v38 = vmul.f32 %v1831_v47, %v2531_v41 }
 0x2ac   :  { %v1368_v62 = vmul.f32 %v1441_v29, %v1346_v48  ;;  %v1369_v39 = vmul.f32 %v1441_v29, %v1347_v17  ;;  %v1370_v59 = vmul.f32 %v1441_v29, %v1348_v49  ;;  %v1371_v27 = vmul.f32 %v1441_v29, %v1349_v50 }
 0x2ad   :  { %v1372_v26 = vmul.f32 %v1441_v29, %v1350_v33  ;;  %v1373_v40 = vmul.f32 %v1441_v29, %v1351_v20  ;;  %v1374_v1 = vmul.f32 %v1441_v29, %v1352_v32  ;;  %v1375_v14 = vmul.f32 %v1441_v29, %v1353_v28 }
 0x2ae   :  { %v1376_v2 = vmul.f32 %v1441_v29, %v1354_v23  ;;  %v1377_v54 = vmul.f32 %v1441_v29, %v1355_v10  ;;  %v1378_v6 = vmul.f32 %v1441_v29, %v1356_v43  ;;  %v1379_v42 = vmul.f32 %v1441_v29, %v1357_v34 }
 0x2af   :  { %v1380_v25 = vmul.f32 %v1441_v29, %v1358_v55  ;;  %v1381_v60 = vmul.f32 %v1441_v29, %v1359_v57  ;;  %v1382_v7 = vmul.f32 %v1441_v29, %v1360_v36  ;;  %v1383_v41 = vmul.f32 %v1441_v29, %v1361_v38 }
 0x2b0   :  { %v1390_v63 = vadd.f32 %v1442_v52, %v1368_v62  ;;  %v1391_v9 = vadd.f32 %v1442_v52, %v1369_v39  ;;  %v1392_v51 = vadd.f32 %v1442_v52, %v1370_v59  ;;  %v1393_v37 = vadd.f32 %v1442_v52, %v1371_v27 }
 0x2b1   :  { %v1394_v0 = vadd.f32 %v1442_v52, %v1372_v26  ;;  %v1395_v31 = vadd.f32 %v1442_v52, %v1373_v40  ;;  %v1396_v4 = vadd.f32 %v1442_v52, %v1374_v1  ;;  %v1397_v11 = vadd.f32 %v1442_v52, %v1375_v14 }
 0x2b2   :  { %v1398_v58 = vadd.f32 %v1442_v52, %v1376_v2  ;;  %v1399_v56 = vadd.f32 %v1442_v52, %v1377_v54  ;;  %v1400_v53 = vadd.f32 %v1442_v52, %v1378_v6  ;;  %v1401_v16 = vadd.f32 %v1442_v52, %v1379_v42  ;;  %1406 = vst.msk [vmem:[%s2673_s6] sm:$0xff] %vm49_vm0, %v1390_v63 }
 0x2b3   :  { %1407 = vst.msk [vmem:[%s2673_s6 + $0x8] sm:$0xff] %vm49_vm0, %v1391_v9  ;;  %1408 = vst.msk [vmem:[%s2673_s6 + $0x10] sm:$0xff] %vm49_vm0, %v1392_v51  ;;  %v1402_v15 = vadd.f32 %v1442_v52, %v1380_v25  ;;  %v1403_v5 = vadd.f32 %v1442_v52, %v1381_v60  ;;  %v1404_v18 = vadd.f32 %v1442_v52, %v1382_v7 }
 0x2b4   :  { %1409 = vst.msk [vmem:[%s2673_s6 + $0x18] sm:$0xff] %vm49_vm0, %v1393_v37  ;;  %v1405_v19 = vadd.f32 %v1442_v52, %v1383_v41  ;;  %1410 = vst.msk [vmem:[%s2673_s6 + $0x20] sm:$0xff] %vm49_vm0, %v1394_v0 }
 0x2b5   :  { %1411 = vst.msk [vmem:[%s2673_s6 + $0x28] sm:$0xff] %vm49_vm0, %v1395_v31  ;;  %1412 = vst.msk [vmem:[%s2673_s6 + $0x30] sm:$0xff] %vm49_vm0, %v1396_v4 }
 0x2b6   :  { %1413 = vst.msk [vmem:[%s2673_s6 + $0x38] sm:$0xff] %vm49_vm0, %v1397_v11  ;;  %1414 = vst.msk [vmem:[%s2673_s6 + $0x40] sm:$0xff] %vm49_vm0, %v1398_v58 }
 0x2b7   :  { %1415 = vst.msk [vmem:[%s2673_s6 + $0x48] sm:$0xff] %vm49_vm0, %v1399_v56  ;;  %1416 = vst.msk [vmem:[%s2673_s6 + $0x50] sm:$0xff] %vm49_vm0, %v1400_v53 }
 0x2b8   :  { %1417 = vst.msk [vmem:[%s2673_s6 + $0x58] sm:$0xff] %vm49_vm0, %v1401_v16  ;;  %1418 = vst.msk [vmem:[%s2673_s6 + $0x60] sm:$0xff] %vm49_vm0, %v1402_v15 }
 0x2b9   :  { %1419 = vst.msk [vmem:[%s2673_s6 + $0x68] sm:$0xff] %vm49_vm0, %v1403_v5  ;;  %1420 = vst.msk [vmem:[%s2673_s6 + $0x70] sm:$0xff] %vm49_vm0, %v1404_v18 }
 0x2ba   :  { %1421 = vst.msk [vmem:[%s2673_s6 + $0x78] sm:$0xff] %vm49_vm0, %v1405_v19 }

// kernel: downsample_forward.6
= control target key start
LH: loop header
LB: loop body
LE: loop exit
PB: predicated region body
PF: predicated region fallthrough
CT: control target
= control target key end

     0   :  { %vm39_vm0 = vcmask 31744   ;;  %vm41_vm1 = vcmask 25600   ;;  %v2101_v1 = vmov 0.0   ;;  %s2102_s21 = smov 8   ;;  %s2103_s22 = smov 4   ;;  %vm938_vm2 = vcmask 1041408   ;;  %s3093_s0 = inlined_call_operand.vmem [shape: f32[2,8,8,4], index: 0, kind: input, shape index: {}]   ;;  %s3094_s1 = inlined_call_operand.vmem [shape: bf16[36,8], index: 1, kind: input, shape index: {}]   ;;  %s3095_s2 = inlined_call_operand.vmem [shape: f32[1,8], index: 2, kind: input, shape index: {}]   ;;  %s3096_s3 = inlined_call_operand.vmem [shape: f32[1,8], index: 3, kind: input, shape index: {}]   ;;  %s3097_s4 = inlined_call_operand.vmem [shape: f32[2,8,8,8], index: 4, kind: output, shape index: {}]  }
   0x1   :  { %v18_v0 = vld [vmem:[%s3093_s0] sm:$0xff]  ;;  %40 = vst.msk [vmem:[#allocation2] sm:$0xff] %vm39_vm0, %v2101_v1  ;;  %43 = vst.msk [vmem:[#allocation2 + $0x10] sm:$0xff] %vm39_vm0, %v2101_v1  ;;  %v19_v2 = vld [vmem:[%s3093_s0 + $0x8] sm:$0xff]  ;;  %s2105_s23 = smov 16   ;;  %s2106_s24 = smov 20  }
   0x2   :  { %42 = vst.msk [vmem:[#allocation2 + $0x8] sm:$0x3] %vm41_vm1, %v2101_v1  ;;  %44 = vst.msk [vmem:[#allocation2 + $0x18] sm:$0x3] %vm41_vm1, %v2101_v1  ;;  %v20_v3 = vld [vmem:[%s3093_s0 + $0x10] sm:$0xff]  ;;  %v21_v4 = vld [vmem:[%s3093_s0 + $0x18] sm:$0xff] }
   0x3   :  { %45 = vst.msk [vmem:[#allocation2 + $0x20] sm:$0xff] %vm39_vm0, %v2101_v1  ;;  %47 = vst.msk [vmem:[#allocation2 + $0x30] sm:$0xff] %vm39_vm0, %v2101_v1  ;;  %v22_v5 = vld [vmem:[%s3093_s0 + $0x20] sm:$0xff]  ;;  %v23_v6 = vld [vmem:[%s3093_s0 + $0x28] sm:$0xff]  ;;  %s2107_s29 = smov 24   ;;  %s2108_s6 = smov 28  }
   0x4   :  { %46 = vst.msk [vmem:[#allocation2 + $0x28] sm:$0x3] %vm41_vm1, %v2101_v1  ;;  %48 = vst.msk [vmem:[#allocation2 + $0x38] sm:$0x3] %vm41_vm1, %v2101_v1  ;;  %v24_v7 = vld [vmem:[%s3093_s0 + $0x30] sm:$0xff]  ;;  %v25_v8 = vld [vmem:[%s3093_s0 + $0x38] sm:$0xff] }
   0x5   :  { %49 = vst.msk [vmem:[#allocation2 + $0x40] sm:$0xff] %vm39_vm0, %v2101_v1  ;;  %51 = vst.msk [vmem:[#allocation2 + $0x50] sm:$0xff] %vm39_vm0, %v2101_v1  ;;  %v26_v9 = vld [vmem:[%s3093_s0 + $0x40] sm:$0xff]  ;;  %v27_v10 = vld [vmem:[%s3093_s0 + $0x48] sm:$0xff]  ;;  %s2109_s7 = smov 32   ;;  %vm771_vm3 = vcmask 64512  }
   0x6   :  { %50 = vst.msk [vmem:[#allocation2 + $0x48] sm:$0x3] %vm41_vm1, %v2101_v1  ;;  %52 = vst.msk [vmem:[#allocation2 + $0x58] sm:$0x3] %vm41_vm1, %v2101_v1  ;;  %v28_v11 = vld [vmem:[%s3093_s0 + $0x50] sm:$0xff]  ;;  %v29_v12 = vld [vmem:[%s3093_s0 + $0x58] sm:$0xff] }
   0x7   :  { %53 = vst.msk [vmem:[#allocation2 + $0x60] sm:$0xff] %vm39_vm0, %v2101_v1  ;;  %55 = vst.msk [vmem:[#allocation2 + $0x70] sm:$0xff] %vm39_vm0, %v2101_v1  ;;  %v30_v13 = vld [vmem:[%s3093_s0 + $0x60] sm:$0xff]  ;;  %v31_v14 = vld [vmem:[%s3093_s0 + $0x68] sm:$0xff]  ;;  %vm788_vm4 = vcmask 97280   ;;  %vm805_vm5 = vcmask 130048  }
   0x8   :  { %54 = vst.msk [vmem:[#allocation2 + $0x68] sm:$0x3] %vm41_vm1, %v2101_v1  ;;  %56 = vst.msk [vmem:[#allocation2 + $0x78] sm:$0x3] %vm41_vm1, %v2101_v1  ;;  %v32_v15 = vld [vmem:[%s3093_s0 + $0x70] sm:$0xff]  ;;  %v33_v16 = vld [vmem:[%s3093_s0 + $0x78] sm:$0xff] }
   0x9   :  { %57 = vst.msk [vmem:[#allocation2 + $0x80] sm:$0xff] %vm39_vm0, %v2101_v1  ;;  %59 = vst.msk [vmem:[#allocation2 + $0x90] sm:$0xff] %vm39_vm0, %v2101_v1  ;;  %v130_v17 = vld [vmem:[#allocation2 + $0x2] sm:$0xff]  ;;  %s2104_s0 = smov 12   ;;  %vm822_vm6 = vcmask 162816   ;;  %vm839_vm7 = vcmask 195584  }
   0xa   :  { %58 = vst.msk [vmem:[#allocation2 + $0x88] sm:$0x3] %vm41_vm1, %v2101_v1  ;;  %60 = vst.msk [vmem:[#allocation2 + $0x98] sm:$0x3] %vm41_vm1, %v2101_v1  ;;  %v114_v18 = vld [vmem:[#allocation2 + $0x1] sm:$0xff]  ;;  %vm856_vm8 = vcmask 228352  }
   0xb   :  { %61 = vst.msk [vmem:[#allocation2 + $0xa0] sm:$0xff] %vm39_vm0, %v2101_v1  ;;  %63 = vst.msk [vmem:[#allocation2 + $0xb0] sm:$0xff] %vm39_vm0, %v2101_v1  ;;  %v2032_v45 = vld [vmem:[%s3094_s1 + $0x10] ss:$0 sps:$4 sm:$0x33]   ;;  %v2033_v46 = vld [vmem:[%s3094_s1 + $0x8] sm:$0xff]  }
   0xc   :  { %62 = vst.msk [vmem:[#allocation2 + $0xa8] sm:$0x3] %vm41_vm1, %v2101_v1  ;;  %64 = vst.msk [vmem:[#allocation2 + $0xb8] sm:$0x3] %vm41_vm1, %v2101_v1  ;;  %1700 = vmatprep.subr.msk.bf16.mxu0 %vm938_vm2, %v2032_v45  ;;  %v940_v47 = vsel %vm938_vm2, %v2032_v45, 0  ;;  %1701 = vmatprep.subr.msk.bf16.mxu1 %vm938_vm2, %v2032_v45  ;;  %v2034_v49 = vld [vmem:[%s3094_s1] sm:$0xff]  }
   0xd   :  { %65 = vst.msk [vmem:[#allocation2 + $0xc0] sm:$0xff] %vm39_vm0, %v2101_v1  ;;  %67 = vst.msk [vmem:[#allocation2 + $0xd0] sm:$0xff] %vm39_vm0, %v2101_v1  ;;  %1673 = vmatpush3.bf16.msra.mxu0 %v940_v47  ;;  %1697 = vmatpush3.bf16.msra.mxu1 %v940_v47  ;;  %vm873_vm9 = vcmask 261120   ;;  %vm913_vm10 = vcmask 293888  }
   0xe   :  { %66 = vst.msk [vmem:[#allocation2 + $0xc8] sm:$0x3] %vm41_vm1, %v2101_v1  ;;  %68 = vst.msk [vmem:[#allocation2 + $0xd8] sm:$0x3] %vm41_vm1, %v2101_v1  ;;  %1674 = vmatprep.subr.bf16.mxu0 %v2033_v46  ;;  %1695 = vmatprep.subr.bf16.mxu1 %v2033_v46 }
   0xf   :  { %69 = vst.msk [vmem:[#allocation2 + $0xe0] sm:$0xff] %vm39_vm0, %v2101_v1  ;;  %71 = vst.msk [vmem:[#allocation2 + $0xf0] sm:$0xff] %vm39_vm0, %v2101_v1 }
  0x10   :  { %70 = vst.msk [vmem:[#allocation2 + $0xe8] sm:$0x3] %vm41_vm1, %v2101_v1  ;;  %72 = vst.msk [vmem:[#allocation2 + $0xf8] sm:$0x3] %vm41_vm1, %v2101_v1 }
  0x11   :  { %73 = vst.msk [vmem:[#allocation2 + $0x100] sm:$0xff] %vm39_vm0, %v2101_v1  ;;  %75 = vst.msk [vmem:[#allocation2 + $0x110] sm:$0xff] %vm39_vm0, %v2101_v1  ;;  %1675 = vmatpush3.bf16.msra.mxu0 %v2033_v46  ;;  %1698 = vmatpush3.bf16.msra.mxu1 %v2033_v46 }
  0x12   :  { %74 = vst.msk [vmem:[#allocation2 + $0x108] sm:$0x3] %vm41_vm1, %v2101_v1  ;;  %76 = vst.msk [vmem:[#allocation2 + $0x118] sm:$0x3] %vm41_vm1, %v2101_v1  ;;  %1676 = vmatprep.subr.bf16.mxu0 %v2034_v49  ;;  %1696 = vmatprep.subr.bf16.mxu1 %v2034_v49 }
  0x13   :  { %77 = vst.msk [vmem:[#allocation2 + $0x120] sm:$0xff] %vm39_vm0, %v2101_v1  ;;  %79 = vst.msk [vmem:[#allocation2 + $0x130] sm:$0xff] %vm39_vm0, %v2101_v1 }
  0x14   :  { %78 = vst.msk [vmem:[#allocation2 + $0x128] sm:$0x3] %vm41_vm1, %v2101_v1  ;;  %80 = vst.msk [vmem:[#allocation2 + $0x138] sm:$0x3] %vm41_vm1, %v2101_v1 }
  0x15   :  { %82 = vst.msk [vmem:[#allocation2 + $0x11] sm:$0xff] %vm39_vm0, %v18_v0  ;;  %83 = vst.msk [vmem:[#allocation2 + $0x21] sm:$0xff] %vm39_vm0, %v19_v2  ;;  %1677 = vmatpush3.bf16.msra.mxu0 %v2034_v49  ;;  %1699 = vmatpush3.bf16.msra.mxu1 %v2034_v49 }
  0x16   :  { %84 = vst.msk [vmem:[#allocation2 + $0x31] sm:$0xff] %vm39_vm0, %v20_v3  ;;  %85 = vst.msk [vmem:[#allocation2 + $0x41] sm:$0xff] %vm39_vm0, %v21_v4 }
  0x17   :  { %86 = vst.msk [vmem:[#allocation2 + $0x51] sm:$0xff] %vm39_vm0, %v22_v5  ;;  %87 = vst.msk [vmem:[#allocation2 + $0x61] sm:$0xff] %vm39_vm0, %v23_v6  ;;  %v202_v5 = vld [vmem:[#allocation2 + $0x90] sm:$0xff] }
  0x18   :  { %88 = vst.msk [vmem:[#allocation2 + $0x71] sm:$0xff] %vm39_vm0, %v24_v7  ;;  %89 = vst.msk [vmem:[#allocation2 + $0x81] sm:$0xff] %vm39_vm0, %v25_v8  ;;  %v218_v8 = vld [vmem:[#allocation2 + $0x91] sm:$0xff] }
  0x19   :  { %90 = vst.msk [vmem:[#allocation2 + $0xb1] sm:$0xff] %vm39_vm0, %v26_v9  ;;  %91 = vst.msk [vmem:[#allocation2 + $0xc1] sm:$0xff] %vm39_vm0, %v27_v10  ;;  %v122_v10 = vld [vmem:[#allocation2 + $0xa1] sm:$0xff] }
  0x1a   :  { %92 = vst.msk [vmem:[#allocation2 + $0xd1] sm:$0xff] %vm39_vm0, %v28_v11  ;;  %93 = vst.msk [vmem:[#allocation2 + $0xe1] sm:$0xff] %vm39_vm0, %v29_v12 }
  0x1b   :  { %94 = vst.msk [vmem:[#allocation2 + $0xf1] sm:$0xff] %vm39_vm0, %v30_v13  ;;  %95 = vst.msk [vmem:[#allocation2 + $0x101] sm:$0xff] %vm39_vm0, %v31_v14 }
  0x1c   :  { %96 = vst.msk [vmem:[#allocation2 + $0x111] sm:$0xff] %vm39_vm0, %v32_v15  ;;  %97 = vst.msk [vmem:[#allocation2 + $0x121] sm:$0xff] %vm39_vm0, %v33_v16  ;;  %v131_v19 = vld [vmem:[#allocation2 + $0x12] sm:$0xff]  ;;  %v132_v21 = vld [vmem:[#allocation2 + $0x22] sm:$0xff] }
  0x1d   :  { %v115_v20 = vld [vmem:[#allocation2 + $0x11] sm:$0xff]  ;;  %v1722_v22 = vpack.i.bf16 %v131_v19, %v130_v17  ;;  %v116_v25 = vld [vmem:[#allocation2 + $0x21] sm:$0xff]  ;;  %v1752_v40 = vpack.i.bf16 %v132_v21, %v131_v19 }
  0x1e   :  { %v1712_v23 = vpack.i.bf16 %v115_v20, %v114_v18  ;;  %v133_v24 = vld [vmem:[#allocation2 + $0x32] sm:$0xff]  ;;  %v2244_v30 = vld [vmem:[#allocation2 + $0x40] sm:$0xff]  ;;  %v1742_v37 = vpack.i.bf16 %v116_v25, %v115_v20 }
  0x1f   :  { %v117_v26 = vld [vmem:[#allocation2 + $0x31] sm:$0xff]  ;;  %1723 = vrot.lane.b32.xlu1 %v1722_v22, %s2102_s21  ;;  %v1727_v27 = vpack.i.bf16 %v133_v24, %v132_v21  ;;  %v2248_v32 = vld [vmem:[#allocation2 + $0x20] sm:$0xff] }
  0x20   :  { %1713 = vrot.lane.b32.xlu0 %v1712_v23, %s2103_s22  ;;  %v1717_v28 = vpack.i.bf16 %v117_v26, %v116_v25  ;;  %v2242_v29 = vld [vmem:[#allocation2 + $0x30] sm:$0xff]  ;;  %v165_v35 = vld [vmem:[#allocation2 + $0x41] sm:$0xff] }
  0x21   :  { %v2246_v31 = vld [vmem:[#allocation2 + $0x10] sm:$0xff]  ;;  %v1737_v33 = vpack.i.bf16 %v2244_v30, %v2242_v29  ;;  %v1747_v36 = vpack.i.bf16 %v165_v35, %v117_v26  ;;  %v181_v38 = vld [vmem:[#allocation2 + $0x42] sm:$0xff]  ;;  %v1762_v43 = vpack.i.bf16 %v2242_v29, %v2248_v32 }
  0x22   :  { %v1732_v34 = vpack.i.bf16 %v2248_v32, %v2246_v31  ;;  %v1757_v39 = vpack.i.bf16 %v181_v38, %v133_v24  ;;  %v2260_v41 = vld [vmem:[#allocation2 + $0x50] sm:$0xff]  ;;  %v120_v50 = vld [vmem:[#allocation2 + $0x61] sm:$0xff] }
  0x23   :  { %1728 = vrot.lane.b32.xlu1 %v1727_v27, %s2102_s21  ;;  %v1767_v42 = vpack.i.bf16 %v2260_v41, %v2244_v30  ;;  %v214_v44 = vld [vmem:[#allocation2 + $0x51] sm:$0xff]  ;;  %v136_v55 = vld [vmem:[#allocation2 + $0x62] sm:$0xff] }
  0x24   :  { %1718 = vrot.lane.b32.xlu0 %v1717_v28, %s2103_s22  ;;  %v1777_v48 = vpack.i.bf16 %v214_v44, %v165_v35  ;;  %v121_v51 = vld [vmem:[#allocation2 + $0x71] sm:$0xff]  ;;  %v153_v59 = vld [vmem:[#allocation2 + $0x80] sm:$0xff]  ;;  %v1822_v1 = vpack.i.bf16 %v120_v50, %v214_v44 }
  0x25   :  { %v230_v52 = vld [vmem:[#allocation2 + $0x52] sm:$0xff]  ;;  %v1797_v53 = vpack.i.bf16 %v121_v51, %v120_v50  ;;  %v2287_v60 = vld [vmem:[#allocation2 + $0x60] sm:$0xff]  ;;  %v1847_v6 = vpack.i.bf16 %v202_v5, %v153_v59 }
  0x26   :  { %v1792_v54 = vpack.i.bf16 %v230_v52, %v181_v38  ;;  %v137_v56 = vld [vmem:[#allocation2 + $0x72] sm:$0xff]  ;;  %v1812_v62 = vpack.i.bf16 %v2287_v60, %v2260_v41  ;;  %v169_v63 = vld [vmem:[#allocation2 + $0x81] sm:$0xff]  ;;  %v1832_v4 = vpack.i.bf16 %v136_v55, %v230_v52 }
  0x27   :  { %1738 = vrot.lane.b32.xlu1 %v1737_v33, %s2104_s0  ;;  %v1807_v57 = vpack.i.bf16 %v137_v56, %v136_v55  ;;  %v2285_v58 = vld [vmem:[#allocation2 + $0x70] sm:$0xff]  ;;  %v1827_v0 = vpack.i.bf16 %v169_v63, %v121_v51  ;;  %v185_v2 = vld [vmem:[#allocation2 + $0x82] sm:$0xff]  ;;  %v1857_v9 = vpack.i.bf16 %v218_v8, %v169_v63 }
  0x28   :  { %1733 = vrot.lane.b32.xlu0 %v1732_v34, %s2104_s0  ;;  %v1817_v61 = vpack.i.bf16 %v153_v59, %v2285_v58  ;;  %v1837_v3 = vpack.i.bf16 %v185_v2, %v137_v56  ;;  %v1842_v7 = vpack.i.bf16 %v2285_v58, %v2287_v60  ;;  %v123_v11 = vld [vmem:[#allocation2 + $0xb1] sm:$0xff]  ;;  %v124_v13 = vld [vmem:[#allocation2 + $0xc1] sm:$0xff] }
  0x29   :  { %v1867_v12 = vpack.i.bf16 %v123_v11, %v122_v10  ;;  %v125_v14 = vld [vmem:[#allocation2 + $0xd1] sm:$0xff]  ;;  %v140_v18 = vld [vmem:[#allocation2 + $0xc2] sm:$0xff] }
  0x2a   :  { %v234_v15 = vld [vmem:[#allocation2 + $0x92] sm:$0xff]  ;;  %v1877_v16 = vpack.i.bf16 %v125_v14, %v124_v13  ;;  %v138_v20 = vld [vmem:[#allocation2 + $0xa2] sm:$0xff] }
  0x2b   :  { %1748 = vrot.lane.b32.xlu1 %v1747_v36, %s2105_s23  ;;  %v1872_v17 = vpack.i.bf16 %v234_v15, %v185_v2  ;;  %v141_v19 = vld [vmem:[#allocation2 + $0xd2] sm:$0xff]  ;;  %v2312_v25 = vld [vmem:[#allocation2 + $0xe0] sm:$0xff]  ;;  %v1902_v36 = vpack.i.bf16 %v124_v13, %v123_v11 }
  0x2c   :  { %1743 = vrot.lane.b32.xlu0 %v1742_v37, %s2105_s23  ;;  %v139_v21 = vld [vmem:[#allocation2 + $0xb2] sm:$0xff]  ;;  %v1887_v22 = vpack.i.bf16 %v141_v19, %v140_v18  ;;  %v173_v34 = vld [vmem:[#allocation2 + $0xe1] sm:$0xff] }
  0x2d   :  { %v1882_v23 = vpack.i.bf16 %v139_v21, %v138_v20  ;;  %v2310_v24 = vld [vmem:[#allocation2 + $0xd0] sm:$0xff]  ;;  %v1907_v35 = vpack.i.bf16 %v173_v34, %v125_v14  ;;  %v189_v37 = vld [vmem:[#allocation2 + $0xe2] sm:$0xff] }
  0x2e   :  { %v2314_v26 = vld [vmem:[#allocation2 + $0xb0] sm:$0xff]  ;;  %v1917_v38 = vpack.i.bf16 %v189_v37, %v141_v19  ;;  %v128_v46 = vld [vmem:[#allocation2 + $0x101] sm:$0xff] }
  0x2f   :  { %1758 = vrot.lane.b32.xlu1 %v1757_v39, %s2106_s24  ;;  %v1912_v39 = vpack.i.bf16 %v140_v18, %v139_v21  ;;  %v222_v44 = vld [vmem:[#allocation2 + $0xf1] sm:$0xff]  ;;  %v144_v51 = vld [vmem:[#allocation2 + $0x102] sm:$0xff] }
  0x30   :  { %1753 = vrot.lane.b32.xlu0 %v1752_v40, %s2106_s24  ;;  %v2328_v40 = vld [vmem:[#allocation2 + $0xf0] sm:$0xff]  ;;  %v1937_v45 = vpack.i.bf16 %v222_v44, %v173_v34  ;;  %v161_v55 = vld [vmem:[#allocation2 + $0x120] sm:$0xff]  ;;  %v1982_v63 = vpack.i.bf16 %v128_v46, %v222_v44 }
  0x31   :  { %v129_v47 = vld [vmem:[#allocation2 + $0x111] sm:$0xff]  ;;  %v2346_v56 = vld [vmem:[#allocation2 + $0x100] sm:$0xff] }
  0x32   :  { %v1957_v49 = vpack.i.bf16 %v129_v47, %v128_v46  ;;  %v145_v52 = vld [vmem:[#allocation2 + $0x112] sm:$0xff]  ;;  %v1972_v59 = vpack.i.bf16 %v2346_v56, %v2328_v40  ;;  %v98_v20 = vld [vmem:[#allocation2] sm:$0xff] }
  0x33   :  { %1768 = vrot.lane.b32.xlu1 %v1767_v42, %s2107_s29  ;;  %v1927_v42 = vpack.i.bf16 %v2328_v40, %v2312_v25  ;;  %v242_v10 = vld [vmem:[#allocation2 + $0x132] sm:$0xff] }
  0x34   :  { %1763 = vrot.lane.b32.xlu0 %v1762_v43, %s2107_s29 }
  0x37   :  { %1778 = vrot.lane.b32.xlu1 %v1777_v48, %s2108_s6 }
  0x38   :  { %1773 = vrot.lane.b32.xlu0 %v1717_v28, %s2108_s6  ;;  %v1897_v28 = vpack.i.bf16 %v2312_v25, %v2310_v24 }
  0x3b   :  { %1788 = vrot.lane.b32.xlu1 %v1777_v48, %s2103_s22  ;;  %v238_v48 = vld [vmem:[#allocation2 + $0xf2] sm:$0xff] }
  0x3c   :  { %1783 = vrot.lane.b32.xlu0 %v1727_v27, %s2109_s7  ;;  %v2316_v27 = vld [vmem:[#allocation2 + $0xc0] sm:$0xff]  ;;  %v1952_v50 = vpack.i.bf16 %v238_v48, %v189_v37  ;;  %v1992_v2 = vpack.i.bf16 %v144_v51, %v238_v48 }
  0x3d   :  { %v1892_v33 = vpack.i.bf16 %v2316_v27, %v2314_v26  ;;  %v1922_v43 = vpack.i.bf16 %v2310_v24, %v2316_v27 }
  0x3f   :  { %1798 = vrot.lane.b32.xlu1 %v1797_v53, %s2103_s22 }
  0x40   :  { %1793 = vrot.lane.b32.xlu0 %v1792_v54, %s2109_s7 }
  0x43   :  { %1808 = vrot.lane.b32.xlu1 %v1807_v57, %s2102_s21 }
  0x44   :  { %1803 = vrot.lane.b32.xlu0 %v1792_v54, %s2102_s21  ;;  %v2344_v54 = vld [vmem:[#allocation2 + $0x110] sm:$0xff] }
  0x45   :  { %v2002_v5 = vpack.i.bf16 %v2344_v54, %v2346_v56 }
  0x47   :  { %1818 = vrot.lane.b32.xlu1 %v1817_v61, %s2104_s0  ;;  %v177_v61 = vld [vmem:[#allocation2 + $0x121] sm:$0xff] }
  0x48   :  { %1813 = vrot.lane.b32.xlu0 %v1812_v62, %s2104_s0  ;;  %v1987_v62 = vpack.i.bf16 %v177_v61, %v129_v47 }
  0x4b   :  { %1828 = vrot.lane.b32.xlu1 %v1827_v0, %s2105_s23  ;;  %v193_v0 = vld [vmem:[#allocation2 + $0x122] sm:$0xff] }
  0x4c   :  { %1823 = vrot.lane.b32.xlu0 %v1822_v1, %s2105_s23  ;;  %v1997_v1 = vpack.i.bf16 %v193_v0, %v145_v52  ;;  %v2027_v13 = vpack.i.bf16 %v242_v10, %v193_v0 }
  0x4f   :  { %1838 = vrot.lane.b32.xlu1 %v1837_v3, %s2106_s24  ;;  %v210_v3 = vld [vmem:[#allocation2 + $0x130] sm:$0xff] }
  0x50   :  { %1833 = vrot.lane.b32.xlu0 %v1832_v4, %s2106_s24  ;;  %v2007_v4 = vpack.i.bf16 %v210_v3, %v161_v55 }
  0x53   :  { %1848 = vrot.lane.b32.xlu1 %v1847_v6, %s2107_s29  ;;  %v226_v6 = vld [vmem:[#allocation2 + $0x131] sm:$0xff] }
  0x54   :  { %1843 = vrot.lane.b32.xlu0 %v1842_v7, %s2107_s29 }
  0x57   :  { %1858 = vrot.lane.b32.xlu1 %v1857_v9, %s2108_s6  ;;  %v2017_v9 = vpack.i.bf16 %v226_v6, %v177_v61 }
  0x58   :  { %1853 = vrot.lane.b32.xlu0 %v1797_v53, %s2108_s6  ;;  %v1967_v53 = vpack.i.bf16 %v145_v52, %v144_v51 }
  0x5b   :  { %1868 = vrot.lane.b32.xlu1 %v1867_v12, %s2103_s22 }
  0x5c   :  { %1863 = vrot.lane.b32.xlu0 %v1807_v57, %s2109_s7  ;;  %v1977_v57 = vpack.i.bf16 %v161_v55, %v2344_v54 }
  0x5f   :  { %1878 = vrot.lane.b32.xlu1 %v1877_v16, %s2103_s22 }
  0x60   :  { %1873 = vrot.lane.b32.xlu0 %v1872_v17, %s2109_s7 }
  0x63   :  { %1888 = vrot.lane.b32.xlu1 %v1887_v22, %s2102_s21 }
  0x64   :  { %1883 = vrot.lane.b32.xlu0 %v1882_v23, %s2102_s21 }
  0x67   :  { %1898 = vrot.lane.b32.xlu1 %v1897_v28, %s2104_s0 }
  0x68   :  { %1893 = vrot.lane.b32.xlu0 %v1892_v33, %s2104_s0 }
  0x6b   :  { %1908 = vrot.lane.b32.xlu1 %v1907_v35, %s2105_s23 }
  0x6c   :  { %1903 = vrot.lane.b32.xlu0 %v1902_v36, %s2105_s23 }
  0x6f   :  { %1918 = vrot.lane.b32.xlu1 %v1917_v38, %s2106_s24 }
  0x70   :  { %1913 = vrot.lane.b32.xlu0 %v1912_v39, %s2106_s24 }
  0x73   :  { %1928 = vrot.lane.b32.xlu1 %v1927_v42, %s2107_s29 }
  0x74   :  { %1923 = vrot.lane.b32.xlu0 %v1922_v43, %s2107_s29 }
  0x77   :  { %1938 = vrot.lane.b32.xlu1 %v1937_v45, %s2108_s6 }
  0x78   :  { %1933 = vrot.lane.b32.xlu0 %v1877_v16, %s2108_s6 }
  0x7b   :  { %1948 = vrot.lane.b32.xlu1 %v1937_v45, %s2103_s22 }
  0x7c   :  { %1943 = vrot.lane.b32.xlu0 %v1887_v22, %s2109_s7 }
  0x7f   :  { %1958 = vrot.lane.b32.xlu1 %v1957_v49, %s2103_s22 }
  0x80   :  { %1953 = vrot.lane.b32.xlu0 %v1952_v50, %s2109_s7 }
  0x83   :  { %1968 = vrot.lane.b32.xlu1 %v1967_v53, %s2102_s21 }
  0x84   :  { %1963 = vrot.lane.b32.xlu0 %v1952_v50, %s2102_s21 }
  0x87   :  { %1978 = vrot.lane.b32.xlu1 %v1977_v57, %s2104_s0 }
  0x88   :  { %1973 = vrot.lane.b32.xlu0 %v1972_v59, %s2104_s0 }
  0x8b   :  { %1988 = vrot.lane.b32.xlu1 %v1987_v62, %s2105_s23 }
  0x8c   :  { %1983 = vrot.lane.b32.xlu0 %v1982_v63, %s2105_s23 }
  0x8f   :  { %1998 = vrot.lane.b32.xlu1 %v1997_v1, %s2106_s24 }
  0x90   :  { %1993 = vrot.lane.b32.xlu0 %v1992_v2, %s2106_s24 }
  0x91   :  { %v1724_v7 = vpop.permute.xlu1 %1723 }
  0x92   :  { %v1714_v8 = vpop.permute.xlu0 %1713  ;;  %v1726_v33 = vunpack.i.h.bf16 %v1724_v7  ;;  %v1725_v34 = vunpack.i.l.bf16 %v1724_v7 }
  0x93   :  { %2008 = vrot.lane.b32.xlu1 %v2007_v4, %s2107_s29  ;;  %v1716_v18 = vunpack.i.h.bf16 %v1714_v8  ;;  %v1715_v19 = vunpack.i.l.bf16 %v1714_v8 }
  0x94   :  { %2003 = vrot.lane.b32.xlu0 %v2002_v5, %s2107_s29 }
  0x95   :  { %v1729_v11 = vpop.permute.xlu1 %1728  ;;  %v755_v35 = vsel %vm39_vm0, %v98_v20, %v1715_v19  ;;  %v756_v36 = vsel %vm39_vm0, %v2246_v31, %v1716_v18 }
  0x96   :  { %v1719_v12 = vpop.permute.xlu0 %1718  ;;  %v1731_v37 = vunpack.i.h.bf16 %v1729_v11  ;;  %v1730_v38 = vunpack.i.l.bf16 %v1729_v11  ;;  %v773_v31 = vsel %vm771_vm3, %v756_v36, %v1726_v33 }
  0x97   :  { %2018 = vrot.lane.b32.xlu1 %v2017_v9, %s2108_s6  ;;  %v1721_v21 = vunpack.i.h.bf16 %v1719_v12  ;;  %v1720_v22 = vunpack.i.l.bf16 %v1719_v12 }
  0x98   :  { %2013 = vrot.lane.b32.xlu0 %v1957_v49, %s2108_s6  ;;  %v772_v49 = vsel %vm771_vm3, %v755_v35, %v1725_v34 }
  0x99   :  { %v1739_v14 = vpop.permute.xlu1 %1738  ;;  %v758_v39 = vsel %vm39_vm0, %v2242_v29, %v1721_v21  ;;  %v757_v42 = vsel %vm39_vm0, %v2248_v32, %v1720_v22 }
  0x9a   :  { %v1734_v15 = vpop.permute.xlu0 %1733  ;;  %v1741_v43 = vunpack.i.h.bf16 %v1739_v14  ;;  %v1740_v44 = vunpack.i.l.bf16 %v1739_v14  ;;  %v774_v50 = vsel %vm771_vm3, %v757_v42, %v1730_v38  ;;  %v775_v29 = vsel %vm771_vm3, %v758_v39, %v1731_v37 }
  0x9b   :  { %2028 = vrot.lane.b32.xlu1 %v2027_v13, %s2109_s7  ;;  %v1736_v47 = vunpack.i.h.bf16 %v1734_v15  ;;  %v1735_v48 = vunpack.i.l.bf16 %v1734_v15 }
  0x9c   :  { %2023 = vrot.lane.b32.xlu0 %v1967_v53, %s2109_s7  ;;  %v791_v52 = vsel %vm788_vm4, %v774_v50, %v1740_v44  ;;  %v792_v53 = vsel %vm788_vm4, %v775_v29, %v1741_v43 }
  0x9d   :  { %v2367_v16 = vpop.permute.xlu1 %1748  ;;  %v789_v62 = vsel %vm788_vm4, %v772_v49, %v1735_v48  ;;  %v790_v63 = vsel %vm788_vm4, %v773_v31, %v1736_v47 }
  0x9e   :  { %v1744_v17 = vpop.permute.xlu0 %1743  ;;  %v1751_v2 = vunpack.i.h.bf16 %v2367_v16  ;;  %v1750_v3 = vunpack.i.l.bf16 %v2367_v16 }
  0x9f   :  { %v1746_v51 = vunpack.i.h.bf16 %v1744_v17  ;;  %v1745_v32 = vunpack.i.l.bf16 %v1744_v17 }
  0xa0   :  { %v809_v33 = vsel %vm805_vm5, %v792_v53, %v1751_v2 }
  0xa1   :  { %v2369_v23 = vpop.permute.xlu1 %1758  ;;  %v806_v6 = vsel %vm805_vm5, %v789_v62, %v1745_v32  ;;  %v807_v7 = vsel %vm805_vm5, %v790_v63, %v1746_v51 }
  0xa2   :  { %v1754_v28 = vpop.permute.xlu0 %1753  ;;  %v1761_v8 = vunpack.i.h.bf16 %v2369_v23  ;;  %v1760_v9 = vunpack.i.l.bf16 %v2369_v23 }
  0xa3   :  { %v1756_v55 = vunpack.i.h.bf16 %v1754_v28  ;;  %v1755_v57 = vunpack.i.l.bf16 %v1754_v28  ;;  %v808_v28 = vsel %vm805_vm5, %v791_v52, %v1750_v3 }
  0xa4   :  { %v825_v36 = vsel %vm822_vm6, %v808_v28, %v1760_v9  ;;  %v826_v37 = vsel %vm822_vm6, %v809_v33, %v1761_v8 }
  0xa5   :  { %v1769_v45 = vpop.permute.xlu1 %1768  ;;  %v823_v10 = vsel %vm822_vm6, %v806_v6, %v1755_v57  ;;  %v824_v11 = vsel %vm822_vm6, %v807_v7, %v1756_v55 }
  0xa6   :  { %v1764_v46 = vpop.permute.xlu0 %1763  ;;  %v1771_v12 = vunpack.i.h.bf16 %v1769_v45  ;;  %v1770_v13 = vunpack.i.l.bf16 %v1769_v45 }
  0xa7   :  { %v1766_v0 = vunpack.i.h.bf16 %v1764_v46  ;;  %v1765_v1 = vunpack.i.l.bf16 %v1764_v46 }
  0xa8   :  { %v842_v43 = vsel %vm839_vm7, %v825_v36, %v1770_v13  ;;  %v843_v44 = vsel %vm839_vm7, %v826_v37, %v1771_v12 }
  0xa9   :  { %v1779_v59 = vpop.permute.xlu1 %1778  ;;  %v840_v16 = vsel %vm839_vm7, %v823_v10, %v1765_v1  ;;  %v841_v17 = vsel %vm839_vm7, %v824_v11, %v1766_v0 }
  0xaa   :  { %v1774_v61 = vpop.permute.xlu0 %1773  ;;  %v1781_v20 = vunpack.i.h.bf16 %v1779_v59  ;;  %v1780_v21 = vunpack.i.l.bf16 %v1779_v59 }
  0xab   :  { %v1776_v4 = vunpack.i.h.bf16 %v1774_v61  ;;  %v1775_v5 = vunpack.i.l.bf16 %v1774_v61 }
  0xac   :  { %v859_v47 = vsel %vm856_vm8, %v842_v43, %v1780_v21  ;;  %v860_v48 = vsel %vm856_vm8, %v843_v44, %v1781_v20 }
  0xad   :  { %v1789_v14 = vpop.permute.xlu1 %1788  ;;  %v857_v22 = vsel %vm856_vm8, %v840_v16, %v1775_v5  ;;  %v858_v23 = vsel %vm856_vm8, %v841_v17, %v1776_v4 }
  0xae   :  { %v1784_v15 = vpop.permute.xlu0 %1783  ;;  %v1791_v63 = vunpack.i.h.bf16 %v1789_v14  ;;  %v1790_v0 = vunpack.i.l.bf16 %v1789_v14 }
  0xaf   :  { %v1786_v18 = vunpack.i.h.bf16 %v1784_v15  ;;  %v1785_v19 = vunpack.i.l.bf16 %v1784_v15 }
  0xb0   :  { %v760_v13 = vsel %vm39_vm0, %v2260_v41, %v1791_v63  ;;  %v759_v14 = vsel %vm39_vm0, %v2244_v30, %v1790_v0 }
  0xb1   :  { %v874_v34 = vsel %vm873_vm9, %v857_v22, %v1785_v19  ;;  %v875_v35 = vsel %vm873_vm9, %v858_v23, %v1786_v18  ;;  %v1799_v38 = vpop.permute.xlu1 %1798 }
  0xb2   :  { %v1794_v39 = vpop.permute.xlu0 %1793  ;;  %v890_v42 = vpack.c.bf16 %v875_v35, %v874_v34  ;;  %v1801_v61 = vunpack.i.h.bf16 %v1799_v38  ;;  %v1800_v62 = vunpack.i.l.bf16 %v1799_v38 }
  0xb3   :  { %v1796_v45 = vunpack.i.h.bf16 %v1794_v39  ;;  %v1795_v46 = vunpack.i.l.bf16 %v1794_v39 }
  0xb4   :  { %1678 = vmatprep.mubr.msk.bf16.mxu0 %vm913_vm10, %v890_v42  ;;  %v762_v9 = vsel %vm39_vm0, %v2285_v58, %v1801_v61  ;;  %v761_v10 = vsel %vm39_vm0, %v2287_v60, %v1800_v62 }
  0xb5   :  { %v876_v49 = vsel %vm873_vm9, %v859_v47, %v1795_v46  ;;  %v877_v31 = vsel %vm873_vm9, %v860_v48, %v1796_v45  ;;  %v1809_v29 = vpop.permute.xlu1 %1808 }
  0xb6   :  { %v891_v50 = vpack.c.bf16 %v877_v31, %v876_v49  ;;  %v1804_v51 = vpop.permute.xlu0 %1803  ;;  %v1811_v1 = vunpack.i.h.bf16 %v1809_v29  ;;  %v1810_v2 = vunpack.i.l.bf16 %v1809_v29 }
  0xb7   :  { %v1806_v3 = vunpack.i.h.bf16 %v1804_v51  ;;  %v1805_v4 = vunpack.i.l.bf16 %v1804_v51 }
  0xb8   :  { %1679 = vmatmul.mubr.msk.bf16.vlgmr.msra.gmra.mxu0 %vm913_vm10, %v891_v50  ;;  %v778_v15 = vsel %vm771_vm3, %v761_v10, %v1810_v2  ;;  %v779_v16 = vsel %vm771_vm3, %v762_v9, %v1811_v1 }
  0xb9   :  { %v1819_v32 = vpop.permute.xlu1 %1818  ;;  %v777_v17 = vsel %vm771_vm3, %v760_v13, %v1806_v3  ;;  %v776_v18 = vsel %vm771_vm3, %v759_v14, %v1805_v4 }
  0xba   :  { %v1814_v52 = vpop.permute.xlu0 %1813  ;;  %v1821_v5 = vunpack.i.h.bf16 %v1819_v32  ;;  %v1820_v6 = vunpack.i.l.bf16 %v1819_v32 }
  0xbb   :  { %v1816_v11 = vunpack.i.h.bf16 %v1814_v52  ;;  %v1815_v12 = vunpack.i.l.bf16 %v1814_v52 }
  0xbc   :  { %v795_v60 = vsel %vm788_vm4, %v778_v15, %v1820_v6  ;;  %v796_v20 = vsel %vm788_vm4, %v779_v16, %v1821_v5 }
  0xbd   :  { %v2412_v53 = vpop.permute.xlu1 %1828  ;;  %v793_v30 = vsel %vm788_vm4, %v776_v18, %v1815_v12  ;;  %v794_v28 = vsel %vm788_vm4, %v777_v17, %v1816_v11 }
  0xbe   :  { %v1824_v55 = vpop.permute.xlu0 %1823  ;;  %v1831_v35 = vunpack.i.h.bf16 %v2412_v53  ;;  %v1830_v36 = vunpack.i.l.bf16 %v2412_v53 }
  0xbf   :  { %v1826_v58 = vunpack.i.h.bf16 %v1824_v55  ;;  %v1825_v19 = vunpack.i.l.bf16 %v1824_v55 }
  0xc0   :  { %v813_v61 = vsel %vm805_vm5, %v796_v20, %v1831_v35 }
  0xc1   :  { %v2414_v57 = vpop.permute.xlu1 %1838  ;;  %v810_v39 = vsel %vm805_vm5, %v793_v30, %v1825_v19  ;;  %v811_v42 = vsel %vm805_vm5, %v794_v28, %v1826_v58  ;;  %v106_v28 = vld [vmem:[#allocation2 + $0xa0] sm:$0xff] }
  0xc2   :  { %v1834_v59 = vpop.permute.xlu0 %1833  ;;  %v1841_v43 = vunpack.i.h.bf16 %v2414_v57  ;;  %v1840_v44 = vunpack.i.l.bf16 %v2414_v57 }
  0xc3   :  { %v1836_v21 = vunpack.i.h.bf16 %v1834_v59  ;;  %v1835_v22 = vunpack.i.l.bf16 %v1834_v59  ;;  %v812_v59 = vsel %vm805_vm5, %v795_v60, %v1830_v36 }
  0xc4   :  { %v829_v0 = vsel %vm822_vm6, %v812_v59, %v1840_v44  ;;  %v830_v1 = vsel %vm822_vm6, %v813_v61, %v1841_v43 }
  0xc5   :  { %v1849_v7 = vpop.permute.xlu1 %1848  ;;  %v827_v45 = vsel %vm822_vm6, %v810_v39, %v1835_v22  ;;  %v828_v46 = vsel %vm822_vm6, %v811_v42, %v1836_v21 }
  0xc6   :  { %v1844_v8 = vpop.permute.xlu0 %1843  ;;  %v1851_v47 = vunpack.i.h.bf16 %v1849_v7  ;;  %v1850_v48 = vunpack.i.l.bf16 %v1849_v7 }
  0xc7   :  { %v1846_v33 = vunpack.i.h.bf16 %v1844_v8  ;;  %v1845_v34 = vunpack.i.l.bf16 %v1844_v8 }
  0xc8   :  { %v846_v5 = vsel %vm839_vm7, %v829_v0, %v1850_v48  ;;  %v847_v6 = vsel %vm839_vm7, %v830_v1, %v1851_v47 }
  0xc9   :  { %v1859_v41 = vpop.permute.xlu1 %1858  ;;  %v844_v50 = vsel %vm839_vm7, %v827_v45, %v1845_v34  ;;  %v845_v29 = vsel %vm839_vm7, %v828_v46, %v1846_v33 }
  0xca   :  { %v1854_v23 = vpop.permute.xlu0 %1853  ;;  %v1861_v52 = vunpack.i.h.bf16 %v1859_v41  ;;  %v1860_v53 = vunpack.i.l.bf16 %v1859_v41 }
  0xcb   :  { %v1856_v37 = vunpack.i.h.bf16 %v1854_v23  ;;  %v1855_v38 = vunpack.i.l.bf16 %v1854_v23 }
  0xcc   :  { %v863_v9 = vsel %vm856_vm8, %v846_v5, %v1860_v53  ;;  %v864_v10 = vsel %vm856_vm8, %v847_v6, %v1861_v52 }
  0xcd   :  { %v1869_v49 = vpop.permute.xlu1 %1868  ;;  %v861_v55 = vsel %vm856_vm8, %v844_v50, %v1855_v38  ;;  %v862_v57 = vsel %vm856_vm8, %v845_v29, %v1856_v37 }
  0xce   :  { %v1864_v31 = vpop.permute.xlu0 %1863  ;;  %v1871_v22 = vunpack.i.h.bf16 %v1869_v49  ;;  %v1870_v41 = vunpack.i.l.bf16 %v1869_v49 }
  0xcf   :  { %v1866_v51 = vunpack.i.h.bf16 %v1864_v31  ;;  %v1865_v32 = vunpack.i.l.bf16 %v1864_v31 }
  0xd0   :  { %v764_v45 = vsel %vm39_vm0, %v2314_v26, %v1871_v22  ;;  %v763_v46 = vsel %vm39_vm0, %v106_v28, %v1870_v41 }
  0xd1   :  { %v878_v62 = vsel %vm873_vm9, %v861_v55, %v1865_v32  ;;  %v879_v63 = vsel %vm873_vm9, %v862_v57, %v1866_v51  ;;  %v1879_v3 = vpop.permute.xlu1 %1878 }
  0xd2   :  { %v892_v2 = vpack.c.bf16 %v879_v63, %v878_v62  ;;  %v1874_v4 = vpop.permute.xlu0 %1873  ;;  %v1881_v20 = vunpack.i.h.bf16 %v1879_v3  ;;  %v1880_v21 = vunpack.i.l.bf16 %v1879_v3 }
  0xd3   :  { %v1876_v7 = vunpack.i.h.bf16 %v1874_v4  ;;  %v1875_v8 = vunpack.i.l.bf16 %v1874_v4 }
  0xd4   :  { %1682 = vmatprep.mubr.msk.bf16.mxu0 %vm913_vm10, %v892_v2  ;;  %v766_v39 = vsel %vm39_vm0, %v2310_v24, %v1881_v20  ;;  %v765_v42 = vsel %vm39_vm0, %v2316_v27, %v1880_v21 }
  0xd5   :  { %v881_v11 = vsel %vm873_vm9, %v864_v10, %v1876_v7  ;;  %v880_v12 = vsel %vm873_vm9, %v863_v9, %v1875_v8  ;;  %v1889_v14 = vpop.permute.xlu1 %1888 }
  0xd6   :  { %v893_v13 = vpack.c.bf16 %v881_v11, %v880_v12  ;;  %v1884_v15 = vpop.permute.xlu0 %1883  ;;  %v1891_v23 = vunpack.i.h.bf16 %v1889_v14  ;;  %v1890_v30 = vunpack.i.l.bf16 %v1889_v14 }
  0xd7   :  { %v1886_v33 = vunpack.i.h.bf16 %v1884_v15  ;;  %v1885_v34 = vunpack.i.l.bf16 %v1884_v15 }
  0xd8   :  { %1683 = vmatmul.mubr.msk.bf16.gmra.mxu0 %vm913_vm10, %v893_v13  ;;  %v782_v47 = vsel %vm771_vm3, %v765_v42, %v1890_v30  ;;  %v783_v48 = vsel %vm771_vm3, %v766_v39, %v1891_v23 }
  0xd9   :  { %v1899_v16 = vpop.permute.xlu1 %1898  ;;  %v781_v49 = vsel %vm771_vm3, %v764_v45, %v1886_v33  ;;  %v780_v31 = vsel %vm771_vm3, %v763_v46, %v1885_v34 }
  0xda   :  { %v1894_v17 = vpop.permute.xlu0 %1893  ;;  %v1901_v35 = vunpack.i.h.bf16 %v1899_v16  ;;  %v1900_v36 = vunpack.i.l.bf16 %v1899_v16 }
  0xdb   :  { %v1896_v43 = vunpack.i.h.bf16 %v1894_v17  ;;  %v1895_v44 = vunpack.i.l.bf16 %v1894_v17 }
  0xdc   :  { %v799_v29 = vsel %vm788_vm4, %v782_v47, %v1900_v36  ;;  %v800_v27 = vsel %vm788_vm4, %v783_v48, %v1901_v35 }
  0xdd   :  { %v2458_v18 = vpop.permute.xlu1 %1908  ;;  %v797_v53 = vsel %vm788_vm4, %v780_v31, %v1895_v44  ;;  %v798_v55 = vsel %vm788_vm4, %v781_v49, %v1896_v43 }
  0xde   :  { %v1904_v58 = vpop.permute.xlu0 %1903  ;;  %v1911_v61 = vunpack.i.h.bf16 %v2458_v18  ;;  %v1910_v62 = vunpack.i.l.bf16 %v2458_v18 }
  0xdf   :  { %v1906_v50 = vunpack.i.h.bf16 %v1904_v58  ;;  %v1905_v24 = vunpack.i.l.bf16 %v1904_v58 }
  0xe0   :  { %v816_v58 = vsel %vm805_vm5, %v799_v29, %v1910_v62 }
  0xe1   :  { %v2460_v19 = vpop.permute.xlu1 %1918  ;;  %v814_v1 = vsel %vm805_vm5, %v797_v53, %v1905_v24  ;;  %v815_v2 = vsel %vm805_vm5, %v798_v55, %v1906_v50 }
  0xe2   :  { %v1914_v60 = vpop.permute.xlu0 %1913  ;;  %v1921_v3 = vunpack.i.h.bf16 %v2460_v19  ;;  %v1920_v4 = vunpack.i.l.bf16 %v2460_v19  ;;  %v817_v19 = vsel %vm805_vm5, %v800_v27, %v1911_v61 }
  0xe3   :  { %v1916_v51 = vunpack.i.h.bf16 %v1914_v60  ;;  %v1915_v32 = vunpack.i.l.bf16 %v1914_v60 }
  0xe4   :  { %v833_v21 = vsel %vm822_vm6, %v816_v58, %v1920_v4  ;;  %v834_v22 = vsel %vm822_vm6, %v817_v19, %v1921_v3 }
  0xe5   :  { %v1929_v37 = vpop.permute.xlu1 %1928  ;;  %v831_v5 = vsel %vm822_vm6, %v814_v1, %v1915_v32  ;;  %v832_v6 = vsel %vm822_vm6, %v815_v2, %v1916_v51 }
  0xe6   :  { %v1924_v38 = vpop.permute.xlu0 %1923  ;;  %v1931_v7 = vunpack.i.h.bf16 %v1929_v37  ;;  %v1930_v8 = vunpack.i.l.bf16 %v1929_v37 }
  0xe7   :  { %v1926_v57 = vunpack.i.h.bf16 %v1924_v38  ;;  %v1925_v59 = vunpack.i.l.bf16 %v1924_v38 }
  0xe8   :  { %v850_v28 = vsel %vm839_vm7, %v833_v21, %v1930_v8  ;;  %v851_v33 = vsel %vm839_vm7, %v834_v22, %v1931_v7 }
  0xe9   :  { %v1939_v52 = vpop.permute.xlu1 %1938  ;;  %v848_v11 = vsel %vm839_vm7, %v831_v5, %v1925_v59  ;;  %v849_v12 = vsel %vm839_vm7, %v832_v6, %v1926_v57 }
  0xea   :  { %v1934_v26 = vpop.permute.xlu0 %1933  ;;  %v1941_v15 = vunpack.i.h.bf16 %v1939_v52  ;;  %v1940_v16 = vunpack.i.l.bf16 %v1939_v52 }
  0xeb   :  { %v1936_v63 = vunpack.i.h.bf16 %v1934_v26  ;;  %v1935_v0 = vunpack.i.l.bf16 %v1934_v26 }
  0xec   :  { %v867_v36 = vsel %vm856_vm8, %v850_v28, %v1940_v16  ;;  %v868_v37 = vsel %vm856_vm8, %v851_v33, %v1941_v15 }
  0xed   :  { %v1949_v9 = vpop.permute.xlu1 %1948  ;;  %v865_v17 = vsel %vm856_vm8, %v848_v11, %v1935_v0  ;;  %v866_v18 = vsel %vm856_vm8, %v849_v12, %v1936_v63 }
  0xee   :  { %v1944_v10 = vpop.permute.xlu0 %1943  ;;  %v1951_v49 = vunpack.i.h.bf16 %v1949_v9  ;;  %v1950_v31 = vunpack.i.l.bf16 %v1949_v9 }
  0xef   :  { %v1946_v13 = vunpack.i.h.bf16 %v1944_v10  ;;  %v1945_v14 = vunpack.i.l.bf16 %v1944_v10 }
  0xf0   :  { %v768_v61 = vsel %vm39_vm0, %v2328_v40, %v1951_v49  ;;  %v767_v62 = vsel %vm39_vm0, %v2312_v25, %v1950_v31 }
  0xf1   :  { %v882_v60 = vsel %vm873_vm9, %v865_v17, %v1945_v14  ;;  %v883_v20 = vsel %vm873_vm9, %v866_v18, %v1946_v13  ;;  %v1959_v41 = vpop.permute.xlu1 %1958 }
  0xf2   :  { %v1954_v23 = vpop.permute.xlu0 %1953  ;;  %v894_v30 = vpack.c.bf16 %v883_v20, %v882_v60  ;;  %v1961_v50 = vunpack.i.h.bf16 %v1959_v41  ;;  %v1960_v24 = vunpack.i.l.bf16 %v1959_v41 }
  0xf3   :  { %v1956_v34 = vunpack.i.h.bf16 %v1954_v23  ;;  %v1955_v35 = vunpack.i.l.bf16 %v1954_v23 }
  0xf4   :  { %1686 = vmatprep.mubr.msk.bf16.mxu1 %vm913_vm10, %v894_v30  ;;  %v770_v63 = vsel %vm39_vm0, %v2344_v54, %v1961_v50  ;;  %v769_v0 = vsel %vm39_vm0, %v2346_v56, %v1960_v24 }
  0xf5   :  { %v885_v38 = vsel %vm873_vm9, %v868_v37, %v1956_v34  ;;  %v884_v39 = vsel %vm873_vm9, %v867_v36, %v1955_v35  ;;  %v1969_v43 = vpop.permute.xlu1 %1968 }
  0xf6   :  { %v895_v42 = vpack.c.bf16 %v885_v38, %v884_v39  ;;  %v1964_v44 = vpop.permute.xlu0 %1963  ;;  %v1971_v29 = vunpack.i.h.bf16 %v1969_v43  ;;  %v1970_v27 = vunpack.i.l.bf16 %v1969_v43 }
  0xf7   :  { %v1966_v51 = vunpack.i.h.bf16 %v1964_v44  ;;  %v1965_v32 = vunpack.i.l.bf16 %v1964_v44 }
  0xf8   :  { %1687 = vmatmul.mubr.msk.bf16.vlgmr.msra.gmra.mxu1 %vm913_vm10, %v895_v42  ;;  %v786_v1 = vsel %vm771_vm3, %v769_v0, %v1970_v27  ;;  %v787_v2 = vsel %vm771_vm3, %v770_v63, %v1971_v29 }
  0xf9   :  { %v1979_v45 = vpop.permute.xlu1 %1978  ;;  %v785_v3 = vsel %vm771_vm3, %v768_v61, %v1966_v51  ;;  %v784_v4 = vsel %vm771_vm3, %v767_v62, %v1965_v32 }
  0xfa   :  { %v1974_v46 = vpop.permute.xlu0 %1973  ;;  %v1981_v53 = vunpack.i.h.bf16 %v1979_v45  ;;  %v1980_v55 = vunpack.i.l.bf16 %v1979_v45 }
  0xfb   :  { %v1976_v57 = vunpack.i.h.bf16 %v1974_v46  ;;  %v1975_v59 = vunpack.i.l.bf16 %v1974_v46 }
  0xfc   :  { %v803_v9 = vsel %vm788_vm4, %v786_v1, %v1980_v55  ;;  %v804_v54 = vsel %vm788_vm4, %v787_v2, %v1981_v53 }
  0xfd   :  { %v1989_v47 = vpop.permute.xlu1 %1988  ;;  %v801_v56 = vsel %vm788_vm4, %v784_v4, %v1975_v59  ;;  %v802_v10 = vsel %vm788_vm4, %v785_v3, %v1976_v57 }
  0xfe   :  { %v1984_v48 = vpop.permute.xlu0 %1983  ;;  %v1991_v40 = vunpack.i.h.bf16 %v1989_v47  ;;  %v1990_v7 = vunpack.i.l.bf16 %v1989_v47 }
  0xff   :  { %v1986_v8 = vunpack.i.h.bf16 %v1984_v48  ;;  %v1985_v25 = vunpack.i.l.bf16 %v1984_v48 }
 0x100   :  { %v820_v60 = vsel %vm805_vm5, %v803_v9, %v1990_v7  ;;  %v821_v20 = vsel %vm805_vm5, %v804_v54, %v1991_v40 }
 0x101   :  { %v1999_v52 = vpop.permute.xlu1 %1998  ;;  %v818_v21 = vsel %vm805_vm5, %v801_v56, %v1985_v25  ;;  %v819_v22 = vsel %vm805_vm5, %v802_v10, %v1986_v8 }
 0x102   :  { %v1994_v26 = vpop.permute.xlu0 %1993  ;;  %v2001_v11 = vunpack.i.h.bf16 %v1999_v52  ;;  %v2000_v12 = vunpack.i.l.bf16 %v1999_v52 }
 0x103   :  { %v1996_v13 = vunpack.i.h.bf16 %v1994_v26  ;;  %v1995_v14 = vunpack.i.l.bf16 %v1994_v26 }
 0x104   :  { %v837_v33 = vsel %vm822_vm6, %v820_v60, %v2000_v12  ;;  %v838_v34 = vsel %vm822_vm6, %v821_v20, %v2001_v11 }
 0x105   :  { %v2009_v5 = vpop.permute.xlu1 %2008  ;;  %v835_v35 = vsel %vm822_vm6, %v818_v21, %v1995_v14  ;;  %v836_v36 = vsel %vm822_vm6, %v819_v22, %v1996_v13 }
 0x106   :  { %v2004_v6 = vpop.permute.xlu0 %2003  ;;  %v2011_v15 = vunpack.i.h.bf16 %v2009_v5  ;;  %v2010_v16 = vunpack.i.l.bf16 %v2009_v5 }
 0x107   :  { %v2006_v17 = vunpack.i.h.bf16 %v2004_v6  ;;  %v2005_v18 = vunpack.i.l.bf16 %v2004_v6 }
 0x108   :  { %v854_v37 = vsel %vm839_vm7, %v837_v33, %v2010_v16  ;;  %v855_v38 = vsel %vm839_vm7, %v838_v34, %v2011_v15 }
 0x109   :  { %v2019_v58 = vpop.permute.xlu1 %2018  ;;  %v852_v39 = vsel %vm839_vm7, %v835_v35, %v2005_v18  ;;  %v853_v42 = vsel %vm839_vm7, %v836_v36, %v2006_v17 }
 0x10a   :  { %v2014_v19 = vpop.permute.xlu0 %2013  ;;  %v2021_v41 = vunpack.i.h.bf16 %v2019_v58  ;;  %v2020_v23 = vunpack.i.l.bf16 %v2019_v58 }
 0x10b   :  { %v2016_v30 = vunpack.i.h.bf16 %v2014_v19  ;;  %v2015_v28 = vunpack.i.l.bf16 %v2014_v19 }
 0x10c   :  { %v871_v49 = vsel %vm856_vm8, %v854_v37, %v2020_v23  ;;  %v872_v31 = vsel %vm856_vm8, %v855_v38, %v2021_v41 }
 0x10d   :  { %v2029_v43 = vpop.permute.xlu1 %2028  ;;  %v869_v50 = vsel %vm856_vm8, %v852_v39, %v2015_v28  ;;  %v870_v24 = vsel %vm856_vm8, %v853_v42, %v2016_v30 }
 0x10e   :  { %v2024_v44 = vpop.permute.xlu0 %2023  ;;  %v2031_v45 = vunpack.i.h.bf16 %v2029_v43  ;;  %v2030_v46 = vunpack.i.l.bf16 %v2029_v43 }
 0x10f   :  { %v2026_v47 = vunpack.i.h.bf16 %v2024_v44  ;;  %v2025_v48 = vunpack.i.l.bf16 %v2024_v44 }
 0x110   :  { %v888_v29 = vsel %vm873_vm9, %v871_v49, %v2030_v46  ;;  %v889_v27 = vsel %vm873_vm9, %v872_v31, %v2031_v45 }
 0x111   :  { %v886_v51 = vsel %vm873_vm9, %v869_v50, %v2025_v48  ;;  %v887_v32 = vsel %vm873_vm9, %v870_v24, %v2026_v47  ;;  %v897_v52 = vpack.c.bf16 %v889_v27, %v888_v29 }
 0x112   :  { %v896_v26 = vpack.c.bf16 %v887_v32, %v886_v51 }
 0x114   :  { %1690 = vmatprep.mubr.msk.bf16.mxu1 %vm913_vm10, %v896_v26 }
 0x115   :  { %1691 = vmatmul.mubr.msk.bf16.gmra.mxu1 %vm913_vm10, %v897_v52 }
 0x178   :  { %v1680_v53 = vpop.f32.mrf.mxu0 }
 0x179   :  { %v1044_v3 = vsel %vm771_vm3, %v1680_v53, 0.0 }
 0x17a   :  { %v976_v55 = vpop.f32.mrf.mxu0 }
 0x17b   :  { %v1041_v0 = vsel %vm771_vm3, %v976_v55, 0.0 }
 0x17c   :  { %v1681_v57 = vpop.f32.mrf.mxu0 }
 0x17d   :  { %v1046_v40 = vsel %vm771_vm3, %v1681_v57, 0.0 }
 0x17e   :  { %v979_v59 = vpop.f32.mrf.mxu0 }
 0x17f   :  { %v1042_v62 = vsel %vm771_vm3, %v979_v59, 0.0 }
 0x180   :  { %v1043_v1 = vadd.f32 %v1042_v62, %v1041_v0 }
 0x182   :  { %v1045_v4 = vadd.f32 %v1044_v3, %v1043_v1 }
 0x184   :  { %v1047_v8 = vadd.f32 %v1046_v40, %v1045_v4 }
 0x198   :  { %v2541_v61 = vpop.f32.mrf.mxu0 }
 0x199   :  { %v1052_v11 = vsel %vm771_vm3, %v2541_v61, 0.0 }
 0x19a   :  { %v992_v63 = vpop.f32.mrf.mxu0 }
 0x19b   :  { %v1048_v7 = vsel %vm771_vm3, %v992_v63, 0.0 }
 0x19c   :  { %v1685_v2 = vpop.f32.mrf.mxu0  ;;  %v1049_v9 = vadd.f32 %v1048_v7, %v1047_v8 }
 0x19d   :  { %v1054_v14 = vsel %vm771_vm3, %v1685_v2, 0.0 }
 0x19e   :  { %v995_v5 = vpop.f32.mrf.mxu0 }
 0x19f   :  { %v1050_v25 = vsel %vm771_vm3, %v995_v5, 0.0 }
 0x1a0   :  { %v1051_v56 = vadd.f32 %v1050_v25, %v1049_v9 }
 0x1a2   :  { %v1053_v12 = vadd.f32 %v1052_v11, %v1051_v56 }
 0x1a4   :  { %v1055_v16 = vadd.f32 %v1054_v14, %v1053_v12 }
 0x1b8   :  { %v2546_v6 = vpop.f32.mrf.mxu1 }
 0x1b9   :  { %v1060_v19 = vsel %vm771_vm3, %v2546_v6, 0.0 }
 0x1ba   :  { %v1008_v54 = vpop.f32.mrf.mxu1 }
 0x1bb   :  { %v1056_v15 = vsel %vm771_vm3, %v1008_v54, 0.0 }
 0x1bc   :  { %v2551_v10 = vpop.f32.mrf.mxu1  ;;  %v1057_v18 = vadd.f32 %v1056_v15, %v1055_v16 }
 0x1bd   :  { %v1062_v22 = vsel %vm771_vm3, %v2551_v10, 0.0 }
 0x1be   :  { %v1011_v13 = vpop.f32.mrf.mxu1 }
 0x1bf   :  { %v1058_v17 = vsel %vm771_vm3, %v1011_v13, 0.0 }
 0x1c0   :  { %v1059_v58 = vadd.f32 %v1058_v17, %v1057_v18 }
 0x1c2   :  { %v1061_v60 = vadd.f32 %v1060_v19, %v1059_v58 }
 0x1c4   :  { %v1063_v23 = vadd.f32 %v1062_v22, %v1061_v60 }
 0x1d5   :  { %v2560_v20 = vpop.f32.mrf.mxu1 }
 0x1d6   :  { %v1068_v36 = vsel %vm771_vm3, %v2560_v20, 0.0 }
 0x1d7   :  { %v1024_v21 = vpop.f32.mrf.mxu1 }
 0x1d8   :  { %v1064_v41 = vsel %vm771_vm3, %v1024_v21, 0.0 }
 0x1d9   :  { %v2565_v30 = vpop.f32.mrf.mxu1  ;;  %v1065_v28 = vadd.f32 %v1064_v41, %v1063_v23 }
 0x1da   :  { %v1070_v38 = vsel %vm771_vm3, %v2565_v30, 0.0 }
 0x1db   :  { %v1027_v33 = vpop.f32.mrf.mxu1 }
 0x1dc   :  { %v1066_v34 = vsel %vm771_vm3, %v1027_v33, 0.0 }
 0x1dd   :  { %v1067_v35 = vadd.f32 %v1066_v34, %v1065_v28 }
 0x1df   :  { %v1069_v37 = vadd.f32 %v1068_v36, %v1067_v35 }
 0x1e1   :  { %v1071_v39 = vadd.f32 %v1070_v38, %v1069_v37 }
 0x1e3   :  { %v1072_v42 = vrot.slane %v1071_v39, 4 }
 0x1e5   :  { %v1073_v43 = vadd.f32 %v1072_v42, %v1071_v39 }
 0x1e7   :  { %v1074_v44 = vrot.slane %v1073_v43, 2 }
 0x1e9   :  { %v1075_v45 = vadd.f32 %v1074_v44, %v1073_v43 }
 0x1eb   :  { %v1076_v46 = vrot.slane %v1075_v45, 1 }
 0x1ed   :  { %v1077_v47 = vadd.f32 %v1076_v46, %v1075_v45 }
 0x1ef   :  { %v1079_v48 = vmul.f32 0.0078125, %v1077_v47 }
 0x1f1   :  { %v2572_v49 = vsub.f32 %v976_v55, %v1079_v48  ;;  %v2574_v31 = vsub.f32 %v979_v59, %v1079_v48  ;;  %v2576_v50 = vsub.f32 %v1680_v53, %v1079_v48  ;;  %v2578_v24 = vsub.f32 %v1681_v57, %v1079_v48 }
 0x1f2   :  { %v2584_v51 = vsub.f32 %v992_v63, %v1079_v48  ;;  %v2588_v52 = vsub.f32 %v995_v5, %v1079_v48  ;;  %v2595_v59 = vsub.f32 %v2541_v61, %v1079_v48  ;;  %v2600_v1 = vsub.f32 %v1685_v2, %v1079_v48 }
 0x1f3   :  { %v1096_v29 = vmul.f32 %v2572_v49, %v2572_v49  ;;  %v1097_v27 = vmul.f32 %v2574_v31, %v2574_v31  ;;  %v1098_v32 = vmul.f32 %v2576_v50, %v2576_v50  ;;  %v1099_v26 = vmul.f32 %v2578_v24, %v2578_v24 }
 0x1f4   :  { %v1100_v62 = vmul.f32 %v2584_v51, %v2584_v51  ;;  %v1101_v3 = vmul.f32 %v2588_v52, %v2588_v52  ;;  %v2605_v40 = vsub.f32 %v1008_v54, %v1079_v48  ;;  %v1102_v61 = vmul.f32 %v2595_v59, %v2595_v59 }
 0x1f5   :  { %v1112_v53 = vsel %vm771_vm3, %v1096_v29, 0.0  ;;  %v1113_v55 = vsel %vm771_vm3, %v1097_v27, 0.0  ;;  %v1115_v63 = vsel %vm771_vm3, %v1098_v32, 0.0  ;;  %v1117_v4 = vsel %vm771_vm3, %v1099_v26, 0.0 }
 0x1f6   :  { %v1114_v57 = vadd.f32 %v1113_v55, %v1112_v53  ;;  %v1119_v7 = vsel %vm771_vm3, %v1100_v62, 0.0  ;;  %v1089_v25 = vsub.f32 %v1011_v13, %v1079_v48  ;;  %v1103_v9 = vmul.f32 %v2600_v1, %v2600_v1 }
 0x1f7   :  { %v1121_v2 = vsel %vm771_vm3, %v1101_v3, 0.0  ;;  %v1090_v11 = vsub.f32 %v2546_v6, %v1079_v48  ;;  %v1104_v12 = vmul.f32 %v2605_v40, %v2605_v40  ;;  %v1123_v54 = vsel %vm771_vm3, %v1102_v61, 0.0  ;;  %v1659_v3 = vld [vmem:[%s3095_s2] ss:$0 sm:$0xff] }
 0x1f8   :  { %v1116_v0 = vadd.f32 %v1115_v63, %v1114_v57  ;;  %v1091_v15 = vsub.f32 %v2551_v10, %v1079_v48  ;;  %v1105_v16 = vmul.f32 %v1089_v25, %v1089_v25  ;;  %v1125_v17 = vsel %vm771_vm3, %v1103_v9, 0.0 }
 0x1f9   :  { %v1092_v18 = vsub.f32 %v1024_v21, %v1079_v48  ;;  %v1106_v58 = vmul.f32 %v1090_v11, %v1090_v11  ;;  %v1127_v19 = vsel %vm771_vm3, %v1104_v12, 0.0  ;;  %v1093_v22 = vsub.f32 %v1027_v33, %v1079_v48 }
 0x1fa   :  { %v1118_v5 = vadd.f32 %v1117_v4, %v1116_v0  ;;  %v1107_v41 = vmul.f32 %v1091_v15, %v1091_v15  ;;  %v1129_v6 = vsel %vm771_vm3, %v1105_v16, 0.0  ;;  %v1094_v28 = vsub.f32 %v2560_v20, %v1079_v48 }
 0x1fb   :  { %v1108_v34 = vmul.f32 %v1092_v18, %v1092_v18  ;;  %v1131_v35 = vsel %vm771_vm3, %v1106_v58, 0.0  ;;  %v1095_v36 = vsub.f32 %v2565_v30, %v1079_v48  ;;  %v1109_v37 = vmul.f32 %v1093_v22, %v1093_v22 }
 0x1fc   :  { %v1120_v8 = vadd.f32 %v1119_v7, %v1118_v5  ;;  %v1133_v21 = vsel %vm771_vm3, %v1107_v41, 0.0  ;;  %v1110_v39 = vmul.f32 %v1094_v28, %v1094_v28 }
 0x1fd   :  { %v1135_v42 = vsel %vm771_vm3, %v1108_v34, 0.0  ;;  %v1111_v43 = vmul.f32 %v1095_v36, %v1095_v36  ;;  %v1137_v44 = vsel %vm771_vm3, %v1109_v37, 0.0 }
 0x1fe   :  { %v1122_v56 = vadd.f32 %v1121_v2, %v1120_v8  ;;  %v1139_v20 = vsel %vm771_vm3, %v1110_v39, 0.0 }
 0x1ff   :  { %v1141_v47 = vsel %vm771_vm3, %v1111_v43, 0.0 }
 0x200   :  { %v1124_v14 = vadd.f32 %v1123_v54, %v1122_v56 }
 0x202   :  { %v1126_v13 = vadd.f32 %v1125_v17, %v1124_v14 }
 0x204   :  { %v1128_v60 = vadd.f32 %v1127_v19, %v1126_v13 }
 0x206   :  { %v1130_v23 = vadd.f32 %v1129_v6, %v1128_v60 }
 0x208   :  { %v1132_v10 = vadd.f32 %v1131_v35, %v1130_v23 }
 0x20a   :  { %v1134_v38 = vadd.f32 %v1133_v21, %v1132_v10 }
 0x20c   :  { %v1136_v33 = vadd.f32 %v1135_v42, %v1134_v38 }
 0x20e   :  { %v1138_v45 = vadd.f32 %v1137_v44, %v1136_v33 }
 0x210   :  { %v1140_v46 = vadd.f32 %v1139_v20, %v1138_v45 }
 0x212   :  { %v1142_v29 = vadd.f32 %v1141_v47, %v1140_v46 }
 0x214   :  { %v1143_v27 = vrot.slane %v1142_v29, 4 }
 0x216   :  { %v1144_v30 = vadd.f32 %v1143_v27, %v1142_v29 }
 0x218   :  { %v1145_v48 = vrot.slane %v1144_v30, 2 }
 0x21a   :  { %v1146_v32 = vadd.f32 %v1145_v48, %v1144_v30 }
 0x21c   :  { %v1147_v26 = vrot.slane %v1146_v32, 1 }
 0x21e   :  { %v1148_v53 = vadd.f32 %v1147_v26, %v1146_v32 }
 0x220   :  { %v1149_v55 = vmul.f32 0.0078125, %v1148_v53 }
 0x222   :  { %v1150_v57 = vadd.f32 1e-05, %v1149_v55 }
 0x224   :  { %2035 = vrsqrt.f32 %v1150_v57 }
 0x231   :  { %v2036_v62 = vpop.eup %2035 }
 0x232   :  { %v1152_v63 = vmul.f32 %v2036_v62, %v2572_v49  ;;  %v1153_v0 = vmul.f32 %v2036_v62, %v2574_v31  ;;  %v1154_v4 = vmul.f32 %v2036_v62, %v2576_v50  ;;  %v1155_v5 = vmul.f32 %v2036_v62, %v2578_v24  ;;  %v1660_v50 = vld [vmem:[%s3096_s3] ss:$0 sm:$0xff] }
 0x233   :  { %v1156_v61 = vmul.f32 %v2036_v62, %v2584_v51  ;;  %v1157_v7 = vmul.f32 %v2036_v62, %v2588_v52  ;;  %v1158_v8 = vmul.f32 %v2036_v62, %v2595_v59  ;;  %v1159_v9 = vmul.f32 %v2036_v62, %v2600_v1 }
 0x234   :  { %v1160_v49 = vmul.f32 %v2036_v62, %v2605_v40  ;;  %v1161_v2 = vmul.f32 %v2036_v62, %v1089_v25  ;;  %v1162_v31 = vmul.f32 %v2036_v62, %v1090_v11  ;;  %v1163_v56 = vmul.f32 %v2036_v62, %v1091_v15 }
 0x235   :  { %v1164_v12 = vmul.f32 %v2036_v62, %v1092_v18  ;;  %v1165_v54 = vmul.f32 %v2036_v62, %v1093_v22  ;;  %v1174_v14 = vmul.f32 %v1659_v3, %v1152_v63  ;;  %v1175_v16 = vmul.f32 %v1659_v3, %v1153_v0 }
 0x236   :  { %v1176_v24 = vmul.f32 %v1659_v3, %v1154_v4  ;;  %v1177_v51 = vmul.f32 %v1659_v3, %v1155_v5  ;;  %v1178_v52 = vmul.f32 %v1659_v3, %v1156_v61  ;;  %v1179_v17 = vmul.f32 %v1659_v3, %v1157_v7 }
 0x237   :  { %v1180_v59 = vmul.f32 %v1659_v3, %v1158_v8  ;;  %v1181_v13 = vmul.f32 %v1659_v3, %v1159_v9  ;;  %v1182_v1 = vmul.f32 %v1659_v3, %v1160_v49  ;;  %v1183_v58 = vmul.f32 %v1659_v3, %v1161_v2 }
 0x238   :  { %v1166_v40 = vmul.f32 %v2036_v62, %v1094_v28  ;;  %v1184_v25 = vmul.f32 %v1659_v3, %v1162_v31  ;;  %v1185_v11 = vmul.f32 %v1659_v3, %v1163_v56  ;;  %v1186_v15 = vmul.f32 %v1659_v3, %v1164_v12 }
 0x239   :  { %v1167_v18 = vmul.f32 %v2036_v62, %v1095_v36  ;;  %v1187_v19 = vmul.f32 %v1659_v3, %v1165_v54  ;;  %v1196_v60 = vadd.f32 %v1660_v50, %v1174_v14  ;;  %v1197_v22 = vadd.f32 %v1660_v50, %v1175_v16 }
 0x23a   :  { %v1198_v41 = vadd.f32 %v1660_v50, %v1176_v24  ;;  %v1199_v6 = vadd.f32 %v1660_v50, %v1177_v51  ;;  %v1200_v23 = vadd.f32 %v1660_v50, %v1178_v52  ;;  %v1201_v34 = vadd.f32 %v1660_v50, %v1179_v17 }
 0x23b   :  { %v1202_v35 = vadd.f32 %v1660_v50, %v1180_v59  ;;  %v1203_v10 = vadd.f32 %v1660_v50, %v1181_v13  ;;  %v1204_v37 = vadd.f32 %v1660_v50, %v1182_v1  ;;  %v1205_v21 = vadd.f32 %v1660_v50, %v1183_v58 }
 0x23c   :  { %v1188_v38 = vmul.f32 %v1659_v3, %v1166_v40  ;;  %v1206_v39 = vadd.f32 %v1660_v50, %v1184_v25  ;;  %v1207_v42 = vadd.f32 %v1660_v50, %v1185_v11  ;;  %v1208_v33 = vadd.f32 %v1660_v50, %v1186_v15 }
 0x23d   :  { %v1189_v28 = vmul.f32 %v1659_v3, %v1167_v18  ;;  %v1209_v43 = vadd.f32 %v1660_v50, %v1187_v19  ;;  %v2644_v44 = vmul.f32 0.5, %v1196_v60  ;;  %v2646_v36 = vmul.f32 0.5, %v1197_v22 }
 0x23e   :  { %v2648_v45 = vmul.f32 0.5, %v1198_v41  ;;  %v2650_v20 = vmul.f32 0.5, %v1199_v6  ;;  %v2652_v46 = vmul.f32 0.5, %v1200_v23  ;;  %v2654_v47 = vmul.f32 0.5, %v1201_v34 }
 0x23f   :  { %3104 = vst [vmem:[#allocation3_spill] sm:$0xff] %v2644_v44  ;;  %3105 = vst [vmem:[#allocation4_spill] sm:$0xff] %v2646_v36  ;;  %v2656_v29 = vmul.f32 0.5, %v1202_v35  ;;  %v2658_v27 = vmul.f32 0.5, %v1203_v10  ;;  %v2660_v30 = vmul.f32 0.5, %v1204_v37  ;;  %v2662_v48 = vmul.f32 0.5, %v1205_v21 }
 0x240   :  { %3106 = vst [vmem:[#allocation5_spill] sm:$0xff] %v2648_v45  ;;  %3107 = vst [vmem:[#allocation6_spill] sm:$0xff] %v2650_v20  ;;  %v2664_v32 = vmul.f32 0.5, %v1206_v39  ;;  %v2666_v26 = vmul.f32 0.5, %v1207_v42  ;;  %v2668_v53 = vmul.f32 0.5, %v1208_v33  ;;  %v2670_v57 = vadd.f32 %v1660_v50, %v1188_v38 }
 0x241   :  { %3108 = vst [vmem:[#allocation7_spill] sm:$0xff] %v2652_v46  ;;  %3109 = vst [vmem:[#allocation8_spill] sm:$0xff] %v2654_v47  ;;  %v1228_v55 = vmul.f32 0.70710677, %v1196_v60  ;;  %v1229_v62 = vmul.f32 0.70710677, %v1197_v22  ;;  %v2672_v3 = vadd.f32 %v1660_v50, %v1189_v28 }
 0x242   :  { %3110 = vst [vmem:[#allocation9_spill] sm:$0xff] %v2656_v29  ;;  %3111 = vst [vmem:[#allocation10_spill] sm:$0xff] %v2658_v27  ;;  %v1230_v63 = vmul.f32 0.70710677, %v1198_v41  ;;  %v1231_v0 = vmul.f32 0.70710677, %v1199_v6 }
 0x243   :  { %3112 = vst [vmem:[#allocation11_spill] sm:$0xff] %v2660_v30  ;;  %3113 = vst [vmem:[#allocation12_spill] sm:$0xff] %v2662_v48  ;;  %v1232_v4 = vmul.f32 0.70710677, %v1200_v23  ;;  %v1233_v5 = vmul.f32 0.70710677, %v1201_v34 }
 0x244   :  { %3114 = vst [vmem:[#allocation13_spill] sm:$0xff] %v2664_v32  ;;  %3115 = vst [vmem:[#allocation14_spill] sm:$0xff] %v2666_v26  ;;  %v1234_v61 = vmul.f32 0.70710677, %v1202_v35  ;;  %v1235_v7 = vmul.f32 0.70710677, %v1203_v10 }
 0x245   :  { %3116 = vst [vmem:[#allocation15_spill] sm:$0xff] %v2668_v53  ;;  %3117 = vst [vmem:[#allocation16_spill] sm:$0xff] %v2670_v57  ;;  %v1236_v8 = vmul.f32 0.70710677, %v1204_v37  ;;  %v1237_v9 = vmul.f32 0.70710677, %v1205_v21 }
 0x246   :  { %3118 = vst [vmem:[#allocation17_spill] sm:$0xff] %v2672_v3  ;;  %v2674_v49 = vmul.f32 0.70710677, %v1206_v39  ;;  %v2676_v2 = vmul.f32 0.70710677, %v1207_v42  ;;  %v2680_v56 = vmul.f32 0.5, %v1209_v43 }
 0x247   :  { %v2678_v31 = vmul.f32 0.70710677, %v1208_v33  ;;  %v2682_v12 = vmul.f32 0.70710677, %v1209_v43  ;;  %v2685_v54 = vmul.f32 0.70710677, %v2670_v57 }
 0x248   :  { %3119 = vst [vmem:[#allocation18_spill] sm:$0xff] %v2680_v56  ;;  %vm1244_vm11 = vcmp.ge.f32.partialorder %v1228_v55, 0.0  ;;  %v2688_v14 = vmul.f32 0.70710677, %v2672_v3  ;;  %vm1245_vm12 = vcmp.ge.f32.partialorder %v1229_v62, 0.0  ;;  %vm1246_vm13 = vcmp.ge.f32.partialorder %v1230_v63, 0.0 }
 0x249   :  { %vm1247_vm14 = vcmp.ge.f32.partialorder %v1231_v0, 0.0  ;;  %vm1248_vm15 = vcmp.ge.f32.partialorder %v1232_v4, 0.0  ;;  %vm1249_vm0 = vcmp.ge.f32.partialorder %v1233_v5, 0.0  ;;  %vm1250_vm1 = vcmp.ge.f32.partialorder %v1234_v61, 0.0 }
 0x24a   :  { %3120 = vst [vmem:[#allocation19_spill] sm:$0xff] %v2688_v14  ;;  %vm1251_vm2 = vcmp.ge.f32.partialorder %v1235_v7, 0.0  ;;  %vm1252_vm4 = vcmp.ge.f32.partialorder %v1236_v8, 0.0  ;;  %vm1253_vm5 = vcmp.ge.f32.partialorder %v1237_v9, 0.0  ;;  %v3100_v16 = vmov -1.0  }
 0x24b   :  { %v2691_v50 = vsel %vm1244_vm11, 1.0, %v3100_v16  ;;  %v2693_v24 = vand.u32 2147483647, %v1228_v55  ;;  %v2696_v51 = vsel %vm1245_vm12, 1.0, %v3100_v16  ;;  %v2699_v52 = vsel %vm1246_vm13, 1.0, %v3100_v16 }
 0x24c   :  { %v2702_v17 = vsel %vm1247_vm14, 1.0, %v3100_v16  ;;  %v2704_v59 = vand.u32 2147483647, %v1229_v62  ;;  %v2707_v13 = vsel %vm1248_vm15, 1.0, %v3100_v16  ;;  %v2710_v1 = vsel %vm1249_vm0, 1.0, %v3100_v16 }
 0x24d   :  { %3121 = vst [vmem:[#allocation20_spill] sm:$0xff] %v2707_v13  ;;  %3122 = vst [vmem:[#allocation21_spill] sm:$0xff] %v2710_v1  ;;  %v2712_v58 = vand.u32 2147483647, %v1230_v63  ;;  %v2714_v40 = vand.u32 2147483647, %v1231_v0 }
 0x24e   :  { %vm1254_vm6 = vcmp.ge.f32.partialorder %v2674_v49, 0.0  ;;  %v2717_v25 = vand.u32 2147483647, %v1232_v4  ;;  %v2719_v11 = vand.u32 2147483647, %v1233_v5  ;;  %vm1255_vm7 = vcmp.ge.f32.partialorder %v2676_v2, 0.0 }
 0x24f   :  { %v2721_v15 = vand.u32 2147483647, %v1234_v61  ;;  %v2724_v18 = vand.u32 2147483647, %v1235_v7  ;;  %v2726_v19 = vand.u32 2147483647, %v1236_v8 }
 0x250   :  { %v1292_v60 = vmul.f32 0.3275911, %v2693_v24  ;;  %v2729_v22 = vand.u32 2147483647, %v1237_v9  ;;  %v2732_v41 = vand.u32 2147483647, %v2674_v49 }
 0x251   :  { %v1293_v6 = vmul.f32 0.3275911, %v2704_v59  ;;  %v2736_v23 = vand.u32 2147483647, %v2676_v2  ;;  %v2739_v34 = vand.u32 2147483647, %v2678_v31 }
 0x252   :  { %v1294_v35 = vmul.f32 0.3275911, %v2712_v58  ;;  %v2743_v10 = vand.u32 2147483647, %v2682_v12  ;;  %v2746_v37 = vand.u32 2147483647, %v2685_v54 }
 0x253   :  { %v1295_v21 = vmul.f32 0.3275911, %v2714_v40  ;;  %v2751_v38 = vsel %vm1250_vm1, 1.0, %v3100_v16  ;;  %v2754_v39 = vand.u32 2147483647, %v2688_v14  ;;  %v1308_v33 = vadd.f32 1.0, %v1292_v60 }
 0x254   :  { %3123 = vst [vmem:[#allocation22_spill] sm:$0xff] %v2751_v38  ;;  %v1296_v42 = vmul.f32 0.3275911, %v2717_v25  ;;  %v2759_v28 = vsel %vm1251_vm2, 1.0, %v3100_v16  ;;  %v1297_v43 = vmul.f32 0.3275911, %v2719_v11 }
 0x255   :  { %3124 = vst [vmem:[#allocation23_spill] sm:$0xff] %v2759_v28  ;;  %v1298_v55 = vmul.f32 0.3275911, %v2721_v15  ;;  %v1309_v62 = vadd.f32 1.0, %v1293_v6  ;;  %v2765_v63 = vsel %vm1252_vm4, 1.0, %v3100_v16  ;;  %v1310_v5 = vadd.f32 1.0, %v1294_v35 }
 0x256   :  { %3125 = vst [vmem:[#allocation24_spill] sm:$0xff] %v2765_v63  ;;  %v1299_v0 = vmul.f32 0.3275911, %v2724_v18  ;;  %v1300_v4 = vmul.f32 0.3275911, %v2726_v19  ;;  %v2771_v61 = vsel %vm1253_vm5, 1.0, %v3100_v16  ;;  %2037 = vrcp.f32 %v1308_v33 }
 0x257   :  { %3126 = vst [vmem:[#allocation25_spill] sm:$0xff] %v2771_v61  ;;  %v1301_v7 = vmul.f32 0.3275911, %v2729_v22  ;;  %v1302_v60 = vmul.f32 0.3275911, %v2732_v41  ;;  %v1311_v56 = vadd.f32 1.0, %v1295_v21  ;;  %2039 = vrcp.f32 %v1309_v62 }
 0x258   :  { %v1303_v6 = vmul.f32 0.3275911, %v2736_v23  ;;  %v1304_v8 = vmul.f32 0.3275911, %v2739_v34  ;;  %v1312_v3 = vadd.f32 1.0, %v1296_v42  ;;  %v1313_v35 = vadd.f32 1.0, %v1297_v43 }
 0x259   :  { %v1305_v53 = vmul.f32 0.3275911, %v2743_v10  ;;  %v1306_v57 = vmul.f32 0.3275911, %v2746_v37  ;;  %v2782_v9 = vsel %vm1254_vm6, 1.0, %v3100_v16  ;;  %v1314_v21 = vadd.f32 1.0, %v1298_v55 }
 0x25a   :  { %3127 = vst [vmem:[#allocation26_spill] sm:$0xff] %v2782_v9  ;;  %v1307_v26 = vmul.f32 0.3275911, %v2754_v39  ;;  %2041 = vrcp.f32 %v1310_v5  ;;  %v2788_v42 = vsel %vm1255_vm7, 1.0, %v3100_v16  ;;  %v1315_v33 = vadd.f32 1.0, %v1299_v0 }
 0x25b   :  { %3128 = vst [vmem:[#allocation27_spill] sm:$0xff] %v2788_v42  ;;  %v1316_v32 = vadd.f32 1.0, %v1300_v4  ;;  %2043 = vrcp.f32 %v1311_v56  ;;  %v1317_v48 = vadd.f32 1.0, %v1301_v7  ;;  %v1318_v43 = vadd.f32 1.0, %v1302_v60 }
 0x25c   :  { %v1319_v62 = vadd.f32 1.0, %v1303_v6  ;;  %2045 = vrcp.f32 %v1312_v3  ;;  %v1320_v30 = vadd.f32 1.0, %v1304_v8  ;;  %v1321_v49 = vadd.f32 1.0, %v1305_v53 }
 0x25d   :  { %v1322_v27 = vadd.f32 1.0, %v1306_v57  ;;  %2047 = vrcp.f32 %v1313_v35  ;;  %v1323_v29 = vadd.f32 1.0, %v1307_v26  ;;  %v1484_v55 = vsub.f32 0.0, %v2693_v24 }
 0x25e   :  { %2049 = vrcp.f32 %v1314_v21  ;;  %v1485_v5 = vsub.f32 0.0, %v2704_v59  ;;  %v1486_v2 = vsub.f32 0.0, %v2712_v58  ;;  %v1487_v0 = vsub.f32 0.0, %v2714_v40 }
 0x25f   :  { %2051 = vrcp.f32 %v1315_v33  ;;  %v1488_v56 = vsub.f32 0.0, %v2717_v25  ;;  %v1489_v3 = vsub.f32 0.0, %v2719_v11  ;;  %v1490_v53 = vsub.f32 0.0, %v2721_v15 }
 0x260   :  { %2053 = vrcp.f32 %v1316_v32  ;;  %v1491_v57 = vsub.f32 0.0, %v2724_v18  ;;  %v1492_v26 = vsub.f32 0.0, %v2726_v19  ;;  %v1493_v4 = vsub.f32 0.0, %v2729_v22 }
 0x261   :  { %2055 = vrcp.f32 %v1317_v48  ;;  %v1494_v7 = vsub.f32 0.0, %v2732_v41  ;;  %v1495_v60 = vsub.f32 0.0, %v2736_v23  ;;  %v1496_v6 = vsub.f32 0.0, %v2739_v34 }
 0x262   :  { %2057 = vrcp.f32 %v1318_v43  ;;  %v1497_v32 = vsub.f32 0.0, %v2743_v10  ;;  %v1498_v8 = vsub.f32 0.0, %v2746_v37  ;;  %v1499_v35 = vsub.f32 0.0, %v2754_v39 }
 0x263   :  { %2059 = vrcp.f32 %v1319_v62  ;;  %v1500_v48 = vmul.f32 %v1484_v55, %v2693_v24  ;;  %v1501_v21 = vmul.f32 %v1485_v5, %v2704_v59  ;;  %v1502_v33 = vmul.f32 %v1486_v2, %v2712_v58  ;;  %v2810_v16 = vpop.eup %2037 }
 0x264   :  { %2061 = vrcp.f32 %v1320_v30  ;;  %v1503_v43 = vmul.f32 %v1487_v0, %v2714_v40  ;;  %v1504_v42 = vmul.f32 %v1488_v56, %v2717_v25  ;;  %v1505_v62 = vmul.f32 %v1489_v3, %v2719_v11  ;;  %v2815_v61 = vpop.eup %2039 }
 0x265   :  { %2063 = vrcp.f32 %v1321_v49  ;;  %v1506_v9 = vmul.f32 %v1490_v53, %v2721_v15  ;;  %v1340_v30 = vmul.f32 1.0614054, %v2810_v16  ;;  %v1507_v24 = vmul.f32 %v1491_v57, %v2724_v18 }
 0x266   :  { %2065 = vrcp.f32 %v1322_v27  ;;  %v1508_v59 = vmul.f32 %v1492_v26, %v2726_v19  ;;  %v1509_v40 = vmul.f32 %v1493_v4, %v2729_v22  ;;  %v1510_v25 = vmul.f32 %v1494_v7, %v2732_v41 }
 0x267   :  { %v2820_v58 = vpop.eup %2041  ;;  %2067 = vrcp.f32 %v1323_v29  ;;  %v1516_v49 = vmul.f32 1.442695, %v1500_v48  ;;  %v1341_v15 = vmul.f32 1.0614054, %v2815_v61  ;;  %v1511_v27 = vmul.f32 %v1495_v60, %v2736_v23 }
 0x268   :  { %v2824_v11 = vpop.eup %2043  ;;  %v1518_v55 = vmul.f32 1.442695, %v1501_v21  ;;  %v2828_v5 = vmul.f32 1.442695, %v1502_v33  ;;  %v1342_v19 = vmul.f32 1.0614054, %v2820_v58  ;;  %v1512_v29 = vmul.f32 %v1496_v6, %v2739_v34 }
 0x269   :  { %v2830_v18 = vpop.eup %2045  ;;  %v2834_v2 = vmul.f32 1.442695, %v1503_v43  ;;  %v2836_v22 = vmul.f32 1.442695, %v1504_v42  ;;  %v1343_v0 = vmul.f32 1.0614054, %v2824_v11  ;;  %v1513_v23 = vmul.f32 %v1497_v32, %v2743_v10 }
 0x26a   :  { %v2838_v41 = vpop.eup %2047  ;;  %v1356_v56 = vadd.f32 -1.4531521, %v1340_v30  ;;  %v2842_v3 = vmul.f32 1.442695, %v1505_v62  ;;  %v1514_v57 = vmul.f32 %v1498_v8, %v2746_v37  ;;  %v2847_v26 = vmul.f32 1.442695, %v1506_v9 }
 0x26b   :  { %v2844_v53 = vpop.eup %2049  ;;  %v2849_v34 = vmul.f32 1.442695, %v1507_v24  ;;  %v2851_v4 = vmul.f32 1.442695, %v1508_v59  ;;  %v1357_v7 = vadd.f32 -1.4531521, %v1341_v15  ;;  %v1515_v60 = vmul.f32 %v1499_v35, %v2754_v39 }
 0x26c   :  { %v2853_v42 = vpop.eup %2051  ;;  %v2856_v6 = vmul.f32 1.442695, %v1509_v40  ;;  %v2858_v10 = vmul.f32 1.442695, %v1510_v25  ;;  %v1344_v48 = vmul.f32 1.0614054, %v2830_v18  ;;  %v1372_v39 = vmul.f32 %v2810_v16, %v1356_v56 }
 0x26d   :  { %v2860_v32 = vpop.eup %2053  ;;  %v1358_v37 = vadd.f32 -1.4531521, %v1342_v19  ;;  %v2863_v9 = vmul.f32 1.442695, %v1511_v27  ;;  %v1345_v21 = vmul.f32 1.0614054, %v2838_v41  ;;  %v1373_v25 = vmul.f32 %v2815_v61, %v1357_v7 }
 0x26e   :  { %v2865_v8 = vpop.eup %2055  ;;  %v1346_v33 = vmul.f32 1.0614054, %v2844_v53  ;;  %v1359_v43 = vadd.f32 -1.4531521, %v1343_v0  ;;  %v1347_v62 = vmul.f32 1.0614054, %v2853_v42  ;;  %2069 = vpow2.f32 %v1516_v49 }
 0x26f   :  { %v2870_v35 = vpop.eup %2057  ;;  %v2873_v30 = vmul.f32 1.442695, %v1512_v29  ;;  %v2875_v24 = vmul.f32 1.442695, %v1513_v23  ;;  %v1348_v40 = vmul.f32 1.0614054, %v2860_v32  ;;  %v1374_v23 = vmul.f32 %v2820_v58, %v1358_v37 }
 0x270   :  { %v2877_v59 = vpop.eup %2059  ;;  %v2881_v15 = vmul.f32 1.442695, %v1514_v57  ;;  %v2883_v27 = vmul.f32 1.442695, %v1515_v60  ;;  %v1349_v0 = vmul.f32 1.0614054, %v2865_v8  ;;  %v1375_v47 = vmul.f32 %v2824_v11, %v1359_v43 }
 0x271   :  { %3129 = vst [vmem:[#allocation28_spill] sm:$0xff] %v2873_v30  ;;  %3130 = vst [vmem:[#allocation29_spill] sm:$0xff] %v2875_v24  ;;  %v2885_v19 = vpop.eup %2061  ;;  %v1350_v56 = vmul.f32 1.0614054, %v2870_v35  ;;  %v1360_v29 = vadd.f32 -1.4531521, %v1344_v48  ;;  %2071 = vpow2.f32 %v1518_v55 }
 0x272   :  { %3131 = vst [vmem:[#allocation30_spill] sm:$0xff] %v2881_v15  ;;  %3132 = vst [vmem:[#allocation31_spill] sm:$0xff] %v2883_v27  ;;  %v2890_v63 = vpop.eup %2063  ;;  %v1361_v28 = vadd.f32 -1.4531521, %v1345_v21  ;;  %v1362_v38 = vadd.f32 -1.4531521, %v1346_v33  ;;  %2073 = vpow2.f32 %v2828_v5 }
 0x273   :  { %v1388_v7 = vadd.f32 1.4214138, %v1372_v39  ;;  %v2893_v57 = vpop.eup %2065  ;;  %v1351_v60 = vmul.f32 1.0614054, %v2877_v59  ;;  %v1352_v46 = vmul.f32 1.0614054, %v2885_v19  ;;  %v1376_v39 = vmul.f32 %v2830_v18, %v1360_v29 }
 0x274   :  { %v1363_v1 = vadd.f32 -1.4531521, %v1347_v62  ;;  %v2897_v20 = vpop.eup %2067  ;;  %v1353_v48 = vmul.f32 1.0614054, %v2890_v63  ;;  %v1354_v37 = vmul.f32 1.0614054, %v2893_v57  ;;  %v1377_v45 = vmul.f32 %v2838_v41, %v1361_v28 }
 0x275   :  { %v1364_v13 = vadd.f32 -1.4531521, %v1348_v40  ;;  %v1355_v21 = vmul.f32 1.0614054, %v2897_v20  ;;  %v1365_v33 = vadd.f32 -1.4531521, %v1349_v0  ;;  %v1378_v15 = vmul.f32 %v2844_v53, %v1362_v38 }
 0x276   :  { %v1366_v43 = vadd.f32 -1.4531521, %v1350_v56  ;;  %v1389_v36 = vadd.f32 1.4214138, %v1373_v25  ;;  %v1390_v27 = vadd.f32 1.4214138, %v1374_v23  ;;  %v1379_v24 = vmul.f32 %v2853_v42, %v1363_v1 }
 0x277   :  { %v1391_v62 = vadd.f32 1.4214138, %v1375_v47  ;;  %v1367_v49 = vadd.f32 -1.4531521, %v1351_v60  ;;  %v1368_v44 = vadd.f32 -1.4531521, %v1352_v46  ;;  %v1380_v14 = vmul.f32 %v2860_v32, %v1364_v13 }
 0x278   :  { %v1369_v30 = vadd.f32 -1.4531521, %v1353_v48  ;;  %v1370_v40 = vadd.f32 -1.4531521, %v1354_v37  ;;  %v1371_v55 = vadd.f32 -1.4531521, %v1355_v21  ;;  %v1381_v0 = vmul.f32 %v2865_v8, %v1365_v33 }
 0x279   :  { %v1382_v56 = vmul.f32 %v2870_v35, %v1366_v43  ;;  %v1392_v29 = vadd.f32 1.4214138, %v1376_v39  ;;  %v1404_v28 = vmul.f32 %v2810_v16, %v1388_v7  ;;  %v1393_v25 = vadd.f32 1.4214138, %v1377_v45 }
 0x27a   :  { %v1405_v47 = vmul.f32 %v2815_v61, %v1389_v36  ;;  %v1406_v46 = vmul.f32 %v2820_v58, %v1390_v27  ;;  %v1407_v38 = vmul.f32 %v2824_v11, %v1391_v62  ;;  %v1383_v1 = vmul.f32 %v2877_v59, %v1367_v49 }
 0x27b   :  { %v1384_v23 = vmul.f32 %v2885_v19, %v1368_v44  ;;  %v1394_v60 = vadd.f32 1.4214138, %v1378_v15  ;;  %v1395_v13 = vadd.f32 1.4214138, %v1379_v24  ;;  %v1385_v48 = vmul.f32 %v2890_v63, %v1369_v30  ;;  %v2070_v62 = vpop.eup %2069 }
 0x27c   :  { %v1386_v37 = vmul.f32 %v2893_v57, %v1370_v40  ;;  %v1387_v21 = vmul.f32 %v2897_v20, %v1371_v55  ;;  %v1396_v7 = vadd.f32 1.4214138, %v1380_v14  ;;  %v1397_v45 = vadd.f32 1.4214138, %v1381_v0 }
 0x27d   :  { %v1398_v33 = vadd.f32 1.4214138, %v1382_v56  ;;  %v1420_v36 = vadd.f32 -0.28449672, %v1404_v28  ;;  %v1421_v27 = vadd.f32 -0.28449672, %v1405_v47  ;;  %2075 = vpow2.f32 %v2834_v2 }
 0x27e   :  { %v1422_v43 = vadd.f32 -0.28449672, %v1406_v46  ;;  %v1423_v39 = vadd.f32 -0.28449672, %v1407_v38  ;;  %v1399_v44 = vadd.f32 1.4214138, %v1383_v1  ;;  %v1408_v24 = vmul.f32 %v2830_v18, %v1392_v29  ;;  %v2072_v0 = vpop.eup %2071 }
 0x27f   :  { %v1400_v15 = vadd.f32 1.4214138, %v1384_v23  ;;  %v1409_v30 = vmul.f32 %v2838_v41, %v1393_v25  ;;  %v1401_v49 = vadd.f32 1.4214138, %v1385_v48  ;;  %v1402_v40 = vadd.f32 1.4214138, %v1386_v37 }
 0x280   :  { %v1403_v14 = vadd.f32 1.4214138, %v1387_v21  ;;  %v1410_v55 = vmul.f32 %v2844_v53, %v1394_v60  ;;  %v1411_v5 = vmul.f32 %v2853_v42, %v1395_v13  ;;  %v1412_v56 = vmul.f32 %v2860_v32, %v1396_v7 }
 0x281   :  { %v1413_v28 = vmul.f32 %v2865_v8, %v1397_v45  ;;  %v1436_v2 = vmul.f32 %v2810_v16, %v1420_v36  ;;  %v1414_v47 = vmul.f32 %v2870_v35, %v1398_v33  ;;  %v1437_v29 = vmul.f32 %v2815_v61, %v1421_v27 }
 0x282   :  { %v1438_v25 = vmul.f32 %v2820_v58, %v1422_v43  ;;  %v1439_v46 = vmul.f32 %v2824_v11, %v1423_v39  ;;  %v1415_v38 = vmul.f32 %v2877_v59, %v1399_v44  ;;  %v1416_v1 = vmul.f32 %v2885_v19, %v1400_v15 }
 0x283   :  { %v1424_v23 = vadd.f32 -0.28449672, %v1408_v24  ;;  %v1425_v60 = vadd.f32 -0.28449672, %v1409_v30  ;;  %v1417_v13 = vmul.f32 %v2890_v63, %v1401_v49  ;;  %v1418_v48 = vmul.f32 %v2893_v57, %v1402_v40 }
 0x284   :  { %v1419_v37 = vmul.f32 %v2897_v20, %v1403_v14  ;;  %v1426_v21 = vadd.f32 -0.28449672, %v1410_v55  ;;  %v1427_v7 = vadd.f32 -0.28449672, %v1411_v5  ;;  %v1428_v45 = vadd.f32 -0.28449672, %v1412_v56  ;;  %v2074_v56 = vpop.eup %2073 }
 0x285   :  { %v1452_v33 = vadd.f32 0.2548296, %v1436_v2  ;;  %2077 = vpow2.f32 %v2836_v22  ;;  %v1453_v36 = vadd.f32 0.2548296, %v1437_v29  ;;  %v1454_v27 = vadd.f32 0.2548296, %v1438_v25 }
 0x286   :  { %v1455_v43 = vadd.f32 0.2548296, %v1439_v46  ;;  %2079 = vpow2.f32 %v2842_v3  ;;  %v1429_v39 = vadd.f32 -0.28449672, %v1413_v28  ;;  %v1430_v44 = vadd.f32 -0.28449672, %v1414_v47 }
 0x287   :  { %v1440_v15 = vmul.f32 %v2830_v18, %v1424_v23  ;;  %v1441_v24 = vmul.f32 %v2838_v41, %v1425_v60  ;;  %v1431_v30 = vadd.f32 -0.28449672, %v1415_v38  ;;  %v1432_v49 = vadd.f32 -0.28449672, %v1416_v1 }
 0x288   :  { %v1433_v40 = vadd.f32 -0.28449672, %v1417_v13  ;;  %v1434_v14 = vadd.f32 -0.28449672, %v1418_v48  ;;  %v2940_v55 = vadd.f32 -0.28449672, %v1419_v37  ;;  %v1442_v5 = vmul.f32 %v2844_v53, %v1426_v21 }
 0x289   :  { %v1468_v22 = vmul.f32 %v2810_v16, %v1452_v33  ;;  %v1443_v2 = vmul.f32 %v2853_v42, %v1427_v7  ;;  %v1469_v3 = vmul.f32 %v2815_v61, %v1453_v36  ;;  %v1470_v28 = vmul.f32 %v2820_v58, %v1454_v27 }
 0x28a   :  { %v1471_v47 = vmul.f32 %v2824_v11, %v1455_v43  ;;  %v2076_v29 = vpop.eup %2075  ;;  %v1444_v25 = vmul.f32 %v2860_v32, %v1428_v45  ;;  %v1445_v46 = vmul.f32 %v2865_v8, %v1429_v39  ;;  %v1456_v38 = vadd.f32 0.2548296, %v1440_v15  ;;  %v3133_v39 = vld [vmem:[#allocation19_spill] sm:$0xff]  ;;  %v3134_v15 = vld [vmem:[#allocation28_spill] sm:$0xff] }
 0x28b   :  { %v1457_v1 = vadd.f32 0.2548296, %v1441_v24  ;;  %v1446_v23 = vmul.f32 %v2870_v35, %v1430_v44  ;;  %v1447_v16 = vmul.f32 %v2877_v59, %v1431_v30  ;;  %v1448_v60 = vmul.f32 %v2885_v19, %v1432_v49 }
 0x28c   :  { %v2954_v13 = vmul.f32 %v2890_v63, %v1433_v40  ;;  %v2957_v61 = vmul.f32 %v2893_v57, %v1434_v14  ;;  %v1458_v58 = vadd.f32 0.2548296, %v1442_v5  ;;  %2081 = vpow2.f32 %v2847_v26 }
 0x28d   :  { %v1548_v11 = vmul.f32 %v2070_v62, %v1468_v22  ;;  %vm1256_vm8 = vcmp.ge.f32.partialorder %v2678_v31, 0.0  ;;  %2083 = vpow2.f32 %v2849_v34  ;;  %v1549_v48 = vmul.f32 %v2072_v0, %v1469_v3  ;;  %v3140_v3 = vld [vmem:[#allocation5_spill] sm:$0xff] }
 0x28e   :  { %v1550_v37 = vmul.f32 %v2074_v56, %v1470_v28  ;;  %v1551_v21 = vmul.f32 %v2076_v29, %v1471_v47  ;;  %vm1257_vm9 = vcmp.ge.f32.partialorder %v2682_v12, 0.0  ;;  %v1472_v7 = vmul.f32 %v2830_v18, %v1456_v38  ;;  %v3139_v56 = vld [vmem:[#allocation4_spill] sm:$0xff]  ;;  %v3142_v38 = vld [vmem:[#allocation6_spill] sm:$0xff] }
 0x28f   :  { %v1473_v45 = vmul.f32 %v2838_v41, %v1457_v1  ;;  %2085 = vpow2.f32 %v2851_v4  ;;  %v1564_v33 = vsub.f32 1.0, %v1548_v11  ;;  %v1565_v26 = vsub.f32 1.0, %v1549_v48  ;;  %v3146_v12 = vld [vmem:[#allocation8_spill] sm:$0xff] }
 0x290   :  { %2087 = vpow2.f32 %v2856_v6  ;;  %v1566_v62 = vsub.f32 1.0, %v1550_v37  ;;  %v1567_v36 = vsub.f32 1.0, %v1551_v21  ;;  %v1459_v27 = vadd.f32 0.2548296, %v1443_v2  ;;  %v3143_v21 = vld [vmem:[#allocation21_spill] sm:$0xff] }
 0x291   :  { %v1460_v43 = vadd.f32 0.2548296, %v1444_v25  ;;  %2089 = vpow2.f32 %v2858_v10  ;;  %v1580_v34 = vmul.f32 %v1564_v33, %v2691_v50  ;;  %vm1258_vm10 = vcmp.ge.f32.partialorder %v2685_v54, 0.0  ;;  %v3135_v50 = vld [vmem:[#allocation29_spill] sm:$0xff]  ;;  %v3141_v25 = vld [vmem:[#allocation20_spill] sm:$0xff] }
 0x292   :  { %v2078_v0 = vpop.eup %2077  ;;  %2091 = vpow2.f32 %v2863_v9  ;;  %v1581_v18 = vmul.f32 %v1565_v26, %v2696_v51  ;;  %v1582_v41 = vmul.f32 %v1566_v62, %v2699_v52  ;;  %v1583_v4 = vmul.f32 %v1567_v36, %v2702_v17  ;;  %v3136_v9 = vld [vmem:[#allocation30_spill] sm:$0xff]  ;;  %v3137_v52 = vld [vmem:[#allocation3_spill] sm:$0xff] }
 0x293   :  { %v2080_v6 = vpop.eup %2079  ;;  %vm1259_vm11 = vcmp.ge.f32.partialorder %v3133_v39, 0.0  ;;  %v1461_v44 = vadd.f32 0.2548296, %v1445_v46  ;;  %2093 = vpow2.f32 %v3134_v15  ;;  %v1552_v10 = vmul.f32 %v2078_v0, %v1472_v7  ;;  %v3138_v17 = vld [vmem:[#allocation31_spill] sm:$0xff] }
 0x294   :  { %v1596_v24 = vadd.f32 1.0, %v1580_v34  ;;  %2095 = vpow2.f32 %v3135_v50  ;;  %v1553_v30 = vmul.f32 %v2080_v6, %v1473_v45  ;;  %v1597_v49 = vadd.f32 1.0, %v1581_v18 }
 0x295   :  { %v1598_v40 = vadd.f32 1.0, %v1582_v41  ;;  %2097 = vpow2.f32 %v3136_v9  ;;  %v1568_v51 = vsub.f32 1.0, %v1552_v10  ;;  %v1599_v14 = vadd.f32 1.0, %v1583_v4 }
 0x296   :  { %v1612_v5 = vmul.f32 %v1596_v24, %v3137_v52  ;;  %2099 = vpow2.f32 %v3138_v17  ;;  %v1569_v22 = vsub.f32 1.0, %v1553_v30  ;;  %v1613_v2 = vmul.f32 %v1597_v49, %v3139_v56  ;;  %v3147_v49 = vld [vmem:[#allocation22_spill] sm:$0xff]  ;;  %v3149_v56 = vld [vmem:[#allocation24_spill] sm:$0xff] }
 0x297   :  { %v1614_v28 = vmul.f32 %v1598_v40, %v3140_v3  ;;  %v1462_v47 = vadd.f32 0.2548296, %v1446_v23  ;;  %v1474_v29 = vmul.f32 %v2844_v53, %v1458_v58  ;;  %v1584_v46 = vmul.f32 %v1568_v51, %v3141_v25 }
 0x298   :  { %v1615_v1 = vmul.f32 %v1599_v14, %v3142_v38  ;;  %1628 = vst.msk [vmem:[%s3097_s4] sm:$0xff] %vm771_vm3, %v1612_v5  ;;  %v1451_v11 = vmul.f32 %v2897_v20, %v2940_v55  ;;  %v1463_v48 = vadd.f32 0.2548296, %v1447_v16  ;;  %v1475_v37 = vmul.f32 %v2853_v42, %v1459_v27  ;;  %1629 = vst.msk [vmem:[%s3097_s4 + $0x8] sm:$0xff] %vm771_vm3, %v1613_v2  ;;  %v3145_v27 = vld [vmem:[#allocation7_spill] sm:$0xff] }
 0x299   :  { %v1585_v7 = vmul.f32 %v1569_v22, %v3143_v21  ;;  %1630 = vst.msk [vmem:[%s3097_s4 + $0x10] sm:$0xff] %vm771_vm3, %v1614_v28  ;;  %v3144_v53 = vmov -1.0   ;;  %v1464_v55 = vadd.f32 0.2548296, %v1448_v60  ;;  %v1476_v16 = vmul.f32 %v2860_v32, %v1460_v43  ;;  %v2082_v58 = vpop.eup %2081 }
 0x29a   :  { %v1272_v23 = vsel %vm1256_vm8, 1.0, %v3144_v53  ;;  %v1600_v42 = vadd.f32 1.0, %v1584_v46  ;;  %1631 = vst.msk [vmem:[%s3097_s4 + $0x18] sm:$0xff] %vm771_vm3, %v1615_v1  ;;  %v1273_v45 = vsel %vm1257_vm9, 1.0, %v3144_v53  ;;  %v1465_v33 = vadd.f32 0.2548296, %v2954_v13  ;;  %v2084_v62 = vpop.eup %2083 }
 0x29b   :  { %v1477_v26 = vmul.f32 %v2865_v8, %v1461_v44  ;;  %v1601_v31 = vadd.f32 1.0, %v1585_v7  ;;  %v1466_v60 = vadd.f32 0.2548296, %v2957_v61  ;;  %v1478_v32 = vmul.f32 %v2870_v35, %v1462_v47 }
 0x29c   :  { %v1554_v36 = vmul.f32 %v2082_v58, %v1474_v29  ;;  %v1616_v43 = vmul.f32 %v1600_v42, %v3145_v27  ;;  %v2086_v34 = vpop.eup %2085  ;;  %v1467_v0 = vadd.f32 0.2548296, %v1451_v11  ;;  %v1479_v18 = vmul.f32 %v2877_v59, %v1463_v48  ;;  %v3150_v29 = vld [vmem:[#allocation25_spill] sm:$0xff] }
 0x29d   :  { %v1555_v41 = vmul.f32 %v2084_v62, %v1475_v37  ;;  %v1617_v4 = vmul.f32 %v1601_v31, %v3146_v12  ;;  %v2088_v6 = vpop.eup %2087  ;;  %v1274_v8 = vsel %vm1258_vm10, 1.0, %v3144_v53  ;;  %v1480_v13 = vmul.f32 %v2885_v19, %v1464_v55 }
 0x29e   :  { %v1556_v61 = vmul.f32 %v2086_v34, %v1476_v16  ;;  %v1570_v44 = vsub.f32 1.0, %v1554_v36  ;;  %1632 = vst.msk [vmem:[%s3097_s4 + $0x20] sm:$0xff] %vm771_vm3, %v1616_v43  ;;  %v2090_v35 = vpop.eup %2089  ;;  %v1275_v59 = vsel %vm1259_vm11, 1.0, %v3144_v53  ;;  %v1481_v15 = vmul.f32 %v2890_v63, %v1465_v33  ;;  %v3148_v63 = vld [vmem:[#allocation23_spill] sm:$0xff]  ;;  %v3154_v36 = vld [vmem:[#allocation10_spill] sm:$0xff] }
 0x29f   :  { %v1557_v10 = vmul.f32 %v2088_v6, %v1477_v26  ;;  %v1571_v24 = vsub.f32 1.0, %v1555_v41  ;;  %1633 = vst.msk [vmem:[%s3097_s4 + $0x28] sm:$0xff] %vm771_vm3, %v1617_v4  ;;  %v2092_v54 = vpop.eup %2091  ;;  %v1482_v19 = vmul.f32 %v2893_v57, %v1466_v60  ;;  %v1558_v50 = vmul.f32 %v2090_v35, %v1478_v32  ;;  %v3152_v53 = vld [vmem:[#allocation27_spill] sm:$0xff]  ;;  %v3153_v26 = vld [vmem:[#allocation9_spill] sm:$0xff]  ;;  %v3156_v41 = vld [vmem:[#allocation12_spill] sm:$0xff] }
 0x2a0   :  { %v1572_v30 = vsub.f32 1.0, %v1556_v61  ;;  %v1586_v40 = vmul.f32 %v1570_v44, %v3147_v49  ;;  %v2094_v9 = vpop.eup %2093  ;;  %v1483_v39 = vmul.f32 %v2897_v20, %v1467_v0  ;;  %v1559_v51 = vmul.f32 %v2092_v54, %v1479_v18  ;;  %v3151_v20 = vld [vmem:[#allocation26_spill] sm:$0xff]  ;;  %v3155_v0 = vld [vmem:[#allocation11_spill] sm:$0xff]  ;;  %v3157_v6 = vld [vmem:[#allocation13_spill] sm:$0xff] }
 0x2a1   :  { %v1573_v14 = vsub.f32 1.0, %v1557_v10  ;;  %v1587_v52 = vmul.f32 %v1571_v24, %v3148_v63  ;;  %v2096_v5 = vpop.eup %2095  ;;  %v1560_v17 = vmul.f32 %v2094_v9, %v1480_v13  ;;  %v1574_v22 = vsub.f32 1.0, %v1558_v50  ;;  %v3158_v61 = vld [vmem:[#allocation14_spill] sm:$0xff] }
 0x2a2   :  { %v1588_v2 = vmul.f32 %v1572_v30, %v3149_v56  ;;  %v1602_v3 = vadd.f32 1.0, %v1586_v40  ;;  %v2098_v28 = vpop.eup %2097  ;;  %v1561_v47 = vmul.f32 %v2096_v5, %v1481_v15  ;;  %v1575_v57 = vsub.f32 1.0, %v1559_v51  ;;  %v3160_v15 = vld [vmem:[#allocation15_spill] sm:$0xff] }
 0x2a3   :  { %v1589_v25 = vmul.f32 %v1573_v14, %v3150_v29  ;;  %v1603_v46 = vadd.f32 1.0, %v1587_v52  ;;  %v2100_v38 = vpop.eup %2099  ;;  %v1562_v1 = vmul.f32 %v2098_v28, %v1482_v19  ;;  %v1576_v11 = vsub.f32 1.0, %v1560_v17  ;;  %v3162_v19 = vld [vmem:[#allocation18_spill] sm:$0xff] }
 0x2a4   :  { %v1590_v48 = vmul.f32 %v1574_v22, %v3151_v20  ;;  %v1604_v37 = vadd.f32 1.0, %v1588_v2  ;;  %v1563_v21 = vmul.f32 %v2100_v38, %v1483_v39  ;;  %v1577_v7 = vsub.f32 1.0, %v1561_v47 }
 0x2a5   :  { %v1591_v55 = vmul.f32 %v1575_v57, %v3152_v53  ;;  %v1605_v16 = vadd.f32 1.0, %v1589_v25  ;;  %v1578_v42 = vsub.f32 1.0, %v1562_v1  ;;  %v1592_v58 = vmul.f32 %v1576_v11, %v1272_v23 }
 0x2a6   :  { %v1606_v33 = vadd.f32 1.0, %v1590_v48  ;;  %v1618_v31 = vmul.f32 %v1602_v3, %v3153_v26  ;;  %v1579_v62 = vsub.f32 1.0, %v1563_v21  ;;  %v1593_v60 = vmul.f32 %v1577_v7, %v1273_v45 }
 0x2a7   :  { %v1607_v32 = vadd.f32 1.0, %v1591_v55  ;;  %v1619_v27 = vmul.f32 %v1603_v46, %v3154_v36  ;;  %v1594_v43 = vmul.f32 %v1578_v42, %v1274_v8  ;;  %v1608_v34 = vadd.f32 1.0, %v1592_v58  ;;  %v3159_v8 = vld [vmem:[#allocation16_spill] sm:$0xff] }
 0x2a8   :  { %v1620_v18 = vmul.f32 %v1604_v37, %v3155_v0  ;;  %v1621_v12 = vmul.f32 %v1605_v16, %v3156_v41  ;;  %1634 = vst.msk [vmem:[%s3097_s4 + $0x30] sm:$0xff] %vm771_vm3, %v1618_v31  ;;  %v1595_v23 = vmul.f32 %v1579_v62, %v1275_v59  ;;  %v1609_v4 = vadd.f32 1.0, %v1593_v60  ;;  %v3161_v59 = vld [vmem:[#allocation17_spill] sm:$0xff] }
 0x2a9   :  { %v1622_v13 = vmul.f32 %v1606_v33, %v3157_v6  ;;  %v1623_v45 = vmul.f32 %v1607_v32, %v3158_v61  ;;  %1635 = vst.msk [vmem:[%s3097_s4 + $0x38] sm:$0xff] %vm771_vm3, %v1619_v27  ;;  %v1226_v44 = vmul.f32 0.5, %v3159_v8  ;;  %v1610_v35 = vadd.f32 1.0, %v1594_v43 }
 0x2aa   :  { %v1624_v10 = vmul.f32 %v1608_v34, %v3160_v15  ;;  %1636 = vst.msk [vmem:[%s3097_s4 + $0x40] sm:$0xff] %vm771_vm3, %v1620_v18  ;;  %1637 = vst.msk [vmem:[%s3097_s4 + $0x48] sm:$0xff] %vm771_vm3, %v1621_v12  ;;  %v1227_v24 = vmul.f32 0.5, %v3161_v59  ;;  %v1611_v54 = vadd.f32 1.0, %v1595_v23  ;;  %v1625_v50 = vmul.f32 %v1609_v4, %v3162_v19 }
 0x2ab   :  { %1638 = vst.msk [vmem:[%s3097_s4 + $0x50] sm:$0xff] %vm771_vm3, %v1622_v13  ;;  %1639 = vst.msk [vmem:[%s3097_s4 + $0x58] sm:$0xff] %vm771_vm3, %v1623_v45  ;;  %v1626_v30 = vmul.f32 %v1610_v35, %v1226_v44 }
 0x2ac   :  { %1640 = vst.msk [vmem:[%s3097_s4 + $0x60] sm:$0xff] %vm771_vm3, %v1624_v10  ;;  %v1627_v49 = vmul.f32 %v1611_v54, %v1227_v24  ;;  %1641 = vst.msk [vmem:[%s3097_s4 + $0x68] sm:$0xff] %vm771_vm3, %v1625_v50 }
 0x2ad   :  { %1642 = vst.msk [vmem:[%s3097_s4 + $0x70] sm:$0xff] %vm771_vm3, %v1626_v30 }
 0x2ae   :  { %1643 = vst.msk [vmem:[%s3097_s4 + $0x78] sm:$0xff] %vm771_vm3, %v1627_v49 }

</bundles_post_ra>
